<compile_context>
chip_gen: v5e
topology: v5e:2x2
jax: 0.10.0
libtpu: 0.0.40
codegen_flags: <defaults>
</compile_context>

<pallas_src>
import functools

import jax
import jax.numpy as jnp
from jax import lax
from jax.experimental import pallas as pl
from jax.experimental.pallas import tpu as pltpu


def _round_up(x, m):
    return (x + m - 1) // m * m


def _char_lang_kernel(tok_ref, mask_ref, emb_ref, h0_ref, wih_ref, whh_ref,
                      bih_ref, bhh_ref, woutT_ref, bout_ref,
                      out_ref, hN_ref,
                      buf_ref, gr_ref, gz_ref, gn_ref,
                      *, hidden_size, num_layers, seq_len, batch_pad, vocab):
    """Embedding gather + relu + GRU stack + output projection, all in VMEM.

    tok_ref:   [S*Bp, 1]    int32 tokens, time-major flattened
    mask_ref:  [S*Bp, 1]    f32, 1.0 where t < len[b] else 0.0
    emb_ref:   [V, H]       embedding table
    h0_ref:    [L, Bp, H]   initial hidden state
    wih_ref:   [L, 3, H, H] per-gate input->gate weights (x @ wih[l,g]); gates r,z,n
    whh_ref:   [L, 3, H, H] per-gate hidden->gate weights
    bih_ref:   [L, 3, 1, H] per-gate input biases
    bhh_ref:   [L, 3, 1, H] per-gate hidden biases
    woutT_ref: [H, Op]      output projection (transposed, lane-padded)
    bout_ref:  [1, Op]      output bias (lane-padded)
    out_ref:   [S*Bp, Op]   projected outputs (padded positions == bias)
    hN_ref:    [L, Bp, H]   final hidden per layer
    buf_ref:   [S*Bp, H]    scratch: current layer's (masked) output sequence
    gr/gz/gn:  [S*Bp, H]    scratch: hoisted input->gate pre-activations
    """
    H = hidden_size
    S = seq_len
    Bp = batch_pad
    V = vocab
    N = S * Bp
    f32 = jnp.float32

    # --- fused embedding gather (exact, via one-hot matmul) + relu ----------
    tok = tok_ref[...]                                              # [N,1] int32
    onehot = (tok == lax.broadcasted_iota(jnp.int32, (N, V), 1)).astype(f32)
    x0 = jnp.maximum(
        jnp.dot(onehot, emb_ref[...], preferred_element_type=f32), 0.0)  # [N,H]

    for l in range(num_layers):
        layer_in = x0 if l == 0 else buf_ref[...]

        # Hoisted input->gates matmuls: one big [N,H]x[H,H] MXU call per gate.
        gr_ref[...] = (jnp.dot(layer_in, wih_ref[l, 0], preferred_element_type=f32)
                       + bih_ref[l, 0])
        gz_ref[...] = (jnp.dot(layer_in, wih_ref[l, 1], preferred_element_type=f32)
                       + bih_ref[l, 1])
        gn_ref[...] = (jnp.dot(layer_in, wih_ref[l, 2], preferred_element_type=f32)
                       + bih_ref[l, 2])

        whh_r = whh_ref[l, 0]
        whh_z = whh_ref[l, 1]
        whh_n = whh_ref[l, 2]
        bhh_r = bhh_ref[l, 0]
        bhh_z = bhh_ref[l, 1]
        bhh_n = bhh_ref[l, 2]

        def step(t, h, whh_r=whh_r, whh_z=whh_z, whh_n=whh_n,
                 bhh_r=bhh_r, bhh_z=bhh_z, bhh_n=bhh_n):
            row = pl.multiple_of(t * Bp, Bp)
            sl = pl.ds(row, Bp)
            gir = gr_ref[sl, :]                                     # [Bp,H]
            giz = gz_ref[sl, :]
            gin = gn_ref[sl, :]
            # Only the hidden->gates matmuls stay on the serial critical path.
            ghr = jnp.dot(h, whh_r, preferred_element_type=f32) + bhh_r
            ghz = jnp.dot(h, whh_z, preferred_element_type=f32) + bhh_z
            ghn = jnp.dot(h, whh_n, preferred_element_type=f32) + bhh_n
            r = jax.nn.sigmoid(gir + ghr)
            z = jax.nn.sigmoid(giz + ghz)
            n = jnp.tanh(gin + r * ghn)
            h_new = (1.0 - z) * n + z * h
            m = mask_ref[sl, :]                                     # [Bp,1] in {0,1}
            buf_ref[sl, :] = m * h_new                              # zero-pad output
            return m * h_new + (1.0 - m) * h                        # freeze past len

        h_last = lax.fori_loop(0, S, step, h0_ref[l], unroll=True)
        hN_ref[l] = h_last

    # Final linear on the zero-padded top-layer outputs: one [N,H]x[H,Op] dot.
    out_ref[...] = (jnp.dot(buf_ref[...], woutT_ref[...],
                            preferred_element_type=f32) + bout_ref[...])


def char_lang_model_forward(tokens, hidden0, input_len, params,
                            *, hidden_size, num_layers, output_size):
    """tokens: [B, S] int32, hidden0: [L, B, H], input_len: [B] int32."""
    B, S = tokens.shape
    H = hidden_size
    O = output_size
    L = num_layers
    V = params["emb"].shape[0]

    Bp = _round_up(B, 8)            # sublane-dense batch tile (f32)
    Op = _round_up(O, 128)          # lane-dense output stores
    N = S * Bp

    # --- wrapper plumbing: pad batch, time-major flatten, lane-pad output ---
    tok_p = jnp.zeros((Bp, S), jnp.int32).at[:B].set(tokens.astype(jnp.int32))
    len_p = jnp.zeros((Bp,), jnp.int32).at[:B].set(input_len.astype(jnp.int32))
    h0_p = jnp.zeros((L, Bp, H), jnp.float32).at[:, :B].set(
        hidden0.astype(jnp.float32))

    tok_tm = jnp.transpose(tok_p, (1, 0)).reshape(N, 1)             # [N,1]
    mask = (jnp.arange(S, dtype=jnp.int32)[:, None] < len_p[None, :])
    mask = mask.astype(jnp.float32).reshape(N, 1)                   # [N,1]

    woutT_p = jnp.zeros((H, Op), jnp.float32).at[:, :O].set(params["woutT"])
    bout_p = jnp.zeros((1, Op), jnp.float32).at[0, :O].set(params["bout"])

    kernel = functools.partial(
        _char_lang_kernel, hidden_size=H, num_layers=L, seq_len=S,
        batch_pad=Bp, vocab=V)

    vmem = pl.BlockSpec(memory_space=pltpu.MemorySpace.VMEM)

    # TODO(synk): for long sequences / large batches, stream (S_chunk, B_tile)
    # blocks through a ("parallel", "arbitrary") grid (h carried in scratch)
    # instead of keeping the whole sequence VMEM-resident (v7x: 64 MiB VMEM).
    out2d, h_final = pl.pallas_call(
        kernel,
        out_shape=(
            jax.ShapeDtypeStruct((N, Op), jnp.float32),
            jax.ShapeDtypeStruct((L, Bp, H), jnp.float32),
        ),
        in_specs=[vmem] * 10,
        out_specs=(vmem, vmem),
        scratch_shapes=[pltpu.VMEM((N, H), jnp.float32) for _ in range(4)],
    )(tok_tm, mask, params["emb"], h0_p,
      params["wih"], params["whh"], params["bih"], params["bhh"],
      woutT_p, bout_p)

    out = out2d.reshape(S, Bp, Op)[:, :B, :O]        # [S, B, O]
    output = jnp.transpose(out, (1, 0, 2))           # [B, S, O]
    return output, h_final[:, :B, :]


def ref_forward(tokens, hidden0, input_len, params, *, hidden_size, num_layers):
    """Pure-JAX reference matching PyTorch packed-GRU semantics (eval mode)."""
    B, S = tokens.shape
    x = jnp.maximum(params["emb"][tokens], 0.0)      # [B, S, H]
    hs = []
    for l in range(num_layers):
        h = hidden0[l]
        outs = []
        for t in range(S):
            xt = x[:, t, :]
            gir = xt @ params["wih"][l, 0] + params["bih"][l, 0]
            giz = xt @ params["wih"][l, 1] + params["bih"][l, 1]
            gin = xt @ params["wih"][l, 2] + params["bih"][l, 2]
            ghr = h @ params["whh"][l, 0] + params["bhh"][l, 0]
            ghz = h @ params["whh"][l, 1] + params["bhh"][l, 1]
            ghn = h @ params["whh"][l, 2] + params["bhh"][l, 2]
            r = jax.nn.sigmoid(gir + ghr)
            z = jax.nn.sigmoid(giz + ghz)
            n = jnp.tanh(gin + r * ghn)
            hn = (1.0 - z) * n + z * h
            m = (t < input_len)[:, None]
            h = jnp.where(m, hn, h)
            outs.append(jnp.where(m, hn, 0.0))
        x = jnp.stack(outs, axis=1)
        hs.append(h)
    out = x @ params["woutT"] + params["bout"]
    return out, jnp.stack(hs)


def make_params(key, input_size, hidden_size, output_size, num_layers):
    H = hidden_size
    k = 1.0 / jnp.sqrt(jnp.float32(H))
    keys = jax.random.split(key, 7)
    return {
        "emb": jax.random.normal(keys[0], (input_size, H), jnp.float32),
        # Per-gate, pre-transposed GRU weights [L, 3, H, H], gate order (r, z, n):
        # gate_g(x) = x @ wih[l, g]  (== x @ W_ih_l[gH:(g+1)H, :].T in PyTorch).
        "wih": jax.random.uniform(keys[1], (num_layers, 3, H, H), jnp.float32, -k, k),
        "whh": jax.random.uniform(keys[2], (num_layers, 3, H, H), jnp.float32, -k, k),
        "bih": jax.random.uniform(keys[3], (num_layers, 3, 1, H), jnp.float32, -k, k),
        "bhh": jax.random.uniform(keys[4], (num_layers, 3, 1, H), jnp.float32, -k, k),
        # Linear stored transposed: [H, O]
        "woutT": jax.random.uniform(keys[5], (H, output_size), jnp.float32, -k, k),
        "bout": jax.random.uniform(keys[6], (output_size,), jnp.float32, -k, k),
    }


if __name__ == "__main__":
    INPUT_SIZE = 16     # vocab
    HIDDEN = 32
    OUTPUT = 16
    LAYERS = 3
    B, S = 2, 8

    key = jax.random.PRNGKey(0)
    kp, kt, kh = jax.random.split(key, 3)

    params = make_params(kp, INPUT_SIZE, HIDDEN, OUTPUT, LAYERS)
    tokens = jax.random.randint(kt, (B, S), 0, INPUT_SIZE, dtype=jnp.int32)
    hidden0 = jax.random.normal(kh, (LAYERS, B, HIDDEN), jnp.float32) * 0.1
    input_len = jnp.array([S, 5], dtype=jnp.int32)   # ragged lengths

    out, h_n = char_lang_model_forward(
        tokens, hidden0, input_len, params,
        hidden_size=HIDDEN, num_layers=LAYERS, output_size=OUTPUT)
    jax.block_until_ready((out, h_n))

    ref_out, ref_h = ref_forward(
        tokens, hidden0, input_len, params,
        hidden_size=HIDDEN, num_layers=LAYERS)

    assert out.shape == (B, S, OUTPUT)
    assert h_n.shape == (LAYERS, B, HIDDEN)
    assert jnp.allclose(out, ref_out, atol=1e-4, rtol=1e-4)
    assert jnp.allclose(h_n, ref_h, atol=1e-4, rtol=1e-4)

    print("KERNEL_OK")
</pallas_src>

<mosaic_0001>
module attributes {stable_mosaic.version = 11 : i64} {
  func.func @_char_lang_kernel(%arg0: memref<64x1xi32, #tpu.memory_space<vmem>>, %arg1: memref<64x1xf32, #tpu.memory_space<vmem>>, %arg2: memref<16x32xf32, #tpu.memory_space<vmem>>, %arg3: memref<3x8x32xf32, #tpu.memory_space<vmem>>, %arg4: memref<3x3x32x32xf32, #tpu.memory_space<vmem>>, %arg5: memref<3x3x32x32xf32, #tpu.memory_space<vmem>>, %arg6: memref<3x3x1x32xf32, #tpu.memory_space<vmem>>, %arg7: memref<3x3x1x32xf32, #tpu.memory_space<vmem>>, %arg8: memref<32x128xf32, #tpu.memory_space<vmem>>, %arg9: memref<1x128xf32, #tpu.memory_space<vmem>>, %arg10: memref<64x128xf32, #tpu.memory_space<vmem>>, %arg11: memref<3x8x32xf32, #tpu.memory_space<vmem>>, %arg12: memref<64x32xf32, #tpu.memory_space<vmem>>, %arg13: memref<64x32xf32, #tpu.memory_space<vmem>>, %arg14: memref<64x32xf32, #tpu.memory_space<vmem>>, %arg15: memref<64x32xf32, #tpu.memory_space<vmem>>) attributes {dimension_semantics = [], scalar_prefetch = 0 : i64, scratch_operands = 4 : i64, tpu.core_type = #tpu.core_type<tc>} {
    %c0 = arith.constant 0 : index
    %c0_0 = arith.constant 0 : index
    %0 = vector.load %arg0[%c0, %c0_0] : memref<64x1xi32, #tpu.memory_space<vmem>>, vector<64x1xi32>
    %1 = tpu.iota {dimensions = array<i32: 1>} : vector<64x16xi32>
    %2 = vector.broadcast %0 : vector<64x1xi32> to vector<64x16xi32>
    %3 = arith.cmpi eq, %2, %1 : vector<64x16xi32>
    %4 = arith.extui %3 : vector<64x16xi1> to vector<64x16xi32>
    %5 = arith.sitofp %4 : vector<64x16xi32> to vector<64x16xf32>
    %c0_1 = arith.constant 0 : index
    %c0_2 = arith.constant 0 : index
    %6 = vector.load %arg2[%c0_1, %c0_2] : memref<16x32xf32, #tpu.memory_space<vmem>>, vector<16x32xf32>
    %cst = arith.constant dense<0.000000e+00> : vector<64x32xf32>
    %7 = tpu.matmul %5, %6, %cst {dimension_numbers = #tpu.dot_dimension_numbers<[1], [0], [0], [1], [0, 0, 1, 1], [], []>} : vector<64x16xf32>, vector<16x32xf32>, vector<64x32xf32> -> vector<64x32xf32>
    %cst_3 = arith.constant 0.000000e+00 : f32
    %8 = vector.broadcast %cst_3 : f32 to vector<64x32xf32>
    %9 = arith.maximumf %7, %8 : vector<64x32xf32>
    %c0_4 = arith.constant 0 : index
    %c0_5 = arith.constant 0 : index
    %c0_6 = arith.constant 0 : index
    %c0_7 = arith.constant 0 : index
    %10 = vector.load %arg4[%c0_4, %c0_5, %c0_6, %c0_7] : memref<3x3x32x32xf32, #tpu.memory_space<vmem>>, vector<1x1x32x32xf32>
    %11 = vector.shape_cast %10 : vector<1x1x32x32xf32> to vector<32x32xf32>
    %cst_8 = arith.constant dense<0.000000e+00> : vector<64x32xf32>
    %12 = tpu.matmul %9, %11, %cst_8 {dimension_numbers = #tpu.dot_dimension_numbers<[1], [0], [0], [1], [0, 0, 1, 1], [], []>} : vector<64x32xf32>, vector<32x32xf32>, vector<64x32xf32> -> vector<64x32xf32>
    %c0_9 = arith.constant 0 : index
    %c0_10 = arith.constant 0 : index
    %c0_11 = arith.constant 0 : index
    %c0_12 = arith.constant 0 : index
    %13 = vector.load %arg6[%c0_9, %c0_10, %c0_11, %c0_12] : memref<3x3x1x32xf32, #tpu.memory_space<vmem>>, vector<1x1x1x32xf32>
    %14 = vector.shape_cast %13 : vector<1x1x1x32xf32> to vector<1x32xf32>
    %15 = vector.broadcast %14 : vector<1x32xf32> to vector<64x32xf32>
    %16 = arith.addf %12, %15 : vector<64x32xf32>
    %c0_13 = arith.constant 0 : index
    %c0_14 = arith.constant 0 : index
    %17 = vector.load %arg13[%c0_13, %c0_14] : memref<64x32xf32, #tpu.memory_space<vmem>>, vector<64x32xf32>
    tpu.vector_store %arg13[%c0_13, %c0_14], %16 {strides = array<i32>} : memref<64x32xf32, #tpu.memory_space<vmem>>, vector<64x32xf32>,
    %c0_15 = arith.constant 0 : index
    %c1 = arith.constant 1 : index
    %c0_16 = arith.constant 0 : index
    %c0_17 = arith.constant 0 : index
    %18 = vector.load %arg4[%c0_15, %c1, %c0_16, %c0_17] : memref<3x3x32x32xf32, #tpu.memory_space<vmem>>, vector<1x1x32x32xf32>
    %19 = vector.shape_cast %18 : vector<1x1x32x32xf32> to vector<32x32xf32>
    %cst_18 = arith.constant dense<0.000000e+00> : vector<64x32xf32>
    %20 = tpu.matmul %9, %19, %cst_18 {dimension_numbers = #tpu.dot_dimension_numbers<[1], [0], [0], [1], [0, 0, 1, 1], [], []>} : vector<64x32xf32>, vector<32x32xf32>, vector<64x32xf32> -> vector<64x32xf32>
    %c0_19 = arith.constant 0 : index
    %c1_20 = arith.constant 1 : index
    %c0_21 = arith.constant 0 : index
    %c0_22 = arith.constant 0 : index
    %21 = vector.load %arg6[%c0_19, %c1_20, %c0_21, %c0_22] : memref<3x3x1x32xf32, #tpu.memory_space<vmem>>, vector<1x1x1x32xf32>
    %22 = vector.shape_cast %21 : vector<1x1x1x32xf32> to vector<1x32xf32>
    %23 = vector.broadcast %22 : vector<1x32xf32> to vector<64x32xf32>
    %24 = arith.addf %20, %23 : vector<64x32xf32>
    %c0_23 = arith.constant 0 : index
    %c0_24 = arith.constant 0 : index
    %25 = vector.load %arg14[%c0_23, %c0_24] : memref<64x32xf32, #tpu.memory_space<vmem>>, vector<64x32xf32>
    tpu.vector_store %arg14[%c0_23, %c0_24], %24 {strides = array<i32>} : memref<64x32xf32, #tpu.memory_space<vmem>>, vector<64x32xf32>,
    %c0_25 = arith.constant 0 : index
    %c2 = arith.constant 2 : index
    %c0_26 = arith.constant 0 : index
    %c0_27 = arith.constant 0 : index
    %26 = vector.load %arg4[%c0_25, %c2, %c0_26, %c0_27] : memref<3x3x32x32xf32, #tpu.memory_space<vmem>>, vector<1x1x32x32xf32>
    %27 = vector.shape_cast %26 : vector<1x1x32x32xf32> to vector<32x32xf32>
    %cst_28 = arith.constant dense<0.000000e+00> : vector<64x32xf32>
    %28 = tpu.matmul %9, %27, %cst_28 {dimension_numbers = #tpu.dot_dimension_numbers<[1], [0], [0], [1], [0, 0, 1, 1], [], []>} : vector<64x32xf32>, vector<32x32xf32>, vector<64x32xf32> -> vector<64x32xf32>
    %c0_29 = arith.constant 0 : index
    %c2_30 = arith.constant 2 : index
    %c0_31 = arith.constant 0 : index
    %c0_32 = arith.constant 0 : index
    %29 = vector.load %arg6[%c0_29, %c2_30, %c0_31, %c0_32] : memref<3x3x1x32xf32, #tpu.memory_space<vmem>>, vector<1x1x1x32xf32>
    %30 = vector.shape_cast %29 : vector<1x1x1x32xf32> to vector<1x32xf32>
    %31 = vector.broadcast %30 : vector<1x32xf32> to vector<64x32xf32>
    %32 = arith.addf %28, %31 : vector<64x32xf32>
    %c0_33 = arith.constant 0 : index
    %c0_34 = arith.constant 0 : index
    %33 = vector.load %arg15[%c0_33, %c0_34] : memref<64x32xf32, #tpu.memory_space<vmem>>, vector<64x32xf32>
    tpu.vector_store %arg15[%c0_33, %c0_34], %32 {strides = array<i32>} : memref<64x32xf32, #tpu.memory_space<vmem>>, vector<64x32xf32>,
    %c0_35 = arith.constant 0 : index
    %c0_36 = arith.constant 0 : index
    %c0_37 = arith.constant 0 : index
    %c0_38 = arith.constant 0 : index
    %34 = vector.load %arg5[%c0_35, %c0_36, %c0_37, %c0_38] : memref<3x3x32x32xf32, #tpu.memory_space<vmem>>, vector<1x1x32x32xf32>
    %35 = vector.shape_cast %34 : vector<1x1x32x32xf32> to vector<32x32xf32>
    %c0_39 = arith.constant 0 : index
    %c1_40 = arith.constant 1 : index
    %c0_41 = arith.constant 0 : index
    %c0_42 = arith.constant 0 : index
    %36 = vector.load %arg5[%c0_39, %c1_40, %c0_41, %c0_42] : memref<3x3x32x32xf32, #tpu.memory_space<vmem>>, vector<1x1x32x32xf32>
    %37 = vector.shape_cast %36 : vector<1x1x32x32xf32> to vector<32x32xf32>
    %c0_43 = arith.constant 0 : index
    %c2_44 = arith.constant 2 : index
    %c0_45 = arith.constant 0 : index
    %c0_46 = arith.constant 0 : index
    %38 = vector.load %arg5[%c0_43, %c2_44, %c0_45, %c0_46] : memref<3x3x32x32xf32, #tpu.memory_space<vmem>>, vector<1x1x32x32xf32>
    %39 = vector.shape_cast %38 : vector<1x1x32x32xf32> to vector<32x32xf32>
    %c0_47 = arith.constant 0 : index
    %c0_48 = arith.constant 0 : index
    %c0_49 = arith.constant 0 : index
    %c0_50 = arith.constant 0 : index
    %40 = vector.load %arg7[%c0_47, %c0_48, %c0_49, %c0_50] : memref<3x3x1x32xf32, #tpu.memory_space<vmem>>, vector<1x1x1x32xf32>
    %41 = vector.shape_cast %40 : vector<1x1x1x32xf32> to vector<1x32xf32>
    %c0_51 = arith.constant 0 : index
    %c1_52 = arith.constant 1 : index
    %c0_53 = arith.constant 0 : index
    %c0_54 = arith.constant 0 : index
    %42 = vector.load %arg7[%c0_51, %c1_52, %c0_53, %c0_54] : memref<3x3x1x32xf32, #tpu.memory_space<vmem>>, vector<1x1x1x32xf32>
    %43 = vector.shape_cast %42 : vector<1x1x1x32xf32> to vector<1x32xf32>
    %c0_55 = arith.constant 0 : index
    %c2_56 = arith.constant 2 : index
    %c0_57 = arith.constant 0 : index
    %c0_58 = arith.constant 0 : index
    %44 = vector.load %arg7[%c0_55, %c2_56, %c0_57, %c0_58] : memref<3x3x1x32xf32, #tpu.memory_space<vmem>>, vector<1x1x1x32xf32>
    %45 = vector.shape_cast %44 : vector<1x1x1x32xf32> to vector<1x32xf32>
    %c0_59 = arith.constant 0 : index
    %c0_60 = arith.constant 0 : index
    %c0_61 = arith.constant 0 : index
    %46 = vector.load %arg3[%c0_59, %c0_60, %c0_61] : memref<3x8x32xf32, #tpu.memory_space<vmem>>, vector<1x8x32xf32>
    %47 = vector.shape_cast %46 : vector<1x8x32xf32> to vector<8x32xf32>
    %c0_i32 = arith.constant 0 : i32
    %c8_i32 = arith.constant 8 : i32
    %48 = arith.muli %c0_i32, %c8_i32 : i32
    %49 = tpu.assume_multiple %48, 8 : i32
    %50 = arith.index_cast %49 : i32 to index
    %c0_62 = arith.constant 0 : index
    %51 = vector.load %arg13[%50, %c0_62] : memref<64x32xf32, #tpu.memory_space<vmem>>, vector<8x32xf32>
    %52 = arith.index_cast %49 : i32 to index
    %c0_63 = arith.constant 0 : index
    %53 = vector.load %arg14[%52, %c0_63] : memref<64x32xf32, #tpu.memory_space<vmem>>, vector<8x32xf32>
    %54 = arith.index_cast %49 : i32 to index
    %c0_64 = arith.constant 0 : index
    %55 = vector.load %arg15[%54, %c0_64] : memref<64x32xf32, #tpu.memory_space<vmem>>, vector<8x32xf32>
    %cst_65 = arith.constant dense<0.000000e+00> : vector<8x32xf32>
    %56 = tpu.matmul %47, %35, %cst_65 {dimension_numbers = #tpu.dot_dimension_numbers<[1], [0], [0], [1], [0, 0, 1, 1], [], []>} : vector<8x32xf32>, vector<32x32xf32>, vector<8x32xf32> -> vector<8x32xf32>
    %57 = vector.broadcast %41 : vector<1x32xf32> to vector<8x32xf32>
    %58 = arith.addf %56, %57 : vector<8x32xf32>
    %cst_66 = arith.constant dense<0.000000e+00> : vector<8x32xf32>
    %59 = tpu.matmul %47, %37, %cst_66 {dimension_numbers = #tpu.dot_dimension_numbers<[1], [0], [0], [1], [0, 0, 1, 1], [], []>} : vector<8x32xf32>, vector<32x32xf32>, vector<8x32xf32> -> vector<8x32xf32>
    %60 = vector.broadcast %43 : vector<1x32xf32> to vector<8x32xf32>
    %61 = arith.addf %59, %60 : vector<8x32xf32>
    %cst_67 = arith.constant dense<0.000000e+00> : vector<8x32xf32>
    %62 = tpu.matmul %47, %39, %cst_67 {dimension_numbers = #tpu.dot_dimension_numbers<[1], [0], [0], [1], [0, 0, 1, 1], [], []>} : vector<8x32xf32>, vector<32x32xf32>, vector<8x32xf32> -> vector<8x32xf32>
    %63 = vector.broadcast %45 : vector<1x32xf32> to vector<8x32xf32>
    %64 = arith.addf %62, %63 : vector<8x32xf32>
    %65 = arith.addf %51, %58 : vector<8x32xf32>
    %66 = arith.negf %65 : vector<8x32xf32>
    %67 = math.exp %66 : vector<8x32xf32>
    %cst_68 = arith.constant 1.000000e+00 : f32
    %68 = vector.broadcast %cst_68 : f32 to vector<8x32xf32>
    %69 = arith.addf %68, %67 : vector<8x32xf32>
    %70 = arith.divf %68, %69 : vector<8x32xf32>
    %71 = arith.addf %53, %61 : vector<8x32xf32>
    %72 = arith.negf %71 : vector<8x32xf32>
    %73 = math.exp %72 : vector<8x32xf32>
    %cst_69 = arith.constant 1.000000e+00 : f32
    %74 = vector.broadcast %cst_69 : f32 to vector<8x32xf32>
    %75 = arith.addf %74, %73 : vector<8x32xf32>
    %76 = arith.divf %74, %75 : vector<8x32xf32>
    %77 = arith.mulf %70, %64 : vector<8x32xf32>
    %78 = arith.addf %55, %77 : vector<8x32xf32>
    %79 = math.tanh %78 : vector<8x32xf32>
    %cst_70 = arith.constant 1.000000e+00 : f32
    %80 = vector.broadcast %cst_70 : f32 to vector<8x32xf32>
    %81 = arith.subf %80, %76 : vector<8x32xf32>
    %82 = arith.mulf %81, %79 : vector<8x32xf32>
    %83 = arith.mulf %76, %47 : vector<8x32xf32>
    %84 = arith.addf %82, %83 : vector<8x32xf32>
    %85 = arith.index_cast %49 : i32 to index
    %c0_71 = arith.constant 0 : index
    %86 = vector.load %arg1[%85, %c0_71] : memref<64x1xf32, #tpu.memory_space<vmem>>, vector<8x1xf32>
    %87 = vector.broadcast %86 : vector<8x1xf32> to vector<8x32xf32>
    %88 = arith.mulf %87, %84 : vector<8x32xf32>
    %89 = arith.index_cast %49 : i32 to index
    %c0_72 = arith.constant 0 : index
    %90 = vector.load %arg12[%89, %c0_72] : memref<64x32xf32, #tpu.memory_space<vmem>>, vector<8x32xf32>
    tpu.vector_store %arg12[%89, %c0_72], %88 {strides = array<i32>} : memref<64x32xf32, #tpu.memory_space<vmem>>, vector<8x32xf32>,
    %91 = vector.broadcast %86 : vector<8x1xf32> to vector<8x32xf32>
    %92 = arith.mulf %91, %84 : vector<8x32xf32>
    %cst_73 = arith.constant 1.000000e+00 : f32
    %93 = vector.broadcast %cst_73 : f32 to vector<8x1xf32>
    %94 = arith.subf %93, %86 : vector<8x1xf32>
    %95 = vector.broadcast %94 : vector<8x1xf32> to vector<8x32xf32>
    %96 = arith.mulf %95, %47 : vector<8x32xf32>
    %97 = arith.addf %92, %96 : vector<8x32xf32>
    %c1_i32 = arith.constant 1 : i32
    %c8_i32_74 = arith.constant 8 : i32
    %98 = arith.muli %c1_i32, %c8_i32_74 : i32
    %99 = tpu.assume_multiple %98, 8 : i32
    %100 = arith.index_cast %99 : i32 to index
    %c0_75 = arith.constant 0 : index
    %101 = vector.load %arg13[%100, %c0_75] : memref<64x32xf32, #tpu.memory_space<vmem>>, vector<8x32xf32>
    %102 = arith.index_cast %99 : i32 to index
    %c0_76 = arith.constant 0 : index
    %103 = vector.load %arg14[%102, %c0_76] : memref<64x32xf32, #tpu.memory_space<vmem>>, vector<8x32xf32>
    %104 = arith.index_cast %99 : i32 to index
    %c0_77 = arith.constant 0 : index
    %105 = vector.load %arg15[%104, %c0_77] : memref<64x32xf32, #tpu.memory_space<vmem>>, vector<8x32xf32>
    %cst_78 = arith.constant dense<0.000000e+00> : vector<8x32xf32>
    %106 = tpu.matmul %97, %35, %cst_78 {dimension_numbers = #tpu.dot_dimension_numbers<[1], [0], [0], [1], [0, 0, 1, 1], [], []>} : vector<8x32xf32>, vector<32x32xf32>, vector<8x32xf32> -> vector<8x32xf32>
    %107 = vector.broadcast %41 : vector<1x32xf32> to vector<8x32xf32>
    %108 = arith.addf %106, %107 : vector<8x32xf32>
    %cst_79 = arith.constant dense<0.000000e+00> : vector<8x32xf32>
    %109 = tpu.matmul %97, %37, %cst_79 {dimension_numbers = #tpu.dot_dimension_numbers<[1], [0], [0], [1], [0, 0, 1, 1], [], []>} : vector<8x32xf32>, vector<32x32xf32>, vector<8x32xf32> -> vector<8x32xf32>
    %110 = vector.broadcast %43 : vector<1x32xf32> to vector<8x32xf32>
    %111 = arith.addf %109, %110 : vector<8x32xf32>
    %cst_80 = arith.constant dense<0.000000e+00> : vector<8x32xf32>
    %112 = tpu.matmul %97, %39, %cst_80 {dimension_numbers = #tpu.dot_dimension_numbers<[1], [0], [0], [1], [0, 0, 1, 1], [], []>} : vector<8x32xf32>, vector<32x32xf32>, vector<8x32xf32> -> vector<8x32xf32>
    %113 = vector.broadcast %45 : vector<1x32xf32> to vector<8x32xf32>
    %114 = arith.addf %112, %113 : vector<8x32xf32>
    %115 = arith.addf %101, %108 : vector<8x32xf32>
    %116 = arith.negf %115 : vector<8x32xf32>
    %117 = math.exp %116 : vector<8x32xf32>
    %cst_81 = arith.constant 1.000000e+00 : f32
    %118 = vector.broadcast %cst_81 : f32 to vector<8x32xf32>
    %119 = arith.addf %118, %117 : vector<8x32xf32>
    %120 = arith.divf %118, %119 : vector<8x32xf32>
    %121 = arith.addf %103, %111 : vector<8x32xf32>
    %122 = arith.negf %121 : vector<8x32xf32>
    %123 = math.exp %122 : vector<8x32xf32>
    %cst_82 = arith.constant 1.000000e+00 : f32
    %124 = vector.broadcast %cst_82 : f32 to vector<8x32xf32>
    %125 = arith.addf %124, %123 : vector<8x32xf32>
    %126 = arith.divf %124, %125 : vector<8x32xf32>
    %127 = arith.mulf %120, %114 : vector<8x32xf32>
    %128 = arith.addf %105, %127 : vector<8x32xf32>
    %129 = math.tanh %128 : vector<8x32xf32>
    %cst_83 = arith.constant 1.000000e+00 : f32
    %130 = vector.broadcast %cst_83 : f32 to vector<8x32xf32>
    %131 = arith.subf %130, %126 : vector<8x32xf32>
    %132 = arith.mulf %131, %129 : vector<8x32xf32>
    %133 = arith.mulf %126, %97 : vector<8x32xf32>
    %134 = arith.addf %132, %133 : vector<8x32xf32>
    %135 = arith.index_cast %99 : i32 to index
    %c0_84 = arith.constant 0 : index
    %136 = vector.load %arg1[%135, %c0_84] : memref<64x1xf32, #tpu.memory_space<vmem>>, vector<8x1xf32>
    %137 = vector.broadcast %136 : vector<8x1xf32> to vector<8x32xf32>
    %138 = arith.mulf %137, %134 : vector<8x32xf32>
    %139 = arith.index_cast %99 : i32 to index
    %c0_85 = arith.constant 0 : index
    %140 = vector.load %arg12[%139, %c0_85] : memref<64x32xf32, #tpu.memory_space<vmem>>, vector<8x32xf32>
    tpu.vector_store %arg12[%139, %c0_85], %138 {strides = array<i32>} : memref<64x32xf32, #tpu.memory_space<vmem>>, vector<8x32xf32>,
    %141 = vector.broadcast %136 : vector<8x1xf32> to vector<8x32xf32>
    %142 = arith.mulf %141, %134 : vector<8x32xf32>
    %cst_86 = arith.constant 1.000000e+00 : f32
    %143 = vector.broadcast %cst_86 : f32 to vector<8x1xf32>
    %144 = arith.subf %143, %136 : vector<8x1xf32>
    %145 = vector.broadcast %144 : vector<8x1xf32> to vector<8x32xf32>
    %146 = arith.mulf %145, %97 : vector<8x32xf32>
    %147 = arith.addf %142, %146 : vector<8x32xf32>
    %c2_i32 = arith.constant 2 : i32
    %c8_i32_87 = arith.constant 8 : i32
    %148 = arith.muli %c2_i32, %c8_i32_87 : i32
    %149 = tpu.assume_multiple %148, 8 : i32
    %150 = arith.index_cast %149 : i32 to index
    %c0_88 = arith.constant 0 : index
    %151 = vector.load %arg13[%150, %c0_88] : memref<64x32xf32, #tpu.memory_space<vmem>>, vector<8x32xf32>
    %152 = arith.index_cast %149 : i32 to index
    %c0_89 = arith.constant 0 : index
    %153 = vector.load %arg14[%152, %c0_89] : memref<64x32xf32, #tpu.memory_space<vmem>>, vector<8x32xf32>
    %154 = arith.index_cast %149 : i32 to index
    %c0_90 = arith.constant 0 : index
    %155 = vector.load %arg15[%154, %c0_90] : memref<64x32xf32, #tpu.memory_space<vmem>>, vector<8x32xf32>
    %cst_91 = arith.constant dense<0.000000e+00> : vector<8x32xf32>
    %156 = tpu.matmul %147, %35, %cst_91 {dimension_numbers = #tpu.dot_dimension_numbers<[1], [0], [0], [1], [0, 0, 1, 1], [], []>} : vector<8x32xf32>, vector<32x32xf32>, vector<8x32xf32> -> vector<8x32xf32>
    %157 = vector.broadcast %41 : vector<1x32xf32> to vector<8x32xf32>
    %158 = arith.addf %156, %157 : vector<8x32xf32>
    %cst_92 = arith.constant dense<0.000000e+00> : vector<8x32xf32>
    %159 = tpu.matmul %147, %37, %cst_92 {dimension_numbers = #tpu.dot_dimension_numbers<[1], [0], [0], [1], [0, 0, 1, 1], [], []>} : vector<8x32xf32>, vector<32x32xf32>, vector<8x32xf32> -> vector<8x32xf32>
    %160 = vector.broadcast %43 : vector<1x32xf32> to vector<8x32xf32>
    %161 = arith.addf %159, %160 : vector<8x32xf32>
    %cst_93 = arith.constant dense<0.000000e+00> : vector<8x32xf32>
    %162 = tpu.matmul %147, %39, %cst_93 {dimension_numbers = #tpu.dot_dimension_numbers<[1], [0], [0], [1], [0, 0, 1, 1], [], []>} : vector<8x32xf32>, vector<32x32xf32>, vector<8x32xf32> -> vector<8x32xf32>
    %163 = vector.broadcast %45 : vector<1x32xf32> to vector<8x32xf32>
    %164 = arith.addf %162, %163 : vector<8x32xf32>
    %165 = arith.addf %151, %158 : vector<8x32xf32>
    %166 = arith.negf %165 : vector<8x32xf32>
    %167 = math.exp %166 : vector<8x32xf32>
    %cst_94 = arith.constant 1.000000e+00 : f32
    %168 = vector.broadcast %cst_94 : f32 to vector<8x32xf32>
    %169 = arith.addf %168, %167 : vector<8x32xf32>
    %170 = arith.divf %168, %169 : vector<8x32xf32>
    %171 = arith.addf %153, %161 : vector<8x32xf32>
    %172 = arith.negf %171 : vector<8x32xf32>
    %173 = math.exp %172 : vector<8x32xf32>
    %cst_95 = arith.constant 1.000000e+00 : f32
    %174 = vector.broadcast %cst_95 : f32 to vector<8x32xf32>
    %175 = arith.addf %174, %173 : vector<8x32xf32>
    %176 = arith.divf %174, %175 : vector<8x32xf32>
    %177 = arith.mulf %170, %164 : vector<8x32xf32>
    %178 = arith.addf %155, %177 : vector<8x32xf32>
    %179 = math.tanh %178 : vector<8x32xf32>
    %cst_96 = arith.constant 1.000000e+00 : f32
    %180 = vector.broadcast %cst_96 : f32 to vector<8x32xf32>
    %181 = arith.subf %180, %176 : vector<8x32xf32>
    %182 = arith.mulf %181, %179 : vector<8x32xf32>
    %183 = arith.mulf %176, %147 : vector<8x32xf32>
    %184 = arith.addf %182, %183 : vector<8x32xf32>
    %185 = arith.index_cast %149 : i32 to index
    %c0_97 = arith.constant 0 : index
    %186 = vector.load %arg1[%185, %c0_97] : memref<64x1xf32, #tpu.memory_space<vmem>>, vector<8x1xf32>
    %187 = vector.broadcast %186 : vector<8x1xf32> to vector<8x32xf32>
    %188 = arith.mulf %187, %184 : vector<8x32xf32>
    %189 = arith.index_cast %149 : i32 to index
    %c0_98 = arith.constant 0 : index
    %190 = vector.load %arg12[%189, %c0_98] : memref<64x32xf32, #tpu.memory_space<vmem>>, vector<8x32xf32>
    tpu.vector_store %arg12[%189, %c0_98], %188 {strides = array<i32>} : memref<64x32xf32, #tpu.memory_space<vmem>>, vector<8x32xf32>,
    %191 = vector.broadcast %186 : vector<8x1xf32> to vector<8x32xf32>
    %192 = arith.mulf %191, %184 : vector<8x32xf32>
    %cst_99 = arith.constant 1.000000e+00 : f32
    %193 = vector.broadcast %cst_99 : f32 to vector<8x1xf32>
    %194 = arith.subf %193, %186 : vector<8x1xf32>
    %195 = vector.broadcast %194 : vector<8x1xf32> to vector<8x32xf32>
    %196 = arith.mulf %195, %147 : vector<8x32xf32>
    %197 = arith.addf %192, %196 : vector<8x32xf32>
    %c3_i32 = arith.constant 3 : i32
    %c8_i32_100 = arith.constant 8 : i32
    %198 = arith.muli %c3_i32, %c8_i32_100 : i32
    %199 = tpu.assume_multiple %198, 8 : i32
    %200 = arith.index_cast %199 : i32 to index
    %c0_101 = arith.constant 0 : index
    %201 = vector.load %arg13[%200, %c0_101] : memref<64x32xf32, #tpu.memory_space<vmem>>, vector<8x32xf32>
    %202 = arith.index_cast %199 : i32 to index
    %c0_102 = arith.constant 0 : index
    %203 = vector.load %arg14[%202, %c0_102] : memref<64x32xf32, #tpu.memory_space<vmem>>, vector<8x32xf32>
    %204 = arith.index_cast %199 : i32 to index
    %c0_103 = arith.constant 0 : index
    %205 = vector.load %arg15[%204, %c0_103] : memref<64x32xf32, #tpu.memory_space<vmem>>, vector<8x32xf32>
    %cst_104 = arith.constant dense<0.000000e+00> : vector<8x32xf32>
    %206 = tpu.matmul %197, %35, %cst_104 {dimension_numbers = #tpu.dot_dimension_numbers<[1], [0], [0], [1], [0, 0, 1, 1], [], []>} : vector<8x32xf32>, vector<32x32xf32>, vector<8x32xf32> -> vector<8x32xf32>
    %207 = vector.broadcast %41 : vector<1x32xf32> to vector<8x32xf32>
    %208 = arith.addf %206, %207 : vector<8x32xf32>
    %cst_105 = arith.constant dense<0.000000e+00> : vector<8x32xf32>
    %209 = tpu.matmul %197, %37, %cst_105 {dimension_numbers = #tpu.dot_dimension_numbers<[1], [0], [0], [1], [0, 0, 1, 1], [], []>} : vector<8x32xf32>, vector<32x32xf32>, vector<8x32xf32> -> vector<8x32xf32>
    %210 = vector.broadcast %43 : vector<1x32xf32> to vector<8x32xf32>
    %211 = arith.addf %209, %210 : vector<8x32xf32>
    %cst_106 = arith.constant dense<0.000000e+00> : vector<8x32xf32>
    %212 = tpu.matmul %197, %39, %cst_106 {dimension_numbers = #tpu.dot_dimension_numbers<[1], [0], [0], [1], [0, 0, 1, 1], [], []>} : vector<8x32xf32>, vector<32x32xf32>, vector<8x32xf32> -> vector<8x32xf32>
    %213 = vector.broadcast %45 : vector<1x32xf32> to vector<8x32xf32>
    %214 = arith.addf %212, %213 : vector<8x32xf32>
    %215 = arith.addf %201, %208 : vector<8x32xf32>
    %216 = arith.negf %215 : vector<8x32xf32>
    %217 = math.exp %216 : vector<8x32xf32>
    %cst_107 = arith.constant 1.000000e+00 : f32
    %218 = vector.broadcast %cst_107 : f32 to vector<8x32xf32>
    %219 = arith.addf %218, %217 : vector<8x32xf32>
    %220 = arith.divf %218, %219 : vector<8x32xf32>
    %221 = arith.addf %203, %211 : vector<8x32xf32>
    %222 = arith.negf %221 : vector<8x32xf32>
    %223 = math.exp %222 : vector<8x32xf32>
    %cst_108 = arith.constant 1.000000e+00 : f32
    %224 = vector.broadcast %cst_108 : f32 to vector<8x32xf32>
    %225 = arith.addf %224, %223 : vector<8x32xf32>
    %226 = arith.divf %224, %225 : vector<8x32xf32>
    %227 = arith.mulf %220, %214 : vector<8x32xf32>
    %228 = arith.addf %205, %227 : vector<8x32xf32>
    %229 = math.tanh %228 : vector<8x32xf32>
    %cst_109 = arith.constant 1.000000e+00 : f32
    %230 = vector.broadcast %cst_109 : f32 to vector<8x32xf32>
    %231 = arith.subf %230, %226 : vector<8x32xf32>
    %232 = arith.mulf %231, %229 : vector<8x32xf32>
    %233 = arith.mulf %226, %197 : vector<8x32xf32>
    %234 = arith.addf %232, %233 : vector<8x32xf32>
    %235 = arith.index_cast %199 : i32 to index
    %c0_110 = arith.constant 0 : index
    %236 = vector.load %arg1[%235, %c0_110] : memref<64x1xf32, #tpu.memory_space<vmem>>, vector<8x1xf32>
    %237 = vector.broadcast %236 : vector<8x1xf32> to vector<8x32xf32>
    %238 = arith.mulf %237, %234 : vector<8x32xf32>
    %239 = arith.index_cast %199 : i32 to index
    %c0_111 = arith.constant 0 : index
    %240 = vector.load %arg12[%239, %c0_111] : memref<64x32xf32, #tpu.memory_space<vmem>>, vector<8x32xf32>
    tpu.vector_store %arg12[%239, %c0_111], %238 {strides = array<i32>} : memref<64x32xf32, #tpu.memory_space<vmem>>, vector<8x32xf32>,
    %241 = vector.broadcast %236 : vector<8x1xf32> to vector<8x32xf32>
    %242 = arith.mulf %241, %234 : vector<8x32xf32>
    %cst_112 = arith.constant 1.000000e+00 : f32
    %243 = vector.broadcast %cst_112 : f32 to vector<8x1xf32>
    %244 = arith.subf %243, %236 : vector<8x1xf32>
    %245 = vector.broadcast %244 : vector<8x1xf32> to vector<8x32xf32>
    %246 = arith.mulf %245, %197 : vector<8x32xf32>
    %247 = arith.addf %242, %246 : vector<8x32xf32>
    %c4_i32 = arith.constant 4 : i32
    %c8_i32_113 = arith.constant 8 : i32
    %248 = arith.muli %c4_i32, %c8_i32_113 : i32
    %249 = tpu.assume_multiple %248, 8 : i32
    %250 = arith.index_cast %249 : i32 to index
    %c0_114 = arith.constant 0 : index
    %251 = vector.load %arg13[%250, %c0_114] : memref<64x32xf32, #tpu.memory_space<vmem>>, vector<8x32xf32>
    %252 = arith.index_cast %249 : i32 to index
    %c0_115 = arith.constant 0 : index
    %253 = vector.load %arg14[%252, %c0_115] : memref<64x32xf32, #tpu.memory_space<vmem>>, vector<8x32xf32>
    %254 = arith.index_cast %249 : i32 to index
    %c0_116 = arith.constant 0 : index
    %255 = vector.load %arg15[%254, %c0_116] : memref<64x32xf32, #tpu.memory_space<vmem>>, vector<8x32xf32>
    %cst_117 = arith.constant dense<0.000000e+00> : vector<8x32xf32>
    %256 = tpu.matmul %247, %35, %cst_117 {dimension_numbers = #tpu.dot_dimension_numbers<[1], [0], [0], [1], [0, 0, 1, 1], [], []>} : vector<8x32xf32>, vector<32x32xf32>, vector<8x32xf32> -> vector<8x32xf32>
    %257 = vector.broadcast %41 : vector<1x32xf32> to vector<8x32xf32>
    %258 = arith.addf %256, %257 : vector<8x32xf32>
    %cst_118 = arith.constant dense<0.000000e+00> : vector<8x32xf32>
    %259 = tpu.matmul %247, %37, %cst_118 {dimension_numbers = #tpu.dot_dimension_numbers<[1], [0], [0], [1], [0, 0, 1, 1], [], []>} : vector<8x32xf32>, vector<32x32xf32>, vector<8x32xf32> -> vector<8x32xf32>
    %260 = vector.broadcast %43 : vector<1x32xf32> to vector<8x32xf32>
    %261 = arith.addf %259, %260 : vector<8x32xf32>
    %cst_119 = arith.constant dense<0.000000e+00> : vector<8x32xf32>
    %262 = tpu.matmul %247, %39, %cst_119 {dimension_numbers = #tpu.dot_dimension_numbers<[1], [0], [0], [1], [0, 0, 1, 1], [], []>} : vector<8x32xf32>, vector<32x32xf32>, vector<8x32xf32> -> vector<8x32xf32>
    %263 = vector.broadcast %45 : vector<1x32xf32> to vector<8x32xf32>
    %264 = arith.addf %262, %263 : vector<8x32xf32>
    %265 = arith.addf %251, %258 : vector<8x32xf32>
    %266 = arith.negf %265 : vector<8x32xf32>
    %267 = math.exp %266 : vector<8x32xf32>
    %cst_120 = arith.constant 1.000000e+00 : f32
    %268 = vector.broadcast %cst_120 : f32 to vector<8x32xf32>
    %269 = arith.addf %268, %267 : vector<8x32xf32>
    %270 = arith.divf %268, %269 : vector<8x32xf32>
    %271 = arith.addf %253, %261 : vector<8x32xf32>
    %272 = arith.negf %271 : vector<8x32xf32>
    %273 = math.exp %272 : vector<8x32xf32>
    %cst_121 = arith.constant 1.000000e+00 : f32
    %274 = vector.broadcast %cst_121 : f32 to vector<8x32xf32>
    %275 = arith.addf %274, %273 : vector<8x32xf32>
    %276 = arith.divf %274, %275 : vector<8x32xf32>
    %277 = arith.mulf %270, %264 : vector<8x32xf32>
    %278 = arith.addf %255, %277 : vector<8x32xf32>
    %279 = math.tanh %278 : vector<8x32xf32>
    %cst_122 = arith.constant 1.000000e+00 : f32
    %280 = vector.broadcast %cst_122 : f32 to vector<8x32xf32>
    %281 = arith.subf %280, %276 : vector<8x32xf32>
    %282 = arith.mulf %281, %279 : vector<8x32xf32>
    %283 = arith.mulf %276, %247 : vector<8x32xf32>
    %284 = arith.addf %282, %283 : vector<8x32xf32>
    %285 = arith.index_cast %249 : i32 to index
    %c0_123 = arith.constant 0 : index
    %286 = vector.load %arg1[%285, %c0_123] : memref<64x1xf32, #tpu.memory_space<vmem>>, vector<8x1xf32>
    %287 = vector.broadcast %286 : vector<8x1xf32> to vector<8x32xf32>
    %288 = arith.mulf %287, %284 : vector<8x32xf32>
    %289 = arith.index_cast %249 : i32 to index
    %c0_124 = arith.constant 0 : index
    %290 = vector.load %arg12[%289, %c0_124] : memref<64x32xf32, #tpu.memory_space<vmem>>, vector<8x32xf32>
    tpu.vector_store %arg12[%289, %c0_124], %288 {strides = array<i32>} : memref<64x32xf32, #tpu.memory_space<vmem>>, vector<8x32xf32>,
    %291 = vector.broadcast %286 : vector<8x1xf32> to vector<8x32xf32>
    %292 = arith.mulf %291, %284 : vector<8x32xf32>
    %cst_125 = arith.constant 1.000000e+00 : f32
    %293 = vector.broadcast %cst_125 : f32 to vector<8x1xf32>
    %294 = arith.subf %293, %286 : vector<8x1xf32>
    %295 = vector.broadcast %294 : vector<8x1xf32> to vector<8x32xf32>
    %296 = arith.mulf %295, %247 : vector<8x32xf32>
    %297 = arith.addf %292, %296 : vector<8x32xf32>
    %c5_i32 = arith.constant 5 : i32
    %c8_i32_126 = arith.constant 8 : i32
    %298 = arith.muli %c5_i32, %c8_i32_126 : i32
    %299 = tpu.assume_multiple %298, 8 : i32
    %300 = arith.index_cast %299 : i32 to index
    %c0_127 = arith.constant 0 : index
    %301 = vector.load %arg13[%300, %c0_127] : memref<64x32xf32, #tpu.memory_space<vmem>>, vector<8x32xf32>
    %302 = arith.index_cast %299 : i32 to index
    %c0_128 = arith.constant 0 : index
    %303 = vector.load %arg14[%302, %c0_128] : memref<64x32xf32, #tpu.memory_space<vmem>>, vector<8x32xf32>
    %304 = arith.index_cast %299 : i32 to index
    %c0_129 = arith.constant 0 : index
    %305 = vector.load %arg15[%304, %c0_129] : memref<64x32xf32, #tpu.memory_space<vmem>>, vector<8x32xf32>
    %cst_130 = arith.constant dense<0.000000e+00> : vector<8x32xf32>
    %306 = tpu.matmul %297, %35, %cst_130 {dimension_numbers = #tpu.dot_dimension_numbers<[1], [0], [0], [1], [0, 0, 1, 1], [], []>} : vector<8x32xf32>, vector<32x32xf32>, vector<8x32xf32> -> vector<8x32xf32>
    %307 = vector.broadcast %41 : vector<1x32xf32> to vector<8x32xf32>
    %308 = arith.addf %306, %307 : vector<8x32xf32>
    %cst_131 = arith.constant dense<0.000000e+00> : vector<8x32xf32>
    %309 = tpu.matmul %297, %37, %cst_131 {dimension_numbers = #tpu.dot_dimension_numbers<[1], [0], [0], [1], [0, 0, 1, 1], [], []>} : vector<8x32xf32>, vector<32x32xf32>, vector<8x32xf32> -> vector<8x32xf32>
    %310 = vector.broadcast %43 : vector<1x32xf32> to vector<8x32xf32>
    %311 = arith.addf %309, %310 : vector<8x32xf32>
    %cst_132 = arith.constant dense<0.000000e+00> : vector<8x32xf32>
    %312 = tpu.matmul %297, %39, %cst_132 {dimension_numbers = #tpu.dot_dimension_numbers<[1], [0], [0], [1], [0, 0, 1, 1], [], []>} : vector<8x32xf32>, vector<32x32xf32>, vector<8x32xf32> -> vector<8x32xf32>
    %313 = vector.broadcast %45 : vector<1x32xf32> to vector<8x32xf32>
    %314 = arith.addf %312, %313 : vector<8x32xf32>
    %315 = arith.addf %301, %308 : vector<8x32xf32>
    %316 = arith.negf %315 : vector<8x32xf32>
    %317 = math.exp %316 : vector<8x32xf32>
    %cst_133 = arith.constant 1.000000e+00 : f32
    %318 = vector.broadcast %cst_133 : f32 to vector<8x32xf32>
    %319 = arith.addf %318, %317 : vector<8x32xf32>
    %320 = arith.divf %318, %319 : vector<8x32xf32>
    %321 = arith.addf %303, %311 : vector<8x32xf32>
    %322 = arith.negf %321 : vector<8x32xf32>
    %323 = math.exp %322 : vector<8x32xf32>
    %cst_134 = arith.constant 1.000000e+00 : f32
    %324 = vector.broadcast %cst_134 : f32 to vector<8x32xf32>
    %325 = arith.addf %324, %323 : vector<8x32xf32>
    %326 = arith.divf %324, %325 : vector<8x32xf32>
    %327 = arith.mulf %320, %314 : vector<8x32xf32>
    %328 = arith.addf %305, %327 : vector<8x32xf32>
    %329 = math.tanh %328 : vector<8x32xf32>
    %cst_135 = arith.constant 1.000000e+00 : f32
    %330 = vector.broadcast %cst_135 : f32 to vector<8x32xf32>
    %331 = arith.subf %330, %326 : vector<8x32xf32>
    %332 = arith.mulf %331, %329 : vector<8x32xf32>
    %333 = arith.mulf %326, %297 : vector<8x32xf32>
    %334 = arith.addf %332, %333 : vector<8x32xf32>
    %335 = arith.index_cast %299 : i32 to index
    %c0_136 = arith.constant 0 : index
    %336 = vector.load %arg1[%335, %c0_136] : memref<64x1xf32, #tpu.memory_space<vmem>>, vector<8x1xf32>
    %337 = vector.broadcast %336 : vector<8x1xf32> to vector<8x32xf32>
    %338 = arith.mulf %337, %334 : vector<8x32xf32>
    %339 = arith.index_cast %299 : i32 to index
    %c0_137 = arith.constant 0 : index
    %340 = vector.load %arg12[%339, %c0_137] : memref<64x32xf32, #tpu.memory_space<vmem>>, vector<8x32xf32>
    tpu.vector_store %arg12[%339, %c0_137], %338 {strides = array<i32>} : memref<64x32xf32, #tpu.memory_space<vmem>>, vector<8x32xf32>,
    %341 = vector.broadcast %336 : vector<8x1xf32> to vector<8x32xf32>
    %342 = arith.mulf %341, %334 : vector<8x32xf32>
    %cst_138 = arith.constant 1.000000e+00 : f32
    %343 = vector.broadcast %cst_138 : f32 to vector<8x1xf32>
    %344 = arith.subf %343, %336 : vector<8x1xf32>
    %345 = vector.broadcast %344 : vector<8x1xf32> to vector<8x32xf32>
    %346 = arith.mulf %345, %297 : vector<8x32xf32>
    %347 = arith.addf %342, %346 : vector<8x32xf32>
    %c6_i32 = arith.constant 6 : i32
    %c8_i32_139 = arith.constant 8 : i32
    %348 = arith.muli %c6_i32, %c8_i32_139 : i32
    %349 = tpu.assume_multiple %348, 8 : i32
    %350 = arith.index_cast %349 : i32 to index
    %c0_140 = arith.constant 0 : index
    %351 = vector.load %arg13[%350, %c0_140] : memref<64x32xf32, #tpu.memory_space<vmem>>, vector<8x32xf32>
    %352 = arith.index_cast %349 : i32 to index
    %c0_141 = arith.constant 0 : index
    %353 = vector.load %arg14[%352, %c0_141] : memref<64x32xf32, #tpu.memory_space<vmem>>, vector<8x32xf32>
    %354 = arith.index_cast %349 : i32 to index
    %c0_142 = arith.constant 0 : index
    %355 = vector.load %arg15[%354, %c0_142] : memref<64x32xf32, #tpu.memory_space<vmem>>, vector<8x32xf32>
    %cst_143 = arith.constant dense<0.000000e+00> : vector<8x32xf32>
    %356 = tpu.matmul %347, %35, %cst_143 {dimension_numbers = #tpu.dot_dimension_numbers<[1], [0], [0], [1], [0, 0, 1, 1], [], []>} : vector<8x32xf32>, vector<32x32xf32>, vector<8x32xf32> -> vector<8x32xf32>
    %357 = vector.broadcast %41 : vector<1x32xf32> to vector<8x32xf32>
    %358 = arith.addf %356, %357 : vector<8x32xf32>
    %cst_144 = arith.constant dense<0.000000e+00> : vector<8x32xf32>
    %359 = tpu.matmul %347, %37, %cst_144 {dimension_numbers = #tpu.dot_dimension_numbers<[1], [0], [0], [1], [0, 0, 1, 1], [], []>} : vector<8x32xf32>, vector<32x32xf32>, vector<8x32xf32> -> vector<8x32xf32>
    %360 = vector.broadcast %43 : vector<1x32xf32> to vector<8x32xf32>
    %361 = arith.addf %359, %360 : vector<8x32xf32>
    %cst_145 = arith.constant dense<0.000000e+00> : vector<8x32xf32>
    %362 = tpu.matmul %347, %39, %cst_145 {dimension_numbers = #tpu.dot_dimension_numbers<[1], [0], [0], [1], [0, 0, 1, 1], [], []>} : vector<8x32xf32>, vector<32x32xf32>, vector<8x32xf32> -> vector<8x32xf32>
    %363 = vector.broadcast %45 : vector<1x32xf32> to vector<8x32xf32>
    %364 = arith.addf %362, %363 : vector<8x32xf32>
    %365 = arith.addf %351, %358 : vector<8x32xf32>
    %366 = arith.negf %365 : vector<8x32xf32>
    %367 = math.exp %366 : vector<8x32xf32>
    %cst_146 = arith.constant 1.000000e+00 : f32
    %368 = vector.broadcast %cst_146 : f32 to vector<8x32xf32>
    %369 = arith.addf %368, %367 : vector<8x32xf32>
    %370 = arith.divf %368, %369 : vector<8x32xf32>
    %371 = arith.addf %353, %361 : vector<8x32xf32>
    %372 = arith.negf %371 : vector<8x32xf32>
    %373 = math.exp %372 : vector<8x32xf32>
    %cst_147 = arith.constant 1.000000e+00 : f32
    %374 = vector.broadcast %cst_147 : f32 to vector<8x32xf32>
    %375 = arith.addf %374, %373 : vector<8x32xf32>
    %376 = arith.divf %374, %375 : vector<8x32xf32>
    %377 = arith.mulf %370, %364 : vector<8x32xf32>
    %378 = arith.addf %355, %377 : vector<8x32xf32>
    %379 = math.tanh %378 : vector<8x32xf32>
    %cst_148 = arith.constant 1.000000e+00 : f32
    %380 = vector.broadcast %cst_148 : f32 to vector<8x32xf32>
    %381 = arith.subf %380, %376 : vector<8x32xf32>
    %382 = arith.mulf %381, %379 : vector<8x32xf32>
    %383 = arith.mulf %376, %347 : vector<8x32xf32>
    %384 = arith.addf %382, %383 : vector<8x32xf32>
    %385 = arith.index_cast %349 : i32 to index
    %c0_149 = arith.constant 0 : index
    %386 = vector.load %arg1[%385, %c0_149] : memref<64x1xf32, #tpu.memory_space<vmem>>, vector<8x1xf32>
    %387 = vector.broadcast %386 : vector<8x1xf32> to vector<8x32xf32>
    %388 = arith.mulf %387, %384 : vector<8x32xf32>
    %389 = arith.index_cast %349 : i32 to index
    %c0_150 = arith.constant 0 : index
    %390 = vector.load %arg12[%389, %c0_150] : memref<64x32xf32, #tpu.memory_space<vmem>>, vector<8x32xf32>
    tpu.vector_store %arg12[%389, %c0_150], %388 {strides = array<i32>} : memref<64x32xf32, #tpu.memory_space<vmem>>, vector<8x32xf32>,
    %391 = vector.broadcast %386 : vector<8x1xf32> to vector<8x32xf32>
    %392 = arith.mulf %391, %384 : vector<8x32xf32>
    %cst_151 = arith.constant 1.000000e+00 : f32
    %393 = vector.broadcast %cst_151 : f32 to vector<8x1xf32>
    %394 = arith.subf %393, %386 : vector<8x1xf32>
    %395 = vector.broadcast %394 : vector<8x1xf32> to vector<8x32xf32>
    %396 = arith.mulf %395, %347 : vector<8x32xf32>
    %397 = arith.addf %392, %396 : vector<8x32xf32>
    %c7_i32 = arith.constant 7 : i32
    %c8_i32_152 = arith.constant 8 : i32
    %398 = arith.muli %c7_i32, %c8_i32_152 : i32
    %399 = tpu.assume_multiple %398, 8 : i32
    %400 = arith.index_cast %399 : i32 to index
    %c0_153 = arith.constant 0 : index
    %401 = vector.load %arg13[%400, %c0_153] : memref<64x32xf32, #tpu.memory_space<vmem>>, vector<8x32xf32>
    %402 = arith.index_cast %399 : i32 to index
    %c0_154 = arith.constant 0 : index
    %403 = vector.load %arg14[%402, %c0_154] : memref<64x32xf32, #tpu.memory_space<vmem>>, vector<8x32xf32>
    %404 = arith.index_cast %399 : i32 to index
    %c0_155 = arith.constant 0 : index
    %405 = vector.load %arg15[%404, %c0_155] : memref<64x32xf32, #tpu.memory_space<vmem>>, vector<8x32xf32>
    %cst_156 = arith.constant dense<0.000000e+00> : vector<8x32xf32>
    %406 = tpu.matmul %397, %35, %cst_156 {dimension_numbers = #tpu.dot_dimension_numbers<[1], [0], [0], [1], [0, 0, 1, 1], [], []>} : vector<8x32xf32>, vector<32x32xf32>, vector<8x32xf32> -> vector<8x32xf32>
    %407 = vector.broadcast %41 : vector<1x32xf32> to vector<8x32xf32>
    %408 = arith.addf %406, %407 : vector<8x32xf32>
    %cst_157 = arith.constant dense<0.000000e+00> : vector<8x32xf32>
    %409 = tpu.matmul %397, %37, %cst_157 {dimension_numbers = #tpu.dot_dimension_numbers<[1], [0], [0], [1], [0, 0, 1, 1], [], []>} : vector<8x32xf32>, vector<32x32xf32>, vector<8x32xf32> -> vector<8x32xf32>
    %410 = vector.broadcast %43 : vector<1x32xf32> to vector<8x32xf32>
    %411 = arith.addf %409, %410 : vector<8x32xf32>
    %cst_158 = arith.constant dense<0.000000e+00> : vector<8x32xf32>
    %412 = tpu.matmul %397, %39, %cst_158 {dimension_numbers = #tpu.dot_dimension_numbers<[1], [0], [0], [1], [0, 0, 1, 1], [], []>} : vector<8x32xf32>, vector<32x32xf32>, vector<8x32xf32> -> vector<8x32xf32>
    %413 = vector.broadcast %45 : vector<1x32xf32> to vector<8x32xf32>
    %414 = arith.addf %412, %413 : vector<8x32xf32>
    %415 = arith.addf %401, %408 : vector<8x32xf32>
    %416 = arith.negf %415 : vector<8x32xf32>
    %417 = math.exp %416 : vector<8x32xf32>
    %cst_159 = arith.constant 1.000000e+00 : f32
    %418 = vector.broadcast %cst_159 : f32 to vector<8x32xf32>
    %419 = arith.addf %418, %417 : vector<8x32xf32>
    %420 = arith.divf %418, %419 : vector<8x32xf32>
    %421 = arith.addf %403, %411 : vector<8x32xf32>
    %422 = arith.negf %421 : vector<8x32xf32>
    %423 = math.exp %422 : vector<8x32xf32>
    %cst_160 = arith.constant 1.000000e+00 : f32
    %424 = vector.broadcast %cst_160 : f32 to vector<8x32xf32>
    %425 = arith.addf %424, %423 : vector<8x32xf32>
    %426 = arith.divf %424, %425 : vector<8x32xf32>
    %427 = arith.mulf %420, %414 : vector<8x32xf32>
    %428 = arith.addf %405, %427 : vector<8x32xf32>
    %429 = math.tanh %428 : vector<8x32xf32>
    %cst_161 = arith.constant 1.000000e+00 : f32
    %430 = vector.broadcast %cst_161 : f32 to vector<8x32xf32>
    %431 = arith.subf %430, %426 : vector<8x32xf32>
    %432 = arith.mulf %431, %429 : vector<8x32xf32>
    %433 = arith.mulf %426, %397 : vector<8x32xf32>
    %434 = arith.addf %432, %433 : vector<8x32xf32>
    %435 = arith.index_cast %399 : i32 to index
    %c0_162 = arith.constant 0 : index
    %436 = vector.load %arg1[%435, %c0_162] : memref<64x1xf32, #tpu.memory_space<vmem>>, vector<8x1xf32>
    %437 = vector.broadcast %436 : vector<8x1xf32> to vector<8x32xf32>
    %438 = arith.mulf %437, %434 : vector<8x32xf32>
    %439 = arith.index_cast %399 : i32 to index
    %c0_163 = arith.constant 0 : index
    %440 = vector.load %arg12[%439, %c0_163] : memref<64x32xf32, #tpu.memory_space<vmem>>, vector<8x32xf32>
    tpu.vector_store %arg12[%439, %c0_163], %438 {strides = array<i32>} : memref<64x32xf32, #tpu.memory_space<vmem>>, vector<8x32xf32>,
    %441 = vector.broadcast %436 : vector<8x1xf32> to vector<8x32xf32>
    %442 = arith.mulf %441, %434 : vector<8x32xf32>
    %cst_164 = arith.constant 1.000000e+00 : f32
    %443 = vector.broadcast %cst_164 : f32 to vector<8x1xf32>
    %444 = arith.subf %443, %436 : vector<8x1xf32>
    %445 = vector.broadcast %444 : vector<8x1xf32> to vector<8x32xf32>
    %446 = arith.mulf %445, %397 : vector<8x32xf32>
    %447 = arith.addf %442, %446 : vector<8x32xf32>
    %c8_i32_165 = arith.constant 8 : i32
    %c0_166 = arith.constant 0 : index
    %c0_167 = arith.constant 0 : index
    %c0_168 = arith.constant 0 : index
    %448 = vector.load %arg11[%c0_166, %c0_167, %c0_168] : memref<3x8x32xf32, #tpu.memory_space<vmem>>, vector<1x8x32xf32>
    %449 = vector.shape_cast %448 : vector<1x8x32xf32> to vector<8x32xf32>
    %450 = vector.shape_cast %447 : vector<8x32xf32> to vector<1x8x32xf32>
    tpu.vector_store %arg11[%c0_166, %c0_167, %c0_168], %450 {strides = array<i32>} : memref<3x8x32xf32, #tpu.memory_space<vmem>>, vector<1x8x32xf32>,
    %c0_169 = arith.constant 0 : index
    %c0_170 = arith.constant 0 : index
    %451 = vector.load %arg12[%c0_169, %c0_170] : memref<64x32xf32, #tpu.memory_space<vmem>>, vector<64x32xf32>
    %c1_171 = arith.constant 1 : index
    %c0_172 = arith.constant 0 : index
    %c0_173 = arith.constant 0 : index
    %c0_174 = arith.constant 0 : index
    %452 = vector.load %arg4[%c1_171, %c0_172, %c0_173, %c0_174] : memref<3x3x32x32xf32, #tpu.memory_space<vmem>>, vector<1x1x32x32xf32>
    %453 = vector.shape_cast %452 : vector<1x1x32x32xf32> to vector<32x32xf32>
    %cst_175 = arith.constant dense<0.000000e+00> : vector<64x32xf32>
    %454 = tpu.matmul %451, %453, %cst_175 {dimension_numbers = #tpu.dot_dimension_numbers<[1], [0], [0], [1], [0, 0, 1, 1], [], []>} : vector<64x32xf32>, vector<32x32xf32>, vector<64x32xf32> -> vector<64x32xf32>
    %c1_176 = arith.constant 1 : index
    %c0_177 = arith.constant 0 : index
    %c0_178 = arith.constant 0 : index
    %c0_179 = arith.constant 0 : index
    %455 = vector.load %arg6[%c1_176, %c0_177, %c0_178, %c0_179] : memref<3x3x1x32xf32, #tpu.memory_space<vmem>>, vector<1x1x1x32xf32>
    %456 = vector.shape_cast %455 : vector<1x1x1x32xf32> to vector<1x32xf32>
    %457 = vector.broadcast %456 : vector<1x32xf32> to vector<64x32xf32>
    %458 = arith.addf %454, %457 : vector<64x32xf32>
    %c0_180 = arith.constant 0 : index
    %c0_181 = arith.constant 0 : index
    %459 = vector.load %arg13[%c0_180, %c0_181] : memref<64x32xf32, #tpu.memory_space<vmem>>, vector<64x32xf32>
    tpu.vector_store %arg13[%c0_180, %c0_181], %458 {strides = array<i32>} : memref<64x32xf32, #tpu.memory_space<vmem>>, vector<64x32xf32>,
    %c1_182 = arith.constant 1 : index
    %c1_183 = arith.constant 1 : index
    %c0_184 = arith.constant 0 : index
    %c0_185 = arith.constant 0 : index
    %460 = vector.load %arg4[%c1_182, %c1_183, %c0_184, %c0_185] : memref<3x3x32x32xf32, #tpu.memory_space<vmem>>, vector<1x1x32x32xf32>
    %461 = vector.shape_cast %460 : vector<1x1x32x32xf32> to vector<32x32xf32>
    %cst_186 = arith.constant dense<0.000000e+00> : vector<64x32xf32>
    %462 = tpu.matmul %451, %461, %cst_186 {dimension_numbers = #tpu.dot_dimension_numbers<[1], [0], [0], [1], [0, 0, 1, 1], [], []>} : vector<64x32xf32>, vector<32x32xf32>, vector<64x32xf32> -> vector<64x32xf32>
    %c1_187 = arith.constant 1 : index
    %c1_188 = arith.constant 1 : index
    %c0_189 = arith.constant 0 : index
    %c0_190 = arith.constant 0 : index
    %463 = vector.load %arg6[%c1_187, %c1_188, %c0_189, %c0_190] : memref<3x3x1x32xf32, #tpu.memory_space<vmem>>, vector<1x1x1x32xf32>
    %464 = vector.shape_cast %463 : vector<1x1x1x32xf32> to vector<1x32xf32>
    %465 = vector.broadcast %464 : vector<1x32xf32> to vector<64x32xf32>
    %466 = arith.addf %462, %465 : vector<64x32xf32>
    %c0_191 = arith.constant 0 : index
    %c0_192 = arith.constant 0 : index
    %467 = vector.load %arg14[%c0_191, %c0_192] : memref<64x32xf32, #tpu.memory_space<vmem>>, vector<64x32xf32>
    tpu.vector_store %arg14[%c0_191, %c0_192], %466 {strides = array<i32>} : memref<64x32xf32, #tpu.memory_space<vmem>>, vector<64x32xf32>,
    %c1_193 = arith.constant 1 : index
    %c2_194 = arith.constant 2 : index
    %c0_195 = arith.constant 0 : index
    %c0_196 = arith.constant 0 : index
    %468 = vector.load %arg4[%c1_193, %c2_194, %c0_195, %c0_196] : memref<3x3x32x32xf32, #tpu.memory_space<vmem>>, vector<1x1x32x32xf32>
    %469 = vector.shape_cast %468 : vector<1x1x32x32xf32> to vector<32x32xf32>
    %cst_197 = arith.constant dense<0.000000e+00> : vector<64x32xf32>
    %470 = tpu.matmul %451, %469, %cst_197 {dimension_numbers = #tpu.dot_dimension_numbers<[1], [0], [0], [1], [0, 0, 1, 1], [], []>} : vector<64x32xf32>, vector<32x32xf32>, vector<64x32xf32> -> vector<64x32xf32>
    %c1_198 = arith.constant 1 : index
    %c2_199 = arith.constant 2 : index
    %c0_200 = arith.constant 0 : index
    %c0_201 = arith.constant 0 : index
    %471 = vector.load %arg6[%c1_198, %c2_199, %c0_200, %c0_201] : memref<3x3x1x32xf32, #tpu.memory_space<vmem>>, vector<1x1x1x32xf32>
    %472 = vector.shape_cast %471 : vector<1x1x1x32xf32> to vector<1x32xf32>
    %473 = vector.broadcast %472 : vector<1x32xf32> to vector<64x32xf32>
    %474 = arith.addf %470, %473 : vector<64x32xf32>
    %c0_202 = arith.constant 0 : index
    %c0_203 = arith.constant 0 : index
    %475 = vector.load %arg15[%c0_202, %c0_203] : memref<64x32xf32, #tpu.memory_space<vmem>>, vector<64x32xf32>
    tpu.vector_store %arg15[%c0_202, %c0_203], %474 {strides = array<i32>} : memref<64x32xf32, #tpu.memory_space<vmem>>, vector<64x32xf32>,
    %c1_204 = arith.constant 1 : index
    %c0_205 = arith.constant 0 : index
    %c0_206 = arith.constant 0 : index
    %c0_207 = arith.constant 0 : index
    %476 = vector.load %arg5[%c1_204, %c0_205, %c0_206, %c0_207] : memref<3x3x32x32xf32, #tpu.memory_space<vmem>>, vector<1x1x32x32xf32>
    %477 = vector.shape_cast %476 : vector<1x1x32x32xf32> to vector<32x32xf32>
    %c1_208 = arith.constant 1 : index
    %c1_209 = arith.constant 1 : index
    %c0_210 = arith.constant 0 : index
    %c0_211 = arith.constant 0 : index
    %478 = vector.load %arg5[%c1_208, %c1_209, %c0_210, %c0_211] : memref<3x3x32x32xf32, #tpu.memory_space<vmem>>, vector<1x1x32x32xf32>
    %479 = vector.shape_cast %478 : vector<1x1x32x32xf32> to vector<32x32xf32>
    %c1_212 = arith.constant 1 : index
    %c2_213 = arith.constant 2 : index
    %c0_214 = arith.constant 0 : index
    %c0_215 = arith.constant 0 : index
    %480 = vector.load %arg5[%c1_212, %c2_213, %c0_214, %c0_215] : memref<3x3x32x32xf32, #tpu.memory_space<vmem>>, vector<1x1x32x32xf32>
    %481 = vector.shape_cast %480 : vector<1x1x32x32xf32> to vector<32x32xf32>
    %c1_216 = arith.constant 1 : index
    %c0_217 = arith.constant 0 : index
    %c0_218 = arith.constant 0 : index
    %c0_219 = arith.constant 0 : index
    %482 = vector.load %arg7[%c1_216, %c0_217, %c0_218, %c0_219] : memref<3x3x1x32xf32, #tpu.memory_space<vmem>>, vector<1x1x1x32xf32>
    %483 = vector.shape_cast %482 : vector<1x1x1x32xf32> to vector<1x32xf32>
    %c1_220 = arith.constant 1 : index
    %c1_221 = arith.constant 1 : index
    %c0_222 = arith.constant 0 : index
    %c0_223 = arith.constant 0 : index
    %484 = vector.load %arg7[%c1_220, %c1_221, %c0_222, %c0_223] : memref<3x3x1x32xf32, #tpu.memory_space<vmem>>, vector<1x1x1x32xf32>
    %485 = vector.shape_cast %484 : vector<1x1x1x32xf32> to vector<1x32xf32>
    %c1_224 = arith.constant 1 : index
    %c2_225 = arith.constant 2 : index
    %c0_226 = arith.constant 0 : index
    %c0_227 = arith.constant 0 : index
    %486 = vector.load %arg7[%c1_224, %c2_225, %c0_226, %c0_227] : memref<3x3x1x32xf32, #tpu.memory_space<vmem>>, vector<1x1x1x32xf32>
    %487 = vector.shape_cast %486 : vector<1x1x1x32xf32> to vector<1x32xf32>
    %c1_228 = arith.constant 1 : index
    %c0_229 = arith.constant 0 : index
    %c0_230 = arith.constant 0 : index
    %488 = vector.load %arg3[%c1_228, %c0_229, %c0_230] : memref<3x8x32xf32, #tpu.memory_space<vmem>>, vector<1x8x32xf32>
    %489 = vector.shape_cast %488 : vector<1x8x32xf32> to vector<8x32xf32>
    %c0_i32_231 = arith.constant 0 : i32
    %c8_i32_232 = arith.constant 8 : i32
    %490 = arith.muli %c0_i32_231, %c8_i32_232 : i32
    %491 = tpu.assume_multiple %490, 8 : i32
    %492 = arith.index_cast %491 : i32 to index
    %c0_233 = arith.constant 0 : index
    %493 = vector.load %arg13[%492, %c0_233] : memref<64x32xf32, #tpu.memory_space<vmem>>, vector<8x32xf32>
    %494 = arith.index_cast %491 : i32 to index
    %c0_234 = arith.constant 0 : index
    %495 = vector.load %arg14[%494, %c0_234] : memref<64x32xf32, #tpu.memory_space<vmem>>, vector<8x32xf32>
    %496 = arith.index_cast %491 : i32 to index
    %c0_235 = arith.constant 0 : index
    %497 = vector.load %arg15[%496, %c0_235] : memref<64x32xf32, #tpu.memory_space<vmem>>, vector<8x32xf32>
    %cst_236 = arith.constant dense<0.000000e+00> : vector<8x32xf32>
    %498 = tpu.matmul %489, %477, %cst_236 {dimension_numbers = #tpu.dot_dimension_numbers<[1], [0], [0], [1], [0, 0, 1, 1], [], []>} : vector<8x32xf32>, vector<32x32xf32>, vector<8x32xf32> -> vector<8x32xf32>
    %499 = vector.broadcast %483 : vector<1x32xf32> to vector<8x32xf32>
    %500 = arith.addf %498, %499 : vector<8x32xf32>
    %cst_237 = arith.constant dense<0.000000e+00> : vector<8x32xf32>
    %501 = tpu.matmul %489, %479, %cst_237 {dimension_numbers = #tpu.dot_dimension_numbers<[1], [0], [0], [1], [0, 0, 1, 1], [], []>} : vector<8x32xf32>, vector<32x32xf32>, vector<8x32xf32> -> vector<8x32xf32>
    %502 = vector.broadcast %485 : vector<1x32xf32> to vector<8x32xf32>
    %503 = arith.addf %501, %502 : vector<8x32xf32>
    %cst_238 = arith.constant dense<0.000000e+00> : vector<8x32xf32>
    %504 = tpu.matmul %489, %481, %cst_238 {dimension_numbers = #tpu.dot_dimension_numbers<[1], [0], [0], [1], [0, 0, 1, 1], [], []>} : vector<8x32xf32>, vector<32x32xf32>, vector<8x32xf32> -> vector<8x32xf32>
    %505 = vector.broadcast %487 : vector<1x32xf32> to vector<8x32xf32>
    %506 = arith.addf %504, %505 : vector<8x32xf32>
    %507 = arith.addf %493, %500 : vector<8x32xf32>
    %508 = arith.negf %507 : vector<8x32xf32>
    %509 = math.exp %508 : vector<8x32xf32>
    %cst_239 = arith.constant 1.000000e+00 : f32
    %510 = vector.broadcast %cst_239 : f32 to vector<8x32xf32>
    %511 = arith.addf %510, %509 : vector<8x32xf32>
    %512 = arith.divf %510, %511 : vector<8x32xf32>
    %513 = arith.addf %495, %503 : vector<8x32xf32>
    %514 = arith.negf %513 : vector<8x32xf32>
    %515 = math.exp %514 : vector<8x32xf32>
    %cst_240 = arith.constant 1.000000e+00 : f32
    %516 = vector.broadcast %cst_240 : f32 to vector<8x32xf32>
    %517 = arith.addf %516, %515 : vector<8x32xf32>
    %518 = arith.divf %516, %517 : vector<8x32xf32>
    %519 = arith.mulf %512, %506 : vector<8x32xf32>
    %520 = arith.addf %497, %519 : vector<8x32xf32>
    %521 = math.tanh %520 : vector<8x32xf32>
    %cst_241 = arith.constant 1.000000e+00 : f32
    %522 = vector.broadcast %cst_241 : f32 to vector<8x32xf32>
    %523 = arith.subf %522, %518 : vector<8x32xf32>
    %524 = arith.mulf %523, %521 : vector<8x32xf32>
    %525 = arith.mulf %518, %489 : vector<8x32xf32>
    %526 = arith.addf %524, %525 : vector<8x32xf32>
    %527 = arith.index_cast %491 : i32 to index
    %c0_242 = arith.constant 0 : index
    %528 = vector.load %arg1[%527, %c0_242] : memref<64x1xf32, #tpu.memory_space<vmem>>, vector<8x1xf32>
    %529 = vector.broadcast %528 : vector<8x1xf32> to vector<8x32xf32>
    %530 = arith.mulf %529, %526 : vector<8x32xf32>
    %531 = arith.index_cast %491 : i32 to index
    %c0_243 = arith.constant 0 : index
    %532 = vector.load %arg12[%531, %c0_243] : memref<64x32xf32, #tpu.memory_space<vmem>>, vector<8x32xf32>
    tpu.vector_store %arg12[%531, %c0_243], %530 {strides = array<i32>} : memref<64x32xf32, #tpu.memory_space<vmem>>, vector<8x32xf32>,
    %533 = vector.broadcast %528 : vector<8x1xf32> to vector<8x32xf32>
    %534 = arith.mulf %533, %526 : vector<8x32xf32>
    %cst_244 = arith.constant 1.000000e+00 : f32
    %535 = vector.broadcast %cst_244 : f32 to vector<8x1xf32>
    %536 = arith.subf %535, %528 : vector<8x1xf32>
    %537 = vector.broadcast %536 : vector<8x1xf32> to vector<8x32xf32>
    %538 = arith.mulf %537, %489 : vector<8x32xf32>
    %539 = arith.addf %534, %538 : vector<8x32xf32>
    %c1_i32_245 = arith.constant 1 : i32
    %c8_i32_246 = arith.constant 8 : i32
    %540 = arith.muli %c1_i32_245, %c8_i32_246 : i32
    %541 = tpu.assume_multiple %540, 8 : i32
    %542 = arith.index_cast %541 : i32 to index
    %c0_247 = arith.constant 0 : index
    %543 = vector.load %arg13[%542, %c0_247] : memref<64x32xf32, #tpu.memory_space<vmem>>, vector<8x32xf32>
    %544 = arith.index_cast %541 : i32 to index
    %c0_248 = arith.constant 0 : index
    %545 = vector.load %arg14[%544, %c0_248] : memref<64x32xf32, #tpu.memory_space<vmem>>, vector<8x32xf32>
    %546 = arith.index_cast %541 : i32 to index
    %c0_249 = arith.constant 0 : index
    %547 = vector.load %arg15[%546, %c0_249] : memref<64x32xf32, #tpu.memory_space<vmem>>, vector<8x32xf32>
    %cst_250 = arith.constant dense<0.000000e+00> : vector<8x32xf32>
    %548 = tpu.matmul %539, %477, %cst_250 {dimension_numbers = #tpu.dot_dimension_numbers<[1], [0], [0], [1], [0, 0, 1, 1], [], []>} : vector<8x32xf32>, vector<32x32xf32>, vector<8x32xf32> -> vector<8x32xf32>
    %549 = vector.broadcast %483 : vector<1x32xf32> to vector<8x32xf32>
    %550 = arith.addf %548, %549 : vector<8x32xf32>
    %cst_251 = arith.constant dense<0.000000e+00> : vector<8x32xf32>
    %551 = tpu.matmul %539, %479, %cst_251 {dimension_numbers = #tpu.dot_dimension_numbers<[1], [0], [0], [1], [0, 0, 1, 1], [], []>} : vector<8x32xf32>, vector<32x32xf32>, vector<8x32xf32> -> vector<8x32xf32>
    %552 = vector.broadcast %485 : vector<1x32xf32> to vector<8x32xf32>
    %553 = arith.addf %551, %552 : vector<8x32xf32>
    %cst_252 = arith.constant dense<0.000000e+00> : vector<8x32xf32>
    %554 = tpu.matmul %539, %481, %cst_252 {dimension_numbers = #tpu.dot_dimension_numbers<[1], [0], [0], [1], [0, 0, 1, 1], [], []>} : vector<8x32xf32>, vector<32x32xf32>, vector<8x32xf32> -> vector<8x32xf32>
    %555 = vector.broadcast %487 : vector<1x32xf32> to vector<8x32xf32>
    %556 = arith.addf %554, %555 : vector<8x32xf32>
    %557 = arith.addf %543, %550 : vector<8x32xf32>
    %558 = arith.negf %557 : vector<8x32xf32>
    %559 = math.exp %558 : vector<8x32xf32>
    %cst_253 = arith.constant 1.000000e+00 : f32
    %560 = vector.broadcast %cst_253 : f32 to vector<8x32xf32>
    %561 = arith.addf %560, %559 : vector<8x32xf32>
    %562 = arith.divf %560, %561 : vector<8x32xf32>
    %563 = arith.addf %545, %553 : vector<8x32xf32>
    %564 = arith.negf %563 : vector<8x32xf32>
    %565 = math.exp %564 : vector<8x32xf32>
    %cst_254 = arith.constant 1.000000e+00 : f32
    %566 = vector.broadcast %cst_254 : f32 to vector<8x32xf32>
    %567 = arith.addf %566, %565 : vector<8x32xf32>
    %568 = arith.divf %566, %567 : vector<8x32xf32>
    %569 = arith.mulf %562, %556 : vector<8x32xf32>
    %570 = arith.addf %547, %569 : vector<8x32xf32>
    %571 = math.tanh %570 : vector<8x32xf32>
    %cst_255 = arith.constant 1.000000e+00 : f32
    %572 = vector.broadcast %cst_255 : f32 to vector<8x32xf32>
    %573 = arith.subf %572, %568 : vector<8x32xf32>
    %574 = arith.mulf %573, %571 : vector<8x32xf32>
    %575 = arith.mulf %568, %539 : vector<8x32xf32>
    %576 = arith.addf %574, %575 : vector<8x32xf32>
    %577 = arith.index_cast %541 : i32 to index
    %c0_256 = arith.constant 0 : index
    %578 = vector.load %arg1[%577, %c0_256] : memref<64x1xf32, #tpu.memory_space<vmem>>, vector<8x1xf32>
    %579 = vector.broadcast %578 : vector<8x1xf32> to vector<8x32xf32>
    %580 = arith.mulf %579, %576 : vector<8x32xf32>
    %581 = arith.index_cast %541 : i32 to index
    %c0_257 = arith.constant 0 : index
    %582 = vector.load %arg12[%581, %c0_257] : memref<64x32xf32, #tpu.memory_space<vmem>>, vector<8x32xf32>
    tpu.vector_store %arg12[%581, %c0_257], %580 {strides = array<i32>} : memref<64x32xf32, #tpu.memory_space<vmem>>, vector<8x32xf32>,
    %583 = vector.broadcast %578 : vector<8x1xf32> to vector<8x32xf32>
    %584 = arith.mulf %583, %576 : vector<8x32xf32>
    %cst_258 = arith.constant 1.000000e+00 : f32
    %585 = vector.broadcast %cst_258 : f32 to vector<8x1xf32>
    %586 = arith.subf %585, %578 : vector<8x1xf32>
    %587 = vector.broadcast %586 : vector<8x1xf32> to vector<8x32xf32>
    %588 = arith.mulf %587, %539 : vector<8x32xf32>
    %589 = arith.addf %584, %588 : vector<8x32xf32>
    %c2_i32_259 = arith.constant 2 : i32
    %c8_i32_260 = arith.constant 8 : i32
    %590 = arith.muli %c2_i32_259, %c8_i32_260 : i32
    %591 = tpu.assume_multiple %590, 8 : i32
    %592 = arith.index_cast %591 : i32 to index
    %c0_261 = arith.constant 0 : index
    %593 = vector.load %arg13[%592, %c0_261] : memref<64x32xf32, #tpu.memory_space<vmem>>, vector<8x32xf32>
    %594 = arith.index_cast %591 : i32 to index
    %c0_262 = arith.constant 0 : index
    %595 = vector.load %arg14[%594, %c0_262] : memref<64x32xf32, #tpu.memory_space<vmem>>, vector<8x32xf32>
    %596 = arith.index_cast %591 : i32 to index
    %c0_263 = arith.constant 0 : index
    %597 = vector.load %arg15[%596, %c0_263] : memref<64x32xf32, #tpu.memory_space<vmem>>, vector<8x32xf32>
    %cst_264 = arith.constant dense<0.000000e+00> : vector<8x32xf32>
    %598 = tpu.matmul %589, %477, %cst_264 {dimension_numbers = #tpu.dot_dimension_numbers<[1], [0], [0], [1], [0, 0, 1, 1], [], []>} : vector<8x32xf32>, vector<32x32xf32>, vector<8x32xf32> -> vector<8x32xf32>
    %599 = vector.broadcast %483 : vector<1x32xf32> to vector<8x32xf32>
    %600 = arith.addf %598, %599 : vector<8x32xf32>
    %cst_265 = arith.constant dense<0.000000e+00> : vector<8x32xf32>
    %601 = tpu.matmul %589, %479, %cst_265 {dimension_numbers = #tpu.dot_dimension_numbers<[1], [0], [0], [1], [0, 0, 1, 1], [], []>} : vector<8x32xf32>, vector<32x32xf32>, vector<8x32xf32> -> vector<8x32xf32>
    %602 = vector.broadcast %485 : vector<1x32xf32> to vector<8x32xf32>
    %603 = arith.addf %601, %602 : vector<8x32xf32>
    %cst_266 = arith.constant dense<0.000000e+00> : vector<8x32xf32>
    %604 = tpu.matmul %589, %481, %cst_266 {dimension_numbers = #tpu.dot_dimension_numbers<[1], [0], [0], [1], [0, 0, 1, 1], [], []>} : vector<8x32xf32>, vector<32x32xf32>, vector<8x32xf32> -> vector<8x32xf32>
    %605 = vector.broadcast %487 : vector<1x32xf32> to vector<8x32xf32>
    %606 = arith.addf %604, %605 : vector<8x32xf32>
    %607 = arith.addf %593, %600 : vector<8x32xf32>
    %608 = arith.negf %607 : vector<8x32xf32>
    %609 = math.exp %608 : vector<8x32xf32>
    %cst_267 = arith.constant 1.000000e+00 : f32
    %610 = vector.broadcast %cst_267 : f32 to vector<8x32xf32>
    %611 = arith.addf %610, %609 : vector<8x32xf32>
    %612 = arith.divf %610, %611 : vector<8x32xf32>
    %613 = arith.addf %595, %603 : vector<8x32xf32>
    %614 = arith.negf %613 : vector<8x32xf32>
    %615 = math.exp %614 : vector<8x32xf32>
    %cst_268 = arith.constant 1.000000e+00 : f32
    %616 = vector.broadcast %cst_268 : f32 to vector<8x32xf32>
    %617 = arith.addf %616, %615 : vector<8x32xf32>
    %618 = arith.divf %616, %617 : vector<8x32xf32>
    %619 = arith.mulf %612, %606 : vector<8x32xf32>
    %620 = arith.addf %597, %619 : vector<8x32xf32>
    %621 = math.tanh %620 : vector<8x32xf32>
    %cst_269 = arith.constant 1.000000e+00 : f32
    %622 = vector.broadcast %cst_269 : f32 to vector<8x32xf32>
    %623 = arith.subf %622, %618 : vector<8x32xf32>
    %624 = arith.mulf %623, %621 : vector<8x32xf32>
    %625 = arith.mulf %618, %589 : vector<8x32xf32>
    %626 = arith.addf %624, %625 : vector<8x32xf32>
    %627 = arith.index_cast %591 : i32 to index
    %c0_270 = arith.constant 0 : index
    %628 = vector.load %arg1[%627, %c0_270] : memref<64x1xf32, #tpu.memory_space<vmem>>, vector<8x1xf32>
    %629 = vector.broadcast %628 : vector<8x1xf32> to vector<8x32xf32>
    %630 = arith.mulf %629, %626 : vector<8x32xf32>
    %631 = arith.index_cast %591 : i32 to index
    %c0_271 = arith.constant 0 : index
    %632 = vector.load %arg12[%631, %c0_271] : memref<64x32xf32, #tpu.memory_space<vmem>>, vector<8x32xf32>
    tpu.vector_store %arg12[%631, %c0_271], %630 {strides = array<i32>} : memref<64x32xf32, #tpu.memory_space<vmem>>, vector<8x32xf32>,
    %633 = vector.broadcast %628 : vector<8x1xf32> to vector<8x32xf32>
    %634 = arith.mulf %633, %626 : vector<8x32xf32>
    %cst_272 = arith.constant 1.000000e+00 : f32
    %635 = vector.broadcast %cst_272 : f32 to vector<8x1xf32>
    %636 = arith.subf %635, %628 : vector<8x1xf32>
    %637 = vector.broadcast %636 : vector<8x1xf32> to vector<8x32xf32>
    %638 = arith.mulf %637, %589 : vector<8x32xf32>
    %639 = arith.addf %634, %638 : vector<8x32xf32>
    %c3_i32_273 = arith.constant 3 : i32
    %c8_i32_274 = arith.constant 8 : i32
    %640 = arith.muli %c3_i32_273, %c8_i32_274 : i32
    %641 = tpu.assume_multiple %640, 8 : i32
    %642 = arith.index_cast %641 : i32 to index
    %c0_275 = arith.constant 0 : index
    %643 = vector.load %arg13[%642, %c0_275] : memref<64x32xf32, #tpu.memory_space<vmem>>, vector<8x32xf32>
    %644 = arith.index_cast %641 : i32 to index
    %c0_276 = arith.constant 0 : index
    %645 = vector.load %arg14[%644, %c0_276] : memref<64x32xf32, #tpu.memory_space<vmem>>, vector<8x32xf32>
    %646 = arith.index_cast %641 : i32 to index
    %c0_277 = arith.constant 0 : index
    %647 = vector.load %arg15[%646, %c0_277] : memref<64x32xf32, #tpu.memory_space<vmem>>, vector<8x32xf32>
    %cst_278 = arith.constant dense<0.000000e+00> : vector<8x32xf32>
    %648 = tpu.matmul %639, %477, %cst_278 {dimension_numbers = #tpu.dot_dimension_numbers<[1], [0], [0], [1], [0, 0, 1, 1], [], []>} : vector<8x32xf32>, vector<32x32xf32>, vector<8x32xf32> -> vector<8x32xf32>
    %649 = vector.broadcast %483 : vector<1x32xf32> to vector<8x32xf32>
    %650 = arith.addf %648, %649 : vector<8x32xf32>
    %cst_279 = arith.constant dense<0.000000e+00> : vector<8x32xf32>
    %651 = tpu.matmul %639, %479, %cst_279 {dimension_numbers = #tpu.dot_dimension_numbers<[1], [0], [0], [1], [0, 0, 1, 1], [], []>} : vector<8x32xf32>, vector<32x32xf32>, vector<8x32xf32> -> vector<8x32xf32>
    %652 = vector.broadcast %485 : vector<1x32xf32> to vector<8x32xf32>
    %653 = arith.addf %651, %652 : vector<8x32xf32>
    %cst_280 = arith.constant dense<0.000000e+00> : vector<8x32xf32>
    %654 = tpu.matmul %639, %481, %cst_280 {dimension_numbers = #tpu.dot_dimension_numbers<[1], [0], [0], [1], [0, 0, 1, 1], [], []>} : vector<8x32xf32>, vector<32x32xf32>, vector<8x32xf32> -> vector<8x32xf32>
    %655 = vector.broadcast %487 : vector<1x32xf32> to vector<8x32xf32>
    %656 = arith.addf %654, %655 : vector<8x32xf32>
    %657 = arith.addf %643, %650 : vector<8x32xf32>
    %658 = arith.negf %657 : vector<8x32xf32>
    %659 = math.exp %658 : vector<8x32xf32>
    %cst_281 = arith.constant 1.000000e+00 : f32
    %660 = vector.broadcast %cst_281 : f32 to vector<8x32xf32>
    %661 = arith.addf %660, %659 : vector<8x32xf32>
    %662 = arith.divf %660, %661 : vector<8x32xf32>
    %663 = arith.addf %645, %653 : vector<8x32xf32>
    %664 = arith.negf %663 : vector<8x32xf32>
    %665 = math.exp %664 : vector<8x32xf32>
    %cst_282 = arith.constant 1.000000e+00 : f32
    %666 = vector.broadcast %cst_282 : f32 to vector<8x32xf32>
    %667 = arith.addf %666, %665 : vector<8x32xf32>
    %668 = arith.divf %666, %667 : vector<8x32xf32>
    %669 = arith.mulf %662, %656 : vector<8x32xf32>
    %670 = arith.addf %647, %669 : vector<8x32xf32>
    %671 = math.tanh %670 : vector<8x32xf32>
    %cst_283 = arith.constant 1.000000e+00 : f32
    %672 = vector.broadcast %cst_283 : f32 to vector<8x32xf32>
    %673 = arith.subf %672, %668 : vector<8x32xf32>
    %674 = arith.mulf %673, %671 : vector<8x32xf32>
    %675 = arith.mulf %668, %639 : vector<8x32xf32>
    %676 = arith.addf %674, %675 : vector<8x32xf32>
    %677 = arith.index_cast %641 : i32 to index
    %c0_284 = arith.constant 0 : index
    %678 = vector.load %arg1[%677, %c0_284] : memref<64x1xf32, #tpu.memory_space<vmem>>, vector<8x1xf32>
    %679 = vector.broadcast %678 : vector<8x1xf32> to vector<8x32xf32>
    %680 = arith.mulf %679, %676 : vector<8x32xf32>
    %681 = arith.index_cast %641 : i32 to index
    %c0_285 = arith.constant 0 : index
    %682 = vector.load %arg12[%681, %c0_285] : memref<64x32xf32, #tpu.memory_space<vmem>>, vector<8x32xf32>
    tpu.vector_store %arg12[%681, %c0_285], %680 {strides = array<i32>} : memref<64x32xf32, #tpu.memory_space<vmem>>, vector<8x32xf32>,
    %683 = vector.broadcast %678 : vector<8x1xf32> to vector<8x32xf32>
    %684 = arith.mulf %683, %676 : vector<8x32xf32>
    %cst_286 = arith.constant 1.000000e+00 : f32
    %685 = vector.broadcast %cst_286 : f32 to vector<8x1xf32>
    %686 = arith.subf %685, %678 : vector<8x1xf32>
    %687 = vector.broadcast %686 : vector<8x1xf32> to vector<8x32xf32>
    %688 = arith.mulf %687, %639 : vector<8x32xf32>
    %689 = arith.addf %684, %688 : vector<8x32xf32>
    %c4_i32_287 = arith.constant 4 : i32
    %c8_i32_288 = arith.constant 8 : i32
    %690 = arith.muli %c4_i32_287, %c8_i32_288 : i32
    %691 = tpu.assume_multiple %690, 8 : i32
    %692 = arith.index_cast %691 : i32 to index
    %c0_289 = arith.constant 0 : index
    %693 = vector.load %arg13[%692, %c0_289] : memref<64x32xf32, #tpu.memory_space<vmem>>, vector<8x32xf32>
    %694 = arith.index_cast %691 : i32 to index
    %c0_290 = arith.constant 0 : index
    %695 = vector.load %arg14[%694, %c0_290] : memref<64x32xf32, #tpu.memory_space<vmem>>, vector<8x32xf32>
    %696 = arith.index_cast %691 : i32 to index
    %c0_291 = arith.constant 0 : index
    %697 = vector.load %arg15[%696, %c0_291] : memref<64x32xf32, #tpu.memory_space<vmem>>, vector<8x32xf32>
    %cst_292 = arith.constant dense<0.000000e+00> : vector<8x32xf32>
    %698 = tpu.matmul %689, %477, %cst_292 {dimension_numbers = #tpu.dot_dimension_numbers<[1], [0], [0], [1], [0, 0, 1, 1], [], []>} : vector<8x32xf32>, vector<32x32xf32>, vector<8x32xf32> -> vector<8x32xf32>
    %699 = vector.broadcast %483 : vector<1x32xf32> to vector<8x32xf32>
    %700 = arith.addf %698, %699 : vector<8x32xf32>
    %cst_293 = arith.constant dense<0.000000e+00> : vector<8x32xf32>
    %701 = tpu.matmul %689, %479, %cst_293 {dimension_numbers = #tpu.dot_dimension_numbers<[1], [0], [0], [1], [0, 0, 1, 1], [], []>} : vector<8x32xf32>, vector<32x32xf32>, vector<8x32xf32> -> vector<8x32xf32>
    %702 = vector.broadcast %485 : vector<1x32xf32> to vector<8x32xf32>
    %703 = arith.addf %701, %702 : vector<8x32xf32>
    %cst_294 = arith.constant dense<0.000000e+00> : vector<8x32xf32>
    %704 = tpu.matmul %689, %481, %cst_294 {dimension_numbers = #tpu.dot_dimension_numbers<[1], [0], [0], [1], [0, 0, 1, 1], [], []>} : vector<8x32xf32>, vector<32x32xf32>, vector<8x32xf32> -> vector<8x32xf32>
    %705 = vector.broadcast %487 : vector<1x32xf32> to vector<8x32xf32>
    %706 = arith.addf %704, %705 : vector<8x32xf32>
    %707 = arith.addf %693, %700 : vector<8x32xf32>
    %708 = arith.negf %707 : vector<8x32xf32>
    %709 = math.exp %708 : vector<8x32xf32>
    %cst_295 = arith.constant 1.000000e+00 : f32
    %710 = vector.broadcast %cst_295 : f32 to vector<8x32xf32>
    %711 = arith.addf %710, %709 : vector<8x32xf32>
    %712 = arith.divf %710, %711 : vector<8x32xf32>
    %713 = arith.addf %695, %703 : vector<8x32xf32>
    %714 = arith.negf %713 : vector<8x32xf32>
    %715 = math.exp %714 : vector<8x32xf32>
    %cst_296 = arith.constant 1.000000e+00 : f32
    %716 = vector.broadcast %cst_296 : f32 to vector<8x32xf32>
    %717 = arith.addf %716, %715 : vector<8x32xf32>
    %718 = arith.divf %716, %717 : vector<8x32xf32>
    %719 = arith.mulf %712, %706 : vector<8x32xf32>
    %720 = arith.addf %697, %719 : vector<8x32xf32>
    %721 = math.tanh %720 : vector<8x32xf32>
    %cst_297 = arith.constant 1.000000e+00 : f32
    %722 = vector.broadcast %cst_297 : f32 to vector<8x32xf32>
    %723 = arith.subf %722, %718 : vector<8x32xf32>
    %724 = arith.mulf %723, %721 : vector<8x32xf32>
    %725 = arith.mulf %718, %689 : vector<8x32xf32>
    %726 = arith.addf %724, %725 : vector<8x32xf32>
    %727 = arith.index_cast %691 : i32 to index
    %c0_298 = arith.constant 0 : index
    %728 = vector.load %arg1[%727, %c0_298] : memref<64x1xf32, #tpu.memory_space<vmem>>, vector<8x1xf32>
    %729 = vector.broadcast %728 : vector<8x1xf32> to vector<8x32xf32>
    %730 = arith.mulf %729, %726 : vector<8x32xf32>
    %731 = arith.index_cast %691 : i32 to index
    %c0_299 = arith.constant 0 : index
    %732 = vector.load %arg12[%731, %c0_299] : memref<64x32xf32, #tpu.memory_space<vmem>>, vector<8x32xf32>
    tpu.vector_store %arg12[%731, %c0_299], %730 {strides = array<i32>} : memref<64x32xf32, #tpu.memory_space<vmem>>, vector<8x32xf32>,
    %733 = vector.broadcast %728 : vector<8x1xf32> to vector<8x32xf32>
    %734 = arith.mulf %733, %726 : vector<8x32xf32>
    %cst_300 = arith.constant 1.000000e+00 : f32
    %735 = vector.broadcast %cst_300 : f32 to vector<8x1xf32>
    %736 = arith.subf %735, %728 : vector<8x1xf32>
    %737 = vector.broadcast %736 : vector<8x1xf32> to vector<8x32xf32>
    %738 = arith.mulf %737, %689 : vector<8x32xf32>
    %739 = arith.addf %734, %738 : vector<8x32xf32>
    %c5_i32_301 = arith.constant 5 : i32
    %c8_i32_302 = arith.constant 8 : i32
    %740 = arith.muli %c5_i32_301, %c8_i32_302 : i32
    %741 = tpu.assume_multiple %740, 8 : i32
    %742 = arith.index_cast %741 : i32 to index
    %c0_303 = arith.constant 0 : index
    %743 = vector.load %arg13[%742, %c0_303] : memref<64x32xf32, #tpu.memory_space<vmem>>, vector<8x32xf32>
    %744 = arith.index_cast %741 : i32 to index
    %c0_304 = arith.constant 0 : index
    %745 = vector.load %arg14[%744, %c0_304] : memref<64x32xf32, #tpu.memory_space<vmem>>, vector<8x32xf32>
    %746 = arith.index_cast %741 : i32 to index
    %c0_305 = arith.constant 0 : index
    %747 = vector.load %arg15[%746, %c0_305] : memref<64x32xf32, #tpu.memory_space<vmem>>, vector<8x32xf32>
    %cst_306 = arith.constant dense<0.000000e+00> : vector<8x32xf32>
    %748 = tpu.matmul %739, %477, %cst_306 {dimension_numbers = #tpu.dot_dimension_numbers<[1], [0], [0], [1], [0, 0, 1, 1], [], []>} : vector<8x32xf32>, vector<32x32xf32>, vector<8x32xf32> -> vector<8x32xf32>
    %749 = vector.broadcast %483 : vector<1x32xf32> to vector<8x32xf32>
    %750 = arith.addf %748, %749 : vector<8x32xf32>
    %cst_307 = arith.constant dense<0.000000e+00> : vector<8x32xf32>
    %751 = tpu.matmul %739, %479, %cst_307 {dimension_numbers = #tpu.dot_dimension_numbers<[1], [0], [0], [1], [0, 0, 1, 1], [], []>} : vector<8x32xf32>, vector<32x32xf32>, vector<8x32xf32> -> vector<8x32xf32>
    %752 = vector.broadcast %485 : vector<1x32xf32> to vector<8x32xf32>
    %753 = arith.addf %751, %752 : vector<8x32xf32>
    %cst_308 = arith.constant dense<0.000000e+00> : vector<8x32xf32>
    %754 = tpu.matmul %739, %481, %cst_308 {dimension_numbers = #tpu.dot_dimension_numbers<[1], [0], [0], [1], [0, 0, 1, 1], [], []>} : vector<8x32xf32>, vector<32x32xf32>, vector<8x32xf32> -> vector<8x32xf32>
    %755 = vector.broadcast %487 : vector<1x32xf32> to vector<8x32xf32>
    %756 = arith.addf %754, %755 : vector<8x32xf32>
    %757 = arith.addf %743, %750 : vector<8x32xf32>
    %758 = arith.negf %757 : vector<8x32xf32>
    %759 = math.exp %758 : vector<8x32xf32>
    %cst_309 = arith.constant 1.000000e+00 : f32
    %760 = vector.broadcast %cst_309 : f32 to vector<8x32xf32>
    %761 = arith.addf %760, %759 : vector<8x32xf32>
    %762 = arith.divf %760, %761 : vector<8x32xf32>
    %763 = arith.addf %745, %753 : vector<8x32xf32>
    %764 = arith.negf %763 : vector<8x32xf32>
    %765 = math.exp %764 : vector<8x32xf32>
    %cst_310 = arith.constant 1.000000e+00 : f32
    %766 = vector.broadcast %cst_310 : f32 to vector<8x32xf32>
    %767 = arith.addf %766, %765 : vector<8x32xf32>
    %768 = arith.divf %766, %767 : vector<8x32xf32>
    %769 = arith.mulf %762, %756 : vector<8x32xf32>
    %770 = arith.addf %747, %769 : vector<8x32xf32>
    %771 = math.tanh %770 : vector<8x32xf32>
    %cst_311 = arith.constant 1.000000e+00 : f32
    %772 = vector.broadcast %cst_311 : f32 to vector<8x32xf32>
    %773 = arith.subf %772, %768 : vector<8x32xf32>
    %774 = arith.mulf %773, %771 : vector<8x32xf32>
    %775 = arith.mulf %768, %739 : vector<8x32xf32>
    %776 = arith.addf %774, %775 : vector<8x32xf32>
    %777 = arith.index_cast %741 : i32 to index
    %c0_312 = arith.constant 0 : index
    %778 = vector.load %arg1[%777, %c0_312] : memref<64x1xf32, #tpu.memory_space<vmem>>, vector<8x1xf32>
    %779 = vector.broadcast %778 : vector<8x1xf32> to vector<8x32xf32>
    %780 = arith.mulf %779, %776 : vector<8x32xf32>
    %781 = arith.index_cast %741 : i32 to index
    %c0_313 = arith.constant 0 : index
    %782 = vector.load %arg12[%781, %c0_313] : memref<64x32xf32, #tpu.memory_space<vmem>>, vector<8x32xf32>
    tpu.vector_store %arg12[%781, %c0_313], %780 {strides = array<i32>} : memref<64x32xf32, #tpu.memory_space<vmem>>, vector<8x32xf32>,
    %783 = vector.broadcast %778 : vector<8x1xf32> to vector<8x32xf32>
    %784 = arith.mulf %783, %776 : vector<8x32xf32>
    %cst_314 = arith.constant 1.000000e+00 : f32
    %785 = vector.broadcast %cst_314 : f32 to vector<8x1xf32>
    %786 = arith.subf %785, %778 : vector<8x1xf32>
    %787 = vector.broadcast %786 : vector<8x1xf32> to vector<8x32xf32>
    %788 = arith.mulf %787, %739 : vector<8x32xf32>
    %789 = arith.addf %784, %788 : vector<8x32xf32>
    %c6_i32_315 = arith.constant 6 : i32
    %c8_i32_316 = arith.constant 8 : i32
    %790 = arith.muli %c6_i32_315, %c8_i32_316 : i32
    %791 = tpu.assume_multiple %790, 8 : i32
    %792 = arith.index_cast %791 : i32 to index
    %c0_317 = arith.constant 0 : index
    %793 = vector.load %arg13[%792, %c0_317] : memref<64x32xf32, #tpu.memory_space<vmem>>, vector<8x32xf32>
    %794 = arith.index_cast %791 : i32 to index
    %c0_318 = arith.constant 0 : index
    %795 = vector.load %arg14[%794, %c0_318] : memref<64x32xf32, #tpu.memory_space<vmem>>, vector<8x32xf32>
    %796 = arith.index_cast %791 : i32 to index
    %c0_319 = arith.constant 0 : index
    %797 = vector.load %arg15[%796, %c0_319] : memref<64x32xf32, #tpu.memory_space<vmem>>, vector<8x32xf32>
    %cst_320 = arith.constant dense<0.000000e+00> : vector<8x32xf32>
    %798 = tpu.matmul %789, %477, %cst_320 {dimension_numbers = #tpu.dot_dimension_numbers<[1], [0], [0], [1], [0, 0, 1, 1], [], []>} : vector<8x32xf32>, vector<32x32xf32>, vector<8x32xf32> -> vector<8x32xf32>
    %799 = vector.broadcast %483 : vector<1x32xf32> to vector<8x32xf32>
    %800 = arith.addf %798, %799 : vector<8x32xf32>
    %cst_321 = arith.constant dense<0.000000e+00> : vector<8x32xf32>
    %801 = tpu.matmul %789, %479, %cst_321 {dimension_numbers = #tpu.dot_dimension_numbers<[1], [0], [0], [1], [0, 0, 1, 1], [], []>} : vector<8x32xf32>, vector<32x32xf32>, vector<8x32xf32> -> vector<8x32xf32>
    %802 = vector.broadcast %485 : vector<1x32xf32> to vector<8x32xf32>
    %803 = arith.addf %801, %802 : vector<8x32xf32>
    %cst_322 = arith.constant dense<0.000000e+00> : vector<8x32xf32>
    %804 = tpu.matmul %789, %481, %cst_322 {dimension_numbers = #tpu.dot_dimension_numbers<[1], [0], [0], [1], [0, 0, 1, 1], [], []>} : vector<8x32xf32>, vector<32x32xf32>, vector<8x32xf32> -> vector<8x32xf32>
    %805 = vector.broadcast %487 : vector<1x32xf32> to vector<8x32xf32>
    %806 = arith.addf %804, %805 : vector<8x32xf32>
    %807 = arith.addf %793, %800 : vector<8x32xf32>
    %808 = arith.negf %807 : vector<8x32xf32>
    %809 = math.exp %808 : vector<8x32xf32>
    %cst_323 = arith.constant 1.000000e+00 : f32
    %810 = vector.broadcast %cst_323 : f32 to vector<8x32xf32>
    %811 = arith.addf %810, %809 : vector<8x32xf32>
    %812 = arith.divf %810, %811 : vector<8x32xf32>
    %813 = arith.addf %795, %803 : vector<8x32xf32>
    %814 = arith.negf %813 : vector<8x32xf32>
    %815 = math.exp %814 : vector<8x32xf32>
    %cst_324 = arith.constant 1.000000e+00 : f32
    %816 = vector.broadcast %cst_324 : f32 to vector<8x32xf32>
    %817 = arith.addf %816, %815 : vector<8x32xf32>
    %818 = arith.divf %816, %817 : vector<8x32xf32>
    %819 = arith.mulf %812, %806 : vector<8x32xf32>
    %820 = arith.addf %797, %819 : vector<8x32xf32>
    %821 = math.tanh %820 : vector<8x32xf32>
    %cst_325 = arith.constant 1.000000e+00 : f32
    %822 = vector.broadcast %cst_325 : f32 to vector<8x32xf32>
    %823 = arith.subf %822, %818 : vector<8x32xf32>
    %824 = arith.mulf %823, %821 : vector<8x32xf32>
    %825 = arith.mulf %818, %789 : vector<8x32xf32>
    %826 = arith.addf %824, %825 : vector<8x32xf32>
    %827 = arith.index_cast %791 : i32 to index
    %c0_326 = arith.constant 0 : index
    %828 = vector.load %arg1[%827, %c0_326] : memref<64x1xf32, #tpu.memory_space<vmem>>, vector<8x1xf32>
    %829 = vector.broadcast %828 : vector<8x1xf32> to vector<8x32xf32>
    %830 = arith.mulf %829, %826 : vector<8x32xf32>
    %831 = arith.index_cast %791 : i32 to index
    %c0_327 = arith.constant 0 : index
    %832 = vector.load %arg12[%831, %c0_327] : memref<64x32xf32, #tpu.memory_space<vmem>>, vector<8x32xf32>
    tpu.vector_store %arg12[%831, %c0_327], %830 {strides = array<i32>} : memref<64x32xf32, #tpu.memory_space<vmem>>, vector<8x32xf32>,
    %833 = vector.broadcast %828 : vector<8x1xf32> to vector<8x32xf32>
    %834 = arith.mulf %833, %826 : vector<8x32xf32>
    %cst_328 = arith.constant 1.000000e+00 : f32
    %835 = vector.broadcast %cst_328 : f32 to vector<8x1xf32>
    %836 = arith.subf %835, %828 : vector<8x1xf32>
    %837 = vector.broadcast %836 : vector<8x1xf32> to vector<8x32xf32>
    %838 = arith.mulf %837, %789 : vector<8x32xf32>
    %839 = arith.addf %834, %838 : vector<8x32xf32>
    %c7_i32_329 = arith.constant 7 : i32
    %c8_i32_330 = arith.constant 8 : i32
    %840 = arith.muli %c7_i32_329, %c8_i32_330 : i32
    %841 = tpu.assume_multiple %840, 8 : i32
    %842 = arith.index_cast %841 : i32 to index
    %c0_331 = arith.constant 0 : index
    %843 = vector.load %arg13[%842, %c0_331] : memref<64x32xf32, #tpu.memory_space<vmem>>, vector<8x32xf32>
    %844 = arith.index_cast %841 : i32 to index
    %c0_332 = arith.constant 0 : index
    %845 = vector.load %arg14[%844, %c0_332] : memref<64x32xf32, #tpu.memory_space<vmem>>, vector<8x32xf32>
    %846 = arith.index_cast %841 : i32 to index
    %c0_333 = arith.constant 0 : index
    %847 = vector.load %arg15[%846, %c0_333] : memref<64x32xf32, #tpu.memory_space<vmem>>, vector<8x32xf32>
    %cst_334 = arith.constant dense<0.000000e+00> : vector<8x32xf32>
    %848 = tpu.matmul %839, %477, %cst_334 {dimension_numbers = #tpu.dot_dimension_numbers<[1], [0], [0], [1], [0, 0, 1, 1], [], []>} : vector<8x32xf32>, vector<32x32xf32>, vector<8x32xf32> -> vector<8x32xf32>
    %849 = vector.broadcast %483 : vector<1x32xf32> to vector<8x32xf32>
    %850 = arith.addf %848, %849 : vector<8x32xf32>
    %cst_335 = arith.constant dense<0.000000e+00> : vector<8x32xf32>
    %851 = tpu.matmul %839, %479, %cst_335 {dimension_numbers = #tpu.dot_dimension_numbers<[1], [0], [0], [1], [0, 0, 1, 1], [], []>} : vector<8x32xf32>, vector<32x32xf32>, vector<8x32xf32> -> vector<8x32xf32>
    %852 = vector.broadcast %485 : vector<1x32xf32> to vector<8x32xf32>
    %853 = arith.addf %851, %852 : vector<8x32xf32>
    %cst_336 = arith.constant dense<0.000000e+00> : vector<8x32xf32>
    %854 = tpu.matmul %839, %481, %cst_336 {dimension_numbers = #tpu.dot_dimension_numbers<[1], [0], [0], [1], [0, 0, 1, 1], [], []>} : vector<8x32xf32>, vector<32x32xf32>, vector<8x32xf32> -> vector<8x32xf32>
    %855 = vector.broadcast %487 : vector<1x32xf32> to vector<8x32xf32>
    %856 = arith.addf %854, %855 : vector<8x32xf32>
    %857 = arith.addf %843, %850 : vector<8x32xf32>
    %858 = arith.negf %857 : vector<8x32xf32>
    %859 = math.exp %858 : vector<8x32xf32>
    %cst_337 = arith.constant 1.000000e+00 : f32
    %860 = vector.broadcast %cst_337 : f32 to vector<8x32xf32>
    %861 = arith.addf %860, %859 : vector<8x32xf32>
    %862 = arith.divf %860, %861 : vector<8x32xf32>
    %863 = arith.addf %845, %853 : vector<8x32xf32>
    %864 = arith.negf %863 : vector<8x32xf32>
    %865 = math.exp %864 : vector<8x32xf32>
    %cst_338 = arith.constant 1.000000e+00 : f32
    %866 = vector.broadcast %cst_338 : f32 to vector<8x32xf32>
    %867 = arith.addf %866, %865 : vector<8x32xf32>
    %868 = arith.divf %866, %867 : vector<8x32xf32>
    %869 = arith.mulf %862, %856 : vector<8x32xf32>
    %870 = arith.addf %847, %869 : vector<8x32xf32>
    %871 = math.tanh %870 : vector<8x32xf32>
    %cst_339 = arith.constant 1.000000e+00 : f32
    %872 = vector.broadcast %cst_339 : f32 to vector<8x32xf32>
    %873 = arith.subf %872, %868 : vector<8x32xf32>
    %874 = arith.mulf %873, %871 : vector<8x32xf32>
    %875 = arith.mulf %868, %839 : vector<8x32xf32>
    %876 = arith.addf %874, %875 : vector<8x32xf32>
    %877 = arith.index_cast %841 : i32 to index
    %c0_340 = arith.constant 0 : index
    %878 = vector.load %arg1[%877, %c0_340] : memref<64x1xf32, #tpu.memory_space<vmem>>, vector<8x1xf32>
    %879 = vector.broadcast %878 : vector<8x1xf32> to vector<8x32xf32>
    %880 = arith.mulf %879, %876 : vector<8x32xf32>
    %881 = arith.index_cast %841 : i32 to index
    %c0_341 = arith.constant 0 : index
    %882 = vector.load %arg12[%881, %c0_341] : memref<64x32xf32, #tpu.memory_space<vmem>>, vector<8x32xf32>
    tpu.vector_store %arg12[%881, %c0_341], %880 {strides = array<i32>} : memref<64x32xf32, #tpu.memory_space<vmem>>, vector<8x32xf32>,
    %883 = vector.broadcast %878 : vector<8x1xf32> to vector<8x32xf32>
    %884 = arith.mulf %883, %876 : vector<8x32xf32>
    %cst_342 = arith.constant 1.000000e+00 : f32
    %885 = vector.broadcast %cst_342 : f32 to vector<8x1xf32>
    %886 = arith.subf %885, %878 : vector<8x1xf32>
    %887 = vector.broadcast %886 : vector<8x1xf32> to vector<8x32xf32>
    %888 = arith.mulf %887, %839 : vector<8x32xf32>
    %889 = arith.addf %884, %888 : vector<8x32xf32>
    %c8_i32_343 = arith.constant 8 : i32
    %c1_344 = arith.constant 1 : index
    %c0_345 = arith.constant 0 : index
    %c0_346 = arith.constant 0 : index
    %890 = vector.load %arg11[%c1_344, %c0_345, %c0_346] : memref<3x8x32xf32, #tpu.memory_space<vmem>>, vector<1x8x32xf32>
    %891 = vector.shape_cast %890 : vector<1x8x32xf32> to vector<8x32xf32>
    %892 = vector.shape_cast %889 : vector<8x32xf32> to vector<1x8x32xf32>
    tpu.vector_store %arg11[%c1_344, %c0_345, %c0_346], %892 {strides = array<i32>} : memref<3x8x32xf32, #tpu.memory_space<vmem>>, vector<1x8x32xf32>,
    %c0_347 = arith.constant 0 : index
    %c0_348 = arith.constant 0 : index
    %893 = vector.load %arg12[%c0_347, %c0_348] : memref<64x32xf32, #tpu.memory_space<vmem>>, vector<64x32xf32>
    %c2_349 = arith.constant 2 : index
    %c0_350 = arith.constant 0 : index
    %c0_351 = arith.constant 0 : index
    %c0_352 = arith.constant 0 : index
    %894 = vector.load %arg4[%c2_349, %c0_350, %c0_351, %c0_352] : memref<3x3x32x32xf32, #tpu.memory_space<vmem>>, vector<1x1x32x32xf32>
    %895 = vector.shape_cast %894 : vector<1x1x32x32xf32> to vector<32x32xf32>
    %cst_353 = arith.constant dense<0.000000e+00> : vector<64x32xf32>
    %896 = tpu.matmul %893, %895, %cst_353 {dimension_numbers = #tpu.dot_dimension_numbers<[1], [0], [0], [1], [0, 0, 1, 1], [], []>} : vector<64x32xf32>, vector<32x32xf32>, vector<64x32xf32> -> vector<64x32xf32>
    %c2_354 = arith.constant 2 : index
    %c0_355 = arith.constant 0 : index
    %c0_356 = arith.constant 0 : index
    %c0_357 = arith.constant 0 : index
    %897 = vector.load %arg6[%c2_354, %c0_355, %c0_356, %c0_357] : memref<3x3x1x32xf32, #tpu.memory_space<vmem>>, vector<1x1x1x32xf32>
    %898 = vector.shape_cast %897 : vector<1x1x1x32xf32> to vector<1x32xf32>
    %899 = vector.broadcast %898 : vector<1x32xf32> to vector<64x32xf32>
    %900 = arith.addf %896, %899 : vector<64x32xf32>
    %c0_358 = arith.constant 0 : index
    %c0_359 = arith.constant 0 : index
    %901 = vector.load %arg13[%c0_358, %c0_359] : memref<64x32xf32, #tpu.memory_space<vmem>>, vector<64x32xf32>
    tpu.vector_store %arg13[%c0_358, %c0_359], %900 {strides = array<i32>} : memref<64x32xf32, #tpu.memory_space<vmem>>, vector<64x32xf32>,
    %c2_360 = arith.constant 2 : index
    %c1_361 = arith.constant 1 : index
    %c0_362 = arith.constant 0 : index
    %c0_363 = arith.constant 0 : index
    %902 = vector.load %arg4[%c2_360, %c1_361, %c0_362, %c0_363] : memref<3x3x32x32xf32, #tpu.memory_space<vmem>>, vector<1x1x32x32xf32>
    %903 = vector.shape_cast %902 : vector<1x1x32x32xf32> to vector<32x32xf32>
    %cst_364 = arith.constant dense<0.000000e+00> : vector<64x32xf32>
    %904 = tpu.matmul %893, %903, %cst_364 {dimension_numbers = #tpu.dot_dimension_numbers<[1], [0], [0], [1], [0, 0, 1, 1], [], []>} : vector<64x32xf32>, vector<32x32xf32>, vector<64x32xf32> -> vector<64x32xf32>
    %c2_365 = arith.constant 2 : index
    %c1_366 = arith.constant 1 : index
    %c0_367 = arith.constant 0 : index
    %c0_368 = arith.constant 0 : index
    %905 = vector.load %arg6[%c2_365, %c1_366, %c0_367, %c0_368] : memref<3x3x1x32xf32, #tpu.memory_space<vmem>>, vector<1x1x1x32xf32>
    %906 = vector.shape_cast %905 : vector<1x1x1x32xf32> to vector<1x32xf32>
    %907 = vector.broadcast %906 : vector<1x32xf32> to vector<64x32xf32>
    %908 = arith.addf %904, %907 : vector<64x32xf32>
    %c0_369 = arith.constant 0 : index
    %c0_370 = arith.constant 0 : index
    %909 = vector.load %arg14[%c0_369, %c0_370] : memref<64x32xf32, #tpu.memory_space<vmem>>, vector<64x32xf32>
    tpu.vector_store %arg14[%c0_369, %c0_370], %908 {strides = array<i32>} : memref<64x32xf32, #tpu.memory_space<vmem>>, vector<64x32xf32>,
    %c2_371 = arith.constant 2 : index
    %c2_372 = arith.constant 2 : index
    %c0_373 = arith.constant 0 : index
    %c0_374 = arith.constant 0 : index
    %910 = vector.load %arg4[%c2_371, %c2_372, %c0_373, %c0_374] : memref<3x3x32x32xf32, #tpu.memory_space<vmem>>, vector<1x1x32x32xf32>
    %911 = vector.shape_cast %910 : vector<1x1x32x32xf32> to vector<32x32xf32>
    %cst_375 = arith.constant dense<0.000000e+00> : vector<64x32xf32>
    %912 = tpu.matmul %893, %911, %cst_375 {dimension_numbers = #tpu.dot_dimension_numbers<[1], [0], [0], [1], [0, 0, 1, 1], [], []>} : vector<64x32xf32>, vector<32x32xf32>, vector<64x32xf32> -> vector<64x32xf32>
    %c2_376 = arith.constant 2 : index
    %c2_377 = arith.constant 2 : index
    %c0_378 = arith.constant 0 : index
    %c0_379 = arith.constant 0 : index
    %913 = vector.load %arg6[%c2_376, %c2_377, %c0_378, %c0_379] : memref<3x3x1x32xf32, #tpu.memory_space<vmem>>, vector<1x1x1x32xf32>
    %914 = vector.shape_cast %913 : vector<1x1x1x32xf32> to vector<1x32xf32>
    %915 = vector.broadcast %914 : vector<1x32xf32> to vector<64x32xf32>
    %916 = arith.addf %912, %915 : vector<64x32xf32>
    %c0_380 = arith.constant 0 : index
    %c0_381 = arith.constant 0 : index
    %917 = vector.load %arg15[%c0_380, %c0_381] : memref<64x32xf32, #tpu.memory_space<vmem>>, vector<64x32xf32>
    tpu.vector_store %arg15[%c0_380, %c0_381], %916 {strides = array<i32>} : memref<64x32xf32, #tpu.memory_space<vmem>>, vector<64x32xf32>,
    %c2_382 = arith.constant 2 : index
    %c0_383 = arith.constant 0 : index
    %c0_384 = arith.constant 0 : index
    %c0_385 = arith.constant 0 : index
    %918 = vector.load %arg5[%c2_382, %c0_383, %c0_384, %c0_385] : memref<3x3x32x32xf32, #tpu.memory_space<vmem>>, vector<1x1x32x32xf32>
    %919 = vector.shape_cast %918 : vector<1x1x32x32xf32> to vector<32x32xf32>
    %c2_386 = arith.constant 2 : index
    %c1_387 = arith.constant 1 : index
    %c0_388 = arith.constant 0 : index
    %c0_389 = arith.constant 0 : index
    %920 = vector.load %arg5[%c2_386, %c1_387, %c0_388, %c0_389] : memref<3x3x32x32xf32, #tpu.memory_space<vmem>>, vector<1x1x32x32xf32>
    %921 = vector.shape_cast %920 : vector<1x1x32x32xf32> to vector<32x32xf32>
    %c2_390 = arith.constant 2 : index
    %c2_391 = arith.constant 2 : index
    %c0_392 = arith.constant 0 : index
    %c0_393 = arith.constant 0 : index
    %922 = vector.load %arg5[%c2_390, %c2_391, %c0_392, %c0_393] : memref<3x3x32x32xf32, #tpu.memory_space<vmem>>, vector<1x1x32x32xf32>
    %923 = vector.shape_cast %922 : vector<1x1x32x32xf32> to vector<32x32xf32>
    %c2_394 = arith.constant 2 : index
    %c0_395 = arith.constant 0 : index
    %c0_396 = arith.constant 0 : index
    %c0_397 = arith.constant 0 : index
    %924 = vector.load %arg7[%c2_394, %c0_395, %c0_396, %c0_397] : memref<3x3x1x32xf32, #tpu.memory_space<vmem>>, vector<1x1x1x32xf32>
    %925 = vector.shape_cast %924 : vector<1x1x1x32xf32> to vector<1x32xf32>
    %c2_398 = arith.constant 2 : index
    %c1_399 = arith.constant 1 : index
    %c0_400 = arith.constant 0 : index
    %c0_401 = arith.constant 0 : index
    %926 = vector.load %arg7[%c2_398, %c1_399, %c0_400, %c0_401] : memref<3x3x1x32xf32, #tpu.memory_space<vmem>>, vector<1x1x1x32xf32>
    %927 = vector.shape_cast %926 : vector<1x1x1x32xf32> to vector<1x32xf32>
    %c2_402 = arith.constant 2 : index
    %c2_403 = arith.constant 2 : index
    %c0_404 = arith.constant 0 : index
    %c0_405 = arith.constant 0 : index
    %928 = vector.load %arg7[%c2_402, %c2_403, %c0_404, %c0_405] : memref<3x3x1x32xf32, #tpu.memory_space<vmem>>, vector<1x1x1x32xf32>
    %929 = vector.shape_cast %928 : vector<1x1x1x32xf32> to vector<1x32xf32>
    %c2_406 = arith.constant 2 : index
    %c0_407 = arith.constant 0 : index
    %c0_408 = arith.constant 0 : index
    %930 = vector.load %arg3[%c2_406, %c0_407, %c0_408] : memref<3x8x32xf32, #tpu.memory_space<vmem>>, vector<1x8x32xf32>
    %931 = vector.shape_cast %930 : vector<1x8x32xf32> to vector<8x32xf32>
    %c0_i32_409 = arith.constant 0 : i32
    %c8_i32_410 = arith.constant 8 : i32
    %932 = arith.muli %c0_i32_409, %c8_i32_410 : i32
    %933 = tpu.assume_multiple %932, 8 : i32
    %934 = arith.index_cast %933 : i32 to index
    %c0_411 = arith.constant 0 : index
    %935 = vector.load %arg13[%934, %c0_411] : memref<64x32xf32, #tpu.memory_space<vmem>>, vector<8x32xf32>
    %936 = arith.index_cast %933 : i32 to index
    %c0_412 = arith.constant 0 : index
    %937 = vector.load %arg14[%936, %c0_412] : memref<64x32xf32, #tpu.memory_space<vmem>>, vector<8x32xf32>
    %938 = arith.index_cast %933 : i32 to index
    %c0_413 = arith.constant 0 : index
    %939 = vector.load %arg15[%938, %c0_413] : memref<64x32xf32, #tpu.memory_space<vmem>>, vector<8x32xf32>
    %cst_414 = arith.constant dense<0.000000e+00> : vector<8x32xf32>
    %940 = tpu.matmul %931, %919, %cst_414 {dimension_numbers = #tpu.dot_dimension_numbers<[1], [0], [0], [1], [0, 0, 1, 1], [], []>} : vector<8x32xf32>, vector<32x32xf32>, vector<8x32xf32> -> vector<8x32xf32>
    %941 = vector.broadcast %925 : vector<1x32xf32> to vector<8x32xf32>
    %942 = arith.addf %940, %941 : vector<8x32xf32>
    %cst_415 = arith.constant dense<0.000000e+00> : vector<8x32xf32>
    %943 = tpu.matmul %931, %921, %cst_415 {dimension_numbers = #tpu.dot_dimension_numbers<[1], [0], [0], [1], [0, 0, 1, 1], [], []>} : vector<8x32xf32>, vector<32x32xf32>, vector<8x32xf32> -> vector<8x32xf32>
    %944 = vector.broadcast %927 : vector<1x32xf32> to vector<8x32xf32>
    %945 = arith.addf %943, %944 : vector<8x32xf32>
    %cst_416 = arith.constant dense<0.000000e+00> : vector<8x32xf32>
    %946 = tpu.matmul %931, %923, %cst_416 {dimension_numbers = #tpu.dot_dimension_numbers<[1], [0], [0], [1], [0, 0, 1, 1], [], []>} : vector<8x32xf32>, vector<32x32xf32>, vector<8x32xf32> -> vector<8x32xf32>
    %947 = vector.broadcast %929 : vector<1x32xf32> to vector<8x32xf32>
    %948 = arith.addf %946, %947 : vector<8x32xf32>
    %949 = arith.addf %935, %942 : vector<8x32xf32>
    %950 = arith.negf %949 : vector<8x32xf32>
    %951 = math.exp %950 : vector<8x32xf32>
    %cst_417 = arith.constant 1.000000e+00 : f32
    %952 = vector.broadcast %cst_417 : f32 to vector<8x32xf32>
    %953 = arith.addf %952, %951 : vector<8x32xf32>
    %954 = arith.divf %952, %953 : vector<8x32xf32>
    %955 = arith.addf %937, %945 : vector<8x32xf32>
    %956 = arith.negf %955 : vector<8x32xf32>
    %957 = math.exp %956 : vector<8x32xf32>
    %cst_418 = arith.constant 1.000000e+00 : f32
    %958 = vector.broadcast %cst_418 : f32 to vector<8x32xf32>
    %959 = arith.addf %958, %957 : vector<8x32xf32>
    %960 = arith.divf %958, %959 : vector<8x32xf32>
    %961 = arith.mulf %954, %948 : vector<8x32xf32>
    %962 = arith.addf %939, %961 : vector<8x32xf32>
    %963 = math.tanh %962 : vector<8x32xf32>
    %cst_419 = arith.constant 1.000000e+00 : f32
    %964 = vector.broadcast %cst_419 : f32 to vector<8x32xf32>
    %965 = arith.subf %964, %960 : vector<8x32xf32>
    %966 = arith.mulf %965, %963 : vector<8x32xf32>
    %967 = arith.mulf %960, %931 : vector<8x32xf32>
    %968 = arith.addf %966, %967 : vector<8x32xf32>
    %969 = arith.index_cast %933 : i32 to index
    %c0_420 = arith.constant 0 : index
    %970 = vector.load %arg1[%969, %c0_420] : memref<64x1xf32, #tpu.memory_space<vmem>>, vector<8x1xf32>
    %971 = vector.broadcast %970 : vector<8x1xf32> to vector<8x32xf32>
    %972 = arith.mulf %971, %968 : vector<8x32xf32>
    %973 = arith.index_cast %933 : i32 to index
    %c0_421 = arith.constant 0 : index
    %974 = vector.load %arg12[%973, %c0_421] : memref<64x32xf32, #tpu.memory_space<vmem>>, vector<8x32xf32>
    tpu.vector_store %arg12[%973, %c0_421], %972 {strides = array<i32>} : memref<64x32xf32, #tpu.memory_space<vmem>>, vector<8x32xf32>,
    %975 = vector.broadcast %970 : vector<8x1xf32> to vector<8x32xf32>
    %976 = arith.mulf %975, %968 : vector<8x32xf32>
    %cst_422 = arith.constant 1.000000e+00 : f32
    %977 = vector.broadcast %cst_422 : f32 to vector<8x1xf32>
    %978 = arith.subf %977, %970 : vector<8x1xf32>
    %979 = vector.broadcast %978 : vector<8x1xf32> to vector<8x32xf32>
    %980 = arith.mulf %979, %931 : vector<8x32xf32>
    %981 = arith.addf %976, %980 : vector<8x32xf32>
    %c1_i32_423 = arith.constant 1 : i32
    %c8_i32_424 = arith.constant 8 : i32
    %982 = arith.muli %c1_i32_423, %c8_i32_424 : i32
    %983 = tpu.assume_multiple %982, 8 : i32
    %984 = arith.index_cast %983 : i32 to index
    %c0_425 = arith.constant 0 : index
    %985 = vector.load %arg13[%984, %c0_425] : memref<64x32xf32, #tpu.memory_space<vmem>>, vector<8x32xf32>
    %986 = arith.index_cast %983 : i32 to index
    %c0_426 = arith.constant 0 : index
    %987 = vector.load %arg14[%986, %c0_426] : memref<64x32xf32, #tpu.memory_space<vmem>>, vector<8x32xf32>
    %988 = arith.index_cast %983 : i32 to index
    %c0_427 = arith.constant 0 : index
    %989 = vector.load %arg15[%988, %c0_427] : memref<64x32xf32, #tpu.memory_space<vmem>>, vector<8x32xf32>
    %cst_428 = arith.constant dense<0.000000e+00> : vector<8x32xf32>
    %990 = tpu.matmul %981, %919, %cst_428 {dimension_numbers = #tpu.dot_dimension_numbers<[1], [0], [0], [1], [0, 0, 1, 1], [], []>} : vector<8x32xf32>, vector<32x32xf32>, vector<8x32xf32> -> vector<8x32xf32>
    %991 = vector.broadcast %925 : vector<1x32xf32> to vector<8x32xf32>
    %992 = arith.addf %990, %991 : vector<8x32xf32>
    %cst_429 = arith.constant dense<0.000000e+00> : vector<8x32xf32>
    %993 = tpu.matmul %981, %921, %cst_429 {dimension_numbers = #tpu.dot_dimension_numbers<[1], [0], [0], [1], [0, 0, 1, 1], [], []>} : vector<8x32xf32>, vector<32x32xf32>, vector<8x32xf32> -> vector<8x32xf32>
    %994 = vector.broadcast %927 : vector<1x32xf32> to vector<8x32xf32>
    %995 = arith.addf %993, %994 : vector<8x32xf32>
    %cst_430 = arith.constant dense<0.000000e+00> : vector<8x32xf32>
    %996 = tpu.matmul %981, %923, %cst_430 {dimension_numbers = #tpu.dot_dimension_numbers<[1], [0], [0], [1], [0, 0, 1, 1], [], []>} : vector<8x32xf32>, vector<32x32xf32>, vector<8x32xf32> -> vector<8x32xf32>
    %997 = vector.broadcast %929 : vector<1x32xf32> to vector<8x32xf32>
    %998 = arith.addf %996, %997 : vector<8x32xf32>
    %999 = arith.addf %985, %992 : vector<8x32xf32>
    %1000 = arith.negf %999 : vector<8x32xf32>
    %1001 = math.exp %1000 : vector<8x32xf32>
    %cst_431 = arith.constant 1.000000e+00 : f32
    %1002 = vector.broadcast %cst_431 : f32 to vector<8x32xf32>
    %1003 = arith.addf %1002, %1001 : vector<8x32xf32>
    %1004 = arith.divf %1002, %1003 : vector<8x32xf32>
    %1005 = arith.addf %987, %995 : vector<8x32xf32>
    %1006 = arith.negf %1005 : vector<8x32xf32>
    %1007 = math.exp %1006 : vector<8x32xf32>
    %cst_432 = arith.constant 1.000000e+00 : f32
    %1008 = vector.broadcast %cst_432 : f32 to vector<8x32xf32>
    %1009 = arith.addf %1008, %1007 : vector<8x32xf32>
    %1010 = arith.divf %1008, %1009 : vector<8x32xf32>
    %1011 = arith.mulf %1004, %998 : vector<8x32xf32>
    %1012 = arith.addf %989, %1011 : vector<8x32xf32>
    %1013 = math.tanh %1012 : vector<8x32xf32>
    %cst_433 = arith.constant 1.000000e+00 : f32
    %1014 = vector.broadcast %cst_433 : f32 to vector<8x32xf32>
    %1015 = arith.subf %1014, %1010 : vector<8x32xf32>
    %1016 = arith.mulf %1015, %1013 : vector<8x32xf32>
    %1017 = arith.mulf %1010, %981 : vector<8x32xf32>
    %1018 = arith.addf %1016, %1017 : vector<8x32xf32>
    %1019 = arith.index_cast %983 : i32 to index
    %c0_434 = arith.constant 0 : index
    %1020 = vector.load %arg1[%1019, %c0_434] : memref<64x1xf32, #tpu.memory_space<vmem>>, vector<8x1xf32>
    %1021 = vector.broadcast %1020 : vector<8x1xf32> to vector<8x32xf32>
    %1022 = arith.mulf %1021, %1018 : vector<8x32xf32>
    %1023 = arith.index_cast %983 : i32 to index
    %c0_435 = arith.constant 0 : index
    %1024 = vector.load %arg12[%1023, %c0_435] : memref<64x32xf32, #tpu.memory_space<vmem>>, vector<8x32xf32>
    tpu.vector_store %arg12[%1023, %c0_435], %1022 {strides = array<i32>} : memref<64x32xf32, #tpu.memory_space<vmem>>, vector<8x32xf32>,
    %1025 = vector.broadcast %1020 : vector<8x1xf32> to vector<8x32xf32>
    %1026 = arith.mulf %1025, %1018 : vector<8x32xf32>
    %cst_436 = arith.constant 1.000000e+00 : f32
    %1027 = vector.broadcast %cst_436 : f32 to vector<8x1xf32>
    %1028 = arith.subf %1027, %1020 : vector<8x1xf32>
    %1029 = vector.broadcast %1028 : vector<8x1xf32> to vector<8x32xf32>
    %1030 = arith.mulf %1029, %981 : vector<8x32xf32>
    %1031 = arith.addf %1026, %1030 : vector<8x32xf32>
    %c2_i32_437 = arith.constant 2 : i32
    %c8_i32_438 = arith.constant 8 : i32
    %1032 = arith.muli %c2_i32_437, %c8_i32_438 : i32
    %1033 = tpu.assume_multiple %1032, 8 : i32
    %1034 = arith.index_cast %1033 : i32 to index
    %c0_439 = arith.constant 0 : index
    %1035 = vector.load %arg13[%1034, %c0_439] : memref<64x32xf32, #tpu.memory_space<vmem>>, vector<8x32xf32>
    %1036 = arith.index_cast %1033 : i32 to index
    %c0_440 = arith.constant 0 : index
    %1037 = vector.load %arg14[%1036, %c0_440] : memref<64x32xf32, #tpu.memory_space<vmem>>, vector<8x32xf32>
    %1038 = arith.index_cast %1033 : i32 to index
    %c0_441 = arith.constant 0 : index
    %1039 = vector.load %arg15[%1038, %c0_441] : memref<64x32xf32, #tpu.memory_space<vmem>>, vector<8x32xf32>
    %cst_442 = arith.constant dense<0.000000e+00> : vector<8x32xf32>
    %1040 = tpu.matmul %1031, %919, %cst_442 {dimension_numbers = #tpu.dot_dimension_numbers<[1], [0], [0], [1], [0, 0, 1, 1], [], []>} : vector<8x32xf32>, vector<32x32xf32>, vector<8x32xf32> -> vector<8x32xf32>
    %1041 = vector.broadcast %925 : vector<1x32xf32> to vector<8x32xf32>
    %1042 = arith.addf %1040, %1041 : vector<8x32xf32>
    %cst_443 = arith.constant dense<0.000000e+00> : vector<8x32xf32>
    %1043 = tpu.matmul %1031, %921, %cst_443 {dimension_numbers = #tpu.dot_dimension_numbers<[1], [0], [0], [1], [0, 0, 1, 1], [], []>} : vector<8x32xf32>, vector<32x32xf32>, vector<8x32xf32> -> vector<8x32xf32>
    %1044 = vector.broadcast %927 : vector<1x32xf32> to vector<8x32xf32>
    %1045 = arith.addf %1043, %1044 : vector<8x32xf32>
    %cst_444 = arith.constant dense<0.000000e+00> : vector<8x32xf32>
    %1046 = tpu.matmul %1031, %923, %cst_444 {dimension_numbers = #tpu.dot_dimension_numbers<[1], [0], [0], [1], [0, 0, 1, 1], [], []>} : vector<8x32xf32>, vector<32x32xf32>, vector<8x32xf32> -> vector<8x32xf32>
    %1047 = vector.broadcast %929 : vector<1x32xf32> to vector<8x32xf32>
    %1048 = arith.addf %1046, %1047 : vector<8x32xf32>
    %1049 = arith.addf %1035, %1042 : vector<8x32xf32>
    %1050 = arith.negf %1049 : vector<8x32xf32>
    %1051 = math.exp %1050 : vector<8x32xf32>
    %cst_445 = arith.constant 1.000000e+00 : f32
    %1052 = vector.broadcast %cst_445 : f32 to vector<8x32xf32>
    %1053 = arith.addf %1052, %1051 : vector<8x32xf32>
    %1054 = arith.divf %1052, %1053 : vector<8x32xf32>
    %1055 = arith.addf %1037, %1045 : vector<8x32xf32>
    %1056 = arith.negf %1055 : vector<8x32xf32>
    %1057 = math.exp %1056 : vector<8x32xf32>
    %cst_446 = arith.constant 1.000000e+00 : f32
    %1058 = vector.broadcast %cst_446 : f32 to vector<8x32xf32>
    %1059 = arith.addf %1058, %1057 : vector<8x32xf32>
    %1060 = arith.divf %1058, %1059 : vector<8x32xf32>
    %1061 = arith.mulf %1054, %1048 : vector<8x32xf32>
    %1062 = arith.addf %1039, %1061 : vector<8x32xf32>
    %1063 = math.tanh %1062 : vector<8x32xf32>
    %cst_447 = arith.constant 1.000000e+00 : f32
    %1064 = vector.broadcast %cst_447 : f32 to vector<8x32xf32>
    %1065 = arith.subf %1064, %1060 : vector<8x32xf32>
    %1066 = arith.mulf %1065, %1063 : vector<8x32xf32>
    %1067 = arith.mulf %1060, %1031 : vector<8x32xf32>
    %1068 = arith.addf %1066, %1067 : vector<8x32xf32>
    %1069 = arith.index_cast %1033 : i32 to index
    %c0_448 = arith.constant 0 : index
    %1070 = vector.load %arg1[%1069, %c0_448] : memref<64x1xf32, #tpu.memory_space<vmem>>, vector<8x1xf32>
    %1071 = vector.broadcast %1070 : vector<8x1xf32> to vector<8x32xf32>
    %1072 = arith.mulf %1071, %1068 : vector<8x32xf32>
    %1073 = arith.index_cast %1033 : i32 to index
    %c0_449 = arith.constant 0 : index
    %1074 = vector.load %arg12[%1073, %c0_449] : memref<64x32xf32, #tpu.memory_space<vmem>>, vector<8x32xf32>
    tpu.vector_store %arg12[%1073, %c0_449], %1072 {strides = array<i32>} : memref<64x32xf32, #tpu.memory_space<vmem>>, vector<8x32xf32>,
    %1075 = vector.broadcast %1070 : vector<8x1xf32> to vector<8x32xf32>
    %1076 = arith.mulf %1075, %1068 : vector<8x32xf32>
    %cst_450 = arith.constant 1.000000e+00 : f32
    %1077 = vector.broadcast %cst_450 : f32 to vector<8x1xf32>
    %1078 = arith.subf %1077, %1070 : vector<8x1xf32>
    %1079 = vector.broadcast %1078 : vector<8x1xf32> to vector<8x32xf32>
    %1080 = arith.mulf %1079, %1031 : vector<8x32xf32>
    %1081 = arith.addf %1076, %1080 : vector<8x32xf32>
    %c3_i32_451 = arith.constant 3 : i32
    %c8_i32_452 = arith.constant 8 : i32
    %1082 = arith.muli %c3_i32_451, %c8_i32_452 : i32
    %1083 = tpu.assume_multiple %1082, 8 : i32
    %1084 = arith.index_cast %1083 : i32 to index
    %c0_453 = arith.constant 0 : index
    %1085 = vector.load %arg13[%1084, %c0_453] : memref<64x32xf32, #tpu.memory_space<vmem>>, vector<8x32xf32>
    %1086 = arith.index_cast %1083 : i32 to index
    %c0_454 = arith.constant 0 : index
    %1087 = vector.load %arg14[%1086, %c0_454] : memref<64x32xf32, #tpu.memory_space<vmem>>, vector<8x32xf32>
    %1088 = arith.index_cast %1083 : i32 to index
    %c0_455 = arith.constant 0 : index
    %1089 = vector.load %arg15[%1088, %c0_455] : memref<64x32xf32, #tpu.memory_space<vmem>>, vector<8x32xf32>
    %cst_456 = arith.constant dense<0.000000e+00> : vector<8x32xf32>
    %1090 = tpu.matmul %1081, %919, %cst_456 {dimension_numbers = #tpu.dot_dimension_numbers<[1], [0], [0], [1], [0, 0, 1, 1], [], []>} : vector<8x32xf32>, vector<32x32xf32>, vector<8x32xf32> -> vector<8x32xf32>
    %1091 = vector.broadcast %925 : vector<1x32xf32> to vector<8x32xf32>
    %1092 = arith.addf %1090, %1091 : vector<8x32xf32>
    %cst_457 = arith.constant dense<0.000000e+00> : vector<8x32xf32>
    %1093 = tpu.matmul %1081, %921, %cst_457 {dimension_numbers = #tpu.dot_dimension_numbers<[1], [0], [0], [1], [0, 0, 1, 1], [], []>} : vector<8x32xf32>, vector<32x32xf32>, vector<8x32xf32> -> vector<8x32xf32>
    %1094 = vector.broadcast %927 : vector<1x32xf32> to vector<8x32xf32>
    %1095 = arith.addf %1093, %1094 : vector<8x32xf32>
    %cst_458 = arith.constant dense<0.000000e+00> : vector<8x32xf32>
    %1096 = tpu.matmul %1081, %923, %cst_458 {dimension_numbers = #tpu.dot_dimension_numbers<[1], [0], [0], [1], [0, 0, 1, 1], [], []>} : vector<8x32xf32>, vector<32x32xf32>, vector<8x32xf32> -> vector<8x32xf32>
    %1097 = vector.broadcast %929 : vector<1x32xf32> to vector<8x32xf32>
    %1098 = arith.addf %1096, %1097 : vector<8x32xf32>
    %1099 = arith.addf %1085, %1092 : vector<8x32xf32>
    %1100 = arith.negf %1099 : vector<8x32xf32>
    %1101 = math.exp %1100 : vector<8x32xf32>
    %cst_459 = arith.constant 1.000000e+00 : f32
    %1102 = vector.broadcast %cst_459 : f32 to vector<8x32xf32>
    %1103 = arith.addf %1102, %1101 : vector<8x32xf32>
    %1104 = arith.divf %1102, %1103 : vector<8x32xf32>
    %1105 = arith.addf %1087, %1095 : vector<8x32xf32>
    %1106 = arith.negf %1105 : vector<8x32xf32>
    %1107 = math.exp %1106 : vector<8x32xf32>
    %cst_460 = arith.constant 1.000000e+00 : f32
    %1108 = vector.broadcast %cst_460 : f32 to vector<8x32xf32>
    %1109 = arith.addf %1108, %1107 : vector<8x32xf32>
    %1110 = arith.divf %1108, %1109 : vector<8x32xf32>
    %1111 = arith.mulf %1104, %1098 : vector<8x32xf32>
    %1112 = arith.addf %1089, %1111 : vector<8x32xf32>
    %1113 = math.tanh %1112 : vector<8x32xf32>
    %cst_461 = arith.constant 1.000000e+00 : f32
    %1114 = vector.broadcast %cst_461 : f32 to vector<8x32xf32>
    %1115 = arith.subf %1114, %1110 : vector<8x32xf32>
    %1116 = arith.mulf %1115, %1113 : vector<8x32xf32>
    %1117 = arith.mulf %1110, %1081 : vector<8x32xf32>
    %1118 = arith.addf %1116, %1117 : vector<8x32xf32>
    %1119 = arith.index_cast %1083 : i32 to index
    %c0_462 = arith.constant 0 : index
    %1120 = vector.load %arg1[%1119, %c0_462] : memref<64x1xf32, #tpu.memory_space<vmem>>, vector<8x1xf32>
    %1121 = vector.broadcast %1120 : vector<8x1xf32> to vector<8x32xf32>
    %1122 = arith.mulf %1121, %1118 : vector<8x32xf32>
    %1123 = arith.index_cast %1083 : i32 to index
    %c0_463 = arith.constant 0 : index
    %1124 = vector.load %arg12[%1123, %c0_463] : memref<64x32xf32, #tpu.memory_space<vmem>>, vector<8x32xf32>
    tpu.vector_store %arg12[%1123, %c0_463], %1122 {strides = array<i32>} : memref<64x32xf32, #tpu.memory_space<vmem>>, vector<8x32xf32>,
    %1125 = vector.broadcast %1120 : vector<8x1xf32> to vector<8x32xf32>
    %1126 = arith.mulf %1125, %1118 : vector<8x32xf32>
    %cst_464 = arith.constant 1.000000e+00 : f32
    %1127 = vector.broadcast %cst_464 : f32 to vector<8x1xf32>
    %1128 = arith.subf %1127, %1120 : vector<8x1xf32>
    %1129 = vector.broadcast %1128 : vector<8x1xf32> to vector<8x32xf32>
    %1130 = arith.mulf %1129, %1081 : vector<8x32xf32>
    %1131 = arith.addf %1126, %1130 : vector<8x32xf32>
    %c4_i32_465 = arith.constant 4 : i32
    %c8_i32_466 = arith.constant 8 : i32
    %1132 = arith.muli %c4_i32_465, %c8_i32_466 : i32
    %1133 = tpu.assume_multiple %1132, 8 : i32
    %1134 = arith.index_cast %1133 : i32 to index
    %c0_467 = arith.constant 0 : index
    %1135 = vector.load %arg13[%1134, %c0_467] : memref<64x32xf32, #tpu.memory_space<vmem>>, vector<8x32xf32>
    %1136 = arith.index_cast %1133 : i32 to index
    %c0_468 = arith.constant 0 : index
    %1137 = vector.load %arg14[%1136, %c0_468] : memref<64x32xf32, #tpu.memory_space<vmem>>, vector<8x32xf32>
    %1138 = arith.index_cast %1133 : i32 to index
    %c0_469 = arith.constant 0 : index
    %1139 = vector.load %arg15[%1138, %c0_469] : memref<64x32xf32, #tpu.memory_space<vmem>>, vector<8x32xf32>
    %cst_470 = arith.constant dense<0.000000e+00> : vector<8x32xf32>
    %1140 = tpu.matmul %1131, %919, %cst_470 {dimension_numbers = #tpu.dot_dimension_numbers<[1], [0], [0], [1], [0, 0, 1, 1], [], []>} : vector<8x32xf32>, vector<32x32xf32>, vector<8x32xf32> -> vector<8x32xf32>
    %1141 = vector.broadcast %925 : vector<1x32xf32> to vector<8x32xf32>
    %1142 = arith.addf %1140, %1141 : vector<8x32xf32>
    %cst_471 = arith.constant dense<0.000000e+00> : vector<8x32xf32>
    %1143 = tpu.matmul %1131, %921, %cst_471 {dimension_numbers = #tpu.dot_dimension_numbers<[1], [0], [0], [1], [0, 0, 1, 1], [], []>} : vector<8x32xf32>, vector<32x32xf32>, vector<8x32xf32> -> vector<8x32xf32>
    %1144 = vector.broadcast %927 : vector<1x32xf32> to vector<8x32xf32>
    %1145 = arith.addf %1143, %1144 : vector<8x32xf32>
    %cst_472 = arith.constant dense<0.000000e+00> : vector<8x32xf32>
    %1146 = tpu.matmul %1131, %923, %cst_472 {dimension_numbers = #tpu.dot_dimension_numbers<[1], [0], [0], [1], [0, 0, 1, 1], [], []>} : vector<8x32xf32>, vector<32x32xf32>, vector<8x32xf32> -> vector<8x32xf32>
    %1147 = vector.broadcast %929 : vector<1x32xf32> to vector<8x32xf32>
    %1148 = arith.addf %1146, %1147 : vector<8x32xf32>
    %1149 = arith.addf %1135, %1142 : vector<8x32xf32>
    %1150 = arith.negf %1149 : vector<8x32xf32>
    %1151 = math.exp %1150 : vector<8x32xf32>
    %cst_473 = arith.constant 1.000000e+00 : f32
    %1152 = vector.broadcast %cst_473 : f32 to vector<8x32xf32>
    %1153 = arith.addf %1152, %1151 : vector<8x32xf32>
    %1154 = arith.divf %1152, %1153 : vector<8x32xf32>
    %1155 = arith.addf %1137, %1145 : vector<8x32xf32>
    %1156 = arith.negf %1155 : vector<8x32xf32>
    %1157 = math.exp %1156 : vector<8x32xf32>
    %cst_474 = arith.constant 1.000000e+00 : f32
    %1158 = vector.broadcast %cst_474 : f32 to vector<8x32xf32>
    %1159 = arith.addf %1158, %1157 : vector<8x32xf32>
    %1160 = arith.divf %1158, %1159 : vector<8x32xf32>
    %1161 = arith.mulf %1154, %1148 : vector<8x32xf32>
    %1162 = arith.addf %1139, %1161 : vector<8x32xf32>
    %1163 = math.tanh %1162 : vector<8x32xf32>
    %cst_475 = arith.constant 1.000000e+00 : f32
    %1164 = vector.broadcast %cst_475 : f32 to vector<8x32xf32>
    %1165 = arith.subf %1164, %1160 : vector<8x32xf32>
    %1166 = arith.mulf %1165, %1163 : vector<8x32xf32>
    %1167 = arith.mulf %1160, %1131 : vector<8x32xf32>
    %1168 = arith.addf %1166, %1167 : vector<8x32xf32>
    %1169 = arith.index_cast %1133 : i32 to index
    %c0_476 = arith.constant 0 : index
    %1170 = vector.load %arg1[%1169, %c0_476] : memref<64x1xf32, #tpu.memory_space<vmem>>, vector<8x1xf32>
    %1171 = vector.broadcast %1170 : vector<8x1xf32> to vector<8x32xf32>
    %1172 = arith.mulf %1171, %1168 : vector<8x32xf32>
    %1173 = arith.index_cast %1133 : i32 to index
    %c0_477 = arith.constant 0 : index
    %1174 = vector.load %arg12[%1173, %c0_477] : memref<64x32xf32, #tpu.memory_space<vmem>>, vector<8x32xf32>
    tpu.vector_store %arg12[%1173, %c0_477], %1172 {strides = array<i32>} : memref<64x32xf32, #tpu.memory_space<vmem>>, vector<8x32xf32>,
    %1175 = vector.broadcast %1170 : vector<8x1xf32> to vector<8x32xf32>
    %1176 = arith.mulf %1175, %1168 : vector<8x32xf32>
    %cst_478 = arith.constant 1.000000e+00 : f32
    %1177 = vector.broadcast %cst_478 : f32 to vector<8x1xf32>
    %1178 = arith.subf %1177, %1170 : vector<8x1xf32>
    %1179 = vector.broadcast %1178 : vector<8x1xf32> to vector<8x32xf32>
    %1180 = arith.mulf %1179, %1131 : vector<8x32xf32>
    %1181 = arith.addf %1176, %1180 : vector<8x32xf32>
    %c5_i32_479 = arith.constant 5 : i32
    %c8_i32_480 = arith.constant 8 : i32
    %1182 = arith.muli %c5_i32_479, %c8_i32_480 : i32
    %1183 = tpu.assume_multiple %1182, 8 : i32
    %1184 = arith.index_cast %1183 : i32 to index
    %c0_481 = arith.constant 0 : index
    %1185 = vector.load %arg13[%1184, %c0_481] : memref<64x32xf32, #tpu.memory_space<vmem>>, vector<8x32xf32>
    %1186 = arith.index_cast %1183 : i32 to index
    %c0_482 = arith.constant 0 : index
    %1187 = vector.load %arg14[%1186, %c0_482] : memref<64x32xf32, #tpu.memory_space<vmem>>, vector<8x32xf32>
    %1188 = arith.index_cast %1183 : i32 to index
    %c0_483 = arith.constant 0 : index
    %1189 = vector.load %arg15[%1188, %c0_483] : memref<64x32xf32, #tpu.memory_space<vmem>>, vector<8x32xf32>
    %cst_484 = arith.constant dense<0.000000e+00> : vector<8x32xf32>
    %1190 = tpu.matmul %1181, %919, %cst_484 {dimension_numbers = #tpu.dot_dimension_numbers<[1], [0], [0], [1], [0, 0, 1, 1], [], []>} : vector<8x32xf32>, vector<32x32xf32>, vector<8x32xf32> -> vector<8x32xf32>
    %1191 = vector.broadcast %925 : vector<1x32xf32> to vector<8x32xf32>
    %1192 = arith.addf %1190, %1191 : vector<8x32xf32>
    %cst_485 = arith.constant dense<0.000000e+00> : vector<8x32xf32>
    %1193 = tpu.matmul %1181, %921, %cst_485 {dimension_numbers = #tpu.dot_dimension_numbers<[1], [0], [0], [1], [0, 0, 1, 1], [], []>} : vector<8x32xf32>, vector<32x32xf32>, vector<8x32xf32> -> vector<8x32xf32>
    %1194 = vector.broadcast %927 : vector<1x32xf32> to vector<8x32xf32>
    %1195 = arith.addf %1193, %1194 : vector<8x32xf32>
    %cst_486 = arith.constant dense<0.000000e+00> : vector<8x32xf32>
    %1196 = tpu.matmul %1181, %923, %cst_486 {dimension_numbers = #tpu.dot_dimension_numbers<[1], [0], [0], [1], [0, 0, 1, 1], [], []>} : vector<8x32xf32>, vector<32x32xf32>, vector<8x32xf32> -> vector<8x32xf32>
    %1197 = vector.broadcast %929 : vector<1x32xf32> to vector<8x32xf32>
    %1198 = arith.addf %1196, %1197 : vector<8x32xf32>
    %1199 = arith.addf %1185, %1192 : vector<8x32xf32>
    %1200 = arith.negf %1199 : vector<8x32xf32>
    %1201 = math.exp %1200 : vector<8x32xf32>
    %cst_487 = arith.constant 1.000000e+00 : f32
    %1202 = vector.broadcast %cst_487 : f32 to vector<8x32xf32>
    %1203 = arith.addf %1202, %1201 : vector<8x32xf32>
    %1204 = arith.divf %1202, %1203 : vector<8x32xf32>
    %1205 = arith.addf %1187, %1195 : vector<8x32xf32>
    %1206 = arith.negf %1205 : vector<8x32xf32>
    %1207 = math.exp %1206 : vector<8x32xf32>
    %cst_488 = arith.constant 1.000000e+00 : f32
    %1208 = vector.broadcast %cst_488 : f32 to vector<8x32xf32>
    %1209 = arith.addf %1208, %1207 : vector<8x32xf32>
    %1210 = arith.divf %1208, %1209 : vector<8x32xf32>
    %1211 = arith.mulf %1204, %1198 : vector<8x32xf32>
    %1212 = arith.addf %1189, %1211 : vector<8x32xf32>
    %1213 = math.tanh %1212 : vector<8x32xf32>
    %cst_489 = arith.constant 1.000000e+00 : f32
    %1214 = vector.broadcast %cst_489 : f32 to vector<8x32xf32>
    %1215 = arith.subf %1214, %1210 : vector<8x32xf32>
    %1216 = arith.mulf %1215, %1213 : vector<8x32xf32>
    %1217 = arith.mulf %1210, %1181 : vector<8x32xf32>
    %1218 = arith.addf %1216, %1217 : vector<8x32xf32>
    %1219 = arith.index_cast %1183 : i32 to index
    %c0_490 = arith.constant 0 : index
    %1220 = vector.load %arg1[%1219, %c0_490] : memref<64x1xf32, #tpu.memory_space<vmem>>, vector<8x1xf32>
    %1221 = vector.broadcast %1220 : vector<8x1xf32> to vector<8x32xf32>
    %1222 = arith.mulf %1221, %1218 : vector<8x32xf32>
    %1223 = arith.index_cast %1183 : i32 to index
    %c0_491 = arith.constant 0 : index
    %1224 = vector.load %arg12[%1223, %c0_491] : memref<64x32xf32, #tpu.memory_space<vmem>>, vector<8x32xf32>
    tpu.vector_store %arg12[%1223, %c0_491], %1222 {strides = array<i32>} : memref<64x32xf32, #tpu.memory_space<vmem>>, vector<8x32xf32>,
    %1225 = vector.broadcast %1220 : vector<8x1xf32> to vector<8x32xf32>
    %1226 = arith.mulf %1225, %1218 : vector<8x32xf32>
    %cst_492 = arith.constant 1.000000e+00 : f32
    %1227 = vector.broadcast %cst_492 : f32 to vector<8x1xf32>
    %1228 = arith.subf %1227, %1220 : vector<8x1xf32>
    %1229 = vector.broadcast %1228 : vector<8x1xf32> to vector<8x32xf32>
    %1230 = arith.mulf %1229, %1181 : vector<8x32xf32>
    %1231 = arith.addf %1226, %1230 : vector<8x32xf32>
    %c6_i32_493 = arith.constant 6 : i32
    %c8_i32_494 = arith.constant 8 : i32
    %1232 = arith.muli %c6_i32_493, %c8_i32_494 : i32
    %1233 = tpu.assume_multiple %1232, 8 : i32
    %1234 = arith.index_cast %1233 : i32 to index
    %c0_495 = arith.constant 0 : index
    %1235 = vector.load %arg13[%1234, %c0_495] : memref<64x32xf32, #tpu.memory_space<vmem>>, vector<8x32xf32>
    %1236 = arith.index_cast %1233 : i32 to index
    %c0_496 = arith.constant 0 : index
    %1237 = vector.load %arg14[%1236, %c0_496] : memref<64x32xf32, #tpu.memory_space<vmem>>, vector<8x32xf32>
    %1238 = arith.index_cast %1233 : i32 to index
    %c0_497 = arith.constant 0 : index
    %1239 = vector.load %arg15[%1238, %c0_497] : memref<64x32xf32, #tpu.memory_space<vmem>>, vector<8x32xf32>
    %cst_498 = arith.constant dense<0.000000e+00> : vector<8x32xf32>
    %1240 = tpu.matmul %1231, %919, %cst_498 {dimension_numbers = #tpu.dot_dimension_numbers<[1], [0], [0], [1], [0, 0, 1, 1], [], []>} : vector<8x32xf32>, vector<32x32xf32>, vector<8x32xf32> -> vector<8x32xf32>
    %1241 = vector.broadcast %925 : vector<1x32xf32> to vector<8x32xf32>
    %1242 = arith.addf %1240, %1241 : vector<8x32xf32>
    %cst_499 = arith.constant dense<0.000000e+00> : vector<8x32xf32>
    %1243 = tpu.matmul %1231, %921, %cst_499 {dimension_numbers = #tpu.dot_dimension_numbers<[1], [0], [0], [1], [0, 0, 1, 1], [], []>} : vector<8x32xf32>, vector<32x32xf32>, vector<8x32xf32> -> vector<8x32xf32>
    %1244 = vector.broadcast %927 : vector<1x32xf32> to vector<8x32xf32>
    %1245 = arith.addf %1243, %1244 : vector<8x32xf32>
    %cst_500 = arith.constant dense<0.000000e+00> : vector<8x32xf32>
    %1246 = tpu.matmul %1231, %923, %cst_500 {dimension_numbers = #tpu.dot_dimension_numbers<[1], [0], [0], [1], [0, 0, 1, 1], [], []>} : vector<8x32xf32>, vector<32x32xf32>, vector<8x32xf32> -> vector<8x32xf32>
    %1247 = vector.broadcast %929 : vector<1x32xf32> to vector<8x32xf32>
    %1248 = arith.addf %1246, %1247 : vector<8x32xf32>
    %1249 = arith.addf %1235, %1242 : vector<8x32xf32>
    %1250 = arith.negf %1249 : vector<8x32xf32>
    %1251 = math.exp %1250 : vector<8x32xf32>
    %cst_501 = arith.constant 1.000000e+00 : f32
    %1252 = vector.broadcast %cst_501 : f32 to vector<8x32xf32>
    %1253 = arith.addf %1252, %1251 : vector<8x32xf32>
    %1254 = arith.divf %1252, %1253 : vector<8x32xf32>
    %1255 = arith.addf %1237, %1245 : vector<8x32xf32>
    %1256 = arith.negf %1255 : vector<8x32xf32>
    %1257 = math.exp %1256 : vector<8x32xf32>
    %cst_502 = arith.constant 1.000000e+00 : f32
    %1258 = vector.broadcast %cst_502 : f32 to vector<8x32xf32>
    %1259 = arith.addf %1258, %1257 : vector<8x32xf32>
    %1260 = arith.divf %1258, %1259 : vector<8x32xf32>
    %1261 = arith.mulf %1254, %1248 : vector<8x32xf32>
    %1262 = arith.addf %1239, %1261 : vector<8x32xf32>
    %1263 = math.tanh %1262 : vector<8x32xf32>
    %cst_503 = arith.constant 1.000000e+00 : f32
    %1264 = vector.broadcast %cst_503 : f32 to vector<8x32xf32>
    %1265 = arith.subf %1264, %1260 : vector<8x32xf32>
    %1266 = arith.mulf %1265, %1263 : vector<8x32xf32>
    %1267 = arith.mulf %1260, %1231 : vector<8x32xf32>
    %1268 = arith.addf %1266, %1267 : vector<8x32xf32>
    %1269 = arith.index_cast %1233 : i32 to index
    %c0_504 = arith.constant 0 : index
    %1270 = vector.load %arg1[%1269, %c0_504] : memref<64x1xf32, #tpu.memory_space<vmem>>, vector<8x1xf32>
    %1271 = vector.broadcast %1270 : vector<8x1xf32> to vector<8x32xf32>
    %1272 = arith.mulf %1271, %1268 : vector<8x32xf32>
    %1273 = arith.index_cast %1233 : i32 to index
    %c0_505 = arith.constant 0 : index
    %1274 = vector.load %arg12[%1273, %c0_505] : memref<64x32xf32, #tpu.memory_space<vmem>>, vector<8x32xf32>
    tpu.vector_store %arg12[%1273, %c0_505], %1272 {strides = array<i32>} : memref<64x32xf32, #tpu.memory_space<vmem>>, vector<8x32xf32>,
    %1275 = vector.broadcast %1270 : vector<8x1xf32> to vector<8x32xf32>
    %1276 = arith.mulf %1275, %1268 : vector<8x32xf32>
    %cst_506 = arith.constant 1.000000e+00 : f32
    %1277 = vector.broadcast %cst_506 : f32 to vector<8x1xf32>
    %1278 = arith.subf %1277, %1270 : vector<8x1xf32>
    %1279 = vector.broadcast %1278 : vector<8x1xf32> to vector<8x32xf32>
    %1280 = arith.mulf %1279, %1231 : vector<8x32xf32>
    %1281 = arith.addf %1276, %1280 : vector<8x32xf32>
    %c7_i32_507 = arith.constant 7 : i32
    %c8_i32_508 = arith.constant 8 : i32
    %1282 = arith.muli %c7_i32_507, %c8_i32_508 : i32
    %1283 = tpu.assume_multiple %1282, 8 : i32
    %1284 = arith.index_cast %1283 : i32 to index
    %c0_509 = arith.constant 0 : index
    %1285 = vector.load %arg13[%1284, %c0_509] : memref<64x32xf32, #tpu.memory_space<vmem>>, vector<8x32xf32>
    %1286 = arith.index_cast %1283 : i32 to index
    %c0_510 = arith.constant 0 : index
    %1287 = vector.load %arg14[%1286, %c0_510] : memref<64x32xf32, #tpu.memory_space<vmem>>, vector<8x32xf32>
    %1288 = arith.index_cast %1283 : i32 to index
    %c0_511 = arith.constant 0 : index
    %1289 = vector.load %arg15[%1288, %c0_511] : memref<64x32xf32, #tpu.memory_space<vmem>>, vector<8x32xf32>
    %cst_512 = arith.constant dense<0.000000e+00> : vector<8x32xf32>
    %1290 = tpu.matmul %1281, %919, %cst_512 {dimension_numbers = #tpu.dot_dimension_numbers<[1], [0], [0], [1], [0, 0, 1, 1], [], []>} : vector<8x32xf32>, vector<32x32xf32>, vector<8x32xf32> -> vector<8x32xf32>
    %1291 = vector.broadcast %925 : vector<1x32xf32> to vector<8x32xf32>
    %1292 = arith.addf %1290, %1291 : vector<8x32xf32>
    %cst_513 = arith.constant dense<0.000000e+00> : vector<8x32xf32>
    %1293 = tpu.matmul %1281, %921, %cst_513 {dimension_numbers = #tpu.dot_dimension_numbers<[1], [0], [0], [1], [0, 0, 1, 1], [], []>} : vector<8x32xf32>, vector<32x32xf32>, vector<8x32xf32> -> vector<8x32xf32>
    %1294 = vector.broadcast %927 : vector<1x32xf32> to vector<8x32xf32>
    %1295 = arith.addf %1293, %1294 : vector<8x32xf32>
    %cst_514 = arith.constant dense<0.000000e+00> : vector<8x32xf32>
    %1296 = tpu.matmul %1281, %923, %cst_514 {dimension_numbers = #tpu.dot_dimension_numbers<[1], [0], [0], [1], [0, 0, 1, 1], [], []>} : vector<8x32xf32>, vector<32x32xf32>, vector<8x32xf32> -> vector<8x32xf32>
    %1297 = vector.broadcast %929 : vector<1x32xf32> to vector<8x32xf32>
    %1298 = arith.addf %1296, %1297 : vector<8x32xf32>
    %1299 = arith.addf %1285, %1292 : vector<8x32xf32>
    %1300 = arith.negf %1299 : vector<8x32xf32>
    %1301 = math.exp %1300 : vector<8x32xf32>
    %cst_515 = arith.constant 1.000000e+00 : f32
    %1302 = vector.broadcast %cst_515 : f32 to vector<8x32xf32>
    %1303 = arith.addf %1302, %1301 : vector<8x32xf32>
    %1304 = arith.divf %1302, %1303 : vector<8x32xf32>
    %1305 = arith.addf %1287, %1295 : vector<8x32xf32>
    %1306 = arith.negf %1305 : vector<8x32xf32>
    %1307 = math.exp %1306 : vector<8x32xf32>
    %cst_516 = arith.constant 1.000000e+00 : f32
    %1308 = vector.broadcast %cst_516 : f32 to vector<8x32xf32>
    %1309 = arith.addf %1308, %1307 : vector<8x32xf32>
    %1310 = arith.divf %1308, %1309 : vector<8x32xf32>
    %1311 = arith.mulf %1304, %1298 : vector<8x32xf32>
    %1312 = arith.addf %1289, %1311 : vector<8x32xf32>
    %1313 = math.tanh %1312 : vector<8x32xf32>
    %cst_517 = arith.constant 1.000000e+00 : f32
    %1314 = vector.broadcast %cst_517 : f32 to vector<8x32xf32>
    %1315 = arith.subf %1314, %1310 : vector<8x32xf32>
    %1316 = arith.mulf %1315, %1313 : vector<8x32xf32>
    %1317 = arith.mulf %1310, %1281 : vector<8x32xf32>
    %1318 = arith.addf %1316, %1317 : vector<8x32xf32>
    %1319 = arith.index_cast %1283 : i32 to index
    %c0_518 = arith.constant 0 : index
    %1320 = vector.load %arg1[%1319, %c0_518] : memref<64x1xf32, #tpu.memory_space<vmem>>, vector<8x1xf32>
    %1321 = vector.broadcast %1320 : vector<8x1xf32> to vector<8x32xf32>
    %1322 = arith.mulf %1321, %1318 : vector<8x32xf32>
    %1323 = arith.index_cast %1283 : i32 to index
    %c0_519 = arith.constant 0 : index
    %1324 = vector.load %arg12[%1323, %c0_519] : memref<64x32xf32, #tpu.memory_space<vmem>>, vector<8x32xf32>
    tpu.vector_store %arg12[%1323, %c0_519], %1322 {strides = array<i32>} : memref<64x32xf32, #tpu.memory_space<vmem>>, vector<8x32xf32>,
    %1325 = vector.broadcast %1320 : vector<8x1xf32> to vector<8x32xf32>
    %1326 = arith.mulf %1325, %1318 : vector<8x32xf32>
    %cst_520 = arith.constant 1.000000e+00 : f32
    %1327 = vector.broadcast %cst_520 : f32 to vector<8x1xf32>
    %1328 = arith.subf %1327, %1320 : vector<8x1xf32>
    %1329 = vector.broadcast %1328 : vector<8x1xf32> to vector<8x32xf32>
    %1330 = arith.mulf %1329, %1281 : vector<8x32xf32>
    %1331 = arith.addf %1326, %1330 : vector<8x32xf32>
    %c8_i32_521 = arith.constant 8 : i32
    %c2_522 = arith.constant 2 : index
    %c0_523 = arith.constant 0 : index
    %c0_524 = arith.constant 0 : index
    %1332 = vector.load %arg11[%c2_522, %c0_523, %c0_524] : memref<3x8x32xf32, #tpu.memory_space<vmem>>, vector<1x8x32xf32>
    %1333 = vector.shape_cast %1332 : vector<1x8x32xf32> to vector<8x32xf32>
    %1334 = vector.shape_cast %1331 : vector<8x32xf32> to vector<1x8x32xf32>
    tpu.vector_store %arg11[%c2_522, %c0_523, %c0_524], %1334 {strides = array<i32>} : memref<3x8x32xf32, #tpu.memory_space<vmem>>, vector<1x8x32xf32>,
    %c0_525 = arith.constant 0 : index
    %c0_526 = arith.constant 0 : index
    %1335 = vector.load %arg12[%c0_525, %c0_526] : memref<64x32xf32, #tpu.memory_space<vmem>>, vector<64x32xf32>
    %c0_527 = arith.constant 0 : index
    %c0_528 = arith.constant 0 : index
    %1336 = vector.load %arg8[%c0_527, %c0_528] : memref<32x128xf32, #tpu.memory_space<vmem>>, vector<32x128xf32>
    %cst_529 = arith.constant dense<0.000000e+00> : vector<64x128xf32>
    %1337 = tpu.matmul %1335, %1336, %cst_529 {dimension_numbers = #tpu.dot_dimension_numbers<[1], [0], [0], [1], [0, 0, 1, 1], [], []>} : vector<64x32xf32>, vector<32x128xf32>, vector<64x128xf32> -> vector<64x128xf32>
    %c0_530 = arith.constant 0 : index
    %c0_531 = arith.constant 0 : index
    %1338 = vector.load %arg9[%c0_530, %c0_531] : memref<1x128xf32, #tpu.memory_space<vmem>>, vector<1x128xf32>
    %1339 = vector.broadcast %1338 : vector<1x128xf32> to vector<64x128xf32>
    %1340 = arith.addf %1337, %1339 : vector<64x128xf32>
    %c0_532 = arith.constant 0 : index
    %c0_533 = arith.constant 0 : index
    %1341 = vector.load %arg10[%c0_532, %c0_533] : memref<64x128xf32, #tpu.memory_space<vmem>>, vector<64x128xf32>
    tpu.vector_store %arg10[%c0_532, %c0_533], %1340 {strides = array<i32>} : memref<64x128xf32, #tpu.memory_space<vmem>>, vector<64x128xf32>,
    return
  }
}

</mosaic_0001>

<bundles_post_ra>
// kernel: tpu_custom_call.1
= control target key start
LH: loop header
LB: loop body
LE: loop exit
PB: predicated region body
PF: predicated region fallthrough
CT: control target
= control target key end

     0   :  { %17 = vsyncpa [#allocation7], 0  ;;  %s6275_s0 = inlined_call_operand.vmem [shape: s32[64,1], index: 0, kind: input, shape index: {}]   ;;  %s6276_s1 = inlined_call_operand.vmem [shape: f32[64,1], index: 1, kind: input, shape index: {}]   ;;  %s6277_s2 = inlined_call_operand.vmem [shape: f32[16,32], index: 2, kind: input, shape index: {}]   ;;  %s6278_s3 = inlined_call_operand.vmem [shape: f32[3,8,32], index: 3, kind: input, shape index: {}]   ;;  %s6279_s4 = inlined_call_operand.hbm [shape: f32[3,3,32,32], index: 4, kind: input, shape index: {}]   ;;  %s6280_s5 = inlined_call_operand.hbm [shape: f32[3,3,32,32], index: 5, kind: input, shape index: {}]   ;;  %s6281_s6 = inlined_call_operand.vmem [shape: f32[3,3,1,32], index: 6, kind: input, shape index: {}]   ;;  %s6282_s7 = inlined_call_operand.vmem [shape: f32[3,3,1,32], index: 7, kind: input, shape index: {}]   ;;  %s6283_s8 = inlined_call_operand.vmem [shape: f32[32,128], index: 8, kind: input, shape index: {}]   ;;  %s6284_s9 = inlined_call_operand.vmem [shape: f32[1,128], index: 9, kind: input, shape index: {}]   ;;  %s6285_s10 = inlined_call_operand.hbm [shape: f32[64,128], index: 10, kind: output, shape index: {0}]   ;;  %s6286_s11 = inlined_call_operand.hbm [shape: f32[3,8,32], index: 11, kind: output, shape index: {1}]  }
   0x1   :  { %18 = vsyncpa [#allocation10], 0 }
   0x2   :  { %19 = vsyncpa [#allocation8], 0 }
   0x3   :  { %20 = vsyncpa [#allocation13], 0  ;;  %s33_s19 = sshll.u32 %s6279_s4, 4  ;;  %s4842_s20 = smov [#allocation6]   ;;  %s34_s19 = int_to_ptr.hbm [resolvable:$true] %s33_s19 }
   0x4   :  { %s35_s21 = sshll.u32 %s4842_s20, 4  ;;  %s46_s24 = sshll.u32 %s6280_s5, 4  ;;  %s36_s21 = int_to_ptr.vmem [resolvable:$true] %s35_s21  ;;  %s47_s24 = int_to_ptr.hbm [resolvable:$true] %s46_s24 }
   0x5   :  { %s4843_s25 = smov 128   ;;  %s4844_s26 = smov 8  }
   0x6   :  { %41 = dma.hbm_to_vmem [thread:$0]  %s34_s19, 4608, %s36_s21, [#allocation7], %s4843_s25, %s4843_s25, %s4844_s26  }
   0x7   :  { %s4845_s27 = smov [#allocation9]  }
   0x8   :  { %s48_s28 = sshll.u32 %s4845_s27, 4  ;;  %s49_s28 = int_to_ptr.vmem [resolvable:$true] %s48_s28 }
   0x9   :  { %54 = dma.hbm_to_vmem [thread:$0]  %s47_s24, 4608, %s49_s28, [#allocation10], %s4843_s25, %s4843_s25, %s4844_s26  }
   0xa   :  { %4834 = dma.done.wait [#allocation7], 4608  }
   0xb   :  { %4835 = vsyncadd [#allocation7], 4294962688 }
   0xc   :  { %4836 = dma.done.wait [#allocation10], 4608  }
   0xd   :  { %4837 = vsyncadd [#allocation10], 4294962688  ;;  %v4846_v0 = vmov 0   ;;  %v75_v1 = vld [vmem:[%s6275_s0 + $0x20] sm:$0xff]  ;;  %v73_v2 = vld [vmem:[%s6275_s0 + $0x10] sm:$0xff]  ;;  %v79_v26 = vlaneseq  ;;  %v4847_v29 = vmov 0.0  }
   0xe   :  { %4450 = vset.pattern.permute.xlu2 %v4846_v0  ;;  %4449 = vset.pattern.permute.xlu1 %v4846_v0  ;;  %v71_v3 = vld [vmem:[%s6275_s0] sm:$0xff]  ;;  %v76_v4 = vld [vmem:[%s6275_s0 + $0x28] sm:$0xff]  ;;  %v74_v5 = vld [vmem:[%s6275_s0 + $0x18] sm:$0xff]  ;;  %vm131_vm1 = vcmask 130048   ;;  %vm213_vm9 = vcmask 261120   ;;  %s4160_s24 = sshll.u32 %s6286_s11, 4  ;;  %s4161_s24 = int_to_ptr.hbm [resolvable:$true] %s4160_s24 }
   0xf   :  { %4448 = vset.pattern.permute.xlu0 %v4846_v0  ;;  %94 = vperm.xlu2 %4450, %v75_v1   ;;  %v72_v6 = vld [vmem:[%s6275_s0 + $0x8] sm:$0xff]  ;;  %v4943_v7 = vld [vmem:[%s6276_s1] sm:$0xff]  ;;  %v78_v8 = vld [vmem:[%s6275_s0 + $0x38] sm:$0xff]  ;;  %v80_v27 = vand.u32 127, %v79_v26  ;;  %s4849_s27 = smov [#allocation11]  }
  0x10   :  { %88 = vperm.xlu1 %4449, %v73_v2   ;;  %82 = vperm.xlu0 %4448, %v71_v3   ;;  %v77_v9 = vld [vmem:[%s6275_s0 + $0x30] sm:$0xff]  ;;  %v4955_v10 = vld [vmem:[%s6276_s1 + $0x8] sm:$0xff]  ;;  %v555_v12 = vsub.f32 1.0, %v4943_v7  ;;  %v4245_v15 = vld [vmem:[%s6276_s1 + $0x18] sm:$0xff]  ;;  %s4145_s28 = sshll.u32 %s4849_s27, 4  ;;  %s4147_s0 = sshll.u32 %s6285_s10, 4  ;;  %s4146_s28 = int_to_ptr.vmem [resolvable:$true] %s4145_s28  ;;  %s4148_s0 = int_to_ptr.hbm [resolvable:$true] %s4147_s0 }
  0x11   :  { %v4958_v11 = vsub.f32 1.0, %v4955_v10  ;;  %v4966_v13 = vld [vmem:[%s6276_s1 + $0x10] sm:$0xff]  ;;  %v4976_v16 = vld [vmem:[%s6276_s1 + $0x20] sm:$0xff]  ;;  %v4981_v18 = vsub.f32 1.0, %v4245_v15  ;;  %v4989_v19 = vld [vmem:[%s6276_s1 + $0x28] sm:$0xff] }
  0x12   :  { %v823_v14 = vsub.f32 1.0, %v4966_v13  ;;  %v4979_v17 = vsub.f32 1.0, %v4976_v16  ;;  %v4992_v20 = vsub.f32 1.0, %v4989_v19  ;;  %v4997_v21 = vld [vmem:[%s6276_s1 + $0x30] sm:$0xff]  ;;  %v5010_v23 = vld [vmem:[%s6276_s1 + $0x38] sm:$0xff]  ;;  %v130_v24 = vld [vmem:[%s6277_s2 + $0x8] sm:$0xff] }
  0x13   :  { %v5003_v22 = vsub.f32 1.0, %v4997_v21  ;;  %170 = vmatpush.msra.mxu0 %v130_v24  ;;  %4434 = vmatpush.msra.mxu1 %v130_v24  ;;  %v129_v25 = vld [vmem:[%s6277_s2] sm:$0xff]  ;;  %v1493_v42 = vsub.f32 1.0, %v5010_v23  ;;  %v208_v46 = vld [vmem:[#allocation6 + $0x18] sm:$0xff]  ;;  %v207_v47 = vld [vmem:[#allocation6 + $0x10] sm:$0xff] }
  0x14   :  { %4436 = vmatpush.msra.mxu3 %v130_v24  ;;  %4435 = vmatpush.msra.mxu2 %v130_v24  ;;  %v206_v48 = vld [vmem:[#allocation6 + $0x8] sm:$0xff]  ;;  %v291_v49 = vld [vmem:[#allocation6 + $0x38] sm:$0xff]  ;;  %v290_v51 = vld [vmem:[#allocation6 + $0x30] sm:$0xff] }
  0x15   :  { %171 = vmatpush.msra.mxu0 %v129_v25  ;;  %4437 = vmatpush.msra.mxu1 %v129_v25  ;;  %v350_v50 = vld [vmem:[#allocation6 + $0x58] sm:$0xff]  ;;  %v349_v52 = vld [vmem:[#allocation6 + $0x50] sm:$0xff]  ;;  %v205_v53 = vld [vmem:[#allocation6] sm:$0xff] }
  0x16   :  { %4439 = vmatpush.msra.mxu3 %v129_v25  ;;  %4438 = vmatpush.msra.mxu2 %v129_v25  ;;  %v289_v54 = vld [vmem:[#allocation6 + $0x28] sm:$0xff]  ;;  %v288_v56 = vld [vmem:[#allocation6 + $0x20] sm:$0xff]  ;;  %v5051_v58 = vld [vmem:[#allocation9 + $0x38] sm:$0xff] }
  0x17   :  { %97 = vperm.xlu2 %4450, %v76_v4   ;;  %250 = vmatpush.msrb.mxu1 %v208_v46  ;;  %v348_v55 = vld [vmem:[#allocation6 + $0x48] sm:$0xff]  ;;  %v347_v57 = vld [vmem:[#allocation6 + $0x40] sm:$0xff]  ;;  %v5053_v59 = vld [vmem:[#allocation9 + $0x18] sm:$0xff] }
  0x18   :  { %91 = vperm.xlu1 %4449, %v74_v5   ;;  %85 = vperm.xlu0 %4448, %v72_v6   ;;  %v5055_v60 = vld [vmem:[#allocation9 + $0x10] sm:$0xff]  ;;  %v5059_v61 = vld [vmem:[#allocation9 + $0x8] sm:$0xff]  ;;  %v5065_v62 = vld [vmem:[#allocation9] sm:$0xff] }
  0x19   :  { %251 = vmatpush.msrb.mxu1 %v207_v47  ;;  %309 = vmatpush.msrb.mxu2 %v291_v49  ;;  %v5071_v63 = vld [vmem:[%s6278_s3] sm:$0xff]  ;;  %v5078_v0 = vld [vmem:[#allocation9 + $0x58] sm:$0xff]  ;;  %v5081_v1 = vld [vmem:[#allocation9 + $0x30] sm:$0xff] }
  0x1a   :  { %368 = vmatpush.msrb.mxu3 %v350_v50  ;;  %446 = vmatpush.msrb.mxu0 %v5053_v59  ;;  %v5085_v2 = vld [vmem:[#allocation9 + $0x50] sm:$0xff]  ;;  %v5091_v5 = vld [vmem:[#allocation9 + $0x28] sm:$0xff]  ;;  %v5164_v26 = vld [vmem:[%s6281_s6 + $0x1] ss:$0 sm:$0xff] }
  0x1b   :  { %252 = vmatpush.msrb.mxu1 %v206_v48  ;;  %310 = vmatpush.msrb.mxu2 %v290_v51  ;;  %v5190_v46 = vld [vmem:[%s6282_s7] ss:$0 sm:$0xff] }
  0x1c   :  { %369 = vmatpush.msrb.mxu3 %v349_v52  ;;  %447 = vmatpush.msrb.mxu0 %v5055_v60 }
  0x1d   :  { %253 = vmatpush.msrb.mxu1 %v205_v53  ;;  %311 = vmatpush.msrb.mxu2 %v289_v54 }
  0x1e   :  { %370 = vmatpush.msrb.mxu3 %v348_v55  ;;  %448 = vmatpush.msrb.mxu0 %v5059_v61 }
  0x1f   :  { %550 = vperm.xlu2 %4450, %v4943_v7   ;;  %312 = vmatpush.msrb.mxu2 %v288_v56 }
  0x20   :  { %103 = vperm.xlu1 %4449, %v78_v8   ;;  %100 = vperm.xlu0 %4448, %v77_v9   ;;  %v5101_v9 = vld [vmem:[#allocation9 + $0x48] sm:$0xff] }
  0x21   :  { %371 = vmatpush.msrb.mxu3 %v347_v57  ;;  %449 = vmatpush.msrb.mxu0 %v5065_v62 }
  0x27   :  { %692 = vperm.xlu2 %4450, %v4958_v11  }
  0x28   :  { %683 = vperm.xlu1 %4449, %v4955_v10   ;;  %558 = vperm.xlu0 %4448, %v555_v12  }
  0x2f   :  { %951 = vperm.xlu2 %4450, %v4245_v15  }
  0x30   :  { %826 = vperm.xlu1 %4449, %v823_v14   ;;  %817 = vperm.xlu0 %4448, %v4966_v13  }
  0x37   :  { %1094 = vperm.xlu2 %4450, %v4979_v17  }
  0x38   :  { %1085 = vperm.xlu1 %4449, %v4976_v16   ;;  %960 = vperm.xlu0 %4448, %v4981_v18  }
  0x3f   :  { %1353 = vperm.xlu2 %4450, %v4997_v21  }
  0x40   :  { %1228 = vperm.xlu1 %4449, %v4992_v20   ;;  %1219 = vperm.xlu0 %4448, %v4989_v19  }
  0x47   :  { %1867 = vperm.xlu2 %4450, %v555_v12  }
  0x48   :  { %1859 = vperm.xlu1 %4449, %v4943_v7   ;;  %1362 = vperm.xlu0 %4448, %v5003_v22  }
  0x4f   :  { %1487 = vperm.xlu2 %4450, %v5010_v23  }
  0x50   :  { %1996 = vperm.xlu1 %4449, %v4958_v11   ;;  %1988 = vperm.xlu0 %4448, %v4955_v10  }
  0x57   :  { %2246 = vperm.xlu2 %4450, %v4245_v15  }
  0x58   :  { %2125 = vperm.xlu1 %4449, %v823_v14   ;;  %2117 = vperm.xlu0 %4448, %v4966_v13  }
  0x5f   :  { %2383 = vperm.xlu2 %4450, %v4979_v17  }
  0x60   :  { %2375 = vperm.xlu1 %4449, %v4976_v16   ;;  %2254 = vperm.xlu0 %4448, %v4981_v18  }
  0x67   :  { %2633 = vperm.xlu2 %4450, %v4997_v21  }
  0x68   :  { %2512 = vperm.xlu1 %4449, %v4992_v20   ;;  %2504 = vperm.xlu0 %4448, %v4989_v19  }
  0x69   :  { %v95_v28 = vpop.permute.xlu2 %94 }
  0x6a   :  { %vm109_vm0 = vcmp.eq.s32.totalorder %v95_v28, %v80_v27 }
  0x6b   :  { %v4183_v30 = vsel %vm109_vm0, 1.0, %v4847_v29 }
  0x6c   :  { %4191 = vmatmul.msk.f32.vlgmr.msra.gmra.mxu2 %vm131_vm1, %v4183_v30 }
  0x6d   :  { %492 = vmatpush.msra.mxu2 %v5078_v0 }
  0x6f   :  { %3142 = vperm.xlu2 %4450, %v555_v12   ;;  %493 = vmatpush.msra.mxu2 %v5085_v2 }
  0x70   :  { %3134 = vperm.xlu1 %4449, %v4943_v7   ;;  %2641 = vperm.xlu0 %4448, %v5003_v22  }
  0x71   :  { %v98_v31 = vpop.permute.xlu2 %97  ;;  %494 = vmatpush.msra.mxu2 %v5101_v9 }
  0x72   :  { %vm110_vm2 = vcmp.eq.s32.totalorder %v98_v31, %v80_v27 }
  0x73   :  { %v4184_v32 = vsel %vm110_vm2, 1.0, %v4847_v29 }
  0x74   :  { %4192 = vmatmul.msk.f32.gmra.mxu2 %vm131_vm1, %v4184_v32 }
  0x77   :  { %2762 = vperm.xlu2 %4450, %v5010_v23  }
  0x78   :  { %3271 = vperm.xlu1 %4449, %v4958_v11   ;;  %3263 = vperm.xlu0 %4448, %v4955_v10   ;;  %v5107_v11 = vld [vmem:[#allocation9 + $0x20] sm:$0xff] }
  0x7f   :  { %3521 = vperm.xlu2 %4450, %v4245_v15   ;;  %v5121_v15 = vld [vmem:[#allocation9 + $0x40] sm:$0xff] }
  0x80   :  { %3400 = vperm.xlu1 %4449, %v823_v14   ;;  %3392 = vperm.xlu0 %4448, %v4966_v13  }
  0x81   :  { %495 = vmatpush.msra.mxu2 %v5121_v15 }
  0x82   :  { %v89_v33 = vpop.permute.xlu1 %88  ;;  %v83_v34 = vpop.permute.xlu0 %82 }
  0x83   :  { %vm107_vm3 = vcmp.eq.s32.totalorder %v89_v33, %v80_v27  ;;  %vm105_vm4 = vcmp.eq.s32.totalorder %v83_v34, %v80_v27 }
  0x84   :  { %v4181_v35 = vsel %vm107_vm3, 1.0, %v4847_v29  ;;  %v4179_v36 = vsel %vm105_vm4, 1.0, %v4847_v29 }
  0x85   :  { %4189 = vmatmul.msk.f32.vlgmr.msra.gmra.mxu1 %vm131_vm1, %v4181_v35  ;;  %4187 = vmatmul.msk.f32.vlgmr.msra.gmra.mxu0 %vm131_vm1, %v4179_v36 }
  0x86   :  { %469 = vmatpush.msra.mxu1 %v5051_v58  ;;  %604 = vmatpush.msra.mxu0 %v5051_v58 }
  0x87   :  { %3658 = vperm.xlu2 %4450, %v4979_v17  }
  0x88   :  { %3650 = vperm.xlu1 %4449, %v4976_v16   ;;  %3529 = vperm.xlu0 %4448, %v4981_v18  }
  0x89   :  { %470 = vmatpush.msra.mxu1 %v5081_v1  ;;  %605 = vmatpush.msra.mxu0 %v5081_v1 }
  0x8a   :  { %v92_v37 = vpop.permute.xlu1 %91  ;;  %v86_v38 = vpop.permute.xlu0 %85 }
  0x8b   :  { %vm108_vm5 = vcmp.eq.s32.totalorder %v92_v37, %v80_v27  ;;  %vm106_vm6 = vcmp.eq.s32.totalorder %v86_v38, %v80_v27  ;;  %471 = vmatpush.msra.mxu1 %v5091_v5  ;;  %606 = vmatpush.msra.mxu0 %v5091_v5 }
  0x8c   :  { %v4182_v39 = vsel %vm108_vm5, 1.0, %v4847_v29  ;;  %v4180_v40 = vsel %vm106_vm6, 1.0, %v4847_v29 }
  0x8d   :  { %4190 = vmatmul.msk.f32.gmra.mxu1 %vm131_vm1, %v4182_v39  ;;  %4188 = vmatmul.msk.f32.gmra.mxu0 %vm131_vm1, %v4180_v40 }
  0x8e   :  { %472 = vmatpush.msra.mxu1 %v5107_v11  ;;  %607 = vmatpush.msra.mxu0 %v5107_v11 }
  0x8f   :  { %3908 = vperm.xlu2 %4450, %v4997_v21  }
  0x90   :  { %3787 = vperm.xlu1 %4449, %v4992_v20   ;;  %3779 = vperm.xlu0 %4448, %v4989_v19  }
  0x92   :  { %v101_v41 = vpop.permute.xlu0 %100  ;;  %v104_v44 = vpop.permute.xlu1 %103 }
  0x93   :  { %vm111_vm7 = vcmp.eq.s32.totalorder %v101_v41, %v80_v27  ;;  %vm112_vm8 = vcmp.eq.s32.totalorder %v104_v44, %v80_v27  ;;  %v5169_v27 = vld [vmem:[%s6281_s6 + $0x2] ss:$0 sm:$0xff] }
  0x94   :  { %v4185_v43 = vsel %vm111_vm7, 1.0, %v4847_v29  ;;  %v4186_v45 = vsel %vm112_vm8, 1.0, %v4847_v29 }
  0x95   :  { %4193 = vmatmul.msk.f32.vlgmr.msra.gmra.mxu3 %vm131_vm1, %v4185_v43  ;;  %4223 = vmatmul.msk.f32.vlgmr.msrb.gmra.mxu0 %vm213_vm9, %v5071_v63 }
  0x96   :  { %584 = vmatpush.msra.mxu3 %v5053_v59  ;;  %758 = vmatpush.msrb.mxu0 %v5078_v0 }
  0x97   :  { %1496 = vperm.xlu2 %4450, %v1493_v42  }
  0x98   :  { %4037 = vperm.xlu1 %4449, %v5010_v23   ;;  %3916 = vperm.xlu0 %4448, %v5003_v22   ;;  %v5157_v23 = vld [vmem:[%s6281_s6] ss:$0 sm:$0xff] }
  0x99   :  { %585 = vmatpush.msra.mxu3 %v5055_v60  ;;  %759 = vmatpush.msrb.mxu0 %v5085_v2 }
  0x9b   :  { %586 = vmatpush.msra.mxu3 %v5059_v61  ;;  %760 = vmatpush.msrb.mxu0 %v5101_v9 }
  0x9d   :  { %4194 = vmatmul.msk.f32.gmra.mxu3 %vm131_vm1, %v4186_v45  ;;  %761 = vmatpush.msrb.mxu0 %v5121_v15 }
  0x9e   :  { %587 = vmatpush.msra.mxu3 %v5065_v62 }
  0xa0   :  { %4045 = vperm.xlu1 %4449, %v1493_v42   ;;  %2770 = vperm.xlu0 %4448, %v1493_v42  }
  0xef   :  { %v185_v14 = vpop.f32.mrf.mxu2 }
  0xf0   :  { %v201_v16 = vmax.f32 %v185_v14, 0.0 }
  0xf7   :  { %v188_v17 = vpop.f32.mrf.mxu2 }
  0xf8   :  { %v202_v18 = vmax.f32 %v188_v17, 0.0 }
 0x102   :  { %v173_v3 = vpop.f32.mrf.mxu0  ;;  %v179_v8 = vpop.f32.mrf.mxu1 }
 0x103   :  { %v197_v4 = vmax.f32 %v173_v3, 0.0  ;;  %v199_v10 = vmax.f32 %v179_v8, 0.0 }
 0x105   :  { %4195 = vmatmul.msk.f32.vlgmr.msrb.gmra.mxu1 %vm213_vm9, %v197_v4  ;;  %4204 = vmatmul.msk.f32.vlgmr.msrb.gmra.mxu2 %vm213_vm9, %v197_v4 }
 0x106   :  { %4213 = vmatmul.msk.f32.vlgmr.msrb.gmra.mxu3 %vm213_vm9, %v197_v4  ;;  %624 = vmatpush.msrb.mxu1 %v5078_v0 }
 0x107   :  { %738 = vmatpush.msrb.mxu3 %v5051_v58  ;;  %718 = vmatpush.msrb.mxu2 %v5053_v59 }
 0x108   :  { %625 = vmatpush.msrb.mxu1 %v5085_v2 }
 0x109   :  { %739 = vmatpush.msrb.mxu3 %v5081_v1  ;;  %719 = vmatpush.msrb.mxu2 %v5055_v60 }
 0x10a   :  { %v176_v6 = vpop.f32.mrf.mxu0  ;;  %v182_v12 = vpop.f32.mrf.mxu1  ;;  %626 = vmatpush.msrb.mxu1 %v5101_v9 }
 0x10b   :  { %v198_v7 = vmax.f32 %v176_v6, 0.0  ;;  %740 = vmatpush.msrb.mxu3 %v5091_v5  ;;  %v200_v13 = vmax.f32 %v182_v12, 0.0  ;;  %720 = vmatpush.msrb.mxu2 %v5059_v61 }
 0x10c   :  { %627 = vmatpush.msrb.mxu1 %v5121_v15 }
 0x10d   :  { %4196 = vmatmul.msk.f32.gmra.mxu1 %vm213_vm9, %v198_v7  ;;  %4205 = vmatmul.msk.f32.gmra.mxu2 %vm213_vm9, %v198_v7 }
 0x10e   :  { %4214 = vmatmul.msk.f32.gmra.mxu3 %vm213_vm9, %v198_v7  ;;  %721 = vmatpush.msrb.mxu2 %v5065_v62 }
 0x10f   :  { %741 = vmatpush.msrb.mxu3 %v5107_v11 }
 0x112   :  { %v451_v47 = vpop.f32.mrf.mxu0 }
 0x113   :  { %v452_v48 = vadd.f32 %v5190_v46, %v451_v47 }
 0x115   :  { %4197 = vmatmul.msk.f32.gmra.mxu1 %vm213_vm9, %v199_v10  ;;  %4206 = vmatmul.msk.f32.gmra.mxu2 %vm213_vm9, %v199_v10 }
 0x116   :  { %4215 = vmatmul.msk.f32.gmra.mxu3 %vm213_vm9, %v199_v10 }
 0x118   :  { %v191_v19 = vpop.f32.mrf.mxu3 }
 0x119   :  { %v203_v20 = vmax.f32 %v191_v19, 0.0 }
 0x11d   :  { %4198 = vmatmul.msk.f32.gmra.mxu1 %vm213_vm9, %v200_v13  ;;  %4207 = vmatmul.msk.f32.gmra.mxu2 %vm213_vm9, %v200_v13 }
 0x11e   :  { %4216 = vmatmul.msk.f32.gmra.mxu3 %vm213_vm9, %v200_v13 }
 0x120   :  { %v194_v21 = vpop.f32.mrf.mxu3 }
 0x121   :  { %v204_v22 = vmax.f32 %v194_v21, 0.0 }
 0x125   :  { %4199 = vmatmul.msk.f32.gmra.mxu1 %vm213_vm9, %v201_v16  ;;  %4208 = vmatmul.msk.f32.gmra.mxu2 %vm213_vm9, %v201_v16 }
 0x126   :  { %4217 = vmatmul.msk.f32.gmra.mxu3 %vm213_vm9, %v201_v16 }
 0x12d   :  { %4200 = vmatmul.msk.f32.gmra.mxu1 %vm213_vm9, %v202_v18  ;;  %4209 = vmatmul.msk.f32.gmra.mxu2 %vm213_vm9, %v202_v18 }
 0x12e   :  { %4218 = vmatmul.msk.f32.gmra.mxu3 %vm213_vm9, %v202_v18 }
 0x135   :  { %4201 = vmatmul.msk.f32.gmra.mxu1 %vm213_vm9, %v203_v20  ;;  %4210 = vmatmul.msk.f32.gmra.mxu2 %vm213_vm9, %v203_v20 }
 0x136   :  { %4219 = vmatmul.msk.f32.gmra.mxu3 %vm213_vm9, %v203_v20 }
 0x13d   :  { %4202 = vmatmul.msk.f32.gmra.mxu1 %vm213_vm9, %v204_v22  ;;  %4211 = vmatmul.msk.f32.gmra.mxu2 %vm213_vm9, %v204_v22 }
 0x13e   :  { %4220 = vmatmul.msk.f32.gmra.mxu3 %vm213_vm9, %v204_v22 }
 0x145   :  { %4224 = vmatmul.msk.f32.vlgmr.msra.gmra.mxu1 %vm213_vm9, %v5071_v63  ;;  %4225 = vmatmul.msk.f32.vlgmr.msra.gmra.mxu2 %vm213_vm9, %v5071_v63 }
 0x146   :  { %852 = vmatpush.msra.mxu1 %v5053_v59  ;;  %872 = vmatpush.msra.mxu2 %v5051_v58 }
 0x148   :  { %853 = vmatpush.msra.mxu1 %v5055_v60  ;;  %873 = vmatpush.msra.mxu2 %v5081_v1 }
 0x14a   :  { %854 = vmatpush.msra.mxu1 %v5059_v61  ;;  %874 = vmatpush.msra.mxu2 %v5091_v5 }
 0x14c   :  { %855 = vmatpush.msra.mxu1 %v5065_v62  ;;  %875 = vmatpush.msra.mxu2 %v5107_v11 }
 0x182   :  { %v255_v24 = vpop.f32.mrf.mxu1 }
 0x183   :  { %v256_v25 = vadd.f32 %v5157_v23, %v255_v24 }
 0x185   :  { %279 = vst.msk [vmem:[#allocation3] sm:$0xff] %vm213_vm9, %v256_v25 }
 0x188   :  { %v314_v28 = vpop.f32.mrf.mxu2 }
 0x189   :  { %v315_v29 = vadd.f32 %v5164_v26, %v314_v28  ;;  %v373_v30 = vpop.f32.mrf.mxu3 }
 0x18a   :  { %v374_v31 = vadd.f32 %v5169_v27, %v373_v30  ;;  %v258_v32 = vpop.f32.mrf.mxu1 }
 0x18b   :  { %338 = vst.msk [vmem:[#allocation4] sm:$0xff] %vm213_vm9, %v315_v29  ;;  %v259_v33 = vadd.f32 %v5157_v23, %v258_v32 }
 0x18c   :  { %397 = vst.msk [vmem:[#allocation5] sm:$0xff] %vm213_vm9, %v374_v31  ;;  %v425_v50 = vld [vmem:[#allocation3] sm:$0xff] }
 0x18d   :  { %280 = vst.msk [vmem:[#allocation3 + $0x8] sm:$0xff] %vm213_vm9, %v259_v33  ;;  %v500_v56 = vadd.f32 %v452_v48, %v425_v50  ;;  %v5222_v31 = vld [vmem:[%s6282_s7 + $0x1] ss:$0 sm:$0xff] }
 0x18f   :  { %v4226_v57 = vmul.f32 -1.442695, %v500_v56 }
 0x190   :  { %v317_v34 = vpop.f32.mrf.mxu2 }
 0x191   :  { %v318_v35 = vadd.f32 %v5164_v26, %v317_v34  ;;  %v376_v36 = vpop.f32.mrf.mxu3  ;;  %4470 = vpow2.f32 %v4226_v57 }
 0x192   :  { %v377_v37 = vadd.f32 %v5169_v27, %v376_v36  ;;  %v261_v38 = vpop.f32.mrf.mxu1 }
 0x193   :  { %339 = vst.msk [vmem:[#allocation4 + $0x8] sm:$0xff] %vm213_vm9, %v318_v35  ;;  %v262_v39 = vadd.f32 %v5157_v23, %v261_v38  ;;  %v426_v38 = vld [vmem:[#allocation4] sm:$0xff] }
 0x194   :  { %398 = vst.msk [vmem:[#allocation5 + $0x8] sm:$0xff] %vm213_vm9, %v377_v37  ;;  %v427_v56 = vld [vmem:[#allocation5] sm:$0xff] }
 0x195   :  { %281 = vst.msk [vmem:[#allocation3 + $0x10] sm:$0xff] %vm213_vm9, %v262_v39 }
 0x197   :  { %v4471_v16 = vpop.eup %4470 }
 0x198   :  { %v320_v40 = vpop.f32.mrf.mxu2  ;;  %v504_v20 = vadd.f32 1.0, %v4471_v16 }
 0x199   :  { %v321_v41 = vadd.f32 %v5164_v26, %v320_v40  ;;  %v379_v42 = vpop.f32.mrf.mxu3 }
 0x19a   :  { %v380_v43 = vadd.f32 %v5169_v27, %v379_v42  ;;  %v264_v44 = vpop.f32.mrf.mxu1  ;;  %4472 = vrcp.f32 %v504_v20  ;;  %vm510_vm11 = vweird.f32 %v504_v20  ;;  %v514_v48 = vand.u32 2147483647, %v504_v20 }
 0x19b   :  { %340 = vst.msk [vmem:[#allocation4 + $0x10] sm:$0xff] %vm213_vm9, %v321_v41  ;;  %v265_v45 = vadd.f32 %v5157_v23, %v264_v44 }
 0x19c   :  { %399 = vst.msk [vmem:[#allocation5 + $0x10] sm:$0xff] %vm213_vm9, %v380_v43  ;;  %vm515_vm13 = vcmp.eq.f32.partialorder %v514_v48, 8.507059e+37 }
 0x19d   :  { %282 = vst.msk [vmem:[#allocation3 + $0x18] sm:$0xff] %vm213_vm9, %v265_v45  ;;  %v516_v45 = vand.u32 2147483648, %v504_v20 }
 0x1a0   :  { %v323_v49 = vpop.f32.mrf.mxu2  ;;  %v4473_v30 = vpop.eup %4472 }
 0x1a1   :  { %v324_v51 = vadd.f32 %v5164_v26, %v323_v49  ;;  %v382_v52 = vpop.f32.mrf.mxu3  ;;  %v506_v37 = vmul.f32 %v4473_v30, %v504_v20  ;;  %vm511_vm10 = vweird.f32 %v4473_v30 }
 0x1a2   :  { %v383_v53 = vadd.f32 %v5169_v27, %v382_v52  ;;  %v267_v54 = vpop.f32.mrf.mxu1  ;;  %vm512_vm12 = vmor %vm510_vm11, %vm511_vm10 }
 0x1a3   :  { %341 = vst.msk [vmem:[#allocation4 + $0x18] sm:$0xff] %vm213_vm9, %v324_v51  ;;  %v268_v55 = vadd.f32 %v5157_v23, %v267_v54  ;;  %v507_v40 = vsub.f32 1.0, %v506_v37  ;;  %v517_v51 = vor.u32 1.1754944e-38, %v516_v45 }
 0x1a4   :  { %400 = vst.msk [vmem:[#allocation5 + $0x18] sm:$0xff] %vm213_vm9, %v383_v53 }
 0x1a5   :  { %283 = vst.msk [vmem:[#allocation3 + $0x20] sm:$0xff] %vm213_vm9, %v268_v55  ;;  %v508_v42 = vmul.f32 %v4473_v30, %v507_v40 }
 0x1a8   :  { %v326_v3 = vpop.f32.mrf.mxu2 }
 0x1a9   :  { %v327_v4 = vadd.f32 %v5164_v26, %v326_v3  ;;  %v385_v6 = vpop.f32.mrf.mxu3 }
 0x1aa   :  { %v386_v7 = vadd.f32 %v5169_v27, %v385_v6  ;;  %v270_v8 = vpop.f32.mrf.mxu1 }
 0x1ab   :  { %342 = vst.msk [vmem:[#allocation4 + $0x20] sm:$0xff] %vm213_vm9, %v327_v4  ;;  %v271_v10 = vadd.f32 %v5157_v23, %v270_v8 }
 0x1ac   :  { %401 = vst.msk [vmem:[#allocation5 + $0x20] sm:$0xff] %vm213_vm9, %v386_v7 }
 0x1ad   :  { %284 = vst.msk [vmem:[#allocation3 + $0x28] sm:$0xff] %vm213_vm9, %v271_v10 }
 0x1b0   :  { %v329_v12 = vpop.f32.mrf.mxu2 }
 0x1b1   :  { %v330_v13 = vadd.f32 %v5164_v26, %v329_v12  ;;  %v388_v14 = vpop.f32.mrf.mxu3 }
 0x1b2   :  { %v389_v17 = vadd.f32 %v5169_v27, %v388_v14  ;;  %v273_v18 = vpop.f32.mrf.mxu1 }
 0x1b3   :  { %343 = vst.msk [vmem:[#allocation4 + $0x28] sm:$0xff] %vm213_vm9, %v330_v13  ;;  %v274_v19 = vadd.f32 %v5157_v23, %v273_v18 }
 0x1b4   :  { %402 = vst.msk [vmem:[#allocation5 + $0x28] sm:$0xff] %vm213_vm9, %v389_v17 }
 0x1b5   :  { %285 = vst.msk [vmem:[#allocation3 + $0x30] sm:$0xff] %vm213_vm9, %v274_v19  ;;  %v559_v19 = vpop.permute.xlu0 %558 }
 0x1b8   :  { %v332_v21 = vpop.f32.mrf.mxu2 }
 0x1b9   :  { %v333_v22 = vadd.f32 %v5164_v26, %v332_v21  ;;  %v391_v24 = vpop.f32.mrf.mxu3  ;;  %v551_v21 = vpop.permute.xlu2 %550 }
 0x1ba   :  { %v392_v25 = vadd.f32 %v5169_v27, %v391_v24  ;;  %v276_v28 = vpop.f32.mrf.mxu1 }
 0x1bb   :  { %344 = vst.msk [vmem:[#allocation4 + $0x30] sm:$0xff] %vm213_vm9, %v333_v22  ;;  %v277_v29 = vadd.f32 %v5157_v23, %v276_v28  ;;  %v561_v22 = vmul.f32 %v559_v19, %v5071_v63 }
 0x1bc   :  { %403 = vst.msk [vmem:[#allocation5 + $0x30] sm:$0xff] %vm213_vm9, %v392_v25 }
 0x1bd   :  { %286 = vst.msk [vmem:[#allocation3 + $0x38] sm:$0xff] %vm213_vm9, %v277_v29  ;;  %v566_v29 = vld [vmem:[#allocation4 + $0x8] sm:$0xff] }
 0x1c0   :  { %v335_v32 = vpop.f32.mrf.mxu2 }
 0x1c1   :  { %v336_v33 = vadd.f32 %v5164_v26, %v335_v32  ;;  %v394_v34 = vpop.f32.mrf.mxu3  ;;  %v5232_v26 = vld [vmem:[%s6282_s7 + $0x2] ss:$0 sm:$0xff] }
 0x1c2   :  { %v395_v35 = vadd.f32 %v5169_v27, %v394_v34  ;;  %v474_v36 = vpop.f32.mrf.mxu1  ;;  %v509_v27 = vadd.f32 %v4473_v30, %v508_v42 }
 0x1c3   :  { %345 = vst.msk [vmem:[#allocation4 + $0x38] sm:$0xff] %vm213_vm9, %v336_v33  ;;  %v475_v23 = vadd.f32 %v5222_v31, %v474_v36 }
 0x1c4   :  { %404 = vst.msk [vmem:[#allocation5 + $0x38] sm:$0xff] %vm213_vm9, %v395_v35  ;;  %v513_v50 = vsel %vm512_vm12, %v4473_v30, %v509_v27  ;;  %v564_v35 = vld [vmem:[#allocation3 + $0x8] sm:$0xff] }
 0x1c5   :  { %v520_v39 = vadd.f32 %v475_v23, %v426_v38  ;;  %v518_v52 = vsel %vm515_vm13, %v517_v51, %v513_v50 }
 0x1c7   :  { %v4227_v41 = vmul.f32 -1.442695, %v520_v39 }
 0x1c8   :  { %v497_v44 = vpop.f32.mrf.mxu2 }
 0x1c9   :  { %4474 = vpow2.f32 %v4227_v41  ;;  %v498_v49 = vadd.f32 %v5232_v26, %v497_v44 }
 0x1cb   :  { %v540_v53 = vmul.f32 %v518_v52, %v498_v49 }
 0x1cd   :  { %v541_v57 = vadd.f32 %v540_v53, %v427_v56 }
 0x1cf   :  { %v4475_v43 = vpop.eup %4474 }
 0x1d0   :  { %v524_v47 = vadd.f32 1.0, %v4475_v43 }
 0x1d2   :  { %4476 = vrcp.f32 %v524_v47  ;;  %v536_v4 = vand.u32 2147483648, %v524_v47  ;;  %v534_v7 = vand.u32 2147483647, %v524_v47  ;;  %vm530_vm15 = vweird.f32 %v524_v47 }
 0x1d3   :  { %4478 = vtanh.f32 %v541_v57 }
 0x1d4   :  { %v537_v10 = vor.u32 1.1754944e-38, %v536_v4  ;;  %vm535_vm1 = vcmp.eq.f32.partialorder %v534_v7, 8.507059e+37  ;;  %v568_v7 = vld [vmem:[#allocation5 + $0x8] sm:$0xff] }
 0x1d8   :  { %v4477_v54 = vpop.eup %4476 }
 0x1d9   :  { %v526_v55 = vmul.f32 %v4477_v54, %v524_v47  ;;  %vm531_vm14 = vweird.f32 %v4477_v54  ;;  %v4479_v16 = vpop.eup %4478 }
 0x1da   :  { %vm532_vm0 = vmor %vm530_vm15, %vm531_vm14 }
 0x1db   :  { %v527_v3 = vsub.f32 1.0, %v526_v55 }
 0x1dd   :  { %v528_v6 = vmul.f32 %v4477_v54, %v527_v3 }
 0x1df   :  { %v529_v8 = vadd.f32 %v4477_v54, %v528_v6 }
 0x1e1   :  { %v533_v12 = vsel %vm532_vm0, %v4477_v54, %v529_v8 }
 0x1e2   :  { %v538_v13 = vsel %vm535_vm1, %v537_v10, %v533_v12 }
 0x1e3   :  { %v543_v14 = vsub.f32 1.0, %v538_v13  ;;  %v545_v18 = vmul.f32 %v538_v13, %v5071_v63 }
 0x1e5   :  { %v544_v17 = vmul.f32 %v4479_v16, %v543_v14 }
 0x1e7   :  { %v546_v20 = vadd.f32 %v545_v18, %v544_v17 }
 0x1e9   :  { %v553_v24 = vmul.f32 %v551_v21, %v546_v20  ;;  %v693_v20 = vpop.permute.xlu2 %692  ;;  %v684_v21 = vpop.permute.xlu1 %683 }
 0x1eb   :  { %554 = vst.msk [vmem:[#allocation2] sm:$0xff] %vm213_vm9, %v553_v24  ;;  %v5238_v25 = vadd.f32 %v561_v22, %v553_v24 }
 0x1ed   :  { %4228 = vmatmul.msk.f32.vlgmr.msra.gmra.mxu3 %vm213_vm9, %v5238_v25  ;;  %4229 = vmatmul.msk.f32.vlgmr.msra.gmra.mxu0 %vm213_vm9, %v5238_v25  ;;  %v695_v24 = vmul.f32 %v693_v20, %v5238_v25 }
 0x1ee   :  { %4230 = vmatmul.msk.f32.vlgmr.msrb.gmra.mxu1 %vm213_vm9, %v5238_v25  ;;  %892 = vmatpush.msra.mxu3 %v5078_v0 }
 0x1ef   :  { %986 = vmatpush.msra.mxu0 %v5053_v59  ;;  %1006 = vmatpush.msrb.mxu1 %v5051_v58 }
 0x1f0   :  { %893 = vmatpush.msra.mxu3 %v5085_v2 }
 0x1f1   :  { %987 = vmatpush.msra.mxu0 %v5055_v60  ;;  %1007 = vmatpush.msrb.mxu1 %v5081_v1  ;;  %v827_v20 = vpop.permute.xlu1 %826 }
 0x1f2   :  { %894 = vmatpush.msra.mxu3 %v5101_v9 }
 0x1f3   :  { %988 = vmatpush.msra.mxu0 %v5059_v61  ;;  %1008 = vmatpush.msrb.mxu1 %v5091_v5 }
 0x1f4   :  { %895 = vmatpush.msra.mxu3 %v5121_v15 }
 0x1f5   :  { %989 = vmatpush.msra.mxu0 %v5065_v62  ;;  %1009 = vmatpush.msrb.mxu1 %v5107_v11 }
 0x26a   :  { %v609_v63 = vpop.f32.mrf.mxu0 }
 0x26b   :  { %v610_v28 = vadd.f32 %v5222_v31, %v609_v63  ;;  %v629_v51 = vpop.f32.mrf.mxu1 }
 0x26c   :  { %v630_v54 = vadd.f32 %v5232_v26, %v629_v51 }
 0x26d   :  { %v652_v30 = vadd.f32 %v610_v28, %v566_v29 }
 0x26f   :  { %v4232_v32 = vmul.f32 -1.442695, %v652_v30 }
 0x270   :  { %v589_v33 = vpop.f32.mrf.mxu3 }
 0x271   :  { %4480 = vpow2.f32 %v4232_v32  ;;  %v590_v34 = vadd.f32 %v5190_v46, %v589_v33  ;;  %v698_v32 = vld [vmem:[#allocation3 + $0x10] sm:$0xff] }
 0x272   :  { %v700_v33 = vld [vmem:[#allocation4 + $0x10] sm:$0xff] }
 0x273   :  { %v632_v36 = vadd.f32 %v590_v34, %v564_v35 }
 0x275   :  { %v4231_v37 = vmul.f32 -1.442695, %v632_v36 }
 0x277   :  { %v4481_v23 = vpop.eup %4480  ;;  %4482 = vpow2.f32 %v4231_v37 }
 0x278   :  { %v656_v38 = vadd.f32 1.0, %v4481_v23 }
 0x27a   :  { %4484 = vrcp.f32 %v656_v38  ;;  %v668_v3 = vand.u32 2147483648, %v656_v38  ;;  %vm662_vm7 = vweird.f32 %v656_v38  ;;  %v666_v6 = vand.u32 2147483647, %v656_v38 }
 0x27c   :  { %v669_v12 = vor.u32 1.1754944e-38, %v668_v3  ;;  %vm667_vm10 = vcmp.eq.f32.partialorder %v666_v6, 8.507059e+37  ;;  %v702_v6 = vld [vmem:[#allocation5 + $0x10] sm:$0xff] }
 0x27d   :  { %v4483_v39 = vpop.eup %4482 }
 0x27e   :  { %v636_v40 = vadd.f32 1.0, %v4483_v39 }
 0x280   :  { %4486 = vrcp.f32 %v636_v40  ;;  %v4485_v41 = vpop.eup %4484  ;;  %v648_v47 = vand.u32 2147483648, %v636_v40  ;;  %v646_v49 = vand.u32 2147483647, %v636_v40  ;;  %vm642_vm3 = vweird.f32 %v636_v40 }
 0x281   :  { %v658_v42 = vmul.f32 %v4485_v41, %v656_v38  ;;  %vm663_vm6 = vweird.f32 %v4485_v41 }
 0x282   :  { %v649_v53 = vor.u32 1.1754944e-38, %v648_v47  ;;  %vm647_vm5 = vcmp.eq.f32.partialorder %v646_v49, 8.507059e+37  ;;  %vm664_vm8 = vmor %vm662_vm7, %vm663_vm6 }
 0x283   :  { %v659_v44 = vsub.f32 1.0, %v658_v42 }
 0x285   :  { %v660_v50 = vmul.f32 %v4485_v41, %v659_v44 }
 0x286   :  { %v4487_v27 = vpop.eup %4486 }
 0x287   :  { %v638_v43 = vmul.f32 %v4487_v27, %v636_v40  ;;  %vm643_vm2 = vweird.f32 %v4487_v27  ;;  %v661_v56 = vadd.f32 %v4485_v41, %v660_v50 }
 0x288   :  { %vm644_vm4 = vmor %vm642_vm3, %vm643_vm2 }
 0x289   :  { %v639_v45 = vsub.f32 1.0, %v638_v43  ;;  %v665_v10 = vsel %vm664_vm8, %v4485_v41, %v661_v56 }
 0x28a   :  { %v670_v13 = vsel %vm667_vm10, %v669_v12, %v665_v10 }
 0x28b   :  { %v640_v48 = vmul.f32 %v4487_v27, %v639_v45  ;;  %v675_v14 = vsub.f32 1.0, %v670_v13  ;;  %v677_v18 = vmul.f32 %v670_v13, %v5238_v25 }
 0x28d   :  { %v641_v52 = vadd.f32 %v4487_v27, %v640_v48 }
 0x28f   :  { %v645_v55 = vsel %vm644_vm4, %v4487_v27, %v641_v52 }
 0x290   :  { %v650_v57 = vsel %vm647_vm5, %v649_v53, %v645_v55 }
 0x291   :  { %v672_v4 = vmul.f32 %v650_v57, %v630_v54 }
 0x293   :  { %v673_v8 = vadd.f32 %v672_v4, %v568_v7 }
 0x295   :  { %4488 = vtanh.f32 %v673_v8 }
 0x29b   :  { %v4489_v16 = vpop.eup %4488 }
 0x29c   :  { %v676_v17 = vmul.f32 %v4489_v16, %v675_v14 }
 0x29e   :  { %v678_v19 = vadd.f32 %v677_v18, %v676_v17 }
 0x2a0   :  { %v686_v22 = vmul.f32 %v684_v21, %v678_v19  ;;  %v818_v21 = vpop.permute.xlu0 %817 }
 0x2a2   :  { %688 = vst.msk [vmem:[#allocation2 + $0x8] sm:$0xff] %vm213_vm9, %v686_v22  ;;  %v5264_v63 = vadd.f32 %v695_v24, %v686_v22 }
 0x2a4   :  { %4234 = vmatmul.msk.f32.vlgmr.msrb.gmra.mxu2 %vm213_vm9, %v5264_v63  ;;  %4235 = vmatmul.msk.f32.vlgmr.msrb.gmra.mxu3 %vm213_vm9, %v5264_v63  ;;  %v829_v24 = vmul.f32 %v827_v20, %v5264_v63  ;;  %v952_v20 = vpop.permute.xlu2 %951 }
 0x2a5   :  { %4236 = vmatmul.msk.f32.vlgmr.msrb.gmra.mxu0 %vm213_vm9, %v5264_v63  ;;  %1026 = vmatpush.msrb.mxu2 %v5078_v0 }
 0x2a6   :  { %1120 = vmatpush.msrb.mxu3 %v5053_v59  ;;  %1140 = vmatpush.msrb.mxu0 %v5051_v58 }
 0x2a7   :  { %1027 = vmatpush.msrb.mxu2 %v5085_v2 }
 0x2a8   :  { %1121 = vmatpush.msrb.mxu3 %v5055_v60  ;;  %1141 = vmatpush.msrb.mxu0 %v5081_v1 }
 0x2a9   :  { %1028 = vmatpush.msrb.mxu2 %v5101_v9 }
 0x2aa   :  { %1122 = vmatpush.msrb.mxu3 %v5059_v61  ;;  %1142 = vmatpush.msrb.mxu0 %v5091_v5 }
 0x2ab   :  { %1029 = vmatpush.msrb.mxu2 %v5121_v15 }
 0x2ac   :  { %1123 = vmatpush.msrb.mxu3 %v5065_v62  ;;  %1143 = vmatpush.msrb.mxu0 %v5107_v11 }
 0x322   :  { %v763_v50 = vpop.f32.mrf.mxu0 }
 0x323   :  { %v764_v54 = vadd.f32 %v5232_v26, %v763_v50 }
 0x327   :  { %v723_v25 = vpop.f32.mrf.mxu2  ;;  %v743_v28 = vpop.f32.mrf.mxu3 }
 0x328   :  { %v724_v29 = vadd.f32 %v5190_v46, %v723_v25  ;;  %v744_v30 = vadd.f32 %v5222_v31, %v743_v28 }
 0x32a   :  { %v766_v34 = vadd.f32 %v724_v29, %v698_v32  ;;  %v786_v35 = vadd.f32 %v744_v30, %v700_v33  ;;  %v832_v29 = vld [vmem:[#allocation3 + $0x18] sm:$0xff] }
 0x32c   :  { %v4237_v36 = vmul.f32 -1.442695, %v766_v34  ;;  %v4238_v37 = vmul.f32 -1.442695, %v786_v35  ;;  %v834_v35 = vld [vmem:[#allocation4 + $0x18] sm:$0xff] }
 0x32e   :  { %4490 = vpow2.f32 %v4237_v36 }
 0x32f   :  { %4492 = vpow2.f32 %v4238_v37 }
 0x334   :  { %v4491_v23 = vpop.eup %4490 }
 0x335   :  { %v4493_v38 = vpop.eup %4492  ;;  %v770_v39 = vadd.f32 1.0, %v4491_v23 }
 0x336   :  { %v790_v40 = vadd.f32 1.0, %v4493_v38 }
 0x337   :  { %4494 = vrcp.f32 %v770_v39  ;;  %v782_v45 = vand.u32 2147483648, %v770_v39  ;;  %v780_v49 = vand.u32 2147483647, %v770_v39  ;;  %vm776_vm12 = vweird.f32 %v770_v39 }
 0x338   :  { %4496 = vrcp.f32 %v790_v40  ;;  %v802_v4 = vand.u32 2147483648, %v790_v40  ;;  %vm796_vm0 = vweird.f32 %v790_v40  ;;  %v800_v7 = vand.u32 2147483647, %v790_v40 }
 0x339   :  { %v783_v53 = vor.u32 1.1754944e-38, %v782_v45  ;;  %vm781_vm14 = vcmp.eq.f32.partialorder %v780_v49, 8.507059e+37 }
 0x33a   :  { %v803_v12 = vor.u32 1.1754944e-38, %v802_v4  ;;  %vm801_vm2 = vcmp.eq.f32.partialorder %v800_v7, 8.507059e+37  ;;  %v836_v4 = vld [vmem:[#allocation5 + $0x18] sm:$0xff] }
 0x33d   :  { %v4495_v41 = vpop.eup %4494 }
 0x33e   :  { %v4497_v42 = vpop.eup %4496  ;;  %v772_v27 = vmul.f32 %v4495_v41, %v770_v39  ;;  %vm777_vm11 = vweird.f32 %v4495_v41 }
 0x33f   :  { %v792_v43 = vmul.f32 %v4497_v42, %v790_v40  ;;  %vm778_vm13 = vmor %vm776_vm12, %vm777_vm11  ;;  %vm797_vm15 = vweird.f32 %v4497_v42 }
 0x340   :  { %v773_v44 = vsub.f32 1.0, %v772_v27  ;;  %vm798_vm1 = vmor %vm796_vm0, %vm797_vm15 }
 0x341   :  { %v793_v47 = vsub.f32 1.0, %v792_v43 }
 0x342   :  { %v774_v48 = vmul.f32 %v4495_v41, %v773_v44 }
 0x343   :  { %v794_v51 = vmul.f32 %v4497_v42, %v793_v47 }
 0x344   :  { %v775_v52 = vadd.f32 %v4495_v41, %v774_v48 }
 0x345   :  { %v795_v57 = vadd.f32 %v4497_v42, %v794_v51 }
 0x346   :  { %v779_v55 = vsel %vm778_vm13, %v4495_v41, %v775_v52 }
 0x347   :  { %v784_v56 = vsel %vm781_vm14, %v783_v53, %v779_v55  ;;  %v799_v10 = vsel %vm798_vm1, %v4497_v42, %v795_v57 }
 0x348   :  { %v806_v3 = vmul.f32 %v784_v56, %v764_v54  ;;  %v804_v13 = vsel %vm801_vm2, %v803_v12, %v799_v10 }
 0x349   :  { %v809_v14 = vsub.f32 1.0, %v804_v13  ;;  %v811_v18 = vmul.f32 %v804_v13, %v5264_v63 }
 0x34a   :  { %v807_v8 = vadd.f32 %v806_v3, %v702_v6 }
 0x34c   :  { %4498 = vtanh.f32 %v807_v8 }
 0x352   :  { %v4499_v16 = vpop.eup %4498 }
 0x353   :  { %v810_v17 = vmul.f32 %v4499_v16, %v809_v14 }
 0x355   :  { %v812_v19 = vadd.f32 %v811_v18, %v810_v17 }
 0x357   :  { %v820_v22 = vmul.f32 %v818_v21, %v812_v19  ;;  %v961_v21 = vpop.permute.xlu0 %960 }
 0x359   :  { %822 = vst.msk [vmem:[#allocation2 + $0x10] sm:$0xff] %vm213_vm9, %v820_v22  ;;  %v5290_v25 = vadd.f32 %v829_v24, %v820_v22 }
 0x35b   :  { %4240 = vmatmul.msk.f32.vlgmr.msra.gmra.mxu1 %vm213_vm9, %v5290_v25  ;;  %4241 = vmatmul.msk.f32.vlgmr.msra.gmra.mxu2 %vm213_vm9, %v5290_v25  ;;  %v963_v24 = vmul.f32 %v961_v21, %v5290_v25 }
 0x35c   :  { %4242 = vmatmul.msk.f32.vlgmr.msra.gmra.mxu3 %vm213_vm9, %v5290_v25  ;;  %1160 = vmatpush.msra.mxu1 %v5078_v0 }
 0x35d   :  { %1254 = vmatpush.msra.mxu2 %v5053_v59  ;;  %1274 = vmatpush.msra.mxu3 %v5051_v58 }
 0x35e   :  { %1161 = vmatpush.msra.mxu1 %v5085_v2 }
 0x35f   :  { %1255 = vmatpush.msra.mxu2 %v5055_v60  ;;  %1275 = vmatpush.msra.mxu3 %v5081_v1 }
 0x360   :  { %1162 = vmatpush.msra.mxu1 %v5101_v9 }
 0x361   :  { %1256 = vmatpush.msra.mxu2 %v5059_v61  ;;  %1276 = vmatpush.msra.mxu3 %v5091_v5 }
 0x362   :  { %1163 = vmatpush.msra.mxu1 %v5121_v15 }
 0x363   :  { %1257 = vmatpush.msra.mxu2 %v5065_v62  ;;  %1277 = vmatpush.msra.mxu3 %v5107_v11 }
 0x3d8   :  { %v857_v63 = vpop.f32.mrf.mxu1 }
 0x3d9   :  { %v858_v28 = vadd.f32 %v5190_v46, %v857_v63 }
 0x3db   :  { %v900_v30 = vadd.f32 %v858_v28, %v832_v29 }
 0x3dd   :  { %v4243_v32 = vmul.f32 -1.442695, %v900_v30 }
 0x3de   :  { %v877_v33 = vpop.f32.mrf.mxu2 }
 0x3df   :  { %4500 = vpow2.f32 %v4243_v32  ;;  %v878_v34 = vadd.f32 %v5222_v31, %v877_v33  ;;  %v897_v48 = vpop.f32.mrf.mxu3 }
 0x3e0   :  { %v898_v53 = vadd.f32 %v5232_v26, %v897_v48 }
 0x3e1   :  { %v920_v36 = vadd.f32 %v878_v34, %v834_v35 }
 0x3e3   :  { %v4244_v37 = vmul.f32 -1.442695, %v920_v36 }
 0x3e5   :  { %v4501_v23 = vpop.eup %4500  ;;  %4502 = vpow2.f32 %v4244_v37 }
 0x3e6   :  { %v904_v38 = vadd.f32 1.0, %v4501_v23 }
 0x3e8   :  { %4504 = vrcp.f32 %v904_v38  ;;  %v916_v43 = vand.u32 2147483648, %v904_v38  ;;  %v914_v45 = vand.u32 2147483647, %v904_v38  ;;  %vm910_vm4 = vweird.f32 %v904_v38 }
 0x3ea   :  { %v917_v51 = vor.u32 1.1754944e-38, %v916_v43  ;;  %vm915_vm6 = vcmp.eq.f32.partialorder %v914_v45, 8.507059e+37 }
 0x3eb   :  { %v4503_v39 = vpop.eup %4502 }
 0x3ec   :  { %v924_v40 = vadd.f32 1.0, %v4503_v39 }
 0x3ee   :  { %v4505_v41 = vpop.eup %4504  ;;  %4506 = vrcp.f32 %v924_v40  ;;  %v936_v57 = vand.u32 2147483648, %v924_v40  ;;  %v934_v6 = vand.u32 2147483647, %v924_v40  ;;  %vm930_vm8 = vweird.f32 %v924_v40 }
 0x3ef   :  { %v906_v42 = vmul.f32 %v4505_v41, %v904_v38  ;;  %vm911_vm3 = vweird.f32 %v4505_v41 }
 0x3f0   :  { %vm912_vm5 = vmor %vm910_vm4, %vm911_vm3  ;;  %v937_v10 = vor.u32 1.1754944e-38, %v936_v57  ;;  %vm935_vm11 = vcmp.eq.f32.partialorder %v934_v6, 8.507059e+37  ;;  %v1095_v6 = vpop.permute.xlu2 %1094 }
 0x3f1   :  { %v907_v27 = vsub.f32 1.0, %v906_v42 }
 0x3f3   :  { %v908_v44 = vmul.f32 %v4505_v41, %v907_v27 }
 0x3f4   :  { %v4507_v47 = vpop.eup %4506 }
 0x3f5   :  { %v926_v49 = vmul.f32 %v4507_v47, %v924_v40  ;;  %v909_v50 = vadd.f32 %v4505_v41, %v908_v44  ;;  %vm931_vm7 = vweird.f32 %v4507_v47 }
 0x3f6   :  { %vm932_vm10 = vmor %vm930_vm8, %vm931_vm7 }
 0x3f7   :  { %v927_v52 = vsub.f32 1.0, %v926_v49  ;;  %v913_v54 = vsel %vm912_vm5, %v4505_v41, %v909_v50  ;;  %v970_v49 = vld [vmem:[#allocation5 + $0x20] sm:$0xff] }
 0x3f8   :  { %v918_v55 = vsel %vm915_vm6, %v917_v51, %v913_v54 }
 0x3f9   :  { %v928_v56 = vmul.f32 %v4507_v47, %v927_v52  ;;  %v940_v3 = vmul.f32 %v918_v55, %v898_v53 }
 0x3fb   :  { %v929_v7 = vadd.f32 %v4507_v47, %v928_v56  ;;  %v941_v8 = vadd.f32 %v940_v3, %v836_v4 }
 0x3fd   :  { %v933_v12 = vsel %vm932_vm10, %v4507_v47, %v929_v7  ;;  %4508 = vtanh.f32 %v941_v8  ;;  %v1086_v7 = vpop.permute.xlu1 %1085 }
 0x3fe   :  { %v938_v13 = vsel %vm935_vm11, %v937_v10, %v933_v12 }
 0x3ff   :  { %v943_v14 = vsub.f32 1.0, %v938_v13  ;;  %v945_v18 = vmul.f32 %v938_v13, %v5290_v25  ;;  %v4710_v13 = vld [vmem:[#allocation9 + $0x58] sm:$0xff] }
 0x403   :  { %v4509_v16 = vpop.eup %4508 }
 0x404   :  { %v944_v17 = vmul.f32 %v4509_v16, %v943_v14  ;;  %v4711_v14 = vld [vmem:[#allocation9 + $0x50] sm:$0xff]  ;;  %v4712_v16 = vld [vmem:[#allocation9 + $0x48] sm:$0xff] }
 0x406   :  { %v946_v19 = vadd.f32 %v945_v18, %v944_v17 }
 0x408   :  { %v954_v22 = vmul.f32 %v952_v20, %v946_v19  ;;  %v1102_v19 = vld [vmem:[#allocation4 + $0x28] sm:$0xff] }
 0x40a   :  { %956 = vst.msk [vmem:[#allocation2 + $0x18] sm:$0xff] %vm213_vm9, %v954_v22  ;;  %v5316_v63 = vadd.f32 %v963_v24, %v954_v22 }
 0x40c   :  { %4246 = vmatmul.msk.f32.vlgmr.msra.gmra.mxu0 %vm213_vm9, %v5316_v63  ;;  %4247 = vmatmul.msk.f32.vlgmr.msrb.gmra.mxu1 %vm213_vm9, %v5316_v63  ;;  %v1097_v10 = vmul.f32 %v1095_v6, %v5316_v63  ;;  %v5373_v6 = vld [vmem:[#allocation2 + $0x10] sm:$0xff] }
 0x40d   :  { %4248 = vmatmul.msk.f32.vlgmr.msrb.gmra.mxu2 %vm213_vm9, %v5316_v63  ;;  %1294 = vmatpush.msra.mxu0 %v5078_v0 }
 0x40e   :  { %1388 = vmatpush.msrb.mxu1 %v5053_v59  ;;  %1408 = vmatpush.msrb.mxu2 %v5051_v58 }
 0x40f   :  { %1295 = vmatpush.msra.mxu0 %v5085_v2  ;;  %v966_v2 = vld [vmem:[#allocation3 + $0x20] sm:$0xff] }
 0x410   :  { %1389 = vmatpush.msrb.mxu1 %v5055_v60  ;;  %1409 = vmatpush.msrb.mxu2 %v5081_v1  ;;  %v968_v1 = vld [vmem:[#allocation4 + $0x20] sm:$0xff] }
 0x411   :  { %1296 = vmatpush.msra.mxu0 %v5101_v9 }
 0x412   :  { %1390 = vmatpush.msrb.mxu1 %v5059_v61  ;;  %1410 = vmatpush.msrb.mxu2 %v5091_v5 }
 0x413   :  { %1297 = vmatpush.msra.mxu0 %v5121_v15 }
 0x414   :  { %1391 = vmatpush.msrb.mxu1 %v5065_v62  ;;  %1411 = vmatpush.msrb.mxu2 %v5107_v11 }
 0x489   :  { %v991_v59 = vpop.f32.mrf.mxu0  ;;  %v1011_v58 = vpop.f32.mrf.mxu1 }
 0x48a   :  { %v992_v0 = vadd.f32 %v5190_v46, %v991_v59  ;;  %v1012_v60 = vadd.f32 %v5222_v31, %v1011_v58 }
 0x48c   :  { %v1034_v25 = vadd.f32 %v992_v0, %v966_v2  ;;  %v1054_v9 = vadd.f32 %v1012_v60, %v968_v1 }
 0x48e   :  { %v4249_v28 = vmul.f32 -1.442695, %v1034_v25  ;;  %v4250_v61 = vmul.f32 -1.442695, %v1054_v9  ;;  %v1514_v9 = vld [vmem:[#allocation6 + $0x78] sm:$0xff] }
 0x490   :  { %4510 = vpow2.f32 %v4249_v28  ;;  %v1031_v40 = vpop.f32.mrf.mxu2  ;;  %v1513_v28 = vld [vmem:[#allocation6 + $0x70] sm:$0xff] }
 0x491   :  { %4512 = vpow2.f32 %v4250_v61  ;;  %v1032_v27 = vadd.f32 %v5232_v26, %v1031_v40 }
 0x496   :  { %v4511_v5 = vpop.eup %4510 }
 0x497   :  { %v4513_v29 = vpop.eup %4512  ;;  %v1038_v30 = vadd.f32 1.0, %v4511_v5 }
 0x498   :  { %v1058_v62 = vadd.f32 1.0, %v4513_v29  ;;  %v1512_v29 = vld [vmem:[#allocation6 + $0x68] sm:$0xff] }
 0x499   :  { %4514 = vrcp.f32 %v1038_v30  ;;  %v1050_v37 = vand.u32 2147483648, %v1038_v30  ;;  %v1048_v38 = vand.u32 2147483647, %v1038_v30  ;;  %vm1044_vm13 = vweird.f32 %v1038_v30 }
 0x49a   :  { %4516 = vrcp.f32 %v1058_v62  ;;  %v1070_v47 = vand.u32 2147483648, %v1058_v62  ;;  %vm1064_vm1 = vweird.f32 %v1058_v62  ;;  %v1068_v50 = vand.u32 2147483647, %v1058_v62 }
 0x49b   :  { %v1051_v42 = vor.u32 1.1754944e-38, %v1050_v37  ;;  %vm1049_vm15 = vcmp.eq.f32.partialorder %v1048_v38, 8.507059e+37 }
 0x49c   :  { %v1071_v53 = vor.u32 1.1754944e-38, %v1070_v47  ;;  %vm1069_vm3 = vcmp.eq.f32.partialorder %v1068_v50, 8.507059e+37 }
 0x49f   :  { %v4515_v11 = vpop.eup %4514 }
 0x4a0   :  { %v4517_v32 = vpop.eup %4516  ;;  %v1040_v33 = vmul.f32 %v4515_v11, %v1038_v30  ;;  %vm1045_vm12 = vweird.f32 %v4515_v11 }
 0x4a1   :  { %v1060_v34 = vmul.f32 %v4517_v32, %v1058_v62  ;;  %vm1046_vm14 = vmor %vm1044_vm13, %vm1045_vm12  ;;  %vm1065_vm0 = vweird.f32 %v4517_v32  ;;  %v1511_v62 = vld [vmem:[#allocation6 + $0x60] sm:$0xff] }
 0x4a2   :  { %v1041_v35 = vsub.f32 1.0, %v1040_v33  ;;  %vm1066_vm2 = vmor %vm1064_vm1, %vm1065_vm0 }
 0x4a3   :  { %v1061_v36 = vsub.f32 1.0, %v1060_v34 }
 0x4a4   :  { %v1042_v23 = vmul.f32 %v4515_v11, %v1041_v35 }
 0x4a5   :  { %v1062_v39 = vmul.f32 %v4517_v32, %v1061_v36 }
 0x4a6   :  { %v1043_v41 = vadd.f32 %v4515_v11, %v1042_v23 }
 0x4a7   :  { %v1063_v45 = vadd.f32 %v4517_v32, %v1062_v39 }
 0x4a8   :  { %v1047_v43 = vsel %vm1046_vm14, %v4515_v11, %v1043_v41 }
 0x4a9   :  { %v1052_v44 = vsel %vm1049_vm15, %v1051_v42, %v1047_v43  ;;  %v1067_v52 = vsel %vm1066_vm2, %v4517_v32, %v1063_v45  ;;  %v1104_v43 = vld [vmem:[#allocation5 + $0x28] sm:$0xff] }
 0x4aa   :  { %v1074_v48 = vmul.f32 %v1052_v44, %v1032_v27  ;;  %v1072_v54 = vsel %vm1069_vm3, %v1071_v53, %v1067_v52  ;;  %v1229_v53 = vpop.permute.xlu1 %1228 }
 0x4ab   :  { %v1077_v55 = vsub.f32 1.0, %v1072_v54  ;;  %v1079_v3 = vmul.f32 %v1072_v54, %v5316_v63  ;;  %v1100_v63 = vld [vmem:[#allocation3 + $0x28] sm:$0xff]  ;;  %v1220_v54 = vpop.permute.xlu0 %1219 }
 0x4ac   :  { %v1075_v51 = vadd.f32 %v1074_v48, %v970_v49 }
 0x4ae   :  { %4518 = vtanh.f32 %v1075_v51 }
 0x4b4   :  { %v4519_v56 = vpop.eup %4518 }
 0x4b5   :  { %v1078_v57 = vmul.f32 %v4519_v56, %v1077_v55 }
 0x4b7   :  { %v1080_v4 = vadd.f32 %v1079_v3, %v1078_v57  ;;  %v5365_v3 = vld [vmem:[#allocation2] sm:$0xff] }
 0x4b9   :  { %v1088_v8 = vmul.f32 %v1086_v7, %v1080_v4  ;;  %v5369_v4 = vld [vmem:[#allocation2 + $0x8] sm:$0xff]  ;;  %v5377_v7 = vld [vmem:[#allocation2 + $0x18] sm:$0xff] }
 0x4bb   :  { %1090 = vst.msk [vmem:[#allocation2 + $0x20] sm:$0xff] %vm213_vm9, %v1088_v8  ;;  %v5342_v12 = vadd.f32 %v1097_v10, %v1088_v8 }
 0x4bd   :  { %4252 = vmatmul.msk.f32.vlgmr.msrb.gmra.mxu3 %vm213_vm9, %v5342_v12  ;;  %4253 = vmatmul.msk.f32.vlgmr.msrb.gmra.mxu0 %vm213_vm9, %v5342_v12  ;;  %v1231_v56 = vmul.f32 %v1229_v53, %v5342_v12 }
 0x4be   :  { %4254 = vmatmul.msk.f32.vlgmr.msra.gmra.mxu1 %vm213_vm9, %v5342_v12  ;;  %1428 = vmatpush.msrb.mxu3 %v4710_v13 }
 0x4bf   :  { %1556 = vmatpush.msrb.mxu0 %v1514_v9 }
 0x4c0   :  { %1429 = vmatpush.msrb.mxu3 %v4711_v14 }
 0x4c1   :  { %1557 = vmatpush.msrb.mxu0 %v1513_v28 }
 0x4c2   :  { %1430 = vmatpush.msrb.mxu3 %v4712_v16  ;;  %v5381_v8 = vld [vmem:[#allocation2 + $0x20] sm:$0xff] }
 0x4c3   :  { %1558 = vmatpush.msrb.mxu0 %v1512_v29  ;;  %v5394_v16 = vld [vmem:[%s6281_s6 + $0x3] ss:$0 sm:$0xff]  ;;  %v1656_v29 = vld [vmem:[#allocation6 + $0xb8] sm:$0xff] }
 0x4c4   :  { %1431 = vmatpush.msrb.mxu3 %v5121_v15 }
 0x4c5   :  { %1559 = vmatpush.msrb.mxu0 %v1511_v62  ;;  %v1596_v62 = vld [vmem:[#allocation6 + $0x90] sm:$0xff] }
 0x53a   :  { %v1145_v17 = vpop.f32.mrf.mxu0 }
 0x53b   :  { %v1146_v18 = vadd.f32 %v5222_v31, %v1145_v17  ;;  %v1165_v35 = vpop.f32.mrf.mxu1  ;;  %v5399_v17 = vld [vmem:[%s6282_s7] ss:$0 sm:$0xff] }
 0x53c   :  { %v1166_v23 = vadd.f32 %v5232_v26, %v1165_v35  ;;  %v1595_v35 = vld [vmem:[#allocation6 + $0x88] sm:$0xff] }
 0x53d   :  { %v1188_v20 = vadd.f32 %v1146_v18, %v1102_v19 }
 0x53f   :  { %v4256_v21 = vmul.f32 -1.442695, %v1188_v20  ;;  %v1234_v20 = vld [vmem:[#allocation3 + $0x30] sm:$0xff] }
 0x540   :  { %v1125_v22 = vpop.f32.mrf.mxu3 }
 0x541   :  { %4520 = vpow2.f32 %v4256_v21  ;;  %v1126_v24 = vadd.f32 %v5190_v46, %v1125_v22  ;;  %v1236_v21 = vld [vmem:[#allocation4 + $0x30] sm:$0xff] }
 0x543   :  { %v1168_v59 = vadd.f32 %v1126_v24, %v1100_v63 }
 0x545   :  { %v4255_v58 = vmul.f32 -1.442695, %v1168_v59 }
 0x547   :  { %v4521_v0 = vpop.eup %4520  ;;  %4522 = vpow2.f32 %v4255_v58 }
 0x548   :  { %v1192_v60 = vadd.f32 1.0, %v4521_v0 }
 0x54a   :  { %4524 = vrcp.f32 %v1192_v60  ;;  %v1204_v41 = vand.u32 2147483648, %v1192_v60  ;;  %vm1198_vm10 = vweird.f32 %v1192_v60  ;;  %v1202_v27 = vand.u32 2147483647, %v1192_v60 }
 0x54c   :  { %v1205_v47 = vor.u32 1.1754944e-38, %v1204_v41  ;;  %vm1203_vm12 = vcmp.eq.f32.partialorder %v1202_v27, 8.507059e+37  ;;  %v1594_v41 = vld [vmem:[#allocation6 + $0x80] sm:$0xff] }
 0x54d   :  { %v4523_v2 = vpop.eup %4522 }
 0x54e   :  { %v1172_v1 = vadd.f32 1.0, %v4523_v2 }
 0x550   :  { %4526 = vrcp.f32 %v1172_v1  ;;  %v4525_v15 = vpop.eup %4524  ;;  %v1184_v11 = vand.u32 2147483648, %v1172_v1  ;;  %v1182_v33 = vand.u32 2147483647, %v1172_v1  ;;  %vm1178_vm5 = vweird.f32 %v1172_v1 }
 0x551   :  { %v1194_v25 = vmul.f32 %v4525_v15, %v1192_v60  ;;  %vm1199_vm8 = vweird.f32 %v4525_v15 }
 0x552   :  { %v1185_v37 = vor.u32 1.1754944e-38, %v1184_v11  ;;  %vm1183_vm7 = vcmp.eq.f32.partialorder %v1182_v33, 8.507059e+37  ;;  %vm1200_vm11 = vmor %vm1198_vm10, %vm1199_vm8  ;;  %v1655_v11 = vld [vmem:[#allocation6 + $0xb0] sm:$0xff] }
 0x553   :  { %v1195_v30 = vsub.f32 1.0, %v1194_v25 }
 0x555   :  { %v1196_v34 = vmul.f32 %v4525_v15, %v1195_v30 }
 0x556   :  { %v4527_v61 = vpop.eup %4526 }
 0x557   :  { %v1174_v5 = vmul.f32 %v4527_v61, %v1172_v1  ;;  %vm1179_vm4 = vweird.f32 %v4527_v61  ;;  %v1197_v39 = vadd.f32 %v4525_v15, %v1196_v34  ;;  %v5417_v34 = vld [vmem:[#allocation9 + $0x68] sm:$0xff] }
 0x558   :  { %vm1180_vm6 = vmor %vm1178_vm5, %vm1179_vm4 }
 0x559   :  { %v1175_v46 = vsub.f32 1.0, %v1174_v5  ;;  %v1201_v45 = vsel %vm1200_vm11, %v4525_v15, %v1197_v39  ;;  %v1597_v5 = vld [vmem:[#allocation6 + $0x98] sm:$0xff] }
 0x55a   :  { %v1206_v48 = vsel %vm1203_vm12, %v1205_v47, %v1201_v45  ;;  %1615 = vmatpush.msra.mxu1 %v1597_v5  ;;  %v5455_v5 = vld [vmem:[#allocation9 + $0xb0] sm:$0xff] }
 0x55b   :  { %v1176_v32 = vmul.f32 %v4527_v61, %v1175_v46  ;;  %v1211_v49 = vsub.f32 1.0, %v1206_v48  ;;  %v1213_v51 = vmul.f32 %v1206_v48, %v5342_v12  ;;  %v5415_v46 = vld [vmem:[#allocation9 + $0x70] sm:$0xff] }
 0x55c   :  { %1616 = vmatpush.msra.mxu1 %v1596_v62  ;;  %v5471_v62 = vld [vmem:[#allocation9 + $0xa0] sm:$0xff] }
 0x55d   :  { %v1177_v36 = vadd.f32 %v4527_v61, %v1176_v32 }
 0x55e   :  { %1617 = vmatpush.msra.mxu1 %v1595_v35 }
 0x55f   :  { %v1181_v38 = vsel %vm1180_vm6, %v4527_v61, %v1177_v36  ;;  %v5411_v61 = vld [vmem:[#allocation9 + $0x78] sm:$0xff] }
 0x560   :  { %v1186_v40 = vsel %vm1183_vm7, %v1185_v37, %v1181_v38  ;;  %v1654_v37 = vld [vmem:[#allocation6 + $0xa8] sm:$0xff]  ;;  %1618 = vmatpush.msra.mxu1 %v1594_v41  ;;  %v5564_v41 = vld [vmem:[%s6281_s6 + $0x4] ss:$0 sm:$0xff] }
 0x561   :  { %v1208_v42 = vmul.f32 %v1186_v40, %v1166_v23  ;;  %v5422_v40 = vld [vmem:[#allocation9 + $0x60] sm:$0xff] }
 0x563   :  { %v1209_v44 = vadd.f32 %v1208_v42, %v1104_v43  ;;  %v1653_v42 = vld [vmem:[#allocation6 + $0xa0] sm:$0xff] }
 0x565   :  { %4528 = vtanh.f32 %v1209_v44 }
 0x56b   :  { %v4529_v50 = vpop.eup %4528 }
 0x56c   :  { %v1212_v26 = vmul.f32 %v4529_v50, %v1211_v49  ;;  %v5430_v50 = vld [vmem:[%s6282_s7 + $0x2] ss:$0 sm:$0xff] }
 0x56e   :  { %v1214_v52 = vadd.f32 %v1213_v51, %v1212_v26 }
 0x570   :  { %v1222_v55 = vmul.f32 %v1220_v54, %v1214_v52 }
 0x572   :  { %1224 = vst.msk [vmem:[#allocation2 + $0x28] sm:$0xff] %vm213_vm9, %v1222_v55  ;;  %v5357_v57 = vadd.f32 %v1231_v56, %v1222_v55  ;;  %v1238_v56 = vld [vmem:[#allocation5 + $0x30] sm:$0xff] }
 0x574   :  { %4258 = vmatmul.msk.f32.vlgmr.msra.gmra.mxu2 %vm213_vm9, %v5357_v57  ;;  %4259 = vmatmul.msk.f32.vlgmr.msra.gmra.mxu3 %vm213_vm9, %v5357_v57 }
 0x575   :  { %4260 = vmatmul.msk.f32.vlgmr.msra.gmra.mxu0 %vm213_vm9, %v5357_v57  ;;  %1755 = vmatpush.msra.mxu3 %v5411_v61 }
 0x576   :  { %1674 = vmatpush.msra.mxu2 %v1656_v29  ;;  %v5459_v29 = vld [vmem:[#allocation9 + $0x90] sm:$0xff] }
 0x577   :  { %1756 = vmatpush.msra.mxu3 %v5415_v46 }
 0x578   :  { %1675 = vmatpush.msra.mxu2 %v1655_v11 }
 0x579   :  { %v5385_v10 = vld [vmem:[#allocation2 + $0x28] sm:$0xff]  ;;  %1757 = vmatpush.msra.mxu3 %v5417_v34 }
 0x57a   :  { %1676 = vmatpush.msra.mxu2 %v1654_v37 }
 0x57b   :  { %1758 = vmatpush.msra.mxu3 %v5422_v40 }
 0x57c   :  { %1677 = vmatpush.msra.mxu2 %v1653_v42 }
 0x57d   :  { %4271 = vmatmul.msk.f32.vlgmr.msrb.gmra.mxu0 %vm213_vm9, %v5365_v3 }
 0x585   :  { %4272 = vmatmul.msk.f32.gmra.mxu0 %vm213_vm9, %v5369_v4 }
 0x58d   :  { %4273 = vmatmul.msk.f32.gmra.mxu0 %vm213_vm9, %v5373_v6 }
 0x595   :  { %4274 = vmatmul.msk.f32.gmra.mxu0 %vm213_vm9, %v5377_v7 }
 0x59d   :  { %4275 = vmatmul.msk.f32.gmra.mxu0 %vm213_vm9, %v5381_v8 }
 0x5a5   :  { %4276 = vmatmul.msk.f32.gmra.mxu0 %vm213_vm9, %v5385_v10 }
 0x5f2   :  { %v5389_v12 = vpop.f32.mrf.mxu0 }
 0x5f3   :  { %v1300_v26 = vadd.f32 %v5430_v50, %v5389_v12 }
 0x5f7   :  { %v1259_v13 = vpop.f32.mrf.mxu2  ;;  %v1279_v14 = vpop.f32.mrf.mxu3 }
 0x5f8   :  { %v1260_v18 = vadd.f32 %v5399_v17, %v1259_v13  ;;  %v1280_v19 = vadd.f32 %v5222_v31, %v1279_v14 }
 0x5fa   :  { %v1302_v22 = vadd.f32 %v1260_v18, %v1234_v20  ;;  %v1322_v24 = vadd.f32 %v1280_v19, %v1236_v21  ;;  %v1561_v63 = vpop.f32.mrf.mxu0 }
 0x5fb   :  { %v1562_v59 = vadd.f32 %v5394_v16, %v1561_v63 }
 0x5fc   :  { %v4261_v58 = vmul.f32 -1.442695, %v1302_v22  ;;  %v4262_v0 = vmul.f32 -1.442695, %v1322_v24 }
 0x5fd   :  { %1585 = vst.msk [vmem:[#allocation3] sm:$0xff] %vm213_vm9, %v1562_v59 }
 0x5fe   :  { %4530 = vpow2.f32 %v4261_v58 }
 0x5ff   :  { %4532 = vpow2.f32 %v4262_v0 }
 0x602   :  { %v1564_v60 = vpop.f32.mrf.mxu0 }
 0x603   :  { %v1565_v2 = vadd.f32 %v5394_v16, %v1564_v60  ;;  %v5441_v60 = vld [vmem:[#allocation9 + $0xb8] sm:$0xff] }
 0x604   :  { %v4531_v1 = vpop.eup %4530  ;;  %2059 = vmatpush.msra.mxu0 %v5441_v60 }
 0x605   :  { %v4533_v15 = vpop.eup %4532  ;;  %v1306_v25 = vadd.f32 1.0, %v4531_v1  ;;  %1586 = vst.msk [vmem:[#allocation3 + $0x8] sm:$0xff] %vm213_vm9, %v1565_v2  ;;  %v1354_v1 = vpop.permute.xlu2 %1353 }
 0x606   :  { %v5407_v31 = vadd.f32 1.0, %v4533_v15  ;;  %v1363_v15 = vpop.permute.xlu0 %1362  ;;  %2060 = vmatpush.msra.mxu0 %v5455_v5 }
 0x607   :  { %4534 = vrcp.f32 %v1306_v25  ;;  %v1318_v38 = vand.u32 2147483648, %v1306_v25  ;;  %v1316_v43 = vand.u32 2147483647, %v1306_v25  ;;  %vm1312_vm14 = vweird.f32 %v1306_v25 }
 0x608   :  { %4536 = vrcp.f32 %v5407_v31  ;;  %v1338_v55 = vand.u32 2147483648, %v5407_v31  ;;  %vm1332_vm2 = vweird.f32 %v5407_v31  ;;  %v1336_v13 = vand.u32 2147483647, %v5407_v31 }
 0x609   :  { %v1319_v49 = vor.u32 1.1754944e-38, %v1318_v38  ;;  %vm1317_vm0 = vcmp.eq.f32.partialorder %v1316_v43, 8.507059e+37  ;;  %v4715_v43 = vld [vmem:[%s6282_s7 + $0x1] ss:$0 sm:$0xff] }
 0x60a   :  { %v1567_v9 = vpop.f32.mrf.mxu0  ;;  %v1339_v12 = vor.u32 1.1754944e-38, %v1338_v55  ;;  %vm1337_vm4 = vcmp.eq.f32.partialorder %v1336_v13, 8.507059e+37 }
 0x60b   :  { %v1568_v28 = vadd.f32 %v5394_v16, %v1567_v9 }
 0x60d   :  { %v4535_v30 = vpop.eup %4534  ;;  %1587 = vst.msk [vmem:[#allocation3 + $0x10] sm:$0xff] %vm213_vm9, %v1568_v28  ;;  %v5449_v28 = vld [vmem:[#allocation9 + $0x98] sm:$0xff] }
 0x60e   :  { %v4537_v32 = vpop.eup %4536  ;;  %v1308_v33 = vmul.f32 %v4535_v30, %v1306_v25  ;;  %vm1313_vm13 = vweird.f32 %v4535_v30 }
 0x60f   :  { %v1328_v36 = vmul.f32 %v4537_v32, %v5407_v31  ;;  %vm1314_vm15 = vmor %vm1312_vm14, %vm1313_vm13  ;;  %vm1333_vm1 = vweird.f32 %v4537_v32  ;;  %v1365_v31 = vmul.f32 %v1363_v15, %v5357_v57 }
 0x610   :  { %v1309_v23 = vsub.f32 1.0, %v1308_v33  ;;  %vm1334_vm3 = vmor %vm1332_vm2, %vm1333_vm1  ;;  %v5485_v33 = vld [vmem:[%s6278_s3 + $0x8] sm:$0xff] }
 0x611   :  { %v1329_v39 = vsub.f32 1.0, %v1328_v36 }
 0x612   :  { %v1310_v27 = vmul.f32 %v4535_v30, %v1309_v23  ;;  %v1570_v44 = vpop.f32.mrf.mxu0 }
 0x613   :  { %v1330_v45 = vmul.f32 %v4537_v32, %v1329_v39  ;;  %v1571_v47 = vadd.f32 %v5394_v16, %v1570_v44 }
 0x614   :  { %v1311_v48 = vadd.f32 %v4535_v30, %v1310_v27 }
 0x615   :  { %1588 = vst.msk [vmem:[#allocation3 + $0x18] sm:$0xff] %vm213_vm9, %v1571_v47  ;;  %v1331_v53 = vadd.f32 %v4537_v32, %v1330_v45  ;;  %v1370_v47 = vld [vmem:[#allocation4 + $0x38] sm:$0xff] }
 0x616   :  { %v1315_v51 = vsel %vm1314_vm15, %v4535_v30, %v1311_v48  ;;  %v5466_v30 = vld [vmem:[#allocation9 + $0x88] sm:$0xff] }
 0x617   :  { %v1320_v52 = vsel %vm1317_vm0, %v1319_v49, %v1315_v51  ;;  %v1335_v20 = vsel %vm1334_vm3, %v4537_v32, %v1331_v53  ;;  %v5478_v32 = vld [vmem:[#allocation9 + $0x80] sm:$0xff] }
 0x618   :  { %v1342_v54 = vmul.f32 %v1320_v52, %v1300_v26  ;;  %v1340_v21 = vsel %vm1337_vm4, %v1339_v12, %v1335_v20  ;;  %v5576_v52 = vld [vmem:[%s6281_s6 + $0x5] ss:$0 sm:$0xff] }
 0x619   :  { %v1345_v22 = vsub.f32 1.0, %v1340_v21  ;;  %v1347_v0 = vmul.f32 %v1340_v21, %v5357_v57  ;;  %v5463_v57 = vld [vmem:[#allocation9 + $0xa8] sm:$0xff]  ;;  %v1734_v21 = vld [vmem:[#allocation3] sm:$0xff] }
 0x61a   :  { %v1343_v14 = vadd.f32 %v1342_v54, %v1238_v56  ;;  %v1573_v18 = vpop.f32.mrf.mxu0  ;;  %2061 = vmatpush.msra.mxu0 %v5463_v57  ;;  %v5581_v54 = vld [vmem:[%s6282_s7 + $0x3] ss:$0 sm:$0xff] }
 0x61b   :  { %v1574_v19 = vadd.f32 %v5394_v16, %v1573_v18 }
 0x61c   :  { %4538 = vtanh.f32 %v1343_v14  ;;  %2062 = vmatpush.msra.mxu0 %v5471_v62 }
 0x61d   :  { %1589 = vst.msk [vmem:[#allocation3 + $0x20] sm:$0xff] %vm213_vm9, %v1574_v19 }
 0x61e   :  { %2277 = vmatpush.msrb.mxu0 %v5411_v61 }
 0x620   :  { %2278 = vmatpush.msrb.mxu0 %v5415_v46 }
 0x622   :  { %v4539_v24 = vpop.eup %4538  ;;  %v1576_v63 = vpop.f32.mrf.mxu0  ;;  %2279 = vmatpush.msrb.mxu0 %v5417_v34 }
 0x623   :  { %v1577_v59 = vadd.f32 %v5394_v16, %v1576_v63  ;;  %v1346_v58 = vmul.f32 %v4539_v24, %v1345_v22 }
 0x624   :  { %2280 = vmatpush.msrb.mxu0 %v5422_v40 }
 0x625   :  { %1590 = vst.msk [vmem:[#allocation3 + $0x28] sm:$0xff] %vm213_vm9, %v1577_v59  ;;  %v1348_v2 = vadd.f32 %v1347_v0, %v1346_v58  ;;  %v5593_v59 = vld [vmem:[%s6282_s7 + $0x4] ss:$0 sm:$0xff] }
 0x627   :  { %v1356_v25 = vmul.f32 %v1354_v1, %v1348_v2 }
 0x629   :  { %1358 = vst.msk [vmem:[#allocation2 + $0x30] sm:$0xff] %vm213_vm9, %v1356_v25  ;;  %v5447_v9 = vadd.f32 %v1365_v31, %v1356_v25 }
 0x62b   :  { %4264 = vmatmul.msk.f32.vlgmr.msrb.gmra.mxu1 %vm213_vm9, %v5447_v9  ;;  %4265 = vmatmul.msk.f32.vlgmr.msrb.gmra.mxu2 %vm213_vm9, %v5447_v9 }
 0x62c   :  { %4266 = vmatmul.msk.f32.vlgmr.msrb.gmra.mxu3 %vm213_vm9, %v5447_v9  ;;  %2148 = vmatpush.msrb.mxu1 %v5411_v61 }
 0x62d   :  { %1778 = vmatpush.msrb.mxu3 %v5449_v28  ;;  %2168 = vmatpush.msrb.mxu2 %v5449_v28 }
 0x62e   :  { %2149 = vmatpush.msrb.mxu1 %v5415_v46 }
 0x62f   :  { %1779 = vmatpush.msrb.mxu3 %v5459_v29  ;;  %2169 = vmatpush.msrb.mxu2 %v5459_v29 }
 0x630   :  { %v1508_v11 = vld [vmem:[#allocation2 + $0x30] sm:$0xff]  ;;  %2150 = vmatpush.msrb.mxu1 %v5417_v34 }
 0x631   :  { %4277 = vmatmul.msk.f32.gmra.mxu0 %vm213_vm9, %v1508_v11  ;;  %1780 = vmatpush.msrb.mxu3 %v5466_v30 }
 0x632   :  { %2170 = vmatpush.msrb.mxu2 %v5466_v30  ;;  %2151 = vmatpush.msrb.mxu1 %v5422_v40 }
 0x633   :  { %4280 = vmatmul.msk.f32.vlgmr.msra.gmra.mxu1 %vm213_vm9, %v5365_v3  ;;  %4289 = vmatmul.msk.f32.vlgmr.msra.gmra.mxu2 %vm213_vm9, %v5365_v3  ;;  %v5546_v3 = vpop.permute.xlu2 %1867 }
 0x634   :  { %4301 = vmatmul.msk.f32.vlgmr.msra.gmra.mxu3 %vm213_vm9, %v5485_v33  ;;  %2171 = vmatpush.msrb.mxu2 %v5478_v32 }
 0x635   :  { %1781 = vmatpush.msrb.mxu3 %v5478_v32  ;;  %2297 = vmatpush.msra.mxu1 %v5449_v28 }
 0x636   :  { %2317 = vmatpush.msra.mxu2 %v5441_v60 }
 0x637   :  { %1801 = vmatpush.msra.mxu3 %v5441_v60  ;;  %2298 = vmatpush.msra.mxu1 %v5459_v29 }
 0x638   :  { %2318 = vmatpush.msra.mxu2 %v5455_v5 }
 0x639   :  { %1802 = vmatpush.msra.mxu3 %v5455_v5  ;;  %2299 = vmatpush.msra.mxu1 %v5466_v30 }
 0x63a   :  { %2319 = vmatpush.msra.mxu2 %v5463_v57 }
 0x63b   :  { %1803 = vmatpush.msra.mxu3 %v5463_v57  ;;  %4281 = vmatmul.msk.f32.gmra.mxu1 %vm213_vm9, %v5369_v4 }
 0x63c   :  { %4290 = vmatmul.msk.f32.gmra.mxu2 %vm213_vm9, %v5369_v4  ;;  %4302 = vmatmul.msk.f32.vlgmr.msrb.gmra.mxu3 %vm213_vm9, %v5485_v33  ;;  %v5548_v4 = vpop.permute.xlu2 %1487 }
 0x63d   :  { %1804 = vmatpush.msra.mxu3 %v5471_v62  ;;  %2300 = vmatpush.msra.mxu1 %v5478_v32 }
 0x63e   :  { %2320 = vmatpush.msra.mxu2 %v5471_v62 }
 0x63f   :  { %1890 = vmatpush.msrb.mxu3 %v5411_v61 }
 0x641   :  { %1891 = vmatpush.msrb.mxu3 %v5415_v46 }
 0x643   :  { %1892 = vmatpush.msrb.mxu3 %v5417_v34  ;;  %4282 = vmatmul.msk.f32.gmra.mxu1 %vm213_vm9, %v5373_v6 }
 0x644   :  { %4291 = vmatmul.msk.f32.gmra.mxu2 %vm213_vm9, %v5373_v6  ;;  %4303 = vmatmul.msk.f32.vlgmr.msra.gmra.mxu3 %vm213_vm9, %v5485_v33  ;;  %v5550_v6 = vpop.permute.xlu2 %2246 }
 0x645   :  { %1893 = vmatpush.msrb.mxu3 %v5422_v40 }
 0x647   :  { %1910 = vmatpush.msra.mxu3 %v5449_v28 }
 0x649   :  { %1911 = vmatpush.msra.mxu3 %v5459_v29 }
 0x64b   :  { %1912 = vmatpush.msra.mxu3 %v5466_v30  ;;  %4283 = vmatmul.msk.f32.gmra.mxu1 %vm213_vm9, %v5377_v7 }
 0x64c   :  { %4292 = vmatmul.msk.f32.gmra.mxu2 %vm213_vm9, %v5377_v7  ;;  %v5552_v7 = vpop.permute.xlu2 %2383 }
 0x64d   :  { %1913 = vmatpush.msra.mxu3 %v5478_v32 }
 0x653   :  { %4284 = vmatmul.msk.f32.gmra.mxu1 %vm213_vm9, %v5381_v8 }
 0x654   :  { %4293 = vmatmul.msk.f32.gmra.mxu2 %vm213_vm9, %v5381_v8  ;;  %v5554_v35 = vpop.permute.xlu2 %2633 }
 0x65b   :  { %4285 = vmatmul.msk.f32.gmra.mxu1 %vm213_vm9, %v5385_v10 }
 0x65c   :  { %4294 = vmatmul.msk.f32.gmra.mxu2 %vm213_vm9, %v5385_v10  ;;  %v5556_v8 = vpop.permute.xlu2 %3142  ;;  %v1368_v10 = vld [vmem:[#allocation3 + $0x38] sm:$0xff] }
 0x663   :  { %4286 = vmatmul.msk.f32.gmra.mxu1 %vm213_vm9, %v1508_v11 }
 0x664   :  { %4295 = vmatmul.msk.f32.gmra.mxu2 %vm213_vm9, %v1508_v11  ;;  %v5559_v38 = vpop.permute.xlu2 %2762 }
 0x66c   :  { %v5584_v18 = vpop.permute.xlu2 %3521 }
 0x6a8   :  { %v1393_v36 = vpop.f32.mrf.mxu1 }
 0x6a9   :  { %v1394_v37 = vadd.f32 %v5399_v17, %v1393_v36 }
 0x6ab   :  { %v1436_v23 = vadd.f32 %v1394_v37, %v1368_v10 }
 0x6ad   :  { %v4267_v39 = vmul.f32 -1.442695, %v1436_v23  ;;  %v5599_v23 = vpop.permute.xlu2 %3658 }
 0x6ae   :  { %v1413_v42 = vpop.f32.mrf.mxu2  ;;  %v1579_v27 = vpop.f32.mrf.mxu0 }
 0x6af   :  { %4540 = vpow2.f32 %v4267_v39  ;;  %v1414_v44 = vadd.f32 %v4715_v43, %v1413_v42  ;;  %v1433_v45 = vpop.f32.mrf.mxu3  ;;  %v1580_v17 = vadd.f32 %v5394_v16, %v1579_v27 }
 0x6b0   :  { %v1620_v48 = vpop.f32.mrf.mxu1 }
 0x6b1   :  { %v1456_v49 = vadd.f32 %v1414_v44, %v1370_v47  ;;  %1591 = vst.msk [vmem:[#allocation3 + $0x30] sm:$0xff] %vm213_vm9, %v1580_v17  ;;  %v1621_v26 = vadd.f32 %v5564_v41, %v1620_v48 }
 0x6b3   :  { %v4268_v51 = vmul.f32 -1.442695, %v1456_v49  ;;  %1644 = vst.msk [vmem:[#allocation4] sm:$0xff] %vm213_vm9, %v1621_v26  ;;  %v1434_v26 = vadd.f32 %v5430_v50, %v1433_v45  ;;  %v1372_v45 = vld [vmem:[#allocation5 + $0x38] sm:$0xff] }
 0x6b5   :  { %v4541_v53 = vpop.eup %4540  ;;  %4542 = vpow2.f32 %v4268_v51 }
 0x6b6   :  { %v1440_v55 = vadd.f32 1.0, %v4541_v53  ;;  %v1679_v56 = vpop.f32.mrf.mxu2 }
 0x6b7   :  { %v1680_v13 = vadd.f32 %v5576_v52, %v1679_v56  ;;  %v1760_v14 = vpop.f32.mrf.mxu3 }
 0x6b8   :  { %4544 = vrcp.f32 %v1440_v55  ;;  %v1623_v19 = vpop.f32.mrf.mxu1  ;;  %v1761_v20 = vadd.f32 %v5581_v54, %v1760_v14  ;;  %v1452_v39 = vand.u32 2147483648, %v1440_v55  ;;  %v1450_v43 = vand.u32 2147483647, %v1440_v55 }
 0x6b9   :  { %1703 = vst.msk [vmem:[#allocation5] sm:$0xff] %vm213_vm9, %v1680_v13  ;;  %v1624_v12 = vadd.f32 %v5564_v41, %v1623_v19  ;;  %vm1446_vm6 = vweird.f32 %v1440_v55 }
 0x6ba   :  { %v1809_v24 = vadd.f32 %v1761_v20, %v1734_v21  ;;  %v1735_v37 = vld [vmem:[#allocation4] sm:$0xff]  ;;  %v1453_v51 = vor.u32 1.1754944e-38, %v1452_v39  ;;  %vm1451_vm8 = vcmp.eq.f32.partialorder %v1450_v43, 8.507059e+37 }
 0x6bb   :  { %v4543_v22 = vpop.eup %4542  ;;  %1645 = vst.msk [vmem:[#allocation4 + $0x8] sm:$0xff] %vm213_vm9, %v1624_v12 }
 0x6bc   :  { %v1460_v63 = vadd.f32 1.0, %v4543_v22  ;;  %v4304_v58 = vmul.f32 -1.442695, %v1809_v24 }
 0x6be   :  { %v4545_v0 = vpop.eup %4544  ;;  %4546 = vrcp.f32 %v1460_v63  ;;  %v1472_v20 = vand.u32 2147483648, %v1460_v63  ;;  %v1470_v24 = vand.u32 2147483647, %v1460_v63  ;;  %vm1466_vm11 = vweird.f32 %v1460_v63 }
 0x6bf   :  { %v1682_v2 = vpop.f32.mrf.mxu2  ;;  %v1442_v1 = vmul.f32 %v4545_v0, %v1440_v55  ;;  %4548 = vpow2.f32 %v4304_v58  ;;  %v1783_v25 = vpop.f32.mrf.mxu3  ;;  %vm1447_vm5 = vweird.f32 %v4545_v0 }
 0x6c0   :  { %v1683_v15 = vadd.f32 %v5576_v52, %v1682_v2  ;;  %v1784_v31 = vadd.f32 %v5593_v59, %v1783_v25  ;;  %v1626_v11 = vpop.f32.mrf.mxu1  ;;  %vm1448_vm7 = vmor %vm1446_vm6, %vm1447_vm5  ;;  %vm1471_vm13 = vcmp.eq.f32.partialorder %v1470_v24, 8.507059e+37 }
 0x6c1   :  { %v1443_v36 = vsub.f32 1.0, %v1442_v1  ;;  %v1627_v10 = vadd.f32 %v5564_v41, %v1626_v11  ;;  %v5610_v1 = vpop.permute.xlu2 %3908 }
 0x6c2   :  { %1704 = vst.msk [vmem:[#allocation5 + $0x8] sm:$0xff] %vm213_vm9, %v1683_v15  ;;  %v1829_v42 = vadd.f32 %v1784_v31, %v1735_v37  ;;  %v1473_v15 = vor.u32 1.1754944e-38, %v1472_v20 }
 0x6c3   :  { %v1444_v27 = vmul.f32 %v4545_v0, %v1443_v36  ;;  %1646 = vst.msk [vmem:[#allocation4 + $0x10] sm:$0xff] %vm213_vm9, %v1627_v10 }
 0x6c4   :  { %v4547_v44 = vpop.eup %4546  ;;  %v4305_v17 = vmul.f32 -1.442695, %v1829_v42 }
 0x6c5   :  { %v4549_v47 = vpop.eup %4548  ;;  %v1462_v48 = vmul.f32 %v4547_v44, %v1460_v63  ;;  %v1445_v49 = vadd.f32 %v4545_v0, %v1444_v27  ;;  %vm1467_vm10 = vweird.f32 %v4547_v44  ;;  %v5618_v27 = vld [vmem:[%s6282_s7 + $0x5] ss:$0 sm:$0xff] }
 0x6c6   :  { %v5603_v53 = vadd.f32 1.0, %v4549_v47  ;;  %4550 = vpow2.f32 %v4305_v17  ;;  %vm1468_vm12 = vmor %vm1466_vm11, %vm1467_vm10 }
 0x6c7   :  { %v1685_v56 = vpop.f32.mrf.mxu2  ;;  %v1463_v13 = vsub.f32 1.0, %v1462_v48  ;;  %v1449_v14 = vsel %vm1448_vm7, %v4545_v0, %v1445_v49 }
 0x6c8   :  { %v1686_v19 = vadd.f32 %v5576_v52, %v1685_v56  ;;  %v1454_v12 = vsel %vm1451_vm8, %v1453_v51, %v1449_v14  ;;  %4552 = vrcp.f32 %v5603_v53  ;;  %v1629_v21 = vpop.f32.mrf.mxu1  ;;  %v1823_v48 = vand.u32 2147483647, %v5603_v53 }
 0x6c9   :  { %v1464_v22 = vmul.f32 %v4547_v44, %v1463_v13  ;;  %v1476_v55 = vmul.f32 %v1454_v12, %v1434_v26  ;;  %v1630_v50 = vadd.f32 %v5564_v41, %v1629_v21  ;;  %v1825_v49 = vand.u32 2147483648, %v5603_v53 }
 0x6ca   :  { %1705 = vst.msk [vmem:[#allocation5 + $0x10] sm:$0xff] %vm213_vm9, %v1686_v19  ;;  %v1497_v19 = vpop.permute.xlu2 %1496  ;;  %vm1819_vm15 = vweird.f32 %v5603_v53  ;;  %vm1824_vm1 = vcmp.eq.f32.partialorder %v1823_v48, 8.507059e+37 }
 0x6cb   :  { %v1465_v58 = vadd.f32 %v4547_v44, %v1464_v22  ;;  %v1477_v0 = vadd.f32 %v1476_v55, %v1372_v45  ;;  %1647 = vst.msk [vmem:[#allocation4 + $0x18] sm:$0xff] %vm213_vm9, %v1630_v50  ;;  %v1826_v55 = vor.u32 1.1754944e-38, %v1825_v49  ;;  %v1499_v45 = vmul.f32 %v1497_v19, %v5447_v9 }
 0x6cc   :  { %v4551_v2 = vpop.eup %4550 }
 0x6cd   :  { %v1469_v25 = vsel %vm1468_vm12, %v4547_v44, %v1465_v58  ;;  %4554 = vtanh.f32 %v1477_v0  ;;  %v1833_v31 = vadd.f32 1.0, %v4551_v2  ;;  %v1806_v44 = vpop.f32.mrf.mxu3 }
 0x6ce   :  { %v4553_v11 = vpop.eup %4552  ;;  %v1474_v37 = vsel %vm1471_vm13, %v1473_v15, %v1469_v25  ;;  %v1807_v14 = vadd.f32 %v5618_v27, %v1806_v44 }
 0x6cf   :  { %v1688_v36 = vpop.f32.mrf.mxu2  ;;  %4556 = vrcp.f32 %v1833_v31  ;;  %v1815_v39 = vmul.f32 %v4553_v11, %v5603_v53  ;;  %v1479_v43 = vsub.f32 1.0, %v1474_v37  ;;  %v1481_v51 = vmul.f32 %v1474_v37, %v5447_v9  ;;  %v1736_v9 = vld [vmem:[#allocation5] sm:$0xff] }
 0x6d0   :  { %v1689_v10 = vadd.f32 %v5576_v52, %v1688_v36  ;;  %v1632_v63 = vpop.f32.mrf.mxu1  ;;  %vm1820_vm14 = vweird.f32 %v4553_v11  ;;  %v1845_v15 = vand.u32 2147483648, %v1833_v31  ;;  %v1843_v36 = vand.u32 2147483647, %v1833_v31 }
 0x6d1   :  { %v1633_v42 = vadd.f32 %v5564_v41, %v1632_v63  ;;  %v1816_v17 = vsub.f32 1.0, %v1815_v39  ;;  %vm1821_vm0 = vmor %vm1819_vm15, %vm1820_vm14  ;;  %vm1839_vm3 = vweird.f32 %v1833_v31 }
 0x6d2   :  { %1706 = vst.msk [vmem:[#allocation5 + $0x18] sm:$0xff] %vm213_vm9, %v1689_v10  ;;  %v1846_v39 = vor.u32 1.1754944e-38, %v1845_v15  ;;  %vm1844_vm5 = vcmp.eq.f32.partialorder %v1843_v36, 8.507059e+37 }
 0x6d3   :  { %v4555_v47 = vpop.eup %4554  ;;  %1648 = vst.msk [vmem:[#allocation4 + $0x20] sm:$0xff] %vm213_vm9, %v1633_v42  ;;  %v1817_v56 = vmul.f32 %v4553_v11, %v1816_v17 }
 0x6d4   :  { %v1480_v26 = vmul.f32 %v4555_v47, %v1479_v43 }
 0x6d5   :  { %v4557_v13 = vpop.eup %4556  ;;  %v1818_v21 = vadd.f32 %v4553_v11, %v1817_v56 }
 0x6d6   :  { %v1482_v20 = vadd.f32 %v1481_v51, %v1480_v26  ;;  %v1835_v12 = vmul.f32 %v4557_v13, %v1833_v31  ;;  %vm1840_vm2 = vweird.f32 %v4557_v13 }
 0x6d7   :  { %v1691_v22 = vpop.f32.mrf.mxu2  ;;  %v1822_v0 = vsel %vm1821_vm0, %v4553_v11, %v1818_v21  ;;  %vm1841_vm4 = vmor %vm1839_vm3, %vm1840_vm2 }
 0x6d8   :  { %v1692_v50 = vadd.f32 %v5576_v52, %v1691_v22  ;;  %v1490_v24 = vmul.f32 %v5548_v4, %v1482_v20  ;;  %v1836_v58 = vsub.f32 1.0, %v1835_v12  ;;  %v1635_v2 = vpop.f32.mrf.mxu1  ;;  %v1827_v25 = vsel %vm1824_vm1, %v1826_v55, %v1822_v0  ;;  %v1860_v20 = vpop.permute.xlu1 %1859 }
 0x6d9   :  { %v1636_v53 = vadd.f32 %v5564_v41, %v1635_v2  ;;  %v1849_v10 = vmul.f32 %v1827_v25, %v1807_v14  ;;  %v1870_v12 = vmul.f32 %v5485_v33, %v5546_v3  ;;  %v1872_v2 = vld [vmem:[#allocation3 + $0x8] sm:$0xff] }
 0x6da   :  { %1707 = vst.msk [vmem:[#allocation5 + $0x20] sm:$0xff] %vm213_vm9, %v1692_v50  ;;  %v1837_v37 = vmul.f32 %v4557_v13, %v1836_v58  ;;  %v1500_v63 = vadd.f32 %v1499_v45, %v1490_v24 }
 0x6db   :  { %1492 = vst.msk [vmem:[#allocation2 + $0x38] sm:$0xff] %vm213_vm9, %v1490_v24  ;;  %v1850_v11 = vadd.f32 %v1849_v10, %v1736_v9 }
 0x6dc   :  { %1649 = vst.msk [vmem:[#allocation4 + $0x28] sm:$0xff] %vm213_vm9, %v1636_v53  ;;  %v1838_v4 = vadd.f32 %v4557_v13, %v1837_v37 }
 0x6dd   :  { %1501 = vst.msk [vmem:[#allocation12] sm:$0xff] %vm213_vm9, %v1500_v63  ;;  %4558 = vtanh.f32 %v1850_v11 }
 0x6de   :  { %v1842_v42 = vsel %vm1841_vm4, %v4557_v13, %v1838_v4 }
 0x6df   :  { %v1694_v43 = vpop.f32.mrf.mxu2  ;;  %v1847_v44 = vsel %vm1844_vm5, %v1846_v39, %v1842_v42 }
 0x6e0   :  { %v1695_v17 = vadd.f32 %v5576_v52, %v1694_v43  ;;  %v1638_v47 = vpop.f32.mrf.mxu1  ;;  %v1852_v48 = vsub.f32 1.0, %v1847_v44  ;;  %v1854_v56 = vmul.f32 %v5485_v33, %v1847_v44 }
 0x6e1   :  { %v1639_v49 = vadd.f32 %v5564_v41, %v1638_v47 }
 0x6e2   :  { %1708 = vst.msk [vmem:[#allocation5 + $0x28] sm:$0xff] %vm213_vm9, %v1695_v17  ;;  %v1509_v31 = vld [vmem:[#allocation2 + $0x38] sm:$0xff] }
 0x6e3   :  { %4278 = vmatmul.msk.f32.gmra.mxu0 %vm213_vm9, %v1509_v31  ;;  %4287 = vmatmul.msk.f32.gmra.mxu1 %vm213_vm9, %v1509_v31  ;;  %1650 = vst.msk [vmem:[#allocation4 + $0x30] sm:$0xff] %vm213_vm9, %v1639_v49  ;;  %v4559_v26 = vpop.eup %4558 }
 0x6e4   :  { %4296 = vmatmul.msk.f32.gmra.mxu2 %vm213_vm9, %v1509_v31  ;;  %v1853_v51 = vmul.f32 %v4559_v26, %v1852_v48 }
 0x6e6   :  { %v1855_v14 = vadd.f32 %v1854_v56, %v1853_v51 }
 0x6e7   :  { %v1697_v13 = vpop.f32.mrf.mxu2 }
 0x6e8   :  { %v1698_v19 = vadd.f32 %v5576_v52, %v1697_v13  ;;  %v1862_v21 = vmul.f32 %v1860_v20, %v1855_v14  ;;  %v1874_v20 = vld [vmem:[#allocation5 + $0x8] sm:$0xff] }
 0x6ea   :  { %1709 = vst.msk [vmem:[#allocation5 + $0x30] sm:$0xff] %vm213_vm9, %v1698_v19  ;;  %v5648_v22 = vadd.f32 %v1870_v12, %v1862_v21 }
 0x6eb   :  { %1863 = vst.msk [vmem:[#allocation2] sm:$0xff] %vm213_vm9, %v1862_v21 }
 0x6ec   :  { %4306 = vmatmul.msk.f32.vlgmr.msrb.gmra.mxu3 %vm213_vm9, %v5648_v22 }
 0x6ed   :  { %1930 = vmatpush.msrb.mxu3 %v5441_v60 }
 0x6ef   :  { %1931 = vmatpush.msrb.mxu3 %v5455_v5 }
 0x6f1   :  { %1932 = vmatpush.msrb.mxu3 %v5463_v57 }
 0x6f3   :  { %1933 = vmatpush.msrb.mxu3 %v5471_v62 }
 0x6f4   :  { %4307 = vmatmul.msk.f32.vlgmr.msra.gmra.mxu3 %vm213_vm9, %v5648_v22 }
 0x6f5   :  { %2019 = vmatpush.msra.mxu3 %v5411_v61 }
 0x6f7   :  { %2020 = vmatpush.msra.mxu3 %v5415_v46 }
 0x6f9   :  { %2021 = vmatpush.msra.mxu3 %v5417_v34 }
 0x6fb   :  { %2022 = vmatpush.msra.mxu3 %v5422_v40 }
 0x6fc   :  { %4308 = vmatmul.msk.f32.vlgmr.msrb.gmra.mxu3 %vm213_vm9, %v5648_v22 }
 0x6fd   :  { %2039 = vmatpush.msrb.mxu3 %v5449_v28 }
 0x6ff   :  { %2040 = vmatpush.msrb.mxu3 %v5459_v29 }
 0x701   :  { %2041 = vmatpush.msrb.mxu3 %v5466_v30 }
 0x703   :  { %2042 = vmatpush.msrb.mxu3 %v5478_v32 }
 0x760   :  { %v1582_v33 = vpop.f32.mrf.mxu0  ;;  %v1641_v3 = vpop.f32.mrf.mxu1 }
 0x761   :  { %v1583_v55 = vadd.f32 %v5394_v16, %v1582_v33  ;;  %v1642_v50 = vadd.f32 %v5564_v41, %v1641_v3  ;;  %v1873_v41 = vld [vmem:[#allocation4 + $0x8] sm:$0xff] }
 0x763   :  { %1592 = vst.msk [vmem:[#allocation3 + $0x38] sm:$0xff] %vm213_vm9, %v1583_v55 }
 0x764   :  { %1651 = vst.msk [vmem:[#allocation4 + $0x38] sm:$0xff] %vm213_vm9, %v1642_v50 }
 0x767   :  { %v1700_v45 = vpop.f32.mrf.mxu2 }
 0x768   :  { %v1701_v24 = vadd.f32 %v5576_v52, %v1700_v45 }
 0x76a   :  { %1710 = vst.msk [vmem:[#allocation5 + $0x38] sm:$0xff] %vm213_vm9, %v1701_v24 }
 0x76f   :  { %v1895_v58 = vpop.f32.mrf.mxu3 }
 0x770   :  { %v1896_v0 = vadd.f32 %v5581_v54, %v1895_v58 }
 0x772   :  { %v1938_v15 = vadd.f32 %v1896_v0, %v1872_v2 }
 0x774   :  { %v4309_v25 = vmul.f32 -1.442695, %v1938_v15 }
 0x776   :  { %4560 = vpow2.f32 %v4309_v25  ;;  %v1997_v25 = vpop.permute.xlu1 %1996 }
 0x777   :  { %v1915_v36 = vpop.f32.mrf.mxu3 }
 0x778   :  { %v1916_v16 = vadd.f32 %v5593_v59, %v1915_v36  ;;  %v1989_v36 = vpop.permute.xlu0 %1988 }
 0x77a   :  { %v1958_v53 = vadd.f32 %v1916_v16, %v1873_v41  ;;  %v1999_v41 = vmul.f32 %v1997_v25, %v5648_v22 }
 0x77c   :  { %v4561_v37 = vpop.eup %4560  ;;  %v4310_v10 = vmul.f32 -1.442695, %v1958_v53 }
 0x77d   :  { %v1942_v63 = vadd.f32 1.0, %v4561_v37 }
 0x77e   :  { %4562 = vpow2.f32 %v4310_v10  ;;  %v2001_v10 = vld [vmem:[#allocation3 + $0x10] sm:$0xff] }
 0x77f   :  { %4564 = vrcp.f32 %v1942_v63  ;;  %v1954_v42 = vand.u32 2147483648, %v1942_v63  ;;  %v1952_v44 = vand.u32 2147483647, %v1942_v63  ;;  %v1935_v17 = vpop.f32.mrf.mxu3  ;;  %vm1948_vm7 = vweird.f32 %v1942_v63 }
 0x780   :  { %v1936_v26 = vadd.f32 %v5618_v27, %v1935_v17 }
 0x781   :  { %v1955_v49 = vor.u32 1.1754944e-38, %v1954_v42  ;;  %vm1953_vm10 = vcmp.eq.f32.partialorder %v1952_v44, 8.507059e+37 }
 0x784   :  { %v4563_v52 = vpop.eup %4562 }
 0x785   :  { %v4565_v9 = vpop.eup %4564  ;;  %v1962_v4 = vadd.f32 1.0, %v4563_v52 }
 0x786   :  { %v1944_v11 = vmul.f32 %v4565_v9, %v1942_v63  ;;  %vm1949_vm6 = vweird.f32 %v4565_v9 }
 0x787   :  { %4566 = vrcp.f32 %v1962_v4  ;;  %vm1950_vm8 = vmor %vm1948_vm7, %vm1949_vm6  ;;  %v1974_v19 = vand.u32 2147483648, %v1962_v4  ;;  %v1972_v21 = vand.u32 2147483647, %v1962_v4  ;;  %vm1968_vm12 = vweird.f32 %v1962_v4 }
 0x788   :  { %v1945_v39 = vsub.f32 1.0, %v1944_v11  ;;  %v2002_v11 = vld [vmem:[#allocation4 + $0x10] sm:$0xff] }
 0x789   :  { %v1975_v55 = vor.u32 1.1754944e-38, %v1974_v19  ;;  %vm1973_vm14 = vcmp.eq.f32.partialorder %v1972_v21, 8.507059e+37 }
 0x78a   :  { %v1946_v43 = vmul.f32 %v4565_v9, %v1945_v39 }
 0x78c   :  { %v1947_v47 = vadd.f32 %v4565_v9, %v1946_v43 }
 0x78d   :  { %v4567_v48 = vpop.eup %4566 }
 0x78e   :  { %v1964_v31 = vmul.f32 %v4567_v48, %v1962_v4  ;;  %v1951_v51 = vsel %vm1950_vm8, %v4565_v9, %v1947_v47  ;;  %vm1969_vm11 = vweird.f32 %v4567_v48 }
 0x78f   :  { %v1956_v56 = vsel %vm1953_vm10, %v1955_v49, %v1951_v51  ;;  %vm1970_vm13 = vmor %vm1968_vm12, %vm1969_vm11 }
 0x790   :  { %v1965_v13 = vsub.f32 1.0, %v1964_v31  ;;  %v1978_v14 = vmul.f32 %v1956_v56, %v1936_v26 }
 0x792   :  { %v1966_v12 = vmul.f32 %v4567_v48, %v1965_v13  ;;  %v1979_v33 = vadd.f32 %v1978_v14, %v1874_v20 }
 0x794   :  { %v1967_v3 = vadd.f32 %v4567_v48, %v1966_v12  ;;  %4568 = vtanh.f32 %v1979_v33 }
 0x796   :  { %v1971_v50 = vsel %vm1970_vm13, %v4567_v48, %v1967_v3 }
 0x797   :  { %v1976_v45 = vsel %vm1973_vm14, %v1975_v55, %v1971_v50 }
 0x798   :  { %v1981_v24 = vsub.f32 1.0, %v1976_v45  ;;  %v1983_v2 = vmul.f32 %v1976_v45, %v5648_v22  ;;  %v2003_v45 = vld [vmem:[#allocation5 + $0x10] sm:$0xff] }
 0x79a   :  { %v4569_v58 = vpop.eup %4568 }
 0x79b   :  { %v1982_v0 = vmul.f32 %v4569_v58, %v1981_v24 }
 0x79d   :  { %v1984_v15 = vadd.f32 %v1983_v2, %v1982_v0 }
 0x79f   :  { %v1991_v16 = vmul.f32 %v1989_v36, %v1984_v15 }
 0x7a1   :  { %1992 = vst.msk [vmem:[#allocation2 + $0x8] sm:$0xff] %vm213_vm9, %v1991_v16  ;;  %v5680_v53 = vadd.f32 %v1999_v41, %v1991_v16 }
 0x7a3   :  { %4312 = vmatmul.msk.f32.vlgmr.msra.gmra.mxu3 %vm213_vm9, %v5680_v53  ;;  %4314 = vmatmul.msk.f32.vlgmr.msra.gmra.mxu0 %vm213_vm9, %v5680_v53 }
 0x7a4   :  { %2188 = vmatpush.msra.mxu3 %v5441_v60  ;;  %2426 = vmatpush.msra.mxu0 %v5449_v28 }
 0x7a6   :  { %2189 = vmatpush.msra.mxu3 %v5455_v5  ;;  %2427 = vmatpush.msra.mxu0 %v5459_v29 }
 0x7a8   :  { %2190 = vmatpush.msra.mxu3 %v5463_v57  ;;  %2428 = vmatpush.msra.mxu0 %v5466_v30 }
 0x7aa   :  { %2191 = vmatpush.msra.mxu3 %v5471_v62  ;;  %2429 = vmatpush.msra.mxu0 %v5478_v32 }
 0x7ab   :  { %4313 = vmatmul.msk.f32.vlgmr.msrb.gmra.mxu3 %vm213_vm9, %v5680_v53 }
 0x7ac   :  { %2406 = vmatpush.msrb.mxu3 %v5411_v61 }
 0x7ae   :  { %2407 = vmatpush.msrb.mxu3 %v5415_v46 }
 0x7b0   :  { %2408 = vmatpush.msrb.mxu3 %v5417_v34 }
 0x7b2   :  { %2409 = vmatpush.msrb.mxu3 %v5422_v40 }
 0x820   :  { %v2064_v13 = vpop.f32.mrf.mxu0 }
 0x821   :  { %v2065_v12 = vadd.f32 %v5618_v27, %v2064_v13 }
 0x826   :  { %v2024_v22 = vpop.f32.mrf.mxu3 }
 0x827   :  { %v2025_v37 = vadd.f32 %v5581_v54, %v2024_v22 }
 0x829   :  { %v2067_v63 = vadd.f32 %v2025_v37, %v2001_v10 }
 0x82b   :  { %v4315_v52 = vmul.f32 -1.442695, %v2067_v63 }
 0x82d   :  { %4570 = vpow2.f32 %v4315_v52  ;;  %v2126_v52 = vpop.permute.xlu1 %2125 }
 0x82e   :  { %v2044_v9 = vpop.f32.mrf.mxu3 }
 0x82f   :  { %v2045_v4 = vadd.f32 %v5593_v59, %v2044_v9  ;;  %v2118_v9 = vpop.permute.xlu0 %2117 }
 0x831   :  { %v2087_v39 = vadd.f32 %v2045_v4, %v2002_v11  ;;  %v2128_v11 = vmul.f32 %v2126_v52, %v5680_v53 }
 0x833   :  { %v4571_v42 = vpop.eup %4570  ;;  %v4316_v43 = vmul.f32 -1.442695, %v2087_v39 }
 0x834   :  { %v2071_v44 = vadd.f32 1.0, %v4571_v42 }
 0x835   :  { %4572 = vpow2.f32 %v4316_v43 }
 0x836   :  { %4574 = vrcp.f32 %v2071_v44  ;;  %v2083_v26 = vand.u32 2147483648, %v2071_v44  ;;  %v2081_v56 = vand.u32 2147483647, %v2071_v44  ;;  %vm2077_vm0 = vweird.f32 %v2071_v44 }
 0x838   :  { %v2084_v20 = vor.u32 1.1754944e-38, %v2083_v26  ;;  %vm2082_vm2 = vcmp.eq.f32.partialorder %v2081_v56, 8.507059e+37 }
 0x83b   :  { %v4573_v17 = vpop.eup %4572 }
 0x83c   :  { %v4575_v47 = vpop.eup %4574  ;;  %v2091_v48 = vadd.f32 1.0, %v4573_v17  ;;  %v2131_v17 = vld [vmem:[#allocation4 + $0x18] sm:$0xff] }
 0x83d   :  { %v2073_v49 = vmul.f32 %v4575_v47, %v2071_v44  ;;  %vm2078_vm15 = vweird.f32 %v4575_v47 }
 0x83e   :  { %4576 = vrcp.f32 %v2091_v48  ;;  %vm2079_vm1 = vmor %vm2077_vm0, %vm2078_vm15  ;;  %v2103_v24 = vand.u32 2147483648, %v2091_v48  ;;  %v2101_v2 = vand.u32 2147483647, %v2091_v48  ;;  %vm2097_vm4 = vweird.f32 %v2091_v48 }
 0x83f   :  { %v2074_v31 = vsub.f32 1.0, %v2073_v49 }
 0x840   :  { %v2104_v25 = vor.u32 1.1754944e-38, %v2103_v24  ;;  %vm2102_vm6 = vcmp.eq.f32.partialorder %v2101_v2, 8.507059e+37 }
 0x841   :  { %v2075_v51 = vmul.f32 %v4575_v47, %v2074_v31 }
 0x843   :  { %v2076_v14 = vadd.f32 %v4575_v47, %v2075_v51 }
 0x844   :  { %v4577_v19 = vpop.eup %4576 }
 0x845   :  { %v2080_v21 = vsel %vm2079_vm1, %v4575_v47, %v2076_v14  ;;  %v2093_v33 = vmul.f32 %v4577_v19, %v2091_v48  ;;  %vm2098_vm3 = vweird.f32 %v4577_v19 }
 0x846   :  { %v2085_v3 = vsel %vm2082_vm2, %v2084_v20, %v2080_v21  ;;  %vm2099_vm5 = vmor %vm2097_vm4, %vm2098_vm3 }
 0x847   :  { %v2107_v55 = vmul.f32 %v2085_v3, %v2065_v12  ;;  %v2094_v50 = vsub.f32 1.0, %v2093_v33 }
 0x849   :  { %v2108_v58 = vadd.f32 %v2107_v55, %v2003_v45  ;;  %v2095_v0 = vmul.f32 %v4577_v19, %v2094_v50 }
 0x84b   :  { %4578 = vtanh.f32 %v2108_v58  ;;  %v2096_v15 = vadd.f32 %v4577_v19, %v2095_v0 }
 0x84d   :  { %v2100_v36 = vsel %vm2099_vm5, %v4577_v19, %v2096_v15  ;;  %v2132_v15 = vld [vmem:[#allocation5 + $0x18] sm:$0xff] }
 0x84e   :  { %v2105_v16 = vsel %vm2102_vm6, %v2104_v25, %v2100_v36 }
 0x84f   :  { %v2110_v41 = vsub.f32 1.0, %v2105_v16  ;;  %v2112_v37 = vmul.f32 %v2105_v16, %v5680_v53  ;;  %v2130_v53 = vld [vmem:[#allocation3 + $0x18] sm:$0xff] }
 0x851   :  { %v4579_v22 = vpop.eup %4578 }
 0x852   :  { %v2111_v10 = vmul.f32 %v4579_v22, %v2110_v41 }
 0x854   :  { %v2113_v63 = vadd.f32 %v2112_v37, %v2111_v10 }
 0x856   :  { %v2120_v4 = vmul.f32 %v2118_v9, %v2113_v63 }
 0x858   :  { %2121 = vst.msk [vmem:[#allocation2 + $0x10] sm:$0xff] %vm213_vm9, %v2120_v4  ;;  %v5706_v39 = vadd.f32 %v2128_v11, %v2120_v4  ;;  %v2255_v11 = vpop.permute.xlu0 %2254 }
 0x85a   :  { %4318 = vmatmul.msk.f32.vlgmr.msrb.gmra.mxu1 %vm213_vm9, %v5706_v39  ;;  %4319 = vmatmul.msk.f32.vlgmr.msrb.gmra.mxu2 %vm213_vm9, %v5706_v39 }
 0x85b   :  { %4320 = vmatmul.msk.f32.vlgmr.msra.gmra.mxu3 %vm213_vm9, %v5706_v39  ;;  %2446 = vmatpush.msrb.mxu1 %v5441_v60 }
 0x85c   :  { %2535 = vmatpush.msrb.mxu2 %v5411_v61  ;;  %2555 = vmatpush.msra.mxu3 %v5449_v28 }
 0x85d   :  { %2447 = vmatpush.msrb.mxu1 %v5455_v5 }
 0x85e   :  { %2536 = vmatpush.msrb.mxu2 %v5415_v46  ;;  %2556 = vmatpush.msra.mxu3 %v5459_v29 }
 0x85f   :  { %2448 = vmatpush.msrb.mxu1 %v5463_v57 }
 0x860   :  { %2537 = vmatpush.msrb.mxu2 %v5417_v34  ;;  %2557 = vmatpush.msra.mxu3 %v5466_v30 }
 0x861   :  { %2449 = vmatpush.msrb.mxu1 %v5471_v62 }
 0x862   :  { %2538 = vmatpush.msrb.mxu2 %v5422_v40  ;;  %2558 = vmatpush.msra.mxu3 %v5478_v32 }
 0x8d7   :  { %v2153_v61 = vpop.f32.mrf.mxu1 }
 0x8d8   :  { %v2154_v60 = vadd.f32 %v5581_v54, %v2153_v61 }
 0x8da   :  { %v2196_v42 = vadd.f32 %v2154_v60, %v2130_v53  ;;  %v2257_v60 = vmul.f32 %v2255_v11, %v5706_v39 }
 0x8dc   :  { %v4321_v46 = vmul.f32 -1.442695, %v2196_v42  ;;  %v5741_v42 = vld [vmem:[#allocation9 + $0xb8] sm:$0xff] }
 0x8dd   :  { %v2173_v43 = vpop.f32.mrf.mxu2 }
 0x8de   :  { %4580 = vpow2.f32 %v4321_v46  ;;  %v2174_v44 = vadd.f32 %v5593_v59, %v2173_v43  ;;  %v2193_v12 = vpop.f32.mrf.mxu3  ;;  %v4719_v46 = vld [vmem:[#allocation9 + $0x68] sm:$0xff]  ;;  %v4720_v43 = vld [vmem:[#allocation9 + $0x60] sm:$0xff] }
 0x8df   :  { %v2194_v50 = vadd.f32 %v5618_v27, %v2193_v12 }
 0x8e0   :  { %v2216_v34 = vadd.f32 %v2174_v44, %v2131_v17 }
 0x8e2   :  { %v4322_v47 = vmul.f32 -1.442695, %v2216_v34  ;;  %v2259_v34 = vld [vmem:[#allocation3 + $0x20] sm:$0xff] }
 0x8e4   :  { %v4581_v48 = vpop.eup %4580  ;;  %4582 = vpow2.f32 %v4322_v47 }
 0x8e5   :  { %v2200_v49 = vadd.f32 1.0, %v4581_v48 }
 0x8e7   :  { %4584 = vrcp.f32 %v2200_v49  ;;  %v2212_v13 = vand.u32 2147483648, %v2200_v49  ;;  %v2210_v19 = vand.u32 2147483647, %v2200_v49  ;;  %vm2206_vm8 = vweird.f32 %v2200_v49 }
 0x8e9   :  { %v2213_v3 = vor.u32 1.1754944e-38, %v2212_v13  ;;  %vm2211_vm11 = vcmp.eq.f32.partialorder %v2210_v19, 8.507059e+37 }
 0x8ea   :  { %v4583_v40 = vpop.eup %4582 }
 0x8eb   :  { %v2220_v31 = vadd.f32 1.0, %v4583_v40 }
 0x8ed   :  { %v4585_v26 = vpop.eup %4584  ;;  %4586 = vrcp.f32 %v2220_v31  ;;  %v2232_v0 = vand.u32 2147483648, %v2220_v31  ;;  %v2230_v25 = vand.u32 2147483647, %v2220_v31  ;;  %vm2226_vm13 = vweird.f32 %v2220_v31 }
 0x8ee   :  { %v2202_v51 = vmul.f32 %v4585_v26, %v2200_v49  ;;  %vm2207_vm7 = vweird.f32 %v4585_v26 }
 0x8ef   :  { %vm2208_vm10 = vmor %vm2206_vm8, %vm2207_vm7  ;;  %v2233_v41 = vor.u32 1.1754944e-38, %v2232_v0  ;;  %vm2231_vm15 = vcmp.eq.f32.partialorder %v2230_v25, 8.507059e+37 }
 0x8f0   :  { %v2203_v56 = vsub.f32 1.0, %v2202_v51 }
 0x8f2   :  { %v2204_v14 = vmul.f32 %v4585_v26, %v2203_v56 }
 0x8f3   :  { %v4587_v20 = vpop.eup %4586 }
 0x8f4   :  { %v2222_v21 = vmul.f32 %v4587_v20, %v2220_v31  ;;  %v2205_v33 = vadd.f32 %v4585_v26, %v2204_v14  ;;  %vm2227_vm12 = vweird.f32 %v4587_v20 }
 0x8f5   :  { %vm2228_vm14 = vmor %vm2226_vm13, %vm2227_vm12 }
 0x8f6   :  { %v2223_v55 = vsub.f32 1.0, %v2222_v21  ;;  %v2209_v45 = vsel %vm2208_vm10, %v4585_v26, %v2205_v33 }
 0x8f7   :  { %v2214_v24 = vsel %vm2211_vm11, %v2213_v3, %v2209_v45 }
 0x8f8   :  { %v2224_v58 = vmul.f32 %v4587_v20, %v2223_v55  ;;  %v2236_v2 = vmul.f32 %v2214_v24, %v2194_v50 }
 0x8fa   :  { %v2225_v36 = vadd.f32 %v4587_v20, %v2224_v58  ;;  %v2237_v16 = vadd.f32 %v2236_v2, %v2132_v15  ;;  %v2261_v15 = vld [vmem:[#allocation5 + $0x20] sm:$0xff] }
 0x8fc   :  { %v2229_v22 = vsel %vm2228_vm14, %v4587_v20, %v2225_v36  ;;  %4588 = vtanh.f32 %v2237_v16 }
 0x8fd   :  { %v2234_v37 = vsel %vm2231_vm15, %v2233_v41, %v2229_v22 }
 0x8fe   :  { %v2239_v10 = vsub.f32 1.0, %v2234_v37  ;;  %v2241_v9 = vmul.f32 %v2234_v37, %v5706_v39  ;;  %v4718_v39 = vld [vmem:[#allocation9 + $0x70] sm:$0xff] }
 0x902   :  { %v4589_v63 = vpop.eup %4588 }
 0x903   :  { %v2240_v52 = vmul.f32 %v4589_v63, %v2239_v10 }
 0x905   :  { %v2242_v4 = vadd.f32 %v2241_v9, %v2240_v52 }
 0x907   :  { %v2249_v61 = vmul.f32 %v5550_v6, %v2242_v4  ;;  %v4717_v6 = vld [vmem:[#allocation9 + $0x78] sm:$0xff]  ;;  %v2376_v4 = vpop.permute.xlu1 %2375 }
 0x909   :  { %2250 = vst.msk [vmem:[#allocation2 + $0x18] sm:$0xff] %vm213_vm9, %v2249_v61  ;;  %v5733_v53 = vadd.f32 %v2257_v60, %v2249_v61 }
 0x90b   :  { %4324 = vmatmul.msk.f32.vlgmr.msrb.gmra.mxu0 %vm213_vm9, %v5733_v53  ;;  %4325 = vmatmul.msk.f32.vlgmr.msra.gmra.mxu1 %vm213_vm9, %v5733_v53  ;;  %v2386_v61 = vmul.f32 %v5552_v7, %v5733_v53  ;;  %v4723_v7 = vld [vmem:[#allocation9 + $0xa0] sm:$0xff] }
 0x90c   :  { %4326 = vmatmul.msk.f32.vlgmr.msra.gmra.mxu2 %vm213_vm9, %v5733_v53  ;;  %2575 = vmatpush.msrb.mxu0 %v5741_v42 }
 0x90d   :  { %2664 = vmatpush.msra.mxu1 %v4717_v6  ;;  %2684 = vmatpush.msra.mxu2 %v5449_v28  ;;  %v4721_v6 = vld [vmem:[#allocation9 + $0xb0] sm:$0xff] }
 0x90e   :  { %2576 = vmatpush.msrb.mxu0 %v5455_v5 }
 0x90f   :  { %2665 = vmatpush.msra.mxu1 %v4718_v39  ;;  %2685 = vmatpush.msra.mxu2 %v5459_v29  ;;  %v2260_v29 = vld [vmem:[#allocation4 + $0x20] sm:$0xff]  ;;  %v4722_v39 = vld [vmem:[#allocation9 + $0xa8] sm:$0xff] }
 0x910   :  { %2577 = vmatpush.msrb.mxu0 %v5463_v57 }
 0x911   :  { %2666 = vmatpush.msra.mxu1 %v4719_v46  ;;  %2686 = vmatpush.msra.mxu2 %v5466_v30 }
 0x912   :  { %2578 = vmatpush.msrb.mxu0 %v5471_v62 }
 0x913   :  { %2667 = vmatpush.msra.mxu1 %v4720_v43  ;;  %2687 = vmatpush.msra.mxu2 %v5478_v32  ;;  %v2389_v43 = vld [vmem:[#allocation4 + $0x28] sm:$0xff] }
 0x988   :  { %v2282_v44 = vpop.f32.mrf.mxu0  ;;  %v2302_v28 = vpop.f32.mrf.mxu1 }
 0x989   :  { %v2283_v5 = vadd.f32 %v5581_v54, %v2282_v44  ;;  %v2303_v17 = vadd.f32 %v5593_v59, %v2302_v28 }
 0x98b   :  { %v2325_v47 = vadd.f32 %v2283_v5, %v2259_v34  ;;  %v2345_v57 = vadd.f32 %v2303_v17, %v2260_v29  ;;  %v2388_v34 = vld [vmem:[#allocation3 + $0x28] sm:$0xff] }
 0x98d   :  { %v4327_v48 = vmul.f32 -1.442695, %v2325_v47  ;;  %v4328_v49 = vmul.f32 -1.442695, %v2345_v57 }
 0x98f   :  { %4590 = vpow2.f32 %v4327_v48  ;;  %v2322_v33 = vpop.f32.mrf.mxu2 }
 0x990   :  { %4592 = vpow2.f32 %v4328_v49  ;;  %v2323_v50 = vadd.f32 %v5618_v27, %v2322_v33 }
 0x995   :  { %v4591_v30 = vpop.eup %4590 }
 0x996   :  { %v4593_v62 = vpop.eup %4592  ;;  %v2329_v40 = vadd.f32 1.0, %v4591_v30 }
 0x997   :  { %v2349_v31 = vadd.f32 1.0, %v4593_v62 }
 0x998   :  { %4594 = vrcp.f32 %v2329_v40  ;;  %v2341_v19 = vand.u32 2147483648, %v2329_v40  ;;  %v2339_v12 = vand.u32 2147483647, %v2329_v40  ;;  %vm2335_vm1 = vweird.f32 %v2329_v40 }
 0x999   :  { %4596 = vrcp.f32 %v2349_v31  ;;  %v2361_v0 = vand.u32 2147483648, %v2349_v31  ;;  %vm2355_vm5 = vweird.f32 %v2349_v31  ;;  %v2359_v25 = vand.u32 2147483647, %v2349_v31 }
 0x99a   :  { %v2342_v55 = vor.u32 1.1754944e-38, %v2341_v19  ;;  %vm2340_vm3 = vcmp.eq.f32.partialorder %v2339_v12, 8.507059e+37 }
 0x99b   :  { %v2362_v41 = vor.u32 1.1754944e-38, %v2361_v0  ;;  %vm2360_vm7 = vcmp.eq.f32.partialorder %v2359_v25, 8.507059e+37 }
 0x99e   :  { %v4595_v32 = vpop.eup %4594 }
 0x99f   :  { %v4597_v26 = vpop.eup %4596  ;;  %v2331_v51 = vmul.f32 %v4595_v32, %v2329_v40  ;;  %vm2336_vm0 = vweird.f32 %v4595_v32  ;;  %v2788_v40 = vld [vmem:[#allocation6 + $0xd0] sm:$0xff] }
 0x9a0   :  { %v2351_v56 = vmul.f32 %v4597_v26, %v2349_v31  ;;  %vm2337_vm2 = vmor %vm2335_vm1, %vm2336_vm0  ;;  %vm2356_vm4 = vweird.f32 %v4597_v26 }
 0x9a1   :  { %v2332_v13 = vsub.f32 1.0, %v2331_v51  ;;  %vm2357_vm6 = vmor %vm2355_vm5, %vm2356_vm4 }
 0x9a2   :  { %v2352_v14 = vsub.f32 1.0, %v2351_v56  ;;  %v2786_v56 = vld [vmem:[#allocation6 + $0xc0] sm:$0xff] }
 0x9a3   :  { %v2333_v20 = vmul.f32 %v4595_v32, %v2332_v13 }
 0x9a4   :  { %v2353_v21 = vmul.f32 %v4597_v26, %v2352_v14 }
 0x9a5   :  { %v2334_v3 = vadd.f32 %v4595_v32, %v2333_v20 }
 0x9a6   :  { %v2354_v58 = vadd.f32 %v4597_v26, %v2353_v21 }
 0x9a7   :  { %v2338_v45 = vsel %vm2337_vm2, %v4595_v32, %v2334_v3 }
 0x9a8   :  { %v2343_v24 = vsel %vm2340_vm3, %v2342_v55, %v2338_v45  ;;  %v2358_v16 = vsel %vm2357_vm6, %v4597_v26, %v2354_v58  ;;  %v2787_v26 = vld [vmem:[#allocation6 + $0xc8] sm:$0xff] }
 0x9a9   :  { %v2365_v2 = vmul.f32 %v2343_v24, %v2323_v50  ;;  %v2363_v22 = vsel %vm2360_vm7, %v2362_v41, %v2358_v16 }
 0x9aa   :  { %v2368_v37 = vsub.f32 1.0, %v2363_v22  ;;  %v2370_v52 = vmul.f32 %v2363_v22, %v5733_v53 }
 0x9ab   :  { %v2366_v36 = vadd.f32 %v2365_v2, %v2261_v15  ;;  %v2390_v2 = vld [vmem:[#allocation5 + $0x28] sm:$0xff] }
 0x9ad   :  { %4598 = vtanh.f32 %v2366_v36 }
 0x9b3   :  { %v4599_v10 = vpop.eup %4598 }
 0x9b4   :  { %v2369_v63 = vmul.f32 %v4599_v10, %v2368_v37 }
 0x9b6   :  { %v2371_v9 = vadd.f32 %v2370_v52, %v2369_v63  ;;  %v2513_v63 = vpop.permute.xlu1 %2512  ;;  %v2505_v52 = vpop.permute.xlu0 %2504 }
 0x9b8   :  { %v2378_v11 = vmul.f32 %v2376_v4, %v2371_v9 }
 0x9ba   :  { %2379 = vst.msk [vmem:[#allocation2 + $0x20] sm:$0xff] %vm213_vm9, %v2378_v11  ;;  %v5758_v60 = vadd.f32 %v2386_v61, %v2378_v11  ;;  %v5781_v61 = vld [vmem:[#allocation2] sm:$0xff] }
 0x9bc   :  { %4330 = vmatmul.msk.f32.vlgmr.msrb.gmra.mxu3 %vm213_vm9, %v5758_v60  ;;  %4331 = vmatmul.msk.f32.vlgmr.msra.gmra.mxu0 %vm213_vm9, %v5758_v60  ;;  %v2515_v4 = vmul.f32 %v2513_v63, %v5758_v60 }
 0x9bd   :  { %4332 = vmatmul.msk.f32.vlgmr.msrb.gmra.mxu1 %vm213_vm9, %v5758_v60  ;;  %2704 = vmatpush.msrb.mxu3 %v5741_v42 }
 0x9bf   :  { %2705 = vmatpush.msrb.mxu3 %v4721_v6  ;;  %v5785_v6 = vld [vmem:[#allocation2 + $0x8] sm:$0xff] }
 0x9c1   :  { %2706 = vmatpush.msrb.mxu3 %v4722_v39  ;;  %v5793_v39 = vld [vmem:[#allocation2 + $0x18] sm:$0xff] }
 0x9c3   :  { %2707 = vmatpush.msrb.mxu3 %v4723_v7  ;;  %v5797_v7 = vld [vmem:[#allocation2 + $0x20] sm:$0xff] }
 0xa39   :  { %v2431_v53 = vpop.f32.mrf.mxu0 }
 0xa3a   :  { %v2432_v46 = vadd.f32 %v5593_v59, %v2431_v53  ;;  %v2789_v59 = vld [vmem:[#allocation6 + $0xd8] sm:$0xff]  ;;  %v2451_v12 = vpop.f32.mrf.mxu1 }
 0xa3b   :  { %2831 = vmatpush.msra.mxu0 %v2789_v59  ;;  %v2452_v3 = vadd.f32 %v5618_v27, %v2451_v12 }
 0xa3c   :  { %v2474_v44 = vadd.f32 %v2432_v46, %v2389_v43 }
 0xa3d   :  { %2832 = vmatpush.msra.mxu0 %v2788_v40 }
 0xa3e   :  { %v4334_v28 = vmul.f32 -1.442695, %v2474_v44 }
 0xa3f   :  { %v2411_v5 = vpop.f32.mrf.mxu3  ;;  %2833 = vmatpush.msra.mxu0 %v2787_v26 }
 0xa40   :  { %4600 = vpow2.f32 %v4334_v28  ;;  %v2412_v17 = vadd.f32 %v5581_v54, %v2411_v5  ;;  %v5810_v28 = vld [vmem:[%s6281_s6 + $0x6] ss:$0 sm:$0xff]  ;;  %v5815_v5 = vld [vmem:[%s6282_s7 + $0x3] ss:$0 sm:$0xff] }
 0xa41   :  { %2834 = vmatpush.msra.mxu0 %v2786_v56 }
 0xa42   :  { %v2454_v29 = vadd.f32 %v2412_v17, %v2388_v34  ;;  %v5821_v34 = vld [vmem:[%s6282_s7 + $0x4] ss:$0 sm:$0xff] }
 0xa44   :  { %v4333_v47 = vmul.f32 -1.442695, %v2454_v29 }
 0xa46   :  { %v4601_v42 = vpop.eup %4600  ;;  %4602 = vpow2.f32 %v4333_v47  ;;  %v2517_v47 = vld [vmem:[#allocation3 + $0x30] sm:$0xff] }
 0xa47   :  { %v2478_v57 = vadd.f32 1.0, %v4601_v42  ;;  %v2518_v42 = vld [vmem:[#allocation4 + $0x30] sm:$0xff] }
 0xa49   :  { %4604 = vrcp.f32 %v2478_v57  ;;  %v2490_v24 = vand.u32 2147483648, %v2478_v57  ;;  %vm2484_vm14 = vweird.f32 %v2478_v57  ;;  %v2488_v0 = vand.u32 2147483647, %v2478_v57 }
 0xa4b   :  { %v2491_v36 = vor.u32 1.1754944e-38, %v2490_v24  ;;  %vm2489_vm0 = vcmp.eq.f32.partialorder %v2488_v0, 8.507059e+37  ;;  %v2870_v24 = vld [vmem:[#allocation6 + $0xe8] sm:$0xff] }
 0xa4c   :  { %v4603_v48 = vpop.eup %4602  ;;  %v2929_v0 = vld [vmem:[#allocation6 + $0x108] sm:$0xff] }
 0xa4d   :  { %v2458_v49 = vadd.f32 1.0, %v4603_v48 }
 0xa4f   :  { %4606 = vrcp.f32 %v2458_v49  ;;  %v4605_v30 = vpop.eup %4604  ;;  %v2470_v13 = vand.u32 2147483648, %v2458_v49  ;;  %v2468_v19 = vand.u32 2147483647, %v2458_v49  ;;  %vm2464_vm10 = vweird.f32 %v2458_v49 }
 0xa50   :  { %v2480_v62 = vmul.f32 %v4605_v30, %v2478_v57  ;;  %vm2485_vm13 = vweird.f32 %v4605_v30 }
 0xa51   :  { %v2471_v33 = vor.u32 1.1754944e-38, %v2470_v13  ;;  %vm2469_vm12 = vcmp.eq.f32.partialorder %v2468_v19, 8.507059e+37  ;;  %vm2486_vm15 = vmor %vm2484_vm14, %vm2485_vm13  ;;  %v2872_v19 = vld [vmem:[#allocation6 + $0xf8] sm:$0xff] }
 0xa52   :  { %v2481_v51 = vsub.f32 1.0, %v2480_v62  ;;  %2890 = vmatpush.msrb.mxu1 %v2872_v19 }
 0xa54   :  { %v2482_v20 = vmul.f32 %v4605_v30, %v2481_v51 }
 0xa55   :  { %v4607_v31 = vpop.eup %4606 }
 0xa56   :  { %v2460_v32 = vmul.f32 %v4607_v31, %v2458_v49  ;;  %vm2465_vm8 = vweird.f32 %v4607_v31  ;;  %v2483_v50 = vadd.f32 %v4605_v30, %v2482_v20  ;;  %v2931_v20 = vld [vmem:[#allocation6 + $0x118] sm:$0xff] }
 0xa57   :  { %vm2466_vm11 = vmor %vm2464_vm10, %vm2465_vm8 }
 0xa58   :  { %v2461_v54 = vsub.f32 1.0, %v2460_v32  ;;  %v2487_v25 = vsel %vm2486_vm15, %v4605_v30, %v2483_v50 }
 0xa59   :  { %v2492_v16 = vsel %vm2489_vm0, %v2491_v36, %v2487_v25  ;;  %v5843_v36 = vld [vmem:[#allocation9 + $0xc0] sm:$0xff] }
 0xa5a   :  { %v2462_v14 = vmul.f32 %v4607_v31, %v2461_v54  ;;  %v2497_v41 = vsub.f32 1.0, %v2492_v16  ;;  %v2499_v27 = vmul.f32 %v2492_v16, %v5758_v60  ;;  %v5789_v60 = vld [vmem:[#allocation2 + $0x10] sm:$0xff]  ;;  %v2869_v16 = vld [vmem:[#allocation6 + $0xe0] sm:$0xff] }
 0xa5c   :  { %v2463_v21 = vadd.f32 %v4607_v31, %v2462_v14  ;;  %v5832_v14 = vld [vmem:[#allocation9 + $0xd8] sm:$0xff] }
 0xa5e   :  { %v2467_v55 = vsel %vm2466_vm11, %v4607_v31, %v2463_v21  ;;  %v5836_v21 = vld [vmem:[#allocation9 + $0xd0] sm:$0xff] }
 0xa5f   :  { %v2472_v45 = vsel %vm2469_vm12, %v2471_v33, %v2467_v55  ;;  %v2871_v33 = vld [vmem:[#allocation6 + $0xf0] sm:$0xff] }
 0xa60   :  { %v2494_v58 = vmul.f32 %v2472_v45, %v2452_v3  ;;  %v2930_v3 = vld [vmem:[#allocation6 + $0x110] sm:$0xff]  ;;  %v5838_v45 = vld [vmem:[#allocation9 + $0xc8] sm:$0xff]  ;;  %2891 = vmatpush.msrb.mxu1 %v2871_v33 }
 0xa62   :  { %v2495_v15 = vadd.f32 %v2494_v58, %v2390_v2  ;;  %2892 = vmatpush.msrb.mxu1 %v2870_v24  ;;  %v5888_v24 = vld [vmem:[#allocation9 + $0xe8] sm:$0xff] }
 0xa64   :  { %4608 = vtanh.f32 %v2495_v15  ;;  %2893 = vmatpush.msrb.mxu1 %v2869_v16 }
 0xa6a   :  { %v4609_v22 = vpop.eup %4608 }
 0xa6b   :  { %v2498_v37 = vmul.f32 %v4609_v22, %v2497_v41  ;;  %v2928_v41 = vld [vmem:[#allocation6 + $0x100] sm:$0xff] }
 0xa6d   :  { %v2500_v10 = vadd.f32 %v2499_v27, %v2498_v37 }
 0xa6f   :  { %v2507_v9 = vmul.f32 %v2505_v52, %v2500_v10 }
 0xa71   :  { %2508 = vst.msk [vmem:[#allocation2 + $0x28] sm:$0xff] %vm213_vm9, %v2507_v9  ;;  %v5773_v11 = vadd.f32 %v2515_v4, %v2507_v9  ;;  %v5851_v4 = vld [vmem:[%s6282_s7 + $0x5] ss:$0 sm:$0xff] }
 0xa73   :  { %4336 = vmatmul.msk.f32.vlgmr.msrb.gmra.mxu2 %vm213_vm9, %v5773_v11  ;;  %4337 = vmatmul.msk.f32.vlgmr.msra.gmra.mxu3 %vm213_vm9, %v5773_v11 }
 0xa74   :  { %4338 = vmatmul.msk.f32.vlgmr.msrb.gmra.mxu0 %vm213_vm9, %v5773_v11  ;;  %3030 = vmatpush.msra.mxu3 %v5832_v14 }
 0xa75   :  { %2949 = vmatpush.msrb.mxu2 %v2931_v20  ;;  %v2642_v20 = vpop.permute.xlu0 %2641 }
 0xa76   :  { %3031 = vmatpush.msra.mxu3 %v5836_v21  ;;  %v2644_v33 = vmul.f32 %v2642_v20, %v5773_v11 }
 0xa77   :  { %2950 = vmatpush.msrb.mxu2 %v2930_v3 }
 0xa78   :  { %v5801_v53 = vld [vmem:[#allocation2 + $0x28] sm:$0xff]  ;;  %3032 = vmatpush.msra.mxu3 %v5838_v45 }
 0xa79   :  { %2951 = vmatpush.msrb.mxu2 %v2929_v0 }
 0xa7a   :  { %3033 = vmatpush.msra.mxu3 %v5843_v36 }
 0xa7b   :  { %2952 = vmatpush.msrb.mxu2 %v2928_v41  ;;  %v5976_v41 = vld [vmem:[%s6281_s6 + $0x7] ss:$0 sm:$0xff] }
 0xa7c   :  { %4349 = vmatmul.msk.f32.vlgmr.msra.gmra.mxu0 %vm213_vm9, %v5781_v61 }
 0xa84   :  { %4350 = vmatmul.msk.f32.gmra.mxu0 %vm213_vm9, %v5785_v6 }
 0xa8c   :  { %4351 = vmatmul.msk.f32.gmra.mxu0 %vm213_vm9, %v5789_v60 }
 0xa94   :  { %4352 = vmatmul.msk.f32.gmra.mxu0 %vm213_vm9, %v5793_v39 }
 0xa9c   :  { %4353 = vmatmul.msk.f32.gmra.mxu0 %vm213_vm9, %v5797_v7 }
 0xaa4   :  { %4354 = vmatmul.msk.f32.gmra.mxu0 %vm213_vm9, %v5801_v53 }
 0xaf1   :  { %v5805_v46 = vpop.f32.mrf.mxu0 }
 0xaf6   :  { %v2540_v43 = vpop.f32.mrf.mxu2  ;;  %v2560_v44 = vpop.f32.mrf.mxu3 }
 0xaf7   :  { %v2541_v17 = vadd.f32 %v5815_v5, %v2540_v43  ;;  %v2561_v29 = vadd.f32 %v5821_v34, %v2560_v44  ;;  %v2581_v43 = vadd.f32 %v5851_v4, %v5805_v46 }
 0xaf9   :  { %v2583_v57 = vadd.f32 %v2541_v17, %v2517_v47  ;;  %v2603_v48 = vadd.f32 %v2561_v29, %v2518_v42  ;;  %v2836_v49 = vpop.f32.mrf.mxu0 }
 0xafa   :  { %v2837_v30 = vadd.f32 %v5810_v28, %v2836_v49 }
 0xafb   :  { %v4339_v62 = vmul.f32 -1.442695, %v2583_v57  ;;  %v4340_v59 = vmul.f32 -1.442695, %v2603_v48  ;;  %v2519_v57 = vld [vmem:[#allocation5 + $0x30] sm:$0xff] }
 0xafc   :  { %2860 = vst.msk [vmem:[#allocation3] sm:$0xff] %vm213_vm9, %v2837_v30 }
 0xafd   :  { %4610 = vpow2.f32 %v4339_v62 }
 0xafe   :  { %4612 = vpow2.f32 %v4340_v59 }
 0xb01   :  { %v2839_v40 = vpop.f32.mrf.mxu0 }
 0xb02   :  { %v2840_v31 = vadd.f32 %v5810_v28, %v2839_v40 }
 0xb03   :  { %v4611_v32 = vpop.eup %4610 }
 0xb04   :  { %v4613_v26 = vpop.eup %4612  ;;  %v2587_v51 = vadd.f32 1.0, %v4611_v32  ;;  %2861 = vst.msk [vmem:[#allocation3 + $0x8] sm:$0xff] %vm213_vm9, %v2840_v31 }
 0xb05   :  { %v5828_v54 = vadd.f32 1.0, %v4613_v26 }
 0xb06   :  { %4614 = vrcp.f32 %v2587_v51  ;;  %v2599_v15 = vand.u32 2147483648, %v2587_v51  ;;  %v2597_v27 = vand.u32 2147483647, %v2587_v51  ;;  %vm2593_vm2 = vweird.f32 %v2587_v51 }
 0xb07   :  { %4616 = vrcp.f32 %v5828_v54  ;;  %v2619_v42 = vand.u32 2147483648, %v5828_v54  ;;  %vm2613_vm6 = vweird.f32 %v5828_v54  ;;  %v2617_v48 = vand.u32 2147483647, %v5828_v54 }
 0xb08   :  { %v2600_v9 = vor.u32 1.1754944e-38, %v2599_v15  ;;  %vm2598_vm4 = vcmp.eq.f32.partialorder %v2597_v27, 8.507059e+37  ;;  %v5907_v15 = vld [vmem:[%s6278_s3 + $0x10] sm:$0xff] }
 0xb09   :  { %v2842_v56 = vpop.f32.mrf.mxu0  ;;  %v2620_v46 = vor.u32 1.1754944e-38, %v2619_v42  ;;  %vm2618_vm8 = vcmp.eq.f32.partialorder %v2617_v48, 8.507059e+37 }
 0xb0a   :  { %v2843_v13 = vadd.f32 %v5810_v28, %v2842_v56 }
 0xb0c   :  { %v4615_v12 = vpop.eup %4614  ;;  %2862 = vst.msk [vmem:[#allocation3 + $0x10] sm:$0xff] %vm213_vm9, %v2843_v13  ;;  %v5862_v13 = vld [vmem:[#allocation9 + $0x118] sm:$0xff] }
 0xb0d   :  { %v4617_v55 = vpop.eup %4616  ;;  %v2589_v50 = vmul.f32 %v4615_v12, %v2587_v51  ;;  %vm2594_vm1 = vweird.f32 %v4615_v12  ;;  %3334 = vmatpush.msrb.mxu0 %v5862_v13 }
 0xb0e   :  { %v2609_v58 = vmul.f32 %v4617_v55, %v5828_v54  ;;  %vm2595_vm3 = vmor %vm2593_vm2, %vm2594_vm1  ;;  %vm2614_vm5 = vweird.f32 %v4617_v55 }
 0xb0f   :  { %v2590_v2 = vsub.f32 1.0, %v2589_v50  ;;  %vm2615_vm7 = vmor %vm2613_vm6, %vm2614_vm5  ;;  %v5877_v50 = vld [vmem:[#allocation9 + $0x110] sm:$0xff] }
 0xb10   :  { %v2610_v25 = vsub.f32 1.0, %v2609_v58  ;;  %3335 = vmatpush.msrb.mxu0 %v5877_v50  ;;  %v5893_v58 = vld [vmem:[#allocation9 + $0x100] sm:$0xff] }
 0xb11   :  { %v2591_v22 = vmul.f32 %v4615_v12, %v2590_v2  ;;  %v2845_v37 = vpop.f32.mrf.mxu0  ;;  %v5900_v2 = vld [vmem:[#allocation9 + $0xe0] sm:$0xff] }
 0xb12   :  { %v2611_v10 = vmul.f32 %v4617_v55, %v2610_v25  ;;  %v2846_v63 = vadd.f32 %v5810_v28, %v2845_v37 }
 0xb13   :  { %v2592_v52 = vadd.f32 %v4615_v12, %v2591_v22 }
 0xb14   :  { %2863 = vst.msk [vmem:[#allocation3 + $0x18] sm:$0xff] %vm213_vm9, %v2846_v63  ;;  %v2612_v29 = vadd.f32 %v4617_v55, %v2611_v10  ;;  %v2647_v63 = vld [vmem:[#allocation4 + $0x38] sm:$0xff] }
 0xb15   :  { %v2596_v44 = vsel %vm2595_vm3, %v4615_v12, %v2592_v52 }
 0xb16   :  { %v2601_v17 = vsel %vm2598_vm4, %v2600_v9, %v2596_v44  ;;  %v2616_v62 = vsel %vm2615_vm7, %v4617_v55, %v2612_v29  ;;  %v5871_v55 = vld [vmem:[#allocation9 + $0xf8] sm:$0xff]  ;;  %v5986_v44 = vld [vmem:[%s6281_s6 + $0x8] ss:$0 sm:$0xff] }
 0xb17   :  { %v2623_v47 = vmul.f32 %v2601_v17, %v2581_v43  ;;  %v2621_v40 = vsel %vm2618_vm8, %v2620_v46, %v2616_v62 }
 0xb18   :  { %v2626_v31 = vsub.f32 1.0, %v2621_v40  ;;  %v2628_v51 = vmul.f32 %v2621_v40, %v5773_v11  ;;  %v5885_v11 = vld [vmem:[#allocation9 + $0x108] sm:$0xff] }
 0xb19   :  { %v2624_v49 = vadd.f32 %v2623_v47, %v2519_v57  ;;  %v2848_v30 = vpop.f32.mrf.mxu0  ;;  %3336 = vmatpush.msrb.mxu0 %v5885_v11 }
 0xb1a   :  { %v2849_v59 = vadd.f32 %v5810_v28, %v2848_v30 }
 0xb1b   :  { %4618 = vtanh.f32 %v2624_v49  ;;  %3337 = vmatpush.msrb.mxu0 %v5893_v58 }
 0xb1c   :  { %2864 = vst.msk [vmem:[#allocation3 + $0x20] sm:$0xff] %vm213_vm9, %v2849_v59  ;;  %v3009_v59 = vld [vmem:[#allocation3] sm:$0xff] }
 0xb1d   :  { %3552 = vmatpush.msra.mxu0 %v5832_v14 }
 0xb1f   :  { %3553 = vmatpush.msra.mxu0 %v5836_v21 }
 0xb21   :  { %v4619_v32 = vpop.eup %4618  ;;  %v2851_v26 = vpop.f32.mrf.mxu0  ;;  %3554 = vmatpush.msra.mxu0 %v5838_v45 }
 0xb22   :  { %v2852_v56 = vadd.f32 %v5810_v28, %v2851_v26  ;;  %v2627_v54 = vmul.f32 %v4619_v32, %v2626_v31  ;;  %v6003_v32 = vld [vmem:[%s6282_s7 + $0x7] ss:$0 sm:$0xff] }
 0xb23   :  { %3555 = vmatpush.msra.mxu0 %v5843_v36 }
 0xb24   :  { %2865 = vst.msk [vmem:[#allocation3 + $0x28] sm:$0xff] %vm213_vm9, %v2852_v56  ;;  %v2629_v19 = vadd.f32 %v2628_v51, %v2627_v54 }
 0xb26   :  { %v2636_v12 = vmul.f32 %v5554_v35, %v2629_v19  ;;  %v5881_v35 = vld [vmem:[#allocation9 + $0xf0] sm:$0xff] }
 0xb28   :  { %2637 = vst.msk [vmem:[#allocation2 + $0x30] sm:$0xff] %vm213_vm9, %v2636_v12  ;;  %v5869_v3 = vadd.f32 %v2644_v33, %v2636_v12 }
 0xb2a   :  { %4342 = vmatmul.msk.f32.vlgmr.msra.gmra.mxu1 %vm213_vm9, %v5869_v3  ;;  %4343 = vmatmul.msk.f32.vlgmr.msra.gmra.mxu2 %vm213_vm9, %v5869_v3 }
 0xb2b   :  { %4344 = vmatmul.msk.f32.vlgmr.msrb.gmra.mxu3 %vm213_vm9, %v5869_v3  ;;  %3423 = vmatpush.msra.mxu1 %v5832_v14 }
 0xb2c   :  { %3053 = vmatpush.msrb.mxu3 %v5871_v55  ;;  %3443 = vmatpush.msra.mxu2 %v5871_v55 }
 0xb2d   :  { %3424 = vmatpush.msra.mxu1 %v5836_v21 }
 0xb2e   :  { %3054 = vmatpush.msrb.mxu3 %v5881_v35  ;;  %3444 = vmatpush.msra.mxu2 %v5881_v35 }
 0xb2f   :  { %v2783_v0 = vld [vmem:[#allocation2 + $0x30] sm:$0xff]  ;;  %3425 = vmatpush.msra.mxu1 %v5838_v45 }
 0xb30   :  { %4355 = vmatmul.msk.f32.gmra.mxu0 %vm213_vm9, %v2783_v0  ;;  %3055 = vmatpush.msrb.mxu3 %v5888_v24 }
 0xb31   :  { %3445 = vmatpush.msra.mxu2 %v5888_v24  ;;  %3426 = vmatpush.msra.mxu1 %v5843_v36 }
 0xb32   :  { %4358 = vmatmul.msk.f32.vlgmr.msrb.gmra.mxu1 %vm213_vm9, %v5781_v61  ;;  %4367 = vmatmul.msk.f32.vlgmr.msrb.gmra.mxu2 %vm213_vm9, %v5781_v61  ;;  %v5968_v61 = vpop.permute.xlu0 %3263 }
 0xb33   :  { %4379 = vmatmul.msk.f32.vlgmr.msra.gmra.mxu3 %vm213_vm9, %v5907_v15  ;;  %3446 = vmatpush.msra.mxu2 %v5900_v2 }
 0xb34   :  { %3056 = vmatpush.msrb.mxu3 %v5900_v2  ;;  %3572 = vmatpush.msrb.mxu1 %v5871_v55 }
 0xb35   :  { %3592 = vmatpush.msrb.mxu2 %v5862_v13 }
 0xb36   :  { %3076 = vmatpush.msra.mxu3 %v5862_v13  ;;  %3573 = vmatpush.msrb.mxu1 %v5881_v35 }
 0xb37   :  { %3593 = vmatpush.msrb.mxu2 %v5877_v50 }
 0xb38   :  { %3077 = vmatpush.msra.mxu3 %v5877_v50  ;;  %3574 = vmatpush.msrb.mxu1 %v5888_v24 }
 0xb39   :  { %3594 = vmatpush.msrb.mxu2 %v5885_v11 }
 0xb3a   :  { %3078 = vmatpush.msra.mxu3 %v5885_v11  ;;  %4359 = vmatmul.msk.f32.gmra.mxu1 %vm213_vm9, %v5785_v6  ;;  %v5971_v16 = vpop.permute.xlu0 %3392 }
 0xb3b   :  { %4368 = vmatmul.msk.f32.gmra.mxu2 %vm213_vm9, %v5785_v6  ;;  %4380 = vmatmul.msk.f32.vlgmr.msrb.gmra.mxu3 %vm213_vm9, %v5907_v15 }
 0xb3c   :  { %3079 = vmatpush.msra.mxu3 %v5893_v58  ;;  %3575 = vmatpush.msrb.mxu1 %v5900_v2 }
 0xb3d   :  { %3595 = vmatpush.msrb.mxu2 %v5893_v58 }
 0xb3e   :  { %3165 = vmatpush.msrb.mxu3 %v5832_v14 }
 0xb40   :  { %3166 = vmatpush.msrb.mxu3 %v5836_v21 }
 0xb42   :  { %3167 = vmatpush.msrb.mxu3 %v5838_v45  ;;  %4360 = vmatmul.msk.f32.gmra.mxu1 %vm213_vm9, %v5789_v60  ;;  %v5994_v48 = vpop.permute.xlu0 %3529 }
 0xb43   :  { %4369 = vmatmul.msk.f32.gmra.mxu2 %vm213_vm9, %v5789_v60  ;;  %4381 = vmatmul.msk.f32.vlgmr.msra.gmra.mxu3 %vm213_vm9, %v5907_v15 }
 0xb44   :  { %3168 = vmatpush.msrb.mxu3 %v5843_v36 }
 0xb46   :  { %3185 = vmatpush.msra.mxu3 %v5871_v55 }
 0xb48   :  { %3186 = vmatpush.msra.mxu3 %v5881_v35 }
 0xb4a   :  { %3187 = vmatpush.msra.mxu3 %v5888_v24  ;;  %4361 = vmatmul.msk.f32.gmra.mxu1 %vm213_vm9, %v5793_v39 }
 0xb4b   :  { %4370 = vmatmul.msk.f32.gmra.mxu2 %vm213_vm9, %v5793_v39  ;;  %v2646_v39 = vld [vmem:[#allocation3 + $0x38] sm:$0xff] }
 0xb4c   :  { %3188 = vmatpush.msra.mxu3 %v5900_v2 }
 0xb52   :  { %4362 = vmatmul.msk.f32.gmra.mxu1 %vm213_vm9, %v5797_v7 }
 0xb53   :  { %4371 = vmatmul.msk.f32.gmra.mxu2 %vm213_vm9, %v5797_v7 }
 0xb5a   :  { %4363 = vmatmul.msk.f32.gmra.mxu1 %vm213_vm9, %v5801_v53 }
 0xb5b   :  { %4372 = vmatmul.msk.f32.gmra.mxu2 %vm213_vm9, %v5801_v53 }
 0xb62   :  { %4364 = vmatmul.msk.f32.gmra.mxu1 %vm213_vm9, %v2783_v0 }
 0xb63   :  { %4373 = vmatmul.msk.f32.gmra.mxu2 %vm213_vm9, %v2783_v0 }
 0xba7   :  { %v2669_v6 = vpop.f32.mrf.mxu1 }
 0xba8   :  { %v2670_v60 = vadd.f32 %v5815_v5, %v2669_v6 }
 0xbaa   :  { %v2712_v25 = vadd.f32 %v2670_v60, %v2646_v39  ;;  %v6009_v39 = vpop.permute.xlu0 %3779 }
 0xbac   :  { %v4345_v7 = vmul.f32 -1.442695, %v2712_v25 }
 0xbad   :  { %v2689_v53 = vpop.f32.mrf.mxu2  ;;  %v2854_v22 = vpop.f32.mrf.mxu0 }
 0xbae   :  { %4620 = vpow2.f32 %v4345_v7  ;;  %v2690_v27 = vadd.f32 %v5821_v34, %v2689_v53  ;;  %v2709_v37 = vpop.f32.mrf.mxu3  ;;  %v2855_v10 = vadd.f32 %v5810_v28, %v2854_v22  ;;  %v5991_v34 = vld [vmem:[%s6282_s7 + $0x6] ss:$0 sm:$0xff] }
 0xbaf   :  { %v2895_v5 = vpop.f32.mrf.mxu1 }
 0xbb0   :  { %v2732_v52 = vadd.f32 %v2690_v27, %v2647_v63  ;;  %2866 = vst.msk [vmem:[#allocation3 + $0x30] sm:$0xff] %vm213_vm9, %v2855_v10  ;;  %v2896_v9 = vadd.f32 %v5976_v41, %v2895_v5 }
 0xbb2   :  { %v4346_v43 = vmul.f32 -1.442695, %v2732_v52  ;;  %2919 = vst.msk [vmem:[#allocation4] sm:$0xff] %vm213_vm9, %v2896_v9  ;;  %v2710_v9 = vadd.f32 %v5851_v4, %v2709_v37  ;;  %v2648_v37 = vld [vmem:[#allocation5 + $0x38] sm:$0xff] }
 0xbb4   :  { %v4621_v17 = vpop.eup %4620  ;;  %4622 = vpow2.f32 %v4346_v43 }
 0xbb5   :  { %v2716_v29 = vadd.f32 1.0, %v4621_v17  ;;  %v2954_v47 = vpop.f32.mrf.mxu2 }
 0xbb6   :  { %v2955_v42 = vadd.f32 %v5986_v44, %v2954_v47  ;;  %v3035_v57 = vpop.f32.mrf.mxu3 }
 0xbb7   :  { %4624 = vrcp.f32 %v2716_v29  ;;  %v2898_v49 = vpop.f32.mrf.mxu1  ;;  %v3036_v30 = vadd.f32 %v5991_v34, %v3035_v57  ;;  %v2728_v25 = vand.u32 2147483648, %v2716_v29  ;;  %v2726_v22 = vand.u32 2147483647, %v2716_v29 }
 0xbb8   :  { %2978 = vst.msk [vmem:[#allocation5] sm:$0xff] %vm213_vm9, %v2955_v42  ;;  %v2899_v62 = vadd.f32 %v5976_v41, %v2898_v49  ;;  %vm2722_vm11 = vweird.f32 %v2716_v29 }
 0xbb9   :  { %v3084_v40 = vadd.f32 %v3036_v30, %v3009_v59  ;;  %v3010_v6 = vld [vmem:[#allocation4] sm:$0xff]  ;;  %v2729_v43 = vor.u32 1.1754944e-38, %v2728_v25  ;;  %vm2727_vm13 = vcmp.eq.f32.partialorder %v2726_v22, 8.507059e+37 }
 0xbba   :  { %v4623_v46 = vpop.eup %4622  ;;  %2920 = vst.msk [vmem:[#allocation4 + $0x8] sm:$0xff] %vm213_vm9, %v2899_v62 }
 0xbbb   :  { %v2736_v31 = vadd.f32 1.0, %v4623_v46  ;;  %v4382_v26 = vmul.f32 -1.442695, %v3084_v40 }
 0xbbd   :  { %v4625_v51 = vpop.eup %4624  ;;  %4626 = vrcp.f32 %v2736_v31  ;;  %v2748_v30 = vand.u32 2147483648, %v2736_v31  ;;  %v2746_v40 = vand.u32 2147483647, %v2736_v31  ;;  %vm2742_vm15 = vweird.f32 %v2736_v31 }
 0xbbe   :  { %v2957_v56 = vpop.f32.mrf.mxu2  ;;  %v2718_v54 = vmul.f32 %v4625_v51, %v2716_v29  ;;  %4628 = vpow2.f32 %v4382_v26  ;;  %v3058_v20 = vpop.f32.mrf.mxu3  ;;  %vm2723_vm10 = vweird.f32 %v4625_v51 }
 0xbbf   :  { %v2958_v19 = vadd.f32 %v5986_v44, %v2957_v56  ;;  %v3059_v12 = vadd.f32 %v6003_v32, %v3058_v20  ;;  %v2901_v33 = vpop.f32.mrf.mxu1  ;;  %vm2724_vm12 = vmor %vm2722_vm11, %vm2723_vm10  ;;  %vm2747_vm1 = vcmp.eq.f32.partialorder %v2746_v40, 8.507059e+37 }
 0xbc0   :  { %v2719_v0 = vsub.f32 1.0, %v2718_v54  ;;  %v2902_v60 = vadd.f32 %v5976_v41, %v2901_v33  ;;  %v6020_v54 = vpop.permute.xlu0 %3916 }
 0xbc1   :  { %2979 = vst.msk [vmem:[#allocation5 + $0x8] sm:$0xff] %vm213_vm9, %v2958_v19  ;;  %v3104_v7 = vadd.f32 %v3059_v12, %v3010_v6  ;;  %v2749_v19 = vor.u32 1.1754944e-38, %v2748_v30 }
 0xbc2   :  { %v2720_v53 = vmul.f32 %v4625_v51, %v2719_v0  ;;  %2921 = vst.msk [vmem:[#allocation4 + $0x10] sm:$0xff] %vm213_vm9, %v2902_v60 }
 0xbc3   :  { %v4627_v27 = vpop.eup %4626  ;;  %v4383_v10 = vmul.f32 -1.442695, %v3104_v7 }
 0xbc4   :  { %v4629_v63 = vpop.eup %4628  ;;  %v2738_v5 = vmul.f32 %v4627_v27, %v2736_v31  ;;  %v2721_v52 = vadd.f32 %v4625_v51, %v2720_v53  ;;  %vm2743_vm14 = vweird.f32 %v4627_v27  ;;  %v6028_v53 = vld [vmem:[%s6282_s7 + $0x8] ss:$0 sm:$0xff] }
 0xbc5   :  { %v6013_v17 = vadd.f32 1.0, %v4629_v63  ;;  %4630 = vpow2.f32 %v4383_v10  ;;  %vm2744_vm0 = vmor %vm2742_vm15, %vm2743_vm14 }
 0xbc6   :  { %v2960_v47 = vpop.f32.mrf.mxu2  ;;  %v2739_v42 = vsub.f32 1.0, %v2738_v5  ;;  %v2725_v57 = vsel %vm2724_vm12, %v4625_v51, %v2721_v52 }
 0xbc7   :  { %v2961_v49 = vadd.f32 %v5986_v44, %v2960_v47  ;;  %v2730_v62 = vsel %vm2727_vm13, %v2729_v43, %v2725_v57  ;;  %4632 = vrcp.f32 %v6013_v17  ;;  %v2904_v59 = vpop.f32.mrf.mxu1  ;;  %v3098_v5 = vand.u32 2147483647, %v6013_v17 }
 0xbc8   :  { %v2740_v46 = vmul.f32 %v4627_v27, %v2739_v42  ;;  %v2752_v29 = vmul.f32 %v2730_v62, %v2710_v9  ;;  %v2905_v4 = vadd.f32 %v5976_v41, %v2904_v59  ;;  %v3100_v52 = vand.u32 2147483648, %v6013_v17 }
 0xbc9   :  { %2980 = vst.msk [vmem:[#allocation5 + $0x10] sm:$0xff] %vm213_vm9, %v2961_v49  ;;  %v2771_v49 = vpop.permute.xlu0 %2770  ;;  %vm3094_vm3 = vweird.f32 %v6013_v17  ;;  %vm3099_vm5 = vcmp.eq.f32.partialorder %v3098_v5, 8.507059e+37 }
 0xbca   :  { %v2741_v26 = vadd.f32 %v4627_v27, %v2740_v46  ;;  %v2753_v51 = vadd.f32 %v2752_v29, %v2648_v37  ;;  %2922 = vst.msk [vmem:[#allocation4 + $0x18] sm:$0xff] %vm213_vm9, %v2905_v4  ;;  %v3101_v29 = vor.u32 1.1754944e-38, %v3100_v52  ;;  %v2773_v37 = vmul.f32 %v2771_v49, %v5869_v3 }
 0xbcb   :  { %v4631_v56 = vpop.eup %4630 }
 0xbcc   :  { %v2745_v20 = vsel %vm2744_vm0, %v4627_v27, %v2741_v26  ;;  %4634 = vtanh.f32 %v2753_v51  ;;  %v3108_v12 = vadd.f32 1.0, %v4631_v56  ;;  %v3081_v27 = vpop.f32.mrf.mxu3 }
 0xbcd   :  { %v4633_v33 = vpop.eup %4632  ;;  %v2750_v6 = vsel %vm2747_vm1, %v2749_v19, %v2745_v20  ;;  %v3082_v57 = vadd.f32 %v6028_v53, %v3081_v27 }
 0xbce   :  { %v2963_v0 = vpop.f32.mrf.mxu2  ;;  %4636 = vrcp.f32 %v3108_v12  ;;  %v3090_v25 = vmul.f32 %v4633_v33, %v6013_v17  ;;  %v2755_v22 = vsub.f32 1.0, %v2750_v6  ;;  %v2757_v43 = vmul.f32 %v2750_v6, %v5869_v3  ;;  %v3011_v3 = vld [vmem:[#allocation5] sm:$0xff] }
 0xbcf   :  { %v2964_v60 = vadd.f32 %v5986_v44, %v2963_v0  ;;  %v2907_v31 = vpop.f32.mrf.mxu1  ;;  %vm3095_vm2 = vweird.f32 %v4633_v33  ;;  %v3120_v19 = vand.u32 2147483648, %v3108_v12  ;;  %v3118_v0 = vand.u32 2147483647, %v3108_v12 }
 0xbd0   :  { %v2908_v7 = vadd.f32 %v5976_v41, %v2907_v31  ;;  %v3091_v10 = vsub.f32 1.0, %v3090_v25  ;;  %vm3096_vm4 = vmor %vm3094_vm3, %vm3095_vm2  ;;  %vm3114_vm7 = vweird.f32 %v3108_v12 }
 0xbd1   :  { %2981 = vst.msk [vmem:[#allocation5 + $0x18] sm:$0xff] %vm213_vm9, %v2964_v60  ;;  %v3121_v25 = vor.u32 1.1754944e-38, %v3120_v19  ;;  %vm3119_vm10 = vcmp.eq.f32.partialorder %v3118_v0, 8.507059e+37 }
 0xbd2   :  { %v4635_v63 = vpop.eup %4634  ;;  %2923 = vst.msk [vmem:[#allocation4 + $0x20] sm:$0xff] %vm213_vm9, %v2908_v7  ;;  %v3092_v47 = vmul.f32 %v4633_v33, %v3091_v10 }
 0xbd3   :  { %v2756_v9 = vmul.f32 %v4635_v63, %v2755_v22 }
 0xbd4   :  { %v4637_v42 = vpop.eup %4636  ;;  %v3093_v59 = vadd.f32 %v4633_v33, %v3092_v47 }
 0xbd5   :  { %v2758_v30 = vadd.f32 %v2757_v43, %v2756_v9  ;;  %v3110_v62 = vmul.f32 %v4637_v42, %v3108_v12  ;;  %vm3115_vm6 = vweird.f32 %v4637_v42 }
 0xbd6   :  { %v2966_v46 = vpop.f32.mrf.mxu2  ;;  %v3097_v51 = vsel %vm3096_vm4, %v4633_v33, %v3093_v59  ;;  %vm3116_vm8 = vmor %vm3114_vm7, %vm3115_vm6 }
 0xbd7   :  { %v2967_v4 = vadd.f32 %v5986_v44, %v2966_v46  ;;  %v2765_v40 = vmul.f32 %v5559_v38, %v2758_v30  ;;  %v3111_v26 = vsub.f32 1.0, %v3110_v62  ;;  %v2910_v56 = vpop.f32.mrf.mxu1  ;;  %v3102_v20 = vsel %vm3099_vm5, %v3101_v29, %v3097_v51  ;;  %v3135_v30 = vpop.permute.xlu1 %3134 }
 0xbd8   :  { %v2911_v17 = vadd.f32 %v5976_v41, %v2910_v56  ;;  %v3124_v60 = vmul.f32 %v3102_v20, %v3082_v57  ;;  %v3145_v62 = vmul.f32 %v5907_v15, %v5556_v8  ;;  %v3147_v56 = vld [vmem:[#allocation3 + $0x8] sm:$0xff] }
 0xbd9   :  { %2982 = vst.msk [vmem:[#allocation5 + $0x20] sm:$0xff] %vm213_vm9, %v2967_v4  ;;  %v3112_v6 = vmul.f32 %v4637_v42, %v3111_v26  ;;  %v2774_v31 = vadd.f32 %v2773_v37, %v2765_v40 }
 0xbda   :  { %2766 = vst.msk [vmem:[#allocation2 + $0x38] sm:$0xff] %vm213_vm9, %v2765_v40  ;;  %v3125_v33 = vadd.f32 %v3124_v60, %v3011_v3 }
 0xbdb   :  { %2924 = vst.msk [vmem:[#allocation4 + $0x28] sm:$0xff] %vm213_vm9, %v2911_v17  ;;  %v3113_v38 = vadd.f32 %v4637_v42, %v3112_v6 }
 0xbdc   :  { %2776 = vst.msk [vmem:[#allocation12 + $0x8] sm:$0xff] %vm213_vm9, %v2774_v31  ;;  %4638 = vtanh.f32 %v3125_v33 }
 0xbdd   :  { %v3117_v7 = vsel %vm3116_vm8, %v4637_v42, %v3113_v38 }
 0xbde   :  { %v2969_v22 = vpop.f32.mrf.mxu2  ;;  %v3122_v27 = vsel %vm3119_vm10, %v3121_v25, %v3117_v7 }
 0xbdf   :  { %v2970_v10 = vadd.f32 %v5986_v44, %v2969_v22  ;;  %v2913_v63 = vpop.f32.mrf.mxu1  ;;  %v3127_v5 = vsub.f32 1.0, %v3122_v27  ;;  %v3129_v47 = vmul.f32 %v5907_v15, %v3122_v27 }
 0xbe0   :  { %v2914_v52 = vadd.f32 %v5976_v41, %v2913_v63 }
 0xbe1   :  { %2983 = vst.msk [vmem:[#allocation5 + $0x28] sm:$0xff] %vm213_vm9, %v2970_v10  ;;  %v2784_v12 = vld [vmem:[#allocation2 + $0x38] sm:$0xff] }
 0xbe2   :  { %4356 = vmatmul.msk.f32.gmra.mxu0 %vm213_vm9, %v2784_v12  ;;  %4365 = vmatmul.msk.f32.gmra.mxu1 %vm213_vm9, %v2784_v12  ;;  %2925 = vst.msk [vmem:[#allocation4 + $0x30] sm:$0xff] %vm213_vm9, %v2914_v52  ;;  %v4639_v9 = vpop.eup %4638 }
 0xbe3   :  { %4374 = vmatmul.msk.f32.gmra.mxu2 %vm213_vm9, %v2784_v12  ;;  %v3128_v43 = vmul.f32 %v4639_v9, %v3127_v5 }
 0xbe5   :  { %v3130_v57 = vadd.f32 %v3129_v47, %v3128_v43 }
 0xbe6   :  { %v2972_v42 = vpop.f32.mrf.mxu2 }
 0xbe7   :  { %v2973_v49 = vadd.f32 %v5986_v44, %v2972_v42  ;;  %v3137_v59 = vmul.f32 %v3135_v30, %v3130_v57  ;;  %v3149_v30 = vld [vmem:[#allocation5 + $0x8] sm:$0xff] }
 0xbe9   :  { %2984 = vst.msk [vmem:[#allocation5 + $0x30] sm:$0xff] %vm213_vm9, %v2973_v49  ;;  %v6058_v46 = vadd.f32 %v3145_v62, %v3137_v59 }
 0xbea   :  { %3138 = vst.msk [vmem:[#allocation2] sm:$0xff] %vm213_vm9, %v3137_v59 }
 0xbeb   :  { %4384 = vmatmul.msk.f32.vlgmr.msrb.gmra.mxu3 %vm213_vm9, %v6058_v46 }
 0xbec   :  { %3205 = vmatpush.msrb.mxu3 %v5862_v13 }
 0xbee   :  { %3206 = vmatpush.msrb.mxu3 %v5877_v50 }
 0xbf0   :  { %3207 = vmatpush.msrb.mxu3 %v5885_v11 }
 0xbf2   :  { %3208 = vmatpush.msrb.mxu3 %v5893_v58 }
 0xbf3   :  { %4385 = vmatmul.msk.f32.vlgmr.msra.gmra.mxu3 %vm213_vm9, %v6058_v46 }
 0xbf4   :  { %3294 = vmatpush.msra.mxu3 %v5832_v14 }
 0xbf6   :  { %3295 = vmatpush.msra.mxu3 %v5836_v21 }
 0xbf8   :  { %3296 = vmatpush.msra.mxu3 %v5838_v45 }
 0xbfa   :  { %3297 = vmatpush.msra.mxu3 %v5843_v36 }
 0xbfb   :  { %4386 = vmatmul.msk.f32.vlgmr.msrb.gmra.mxu3 %vm213_vm9, %v6058_v46 }
 0xbfc   :  { %3314 = vmatpush.msrb.mxu3 %v5871_v55 }
 0xbfe   :  { %3315 = vmatpush.msrb.mxu3 %v5881_v35 }
 0xc00   :  { %3316 = vmatpush.msrb.mxu3 %v5888_v24 }
 0xc02   :  { %3317 = vmatpush.msrb.mxu3 %v5900_v2 }
 0xc5f   :  { %v2857_v8 = vpop.f32.mrf.mxu0  ;;  %v2916_v15 = vpop.f32.mrf.mxu1 }
 0xc60   :  { %v2858_v29 = vadd.f32 %v5810_v28, %v2857_v8  ;;  %v2917_v4 = vadd.f32 %v5976_v41, %v2916_v15  ;;  %v3148_v41 = vld [vmem:[#allocation4 + $0x8] sm:$0xff] }
 0xc62   :  { %2867 = vst.msk [vmem:[#allocation3 + $0x38] sm:$0xff] %vm213_vm9, %v2858_v29 }
 0xc63   :  { %2926 = vst.msk [vmem:[#allocation4 + $0x38] sm:$0xff] %vm213_vm9, %v2917_v4 }
 0xc66   :  { %v2975_v37 = vpop.f32.mrf.mxu2 }
 0xc67   :  { %v2976_v40 = vadd.f32 %v5986_v44, %v2975_v37 }
 0xc69   :  { %2985 = vst.msk [vmem:[#allocation5 + $0x38] sm:$0xff] %vm213_vm9, %v2976_v40 }
 0xc6e   :  { %v3170_v26 = vpop.f32.mrf.mxu3 }
 0xc6f   :  { %v3171_v51 = vadd.f32 %v5991_v34, %v3170_v26 }
 0xc71   :  { %v3213_v19 = vadd.f32 %v3171_v51, %v3147_v56 }
 0xc73   :  { %v4387_v20 = vmul.f32 -1.442695, %v3213_v19 }
 0xc75   :  { %4640 = vpow2.f32 %v4387_v20  ;;  %v3272_v20 = vpop.permute.xlu1 %3271 }
 0xc76   :  { %v3190_v0 = vpop.f32.mrf.mxu3 }
 0xc77   :  { %v3191_v28 = vadd.f32 %v6003_v32, %v3190_v0 }
 0xc79   :  { %v3233_v17 = vadd.f32 %v3191_v28, %v3148_v41  ;;  %v3274_v28 = vmul.f32 %v3272_v20, %v6058_v46 }
 0xc7b   :  { %v4641_v6 = vpop.eup %4640  ;;  %v4388_v60 = vmul.f32 -1.442695, %v3233_v17  ;;  %v3276_v17 = vld [vmem:[#allocation3 + $0x10] sm:$0xff] }
 0xc7c   :  { %v3217_v31 = vadd.f32 1.0, %v4641_v6 }
 0xc7d   :  { %4642 = vpow2.f32 %v4388_v60 }
 0xc7e   :  { %4644 = vrcp.f32 %v3217_v31  ;;  %v3229_v7 = vand.u32 2147483648, %v3217_v31  ;;  %v3227_v27 = vand.u32 2147483647, %v3217_v31  ;;  %v3210_v10 = vpop.f32.mrf.mxu3  ;;  %vm3223_vm12 = vweird.f32 %v3217_v31 }
 0xc7f   :  { %v3211_v9 = vadd.f32 %v6028_v53, %v3210_v10 }
 0xc80   :  { %v3230_v52 = vor.u32 1.1754944e-38, %v3229_v7  ;;  %vm3228_vm14 = vcmp.eq.f32.partialorder %v3227_v27, 8.507059e+37 }
 0xc83   :  { %v4643_v44 = vpop.eup %4642 }
 0xc84   :  { %v4645_v3 = vpop.eup %4644  ;;  %v3237_v38 = vadd.f32 1.0, %v4643_v44 }
 0xc85   :  { %v3219_v33 = vmul.f32 %v4645_v3, %v3217_v31  ;;  %vm3224_vm11 = vweird.f32 %v4645_v3 }
 0xc86   :  { %4646 = vrcp.f32 %v3237_v38  ;;  %vm3225_vm13 = vmor %vm3223_vm12, %vm3224_vm11  ;;  %v3249_v49 = vand.u32 2147483648, %v3237_v38  ;;  %v3247_v59 = vand.u32 2147483647, %v3237_v38  ;;  %vm3243_vm0 = vweird.f32 %v3237_v38 }
 0xc87   :  { %v3220_v25 = vsub.f32 1.0, %v3219_v33 }
 0xc88   :  { %v3250_v29 = vor.u32 1.1754944e-38, %v3249_v49  ;;  %vm3248_vm2 = vcmp.eq.f32.partialorder %v3247_v59, 8.507059e+37 }
 0xc89   :  { %v3221_v22 = vmul.f32 %v4645_v3, %v3220_v25 }
 0xc8b   :  { %v3222_v63 = vadd.f32 %v4645_v3, %v3221_v22 }
 0xc8c   :  { %v4647_v5 = vpop.eup %4646 }
 0xc8d   :  { %v3239_v12 = vmul.f32 %v4647_v5, %v3237_v38  ;;  %v3226_v43 = vsel %vm3225_vm13, %v4645_v3, %v3222_v63  ;;  %vm3244_vm15 = vweird.f32 %v4647_v5  ;;  %v3277_v3 = vld [vmem:[#allocation4 + $0x10] sm:$0xff] }
 0xc8e   :  { %v3231_v47 = vsel %vm3228_vm14, %v3230_v52, %v3226_v43  ;;  %vm3245_vm1 = vmor %vm3243_vm0, %vm3244_vm15 }
 0xc8f   :  { %v3240_v42 = vsub.f32 1.0, %v3239_v12  ;;  %v3253_v57 = vmul.f32 %v3231_v47, %v3211_v9 }
 0xc91   :  { %v3241_v62 = vmul.f32 %v4647_v5, %v3240_v42  ;;  %v3254_v8 = vadd.f32 %v3253_v57, %v3149_v30 }
 0xc93   :  { %v3242_v15 = vadd.f32 %v4647_v5, %v3241_v62  ;;  %4648 = vtanh.f32 %v3254_v8 }
 0xc95   :  { %v3246_v4 = vsel %vm3245_vm1, %v4647_v5, %v3242_v15 }
 0xc96   :  { %v3251_v37 = vsel %vm3248_vm2, %v3250_v29, %v3246_v4  ;;  %v3278_v29 = vld [vmem:[#allocation5 + $0x10] sm:$0xff] }
 0xc97   :  { %v3256_v40 = vsub.f32 1.0, %v3251_v37  ;;  %v3258_v56 = vmul.f32 %v3251_v37, %v6058_v46 }
 0xc99   :  { %v4649_v26 = vpop.eup %4648 }
 0xc9a   :  { %v3257_v51 = vmul.f32 %v4649_v26, %v3256_v40 }
 0xc9c   :  { %v3259_v19 = vadd.f32 %v3258_v56, %v3257_v51 }
 0xc9e   :  { %v3266_v0 = vmul.f32 %v5968_v61, %v3259_v19 }
 0xca0   :  { %3267 = vst.msk [vmem:[#allocation2 + $0x8] sm:$0xff] %vm213_vm9, %v3266_v0  ;;  %v6091_v41 = vadd.f32 %v3274_v28, %v3266_v0 }
 0xca2   :  { %4390 = vmatmul.msk.f32.vlgmr.msra.gmra.mxu3 %vm213_vm9, %v6091_v41  ;;  %4392 = vmatmul.msk.f32.vlgmr.msrb.gmra.mxu0 %vm213_vm9, %v6091_v41 }
 0xca3   :  { %3463 = vmatpush.msra.mxu3 %v5862_v13  ;;  %3701 = vmatpush.msrb.mxu0 %v5871_v55 }
 0xca5   :  { %3464 = vmatpush.msra.mxu3 %v5877_v50  ;;  %3702 = vmatpush.msrb.mxu0 %v5881_v35 }
 0xca7   :  { %3465 = vmatpush.msra.mxu3 %v5885_v11  ;;  %3703 = vmatpush.msrb.mxu0 %v5888_v24 }
 0xca9   :  { %3466 = vmatpush.msra.mxu3 %v5893_v58  ;;  %3704 = vmatpush.msrb.mxu0 %v5900_v2 }
 0xcaa   :  { %4391 = vmatmul.msk.f32.vlgmr.msrb.gmra.mxu3 %vm213_vm9, %v6091_v41 }
 0xcab   :  { %3681 = vmatpush.msrb.mxu3 %v5832_v14 }
 0xcad   :  { %3682 = vmatpush.msrb.mxu3 %v5836_v21 }
 0xcaf   :  { %3683 = vmatpush.msrb.mxu3 %v5838_v45 }
 0xcb1   :  { %3684 = vmatpush.msrb.mxu3 %v5843_v36 }
 0xd1f   :  { %v3339_v43 = vpop.f32.mrf.mxu0 }
 0xd20   :  { %v3340_v49 = vadd.f32 %v6028_v53, %v3339_v43 }
 0xd25   :  { %v3299_v61 = vpop.f32.mrf.mxu3 }
 0xd26   :  { %v3300_v46 = vadd.f32 %v5991_v34, %v3299_v61 }
 0xd28   :  { %v3342_v6 = vadd.f32 %v3300_v46, %v3276_v17 }
 0xd2a   :  { %v4393_v60 = vmul.f32 -1.442695, %v3342_v6  ;;  %v3401_v6 = vpop.permute.xlu1 %3400 }
 0xd2c   :  { %4650 = vpow2.f32 %v4393_v60 }
 0xd2d   :  { %v3319_v31 = vpop.f32.mrf.mxu3 }
 0xd2e   :  { %v3320_v44 = vadd.f32 %v6003_v32, %v3319_v31  ;;  %v3403_v31 = vmul.f32 %v3401_v6, %v6091_v41 }
 0xd30   :  { %v3362_v38 = vadd.f32 %v3320_v44, %v3277_v3 }
 0xd32   :  { %v4651_v33 = vpop.eup %4650  ;;  %v4394_v25 = vmul.f32 -1.442695, %v3362_v38 }
 0xd33   :  { %v3346_v7 = vadd.f32 1.0, %v4651_v33 }
 0xd34   :  { %4652 = vpow2.f32 %v4394_v25  ;;  %v3406_v25 = vld [vmem:[#allocation4 + $0x18] sm:$0xff] }
 0xd35   :  { %4654 = vrcp.f32 %v3346_v7  ;;  %v3358_v52 = vand.u32 2147483648, %v3346_v7  ;;  %v3356_v9 = vand.u32 2147483647, %v3346_v7  ;;  %vm3352_vm4 = vweird.f32 %v3346_v7 }
 0xd37   :  { %v3359_v57 = vor.u32 1.1754944e-38, %v3358_v52  ;;  %vm3357_vm6 = vcmp.eq.f32.partialorder %v3356_v9, 8.507059e+37 }
 0xd3a   :  { %v4653_v22 = vpop.eup %4652 }
 0xd3b   :  { %v4655_v27 = vpop.eup %4654  ;;  %v3366_v10 = vadd.f32 1.0, %v4653_v22 }
 0xd3c   :  { %v3348_v63 = vmul.f32 %v4655_v27, %v3346_v7  ;;  %vm3353_vm3 = vweird.f32 %v4655_v27 }
 0xd3d   :  { %4656 = vrcp.f32 %v3366_v10  ;;  %vm3354_vm5 = vmor %vm3352_vm4, %vm3353_vm3  ;;  %v3378_v4 = vand.u32 2147483648, %v3366_v10  ;;  %v3376_v26 = vand.u32 2147483647, %v3366_v10  ;;  %vm3372_vm8 = vweird.f32 %v3366_v10 }
 0xd3e   :  { %v3349_v5 = vsub.f32 1.0, %v3348_v63 }
 0xd3f   :  { %v3379_v56 = vor.u32 1.1754944e-38, %v3378_v4  ;;  %vm3377_vm11 = vcmp.eq.f32.partialorder %v3376_v26, 8.507059e+37 }
 0xd40   :  { %v3350_v12 = vmul.f32 %v4655_v27, %v3349_v5 }
 0xd42   :  { %v3351_v47 = vadd.f32 %v4655_v27, %v3350_v12 }
 0xd43   :  { %v4657_v42 = vpop.eup %4656 }
 0xd44   :  { %v3355_v30 = vsel %vm3354_vm5, %v4655_v27, %v3351_v47  ;;  %v3368_v62 = vmul.f32 %v4657_v42, %v3366_v10  ;;  %vm3373_vm7 = vweird.f32 %v4657_v42 }
 0xd45   :  { %v3360_v59 = vsel %vm3357_vm6, %v3359_v57, %v3355_v30  ;;  %vm3374_vm10 = vmor %vm3372_vm8, %vm3373_vm7 }
 0xd46   :  { %v3382_v8 = vmul.f32 %v3360_v59, %v3340_v49  ;;  %v3369_v15 = vsub.f32 1.0, %v3368_v62 }
 0xd48   :  { %v3383_v37 = vadd.f32 %v3382_v8, %v3278_v29  ;;  %v3370_v40 = vmul.f32 %v4657_v42, %v3369_v15 }
 0xd4a   :  { %4658 = vtanh.f32 %v3383_v37  ;;  %v3371_v51 = vadd.f32 %v4657_v42, %v3370_v40  ;;  %v3407_v40 = vld [vmem:[#allocation5 + $0x18] sm:$0xff] }
 0xd4c   :  { %v3375_v19 = vsel %vm3374_vm10, %v4657_v42, %v3371_v51 }
 0xd4d   :  { %v3380_v20 = vsel %vm3377_vm11, %v3379_v56, %v3375_v19 }
 0xd4e   :  { %v3385_v0 = vsub.f32 1.0, %v3380_v20  ;;  %v3387_v61 = vmul.f32 %v3380_v20, %v6091_v41  ;;  %v3405_v41 = vld [vmem:[#allocation3 + $0x18] sm:$0xff] }
 0xd50   :  { %v4659_v28 = vpop.eup %4658 }
 0xd51   :  { %v3386_v46 = vmul.f32 %v4659_v28, %v3385_v0 }
 0xd53   :  { %v3388_v17 = vadd.f32 %v3387_v61, %v3386_v46 }
 0xd55   :  { %v3395_v60 = vmul.f32 %v5971_v16, %v3388_v17 }
 0xd57   :  { %3396 = vst.msk [vmem:[#allocation2 + $0x10] sm:$0xff] %vm213_vm9, %v3395_v60  ;;  %v6118_v44 = vadd.f32 %v3403_v31, %v3395_v60 }
 0xd59   :  { %4396 = vmatmul.msk.f32.vlgmr.msra.gmra.mxu1 %vm213_vm9, %v6118_v44  ;;  %4397 = vmatmul.msk.f32.vlgmr.msra.gmra.mxu2 %vm213_vm9, %v6118_v44  ;;  %v3532_v31 = vmul.f32 %v5994_v48, %v6118_v44  ;;  %v4729_v48 = vld [vmem:[#allocation9 + $0xc8] sm:$0xff] }
 0xd5a   :  { %4398 = vmatmul.msk.f32.vlgmr.msra.gmra.mxu3 %vm213_vm9, %v6118_v44  ;;  %3721 = vmatpush.msra.mxu1 %v5862_v13 }
 0xd5b   :  { %3810 = vmatpush.msra.mxu2 %v5832_v14  ;;  %3830 = vmatpush.msra.mxu3 %v5871_v55 }
 0xd5c   :  { %3722 = vmatpush.msra.mxu1 %v5877_v50 }
 0xd5d   :  { %3811 = vmatpush.msra.mxu2 %v5836_v21  ;;  %3831 = vmatpush.msra.mxu3 %v5881_v35 }
 0xd5e   :  { %3723 = vmatpush.msra.mxu1 %v5885_v11 }
 0xd5f   :  { %3812 = vmatpush.msra.mxu2 %v5838_v45  ;;  %3832 = vmatpush.msra.mxu3 %v5888_v24 }
 0xd60   :  { %3724 = vmatpush.msra.mxu1 %v5893_v58 }
 0xd61   :  { %3813 = vmatpush.msra.mxu2 %v5843_v36  ;;  %3833 = vmatpush.msra.mxu3 %v5900_v2 }
 0xdd6   :  { %v3428_v14 = vpop.f32.mrf.mxu1 }
 0xdd7   :  { %v3429_v16 = vadd.f32 %v5991_v34, %v3428_v14 }
 0xdd9   :  { %v3471_v3 = vadd.f32 %v3429_v16, %v3405_v41  ;;  %v4727_v16 = vld [vmem:[#allocation9 + $0xd8] sm:$0xff] }
 0xddb   :  { %v4399_v21 = vmul.f32 -1.442695, %v3471_v3  ;;  %v3534_v3 = vld [vmem:[#allocation3 + $0x20] sm:$0xff] }
 0xddc   :  { %v3448_v38 = vpop.f32.mrf.mxu2 }
 0xddd   :  { %4660 = vpow2.f32 %v4399_v21  ;;  %v3449_v33 = vadd.f32 %v6003_v32, %v3448_v38  ;;  %v3468_v42 = vpop.f32.mrf.mxu3 }
 0xdde   :  { %v3469_v59 = vadd.f32 %v6028_v53, %v3468_v42 }
 0xddf   :  { %v3491_v45 = vadd.f32 %v3449_v33, %v3406_v25 }
 0xde1   :  { %v4400_v7 = vmul.f32 -1.442695, %v3491_v45 }
 0xde3   :  { %v4661_v22 = vpop.eup %4660  ;;  %4662 = vpow2.f32 %v4400_v7 }
 0xde4   :  { %v3475_v27 = vadd.f32 1.0, %v4661_v22 }
 0xde6   :  { %4664 = vrcp.f32 %v3475_v27  ;;  %v3487_v12 = vand.u32 2147483648, %v3475_v27  ;;  %v3485_v43 = vand.u32 2147483647, %v3475_v27  ;;  %vm3481_vm13 = vweird.f32 %v3475_v27 }
 0xde8   :  { %v3488_v30 = vor.u32 1.1754944e-38, %v3487_v12  ;;  %vm3486_vm15 = vcmp.eq.f32.partialorder %v3485_v43, 8.507059e+37 }
 0xde9   :  { %v4663_v36 = vpop.eup %4662 }
 0xdea   :  { %v3495_v10 = vadd.f32 1.0, %v4663_v36 }
 0xdec   :  { %v4665_v63 = vpop.eup %4664  ;;  %4666 = vrcp.f32 %v3495_v10  ;;  %v3507_v4 = vand.u32 2147483648, %v3495_v10  ;;  %v3505_v26 = vand.u32 2147483647, %v3495_v10  ;;  %vm3501_vm1 = vweird.f32 %v3495_v10 }
 0xded   :  { %v3477_v5 = vmul.f32 %v4665_v63, %v3475_v27  ;;  %vm3482_vm12 = vweird.f32 %v4665_v63 }
 0xdee   :  { %vm3483_vm14 = vmor %vm3481_vm13, %vm3482_vm12  ;;  %v3508_v19 = vor.u32 1.1754944e-38, %v3507_v4  ;;  %vm3506_vm3 = vcmp.eq.f32.partialorder %v3505_v26, 8.507059e+37 }
 0xdef   :  { %v3478_v52 = vsub.f32 1.0, %v3477_v5 }
 0xdf1   :  { %v3479_v9 = vmul.f32 %v4665_v63, %v3478_v52 }
 0xdf2   :  { %v4667_v47 = vpop.eup %4666 }
 0xdf3   :  { %v3497_v57 = vmul.f32 %v4667_v47, %v3495_v10  ;;  %v3480_v49 = vadd.f32 %v4665_v63, %v3479_v9  ;;  %vm3502_vm0 = vweird.f32 %v4667_v47 }
 0xdf4   :  { %vm3503_vm2 = vmor %vm3501_vm1, %vm3502_vm0 }
 0xdf5   :  { %v3498_v62 = vsub.f32 1.0, %v3497_v57  ;;  %v3484_v8 = vsel %vm3483_vm14, %v4665_v63, %v3480_v49 }
 0xdf6   :  { %v3489_v15 = vsel %vm3486_vm15, %v3488_v30, %v3484_v8  ;;  %v3536_v8 = vld [vmem:[#allocation5 + $0x20] sm:$0xff] }
 0xdf7   :  { %v3499_v29 = vmul.f32 %v4667_v47, %v3498_v62  ;;  %v3511_v37 = vmul.f32 %v3489_v15, %v3469_v59 }
 0xdf9   :  { %v3500_v51 = vadd.f32 %v4667_v47, %v3499_v29  ;;  %v3512_v56 = vadd.f32 %v3511_v37, %v3407_v40 }
 0xdfb   :  { %v3504_v20 = vsel %vm3503_vm2, %v4667_v47, %v3500_v51  ;;  %4668 = vtanh.f32 %v3512_v56 }
 0xdfc   :  { %v3509_v0 = vsel %vm3506_vm3, %v3508_v19, %v3504_v20 }
 0xdfd   :  { %v3514_v28 = vsub.f32 1.0, %v3509_v0  ;;  %v3516_v17 = vmul.f32 %v3509_v0, %v6118_v44  ;;  %v4730_v44 = vld [vmem:[#allocation9 + $0xc0] sm:$0xff]  ;;  %v3651_v0 = vpop.permute.xlu1 %3650 }
 0xe01   :  { %v4669_v61 = vpop.eup %4668 }
 0xe02   :  { %v3515_v46 = vmul.f32 %v4669_v61, %v3514_v28 }
 0xe04   :  { %v3517_v6 = vadd.f32 %v3516_v17, %v3515_v46  ;;  %v4731_v17 = vld [vmem:[#allocation9 + $0x118] sm:$0xff] }
 0xe06   :  { %v3524_v60 = vmul.f32 %v5584_v18, %v3517_v6  ;;  %v4728_v18 = vld [vmem:[#allocation9 + $0xd0] sm:$0xff] }
 0xe07   :  { %v4732_v6 = vld [vmem:[#allocation9 + $0x110] sm:$0xff] }
 0xe08   :  { %3525 = vst.msk [vmem:[#allocation2 + $0x18] sm:$0xff] %vm213_vm9, %v3524_v60  ;;  %v6146_v14 = vadd.f32 %v3532_v31, %v3524_v60  ;;  %v4733_v60 = vld [vmem:[#allocation9 + $0x108] sm:$0xff] }
 0xe0a   :  { %4402 = vmatmul.msk.f32.vlgmr.msra.gmra.mxu0 %vm213_vm9, %v6146_v14  ;;  %4403 = vmatmul.msk.f32.vlgmr.msrb.gmra.mxu1 %vm213_vm9, %v6146_v14  ;;  %v3661_v61 = vmul.f32 %v5599_v23, %v6146_v14  ;;  %v4734_v23 = vld [vmem:[#allocation9 + $0x100] sm:$0xff] }
 0xe0b   :  { %4404 = vmatmul.msk.f32.vlgmr.msrb.gmra.mxu2 %vm213_vm9, %v6146_v14  ;;  %3850 = vmatpush.msra.mxu0 %v5862_v13 }
 0xe0c   :  { %3939 = vmatpush.msrb.mxu1 %v4727_v16  ;;  %3959 = vmatpush.msrb.mxu2 %v5871_v55  ;;  %v3664_v16 = vld [vmem:[#allocation4 + $0x28] sm:$0xff] }
 0xe0d   :  { %3851 = vmatpush.msra.mxu0 %v5877_v50 }
 0xe0e   :  { %3940 = vmatpush.msrb.mxu1 %v4728_v18  ;;  %3960 = vmatpush.msrb.mxu2 %v5881_v35  ;;  %v3535_v35 = vld [vmem:[#allocation4 + $0x20] sm:$0xff] }
 0xe0f   :  { %3852 = vmatpush.msra.mxu0 %v5885_v11 }
 0xe10   :  { %3941 = vmatpush.msrb.mxu1 %v4729_v48  ;;  %3961 = vmatpush.msrb.mxu2 %v5888_v24 }
 0xe11   :  { %3853 = vmatpush.msra.mxu0 %v5893_v58 }
 0xe12   :  { %3942 = vmatpush.msrb.mxu1 %v4730_v44  ;;  %3962 = vmatpush.msrb.mxu2 %v5900_v2 }
 0xe87   :  { %v3557_v13 = vpop.f32.mrf.mxu0  ;;  %v3577_v55 = vpop.f32.mrf.mxu1 }
 0xe88   :  { %v3558_v50 = vadd.f32 %v5991_v34, %v3557_v13  ;;  %v3578_v41 = vadd.f32 %v6003_v32, %v3577_v55  ;;  %v3663_v55 = vld [vmem:[#allocation3 + $0x28] sm:$0xff] }
 0xe8a   :  { %v3600_v21 = vadd.f32 %v3558_v50, %v3534_v3  ;;  %v3620_v11 = vadd.f32 %v3578_v41, %v3535_v35 }
 0xe8c   :  { %v4405_v38 = vmul.f32 -1.442695, %v3600_v21  ;;  %v4406_v33 = vmul.f32 -1.442695, %v3620_v11 }
 0xe8e   :  { %4670 = vpow2.f32 %v4405_v38  ;;  %v3597_v9 = vpop.f32.mrf.mxu2 }
 0xe8f   :  { %4672 = vpow2.f32 %v4406_v33  ;;  %v3598_v42 = vadd.f32 %v6028_v53, %v3597_v9 }
 0xe94   :  { %v4671_v24 = vpop.eup %4670 }
 0xe95   :  { %v4673_v58 = vpop.eup %4672  ;;  %v3604_v25 = vadd.f32 1.0, %v4671_v24 }
 0xe96   :  { %v3624_v45 = vadd.f32 1.0, %v4673_v58 }
 0xe97   :  { %4674 = vrcp.f32 %v3604_v25  ;;  %v3616_v63 = vand.u32 2147483648, %v3604_v25  ;;  %v3614_v52 = vand.u32 2147483647, %v3604_v25  ;;  %vm3610_vm5 = vweird.f32 %v3604_v25 }
 0xe98   :  { %4676 = vrcp.f32 %v3624_v45  ;;  %v3636_v62 = vand.u32 2147483648, %v3624_v45  ;;  %vm3630_vm10 = vweird.f32 %v3624_v45  ;;  %v3634_v15 = vand.u32 2147483647, %v3624_v45 }
 0xe99   :  { %v3617_v47 = vor.u32 1.1754944e-38, %v3616_v63  ;;  %vm3615_vm7 = vcmp.eq.f32.partialorder %v3614_v52, 8.507059e+37 }
 0xe9a   :  { %v3637_v37 = vor.u32 1.1754944e-38, %v3636_v62  ;;  %vm3635_vm12 = vcmp.eq.f32.partialorder %v3634_v15, 8.507059e+37 }
 0xe9d   :  { %v4675_v2 = vpop.eup %4674 }
 0xe9e   :  { %v4677_v7 = vpop.eup %4676  ;;  %v3606_v22 = vmul.f32 %v4675_v2, %v3604_v25  ;;  %vm3611_vm4 = vweird.f32 %v4675_v2  ;;  %v4061_v25 = vld [vmem:[%s6283_s8 + $0x8] sm:$0xff] }
 0xe9f   :  { %v3626_v27 = vmul.f32 %v4677_v7, %v3624_v45  ;;  %vm3612_vm6 = vmor %vm3610_vm5, %vm3611_vm4  ;;  %vm3631_vm8 = vweird.f32 %v4677_v7 }
 0xea0   :  { %v3607_v36 = vsub.f32 1.0, %v3606_v22  ;;  %vm3632_vm11 = vmor %vm3630_vm10, %vm3631_vm8 }
 0xea1   :  { %v3627_v10 = vsub.f32 1.0, %v3626_v27 }
 0xea2   :  { %v3608_v5 = vmul.f32 %v4675_v2, %v3607_v36 }
 0xea3   :  { %v3628_v12 = vmul.f32 %v4677_v7, %v3627_v10 }
 0xea4   :  { %v3609_v43 = vadd.f32 %v4675_v2, %v3608_v5 }
 0xea5   :  { %v3629_v30 = vadd.f32 %v4677_v7, %v3628_v12 }
 0xea6   :  { %v3613_v57 = vsel %vm3612_vm6, %v4675_v2, %v3609_v43 }
 0xea7   :  { %v3618_v49 = vsel %vm3615_vm7, %v3617_v47, %v3613_v57  ;;  %v3633_v4 = vsel %vm3632_vm11, %v4677_v7, %v3629_v30  ;;  %v4060_v7 = vld [vmem:[%s6283_s8] sm:$0xff]  ;;  %v3665_v30 = vld [vmem:[#allocation5 + $0x28] sm:$0xff] }
 0xea8   :  { %v3640_v59 = vmul.f32 %v3618_v49, %v3598_v42  ;;  %v3638_v40 = vsel %vm3635_vm12, %v3637_v37, %v3633_v4 }
 0xea9   :  { %v3643_v26 = vsub.f32 1.0, %v3638_v40  ;;  %v3645_v19 = vmul.f32 %v3638_v40, %v6146_v14 }
 0xeaa   :  { %v3641_v29 = vadd.f32 %v3640_v59, %v3536_v8 }
 0xeac   :  { %4678 = vtanh.f32 %v3641_v29 }
 0xeb2   :  { %v4679_v51 = vpop.eup %4678 }
 0xeb3   :  { %v3644_v56 = vmul.f32 %v4679_v51, %v3643_v26  ;;  %v3788_v26 = vpop.permute.xlu1 %3787 }
 0xeb5   :  { %v3646_v20 = vadd.f32 %v3645_v19, %v3644_v56 }
 0xeb7   :  { %v3653_v28 = vmul.f32 %v3651_v0, %v3646_v20  ;;  %v4052_v20 = vld [vmem:[#allocation2] sm:$0xff]  ;;  %v4053_v0 = vld [vmem:[#allocation2 + $0x8] sm:$0xff] }
 0xeb9   :  { %3654 = vst.msk [vmem:[#allocation2 + $0x20] sm:$0xff] %vm213_vm9, %v3653_v28  ;;  %v6169_v46 = vadd.f32 %v3661_v61, %v3653_v28  ;;  %v4055_v28 = vld [vmem:[#allocation2 + $0x18] sm:$0xff] }
 0xebb   :  { %4408 = vmatmul.msk.f32.vlgmr.msrb.gmra.mxu3 %vm213_vm9, %v6169_v46  ;;  %4409 = vmatmul.msk.f32.vlgmr.msrb.gmra.mxu0 %vm213_vm9, %v6169_v46  ;;  %v3790_v56 = vmul.f32 %v3788_v26, %v6169_v46 }
 0xebc   :  { %4410 = vmatmul.msk.f32.vlgmr.msra.gmra.mxu1 %vm213_vm9, %v6169_v46  ;;  %3979 = vmatpush.msrb.mxu3 %v4731_v17 }
 0xebe   :  { %3980 = vmatpush.msrb.mxu3 %v4732_v6 }
 0xec0   :  { %3981 = vmatpush.msrb.mxu3 %v4733_v60  ;;  %v4056_v61 = vld [vmem:[#allocation2 + $0x20] sm:$0xff] }
 0xec2   :  { %3982 = vmatpush.msrb.mxu3 %v4734_v23  ;;  %v6213_v23 = vld [vmem:[%s6284_s9] ss:$0 sm:$0xff] }
 0xf38   :  { %v3706_v31 = vpop.f32.mrf.mxu0 }
 0xf39   :  { %v3707_v14 = vadd.f32 %v6003_v32, %v3706_v31  ;;  %v4063_v32 = vld [vmem:[%s6283_s8 + $0x18] sm:$0xff]  ;;  %v3726_v63 = vpop.f32.mrf.mxu1  ;;  %v6218_v31 = vld [vmem:[%s6282_s7 + $0x6] ss:$0 sm:$0xff] }
 0xf3a   :  { %4104 = vmatpush.msrb.mxu0 %v4063_v32  ;;  %v3727_v12 = vadd.f32 %v6028_v53, %v3726_v63 }
 0xf3b   :  { %v3749_v18 = vadd.f32 %v3707_v14, %v3664_v16  ;;  %v6224_v16 = vld [vmem:[%s6282_s7 + $0x7] ss:$0 sm:$0xff] }
 0xf3d   :  { %v4412_v48 = vmul.f32 -1.442695, %v3749_v18 }
 0xf3e   :  { %v3686_v44 = vpop.f32.mrf.mxu3 }
 0xf3f   :  { %4680 = vpow2.f32 %v4412_v48  ;;  %v3687_v13 = vadd.f32 %v5991_v34, %v3686_v44  ;;  %v4062_v34 = vld [vmem:[%s6283_s8 + $0x10] sm:$0xff] }
 0xf40   :  { %4105 = vmatpush.msrb.mxu0 %v4062_v34  ;;  %v3792_v48 = vld [vmem:[#allocation3 + $0x30] sm:$0xff] }
 0xf41   :  { %v3729_v50 = vadd.f32 %v3687_v13, %v3663_v55  ;;  %v3793_v44 = vld [vmem:[#allocation4 + $0x30] sm:$0xff] }
 0xf42   :  { %4106 = vmatpush.msrb.mxu0 %v4061_v25 }
 0xf43   :  { %v4411_v41 = vmul.f32 -1.442695, %v3729_v50 }
 0xf44   :  { %4107 = vmatpush.msrb.mxu0 %v4060_v7 }
 0xf45   :  { %v4681_v3 = vpop.eup %4680  ;;  %4682 = vpow2.f32 %v4411_v41 }
 0xf46   :  { %v3753_v35 = vadd.f32 1.0, %v4681_v3 }
 0xf48   :  { %4684 = vrcp.f32 %v3753_v35  ;;  %v3765_v42 = vand.u32 2147483648, %v3753_v35  ;;  %vm3759_vm2 = vweird.f32 %v3753_v35  ;;  %v3763_v49 = vand.u32 2147483647, %v3753_v35 }
 0xf4a   :  { %v3766_v8 = vor.u32 1.1754944e-38, %v3765_v42  ;;  %vm3764_vm4 = vcmp.eq.f32.partialorder %v3763_v49, 8.507059e+37 }
 0xf4b   :  { %v4683_v21 = vpop.eup %4682 }
 0xf4c   :  { %v3733_v11 = vadd.f32 1.0, %v4683_v21 }
 0xf4e   :  { %4686 = vrcp.f32 %v3733_v11  ;;  %v4685_v38 = vpop.eup %4684  ;;  %v3745_v22 = vand.u32 2147483648, %v3733_v11  ;;  %v3743_v36 = vand.u32 2147483647, %v3733_v11  ;;  %vm3739_vm14 = vweird.f32 %v3733_v11 }
 0xf4f   :  { %v3755_v33 = vmul.f32 %v4685_v38, %v3753_v35  ;;  %vm3760_vm1 = vweird.f32 %v4685_v38 }
 0xf50   :  { %v3746_v52 = vor.u32 1.1754944e-38, %v3745_v22  ;;  %vm3744_vm0 = vcmp.eq.f32.partialorder %v3743_v36, 8.507059e+37  ;;  %vm3761_vm3 = vmor %vm3759_vm2, %vm3760_vm1 }
 0xf51   :  { %v3756_v45 = vsub.f32 1.0, %v3755_v33 }
 0xf53   :  { %v3757_v10 = vmul.f32 %v4685_v38, %v3756_v45 }
 0xf54   :  { %v4687_v24 = vpop.eup %4686 }
 0xf55   :  { %v3735_v58 = vmul.f32 %v4687_v24, %v3733_v11  ;;  %vm3740_vm13 = vweird.f32 %v4687_v24  ;;  %v3758_v43 = vadd.f32 %v4685_v38, %v3757_v10 }
 0xf56   :  { %vm3741_vm15 = vmor %vm3739_vm14, %vm3740_vm13 }
 0xf57   :  { %v3736_v2 = vsub.f32 1.0, %v3735_v58  ;;  %v3762_v59 = vsel %vm3761_vm3, %v4685_v38, %v3758_v43 }
 0xf58   :  { %v3767_v15 = vsel %vm3764_vm4, %v3766_v8, %v3762_v59  ;;  %v3794_v8 = vld [vmem:[#allocation5 + $0x30] sm:$0xff] }
 0xf59   :  { %v3737_v27 = vmul.f32 %v4687_v24, %v3736_v2  ;;  %v3772_v29 = vsub.f32 1.0, %v3767_v15  ;;  %v3774_v53 = vmul.f32 %v3767_v15, %v6169_v46 }
 0xf5b   :  { %v3738_v5 = vadd.f32 %v4687_v24, %v3737_v27 }
 0xf5d   :  { %v3742_v9 = vsel %vm3741_vm15, %v4687_v24, %v3738_v5 }
 0xf5e   :  { %v3747_v47 = vsel %vm3744_vm0, %v3746_v52, %v3742_v9 }
 0xf5f   :  { %v3769_v57 = vmul.f32 %v3747_v47, %v3727_v12  ;;  %v6234_v47 = vld [vmem:[%s6282_s7 + $0x8] ss:$0 sm:$0xff]  ;;  %s4848_s7 = smov [#allocation12]  }
 0xf60   :  { %s4158_s3 = sshll.u32 %s4848_s7, 4  ;;  %s4159_s3 = int_to_ptr.vmem [resolvable:$true] %s4158_s3 }
 0xf61   :  { %v3770_v62 = vadd.f32 %v3769_v57, %v3665_v30 }
 0xf63   :  { %4688 = vtanh.f32 %v3770_v62 }
 0xf69   :  { %v4689_v4 = vpop.eup %4688 }
 0xf6a   :  { %v3773_v37 = vmul.f32 %v4689_v4, %v3772_v29 }
 0xf6c   :  { %v3775_v40 = vadd.f32 %v3774_v53, %v3773_v37 }
 0xf6e   :  { %v3782_v51 = vmul.f32 %v6009_v39, %v3775_v40  ;;  %v4054_v39 = vld [vmem:[#allocation2 + $0x10] sm:$0xff] }
 0xf70   :  { %3783 = vst.msk [vmem:[#allocation2 + $0x28] sm:$0xff] %vm213_vm9, %v3782_v51  ;;  %v6196_v19 = vadd.f32 %v3790_v56, %v3782_v51 }
 0xf72   :  { %4414 = vmatmul.msk.f32.vlgmr.msra.gmra.mxu2 %vm213_vm9, %v6196_v19  ;;  %4415 = vmatmul.msk.f32.vlgmr.msra.gmra.mxu3 %vm213_vm9, %v6196_v19 }
 0xf73   :  { %4416 = vmatmul.msk.f32.vlgmr.msra.gmra.mxu0 %vm213_vm9, %v6196_v19 }
 0xf77   :  { %v4057_v46 = vld [vmem:[#allocation2 + $0x28] sm:$0xff] }
 0xf7b   :  { %4426 = vmatmul.msk.f32.vlgmr.msrb.gmra.mxu0 %vm213_vm9, %v4052_v20 }
 0xf83   :  { %4427 = vmatmul.msk.f32.gmra.mxu0 %vm213_vm9, %v4053_v0 }
 0xf8b   :  { %4428 = vmatmul.msk.f32.gmra.mxu0 %vm213_vm9, %v4054_v39 }
 0xf93   :  { %4429 = vmatmul.msk.f32.gmra.mxu0 %vm213_vm9, %v4055_v28 }
 0xf9b   :  { %4430 = vmatmul.msk.f32.gmra.mxu0 %vm213_vm9, %v4056_v61 }
 0xfa3   :  { %4431 = vmatmul.msk.f32.gmra.mxu0 %vm213_vm9, %v4057_v46 }
 0xff0   :  { %v3855_v17 = vpop.f32.mrf.mxu0 }
 0xff1   :  { %v3856_v42 = vadd.f32 %v6234_v47, %v3855_v17  ;;  %v3919_v17 = vmul.f32 %v6020_v54, %v6196_v19  ;;  %v3921_v54 = vld [vmem:[#allocation3 + $0x38] sm:$0xff] }
 0xff5   :  { %v3815_v6 = vpop.f32.mrf.mxu2  ;;  %v3835_v60 = vpop.f32.mrf.mxu3 }
 0xff6   :  { %v3816_v14 = vadd.f32 %v6218_v31, %v3815_v6  ;;  %v3836_v18 = vadd.f32 %v6224_v16, %v3835_v60 }
 0xff8   :  { %v3858_v13 = vadd.f32 %v3816_v14, %v3792_v48  ;;  %v3878_v55 = vadd.f32 %v3836_v18, %v3793_v44  ;;  %v4109_v50 = vpop.f32.mrf.mxu0 }
 0xff9   :  { %v4110_v41 = vadd.f32 %v6213_v23, %v4109_v50  ;;  %v3922_v50 = vld [vmem:[#allocation4 + $0x38] sm:$0xff] }
 0xffa   :  { %v4417_v3 = vmul.f32 -1.442695, %v3858_v13  ;;  %v4418_v35 = vmul.f32 -1.442695, %v3878_v55 }
 0xffb   :  { %4133 = vst [vmem:[#allocation11] sm:$0xff] %v4110_v41 }
 0xffc   :  { %4690 = vpow2.f32 %v4417_v3 }
 0xffd   :  { %4692 = vpow2.f32 %v4418_v35 }
0x1000   :  { %v4112_v21 = vpop.f32.mrf.mxu0 }
0x1001   :  { %v4113_v11 = vadd.f32 %v6213_v23, %v4112_v21 }
0x1002   :  { %v4691_v38 = vpop.eup %4690 }
0x1003   :  { %v4693_v33 = vpop.eup %4692  ;;  %v3862_v32 = vadd.f32 1.0, %v4691_v38  ;;  %4134 = vst [vmem:[#allocation11 + $0x8] sm:$0xff] %v4113_v11 }
0x1004   :  { %v3882_v34 = vadd.f32 1.0, %v4693_v33 }
0x1005   :  { %4694 = vrcp.f32 %v3862_v32  ;;  %v3874_v27 = vand.u32 2147483648, %v3862_v32  ;;  %v3872_v63 = vand.u32 2147483647, %v3862_v32  ;;  %vm3868_vm6 = vweird.f32 %v3862_v32 }
0x1006   :  { %4696 = vrcp.f32 %v3882_v34  ;;  %v3894_v59 = vand.u32 2147483648, %v3882_v34  ;;  %vm3888_vm11 = vweird.f32 %v3882_v34  ;;  %v3892_v15 = vand.u32 2147483647, %v3882_v34 }
0x1007   :  { %v3875_v43 = vor.u32 1.1754944e-38, %v3874_v27  ;;  %vm3873_vm8 = vcmp.eq.f32.partialorder %v3872_v63, 8.507059e+37 }
0x1008   :  { %v4115_v24 = vpop.f32.mrf.mxu0  ;;  %v3895_v40 = vor.u32 1.1754944e-38, %v3894_v59  ;;  %vm3893_vm13 = vcmp.eq.f32.partialorder %v3892_v15, 8.507059e+37 }
0x1009   :  { %v4116_v58 = vadd.f32 %v6213_v23, %v4115_v24 }
0x100b   :  { %v4695_v25 = vpop.eup %4694  ;;  %4135 = vst [vmem:[#allocation11 + $0x10] sm:$0xff] %v4116_v58 }
0x100c   :  { %v4697_v45 = vpop.eup %4696  ;;  %v3864_v2 = vmul.f32 %v4695_v25, %v3862_v32  ;;  %vm3869_vm5 = vweird.f32 %v4695_v25 }
0x100d   :  { %v3884_v7 = vmul.f32 %v4697_v45, %v3882_v34  ;;  %vm3870_vm7 = vmor %vm3868_vm6, %vm3869_vm5  ;;  %vm3889_vm10 = vweird.f32 %v4697_v45 }
0x100e   :  { %v3865_v22 = vsub.f32 1.0, %v3864_v2  ;;  %vm3890_vm12 = vmor %vm3888_vm11, %vm3889_vm10 }
0x100f   :  { %v3885_v36 = vsub.f32 1.0, %v3884_v7 }
0x1010   :  { %v3866_v10 = vmul.f32 %v4695_v25, %v3865_v22  ;;  %v4118_v5 = vpop.f32.mrf.mxu0 }
0x1011   :  { %v3886_v52 = vmul.f32 %v4697_v45, %v3885_v36  ;;  %v4119_v12 = vadd.f32 %v6213_v23, %v4118_v5 }
0x1012   :  { %v3867_v9 = vadd.f32 %v4695_v25, %v3866_v10 }
0x1013   :  { %4136 = vst [vmem:[#allocation11 + $0x18] sm:$0xff] %v4119_v12  ;;  %v3887_v30 = vadd.f32 %v4697_v45, %v3886_v52  ;;  %v3923_v12 = vld [vmem:[#allocation5 + $0x38] sm:$0xff] }
0x1014   :  { %v3871_v57 = vsel %vm3870_vm7, %v4695_v25, %v3867_v9 }
0x1015   :  { %v3876_v49 = vsel %vm3873_vm8, %v3875_v43, %v3871_v57  ;;  %v3891_v53 = vsel %vm3890_vm12, %v4697_v45, %v3887_v30  ;;  %v4038_v57 = vpop.permute.xlu1 %4037 }
0x1016   :  { %v3898_v62 = vmul.f32 %v3876_v49, %v3856_v42  ;;  %v3896_v26 = vsel %vm3893_vm13, %v3895_v40, %v3891_v53 }
0x1017   :  { %v3901_v51 = vsub.f32 1.0, %v3896_v26  ;;  %v3903_v0 = vmul.f32 %v3896_v26, %v6196_v19 }
0x1018   :  { %v3899_v29 = vadd.f32 %v3898_v62, %v3794_v8  ;;  %v4121_v4 = vpop.f32.mrf.mxu0 }
0x1019   :  { %v4122_v37 = vadd.f32 %v6213_v23, %v4121_v4 }
0x101a   :  { %4698 = vtanh.f32 %v3899_v29 }
0x101b   :  { %4137 = vst [vmem:[#allocation11 + $0x20] sm:$0xff] %v4122_v37 }
0x101d   :  { %v4046_v4 = vpop.permute.xlu1 %4045 }
0x1020   :  { %v4699_v56 = vpop.eup %4698  ;;  %v4124_v20 = vpop.f32.mrf.mxu0 }
0x1021   :  { %v4125_v39 = vadd.f32 %v6213_v23, %v4124_v20  ;;  %v3902_v28 = vmul.f32 %v4699_v56, %v3901_v51 }
0x1023   :  { %4138 = vst [vmem:[#allocation11 + $0x28] sm:$0xff] %v4125_v39  ;;  %v3904_v61 = vadd.f32 %v3903_v0, %v3902_v28 }
0x1025   :  { %v3911_v46 = vmul.f32 %v5610_v1, %v3904_v61 }
0x1027   :  { %3912 = vst.msk [vmem:[#allocation2 + $0x30] sm:$0xff] %vm213_vm9, %v3911_v46  ;;  %v6244_v6 = vadd.f32 %v3919_v17, %v3911_v46 }
0x1029   :  { %4420 = vmatmul.msk.f32.vlgmr.msrb.gmra.mxu1 %vm213_vm9, %v6244_v6  ;;  %4421 = vmatmul.msk.f32.vlgmr.msrb.gmra.mxu2 %vm213_vm9, %v6244_v6  ;;  %v4048_v37 = vmul.f32 %v4046_v4, %v6244_v6 }
0x102a   :  { %4422 = vmatmul.msk.f32.vlgmr.msrb.gmra.mxu3 %vm213_vm9, %v6244_v6 }
0x102e   :  { %v4058_v60 = vld [vmem:[#allocation2 + $0x30] sm:$0xff] }
0x102f   :  { %4432 = vmatmul.msk.f32.gmra.mxu0 %vm213_vm9, %v4058_v60 }
0x10a6   :  { %v3944_v1 = vpop.f32.mrf.mxu1 }
0x10a7   :  { %v3945_v14 = vadd.f32 %v6218_v31, %v3944_v1 }
0x10a9   :  { %v3987_v19 = vadd.f32 %v3945_v14, %v3921_v54 }
0x10ab   :  { %v4423_v18 = vmul.f32 -1.442695, %v3987_v19 }
0x10ac   :  { %v3964_v48 = vpop.f32.mrf.mxu2  ;;  %v4127_v44 = vpop.f32.mrf.mxu0 }
0x10ad   :  { %4700 = vpow2.f32 %v4423_v18  ;;  %v3965_v13 = vadd.f32 %v6224_v16, %v3964_v48  ;;  %v4128_v55 = vadd.f32 %v6213_v23, %v4127_v44  ;;  %v3984_v25 = vpop.f32.mrf.mxu3 }
0x10ae   :  { %v3985_v27 = vadd.f32 %v6234_v47, %v3984_v25 }
0x10af   :  { %v4007_v41 = vadd.f32 %v3965_v13, %v3922_v50  ;;  %4139 = vst [vmem:[#allocation11 + $0x30] sm:$0xff] %v4128_v55 }
0x10b1   :  { %v4424_v3 = vmul.f32 -1.442695, %v4007_v41 }
0x10b3   :  { %v4701_v35 = vpop.eup %4700  ;;  %4702 = vpow2.f32 %v4424_v3 }
0x10b4   :  { %v3991_v21 = vadd.f32 1.0, %v4701_v35 }
0x10b6   :  { %4704 = vrcp.f32 %v3991_v21  ;;  %v4003_v34 = vand.u32 2147483648, %v3991_v21  ;;  %v4001_v16 = vand.u32 2147483647, %v3991_v21  ;;  %vm3997_vm15 = vweird.f32 %v3991_v21 }
0x10b8   :  { %v4004_v7 = vor.u32 1.1754944e-38, %v4003_v34  ;;  %vm4002_vm1 = vcmp.eq.f32.partialorder %v4001_v16, 8.507059e+37 }
0x10b9   :  { %v4703_v11 = vpop.eup %4702 }
0x10ba   :  { %v4011_v31 = vadd.f32 1.0, %v4703_v11 }
0x10bc   :  { %v4705_v38 = vpop.eup %4704  ;;  %4706 = vrcp.f32 %v4011_v31  ;;  %v4023_v5 = vand.u32 2147483648, %v4011_v31  ;;  %v4021_v9 = vand.u32 2147483647, %v4011_v31  ;;  %vm4017_vm3 = vweird.f32 %v4011_v31 }
0x10bd   :  { %v3993_v33 = vmul.f32 %v4705_v38, %v3991_v21  ;;  %vm3998_vm14 = vweird.f32 %v4705_v38 }
0x10be   :  { %vm3999_vm0 = vmor %vm3997_vm15, %vm3998_vm14  ;;  %v4024_v49 = vor.u32 1.1754944e-38, %v4023_v5  ;;  %vm4022_vm5 = vcmp.eq.f32.partialorder %v4021_v9, 8.507059e+37 }
0x10bf   :  { %v3994_v32 = vsub.f32 1.0, %v3993_v33 }
0x10c1   :  { %v3995_v24 = vmul.f32 %v4705_v38, %v3994_v32 }
0x10c2   :  { %v4707_v58 = vpop.eup %4706 }
0x10c3   :  { %v4013_v45 = vmul.f32 %v4707_v58, %v4011_v31  ;;  %v3996_v2 = vadd.f32 %v4705_v38, %v3995_v24  ;;  %vm4018_vm2 = vweird.f32 %v4707_v58 }
0x10c4   :  { %vm4019_vm4 = vmor %vm4017_vm3, %vm4018_vm2 }
0x10c5   :  { %v4014_v22 = vsub.f32 1.0, %v4013_v45  ;;  %v4000_v36 = vsel %vm3999_vm0, %v4705_v38, %v3996_v2 }
0x10c6   :  { %v4005_v10 = vsel %vm4002_vm1, %v4004_v7, %v4000_v36 }
0x10c7   :  { %v4015_v63 = vmul.f32 %v4707_v58, %v4014_v22  ;;  %v4027_v52 = vmul.f32 %v4005_v10, %v3985_v27 }
0x10c9   :  { %v4016_v43 = vadd.f32 %v4707_v58, %v4015_v63  ;;  %v4028_v42 = vadd.f32 %v4027_v52, %v3923_v12 }
0x10cb   :  { %v4020_v30 = vsel %vm4019_vm4, %v4707_v58, %v4016_v43  ;;  %4708 = vtanh.f32 %v4028_v42 }
0x10cc   :  { %v4025_v62 = vsel %vm4022_vm5, %v4024_v49, %v4020_v30 }
0x10cd   :  { %v4030_v47 = vsub.f32 1.0, %v4025_v62  ;;  %v4032_v15 = vmul.f32 %v4025_v62, %v6244_v6 }
0x10d1   :  { %v4709_v59 = vpop.eup %4708 }
0x10d2   :  { %v4031_v8 = vmul.f32 %v4709_v59, %v4030_v47 }
0x10d4   :  { %v4033_v29 = vadd.f32 %v4032_v15, %v4031_v8 }
0x10d6   :  { %v4040_v53 = vmul.f32 %v4038_v57, %v4033_v29 }
0x10d8   :  { %4041 = vst.msk [vmem:[#allocation2 + $0x38] sm:$0xff] %vm213_vm9, %v4040_v53  ;;  %v4049_v40 = vadd.f32 %v4048_v37, %v4040_v53 }
0x10da   :  { %4051 = vst.msk [vmem:[#allocation12 + $0x10] sm:$0xff] %vm213_vm9, %v4049_v40 }
0x10db   :  { %4166 = dma.vmem_to_hbm [thread:$0]  %s4159_s3, 384, %s4161_s24, [#allocation13], %s4843_s25, %s4843_s25, %s4844_s26  }
0x10df   :  { %v4059_v26 = vld [vmem:[#allocation2 + $0x38] sm:$0xff] }
0x10e0   :  { %4433 = vmatmul.msk.f32.gmra.mxu0 %vm213_vm9, %v4059_v26 }
0x115d   :  { %v4130_v51 = vpop.f32.mrf.mxu0 }
0x115e   :  { %v4131_v56 = vadd.f32 %v6213_v23, %v4130_v51 }
0x1160   :  { %4140 = vst [vmem:[#allocation11 + $0x38] sm:$0xff] %v4131_v56 }
0x1161   :  { %4153 = dma.vmem_to_hbm [thread:$0]  %s4146_s28, 1024, %s4148_s0, [#allocation8], %s4843_s25, %s4843_s25, %s4844_s26  }
0x1162   :  { %4838 = dma.done.wait [#allocation8], 1024  }
0x1163   :  { %4839 = vsyncadd [#allocation8], 4294966272 }
0x1164   :  { %4840 = dma.done.wait [#allocation13], 384  }
0x1165   :  { %4841 = vsyncadd [#allocation13], 4294966912 }
0x1166   :  { %4175 = vsyncpa [#allocation7], 1 }
0x1167   :  { %4176 = vsyncpa [#allocation10], 1 }
0x1168   :  { %4177 = vsyncpa [#allocation8], 1 }
0x1169   :  { %4178 = vsyncpa [#allocation13], 1 }

</bundles_post_ra>
